<compile_context>
chip_gen: v6e
topology: v6e:2x2x1
jax: 0.10.0
libtpu: 0.0.40
codegen_flags: <defaults>
</compile_context>

<pallas_src>
import numpy as np
import jax
import jax.numpy as jnp
from jax.experimental import pallas as pl
from jax.experimental.pallas import tpu as pltpu

# Model hyper-parameters (from the PyTorch Namespace + fc1 in-features 20*33=660)
NUM_VOCAB = 200
EMBED_DIM = 100
HIDDEN = 20
NUM_LAYERS = 3
SEQ_LEN = 33          # hidden_size * 33 = fc1 in-features
BATCH = 2


def lstm_embed_kernel(g0w_ref,                         # (T+2, B, 12H) layer-0 gate pre-acts, gate-kind layout
                      wbig_ref,                        # (3H, 12H) bf16 fused recurrent weight
                      bias_ref,                        # (1, 12H) f32 bias slab (b1,b2 scattered; layer0 zero)
                      w1r_ref, bfc1_ref,               # (T,H,32) (1,32)
                      w2_ref, bfc2_ref,                # (32,16) (1,16)
                      w3_ref, bfc3_ref,                # (16,2)  (1,2)
                      out_ref,                         # (B, 2)
                      h2_scr):                         # VMEM scratch (T, B, H): relu(h2_t)
    TP2, B, GW = g0w_ref.shape
    T = TP2 - 2
    H3 = wbig_ref.shape[0]            # 3H = 60
    H = H3 // 3
    NFC1 = w1r_ref.shape[2]

    def dot(a, b):
        return jnp.dot(a, b, preferred_element_type=jnp.float32)

    # ---- hoisted (read / broadcast once) ------------------------------------------
    wbig = wbig_ref[...]                                   # (3H, 12H) bf16
    bias = jnp.broadcast_to(bias_ref[...], (B, GW))        # (B, 12H) f32

    # State for all three layers in one contiguous slab: [h0 | h1 | h2].
    h_all = jnp.zeros((B, H3), jnp.float32)
    c_all = jnp.zeros((B, H3), jnp.float32)

    # ---- wave-pipelined, statically unrolled recurrence ----------------------------
    # Wave step t: layer0 @ t, layer1 @ t-1, layer2 @ t-2.  All three cells consume
    # the PREVIOUS step's h slab, so one fused matmul + one slab cell is legal.
    for t in range(T + 2):
        # single recurrent MXU push per step (bf16 operands, f32 accumulation)
        big = dot(h_all.astype(jnp.bfloat16), wbig)        # (B, 12H)
        gates = big + g0w_ref[t] + bias                    # layer-0 proj/bias live in g0w

        # full-slab EUP pushes, then 4 gate-kind slices (60 lanes each)
        sg = jax.nn.sigmoid(gates)
        tg = jnp.tanh(gates)
        i_all = sg[:, 0:H3]
        f_all = sg[:, H3:2 * H3]
        g_all = tg[:, 2 * H3:3 * H3]
        o_all = sg[:, 3 * H3:4 * H3]

        c_new = f_all * c_all + i_all * g_all              # one (B,60) slab update
        h_new = o_all * jnp.tanh(c_new)

        if t >= 2:
            # layer-2 output for timestep t-2 -> fc1 operand scratch (off critical path)
            h2_scr[t - 2] = jnp.maximum(h_new[:, 2 * H:3 * H], 0.0)

        if 2 <= t <= T - 1:
            # steady state: all three layers valid, no masking
            h_all, c_all = h_new, c_new
        else:
            # ramp-up / drain (only 4 of T+2 steps): static contiguous lane-range mask
            lo = 0 if t < T else (H if t == T else 2 * H)
            hi = H3 if t >= 2 else (2 * H if t == 1 else H)
            lane = jax.lax.broadcasted_iota(jnp.int32, (B, H3), 1)
            m = (lane >= lo) & (lane < hi)
            h_all = jnp.where(m, h_new, h_all)
            c_all = jnp.where(m, c_new, c_all)

    # ---- fc1 contraction, now entirely off the serial recurrence -------------------
    # flatten(h2)[b, t*H + k] @ W1^T  ==  sum_t relu(h2_t) @ W1r[t]
    acc = jnp.zeros((B, NFC1), jnp.float32)
    for t in range(T):
        acc = acc + dot(h2_scr[t], w1r_ref[t])

    # ---- FC head: fc1 bias, relu, fc2, fc3, softmax(dim=1) -------------------------
    z1 = acc + bfc1_ref[...]                                        # (B, 32)
    z2 = dot(jnp.maximum(z1, 0.0), w2_ref[...]) + bfc2_ref[...]     # (B, 16)
    z3 = dot(z2, w3_ref[...]) + bfc3_ref[...]                       # (B, 2)
    z3 = z3 - jnp.max(z3, axis=1, keepdims=True)
    e = jnp.exp(z3)
    out_ref[...] = e / jnp.sum(e, axis=1, keepdims=True)


def init_params(key):
    ks = jax.random.split(key, 24)
    ki = iter(ks)

    def u(k, shape, scale):
        return jax.random.uniform(k, shape, jnp.float32, -scale, scale)

    s_lstm = 1.0 / np.sqrt(HIDDEN)
    params = {
        "emb": jax.random.normal(next(ki), (NUM_VOCAB, EMBED_DIM), jnp.float32),
        # layer 0
        "wih0": u(next(ki), (EMBED_DIM, 4 * HIDDEN), s_lstm),
        "whh0": u(next(ki), (HIDDEN, 4 * HIDDEN), s_lstm),
        "b0":   u(next(ki), (1, 4 * HIDDEN), s_lstm),     # b_ih + b_hh combined
        # layer 1
        "wih1": u(next(ki), (HIDDEN, 4 * HIDDEN), s_lstm),
        "whh1": u(next(ki), (HIDDEN, 4 * HIDDEN), s_lstm),
        "b1":   u(next(ki), (1, 4 * HIDDEN), s_lstm),
        # layer 2
        "wih2": u(next(ki), (HIDDEN, 4 * HIDDEN), s_lstm),
        "whh2": u(next(ki), (HIDDEN, 4 * HIDDEN), s_lstm),
        "b2":   u(next(ki), (1, 4 * HIDDEN), s_lstm),
        # fc1 stored directly as (T, H, 32) == W1^T reshaped
        "w1r":  u(next(ki), (SEQ_LEN, HIDDEN, 32), 1.0 / np.sqrt(HIDDEN * SEQ_LEN)),
        "bfc1": u(next(ki), (1, 32), 1.0 / np.sqrt(HIDDEN * SEQ_LEN)),
        "w2":   u(next(ki), (32, 16), 1.0 / np.sqrt(32)),
        "bfc2": u(next(ki), (1, 16), 1.0 / np.sqrt(32)),
        "w3":   u(next(ki), (16, 2), 1.0 / np.sqrt(16)),
        "bfc3": u(next(ki), (1, 2), 1.0 / np.sqrt(16)),
    }
    return params


def embed_lookup(seq_in, emb_w):
    # nn.Embedding(max_norm=1, norm_type=2): rows with L2 norm > 1 rescaled to norm 1.
    # Gather first, renormalize only the looked-up rows (66, not 200).
    rows = emb_w[seq_in]                                             # (B, T, E)
    norms = jnp.sqrt(jnp.sum(rows * rows, axis=-1, keepdims=True))
    scale = jnp.where(norms > 1.0, 1.0 / (norms + 1e-7), 1.0)
    return rows * scale


def _lstm_embed_forward(seq_in, params):
    B, T = seq_in.shape
    H = HIDDEN
    H3 = 3 * H
    GW = 12 * H

    x = embed_lookup(seq_in, params["emb"])                               # (B, T, E)

    # Layer-0 input projection hoisted out of the serial recurrence (one batched
    # (B*T, E) @ (E, 4H) contraction done by XLA, off the latency-critical path).
    g0 = jnp.einsum("bte,eg->btg", x, params["wih0"]) + params["b0"]      # (B, T, 4H)

    # ---- gate-kind-grouped layouts: columns are [i0 i1 i2 | f0 f1 f2 | g...| o...] -
    def kind_blocks(w):
        return [w[:, k * H:(k + 1) * H] for k in range(4)]

    whh0_k = kind_blocks(params["whh0"])
    wih1_k = kind_blocks(params["wih1"])
    whh1_k = kind_blocks(params["whh1"])
    wih2_k = kind_blocks(params["wih2"])
    whh2_k = kind_blocks(params["whh2"])
    zh = jnp.zeros((H, H), jnp.float32)

    # W_big rows: [h0 | h1 | h2]; block structure per gate kind k:
    #   layer0 col <- whh0_k ; layer1 col <- wih1_k / whh1_k ; layer2 col <- wih2_k / whh2_k
    cols = []
    for k in range(4):
        cols.append(jnp.concatenate([whh0_k[k], zh, zh], axis=0))
        cols.append(jnp.concatenate([wih1_k[k], whh1_k[k], zh], axis=0))
        cols.append(jnp.concatenate([zh, wih2_k[k], whh2_k[k]], axis=0))
    wbig = jnp.concatenate(cols, axis=1).astype(jnp.bfloat16)             # (3H, 12H) bf16

    # bias slab: layer0 lanes zero (b0 already folded into g0), b1/b2 scattered by kind
    zb = jnp.zeros((1, H), jnp.float32)
    bias_parts = []
    for k in range(4):
        bias_parts += [zb,
                       params["b1"][:, k * H:(k + 1) * H],
                       params["b2"][:, k * H:(k + 1) * H]]
    bias_slab = jnp.concatenate(bias_parts, axis=1)                       # (1, 12H)

    # layer-0 gate pre-acts scattered into the 12H gate-kind layout, zero elsewhere;
    # padded with 2 zero wave steps for the pipeline drain.
    z2h = jnp.zeros((B, T, 2 * H), jnp.float32)
    g0_parts = []
    for k in range(4):
        g0_parts += [g0[:, :, k * H:(k + 1) * H], z2h]
    g0w = jnp.concatenate(g0_parts, axis=2)                               # (B, T, 12H)
    g0w = jnp.transpose(g0w, (1, 0, 2)).astype(jnp.float32)               # (T, B, 12H)
    g0w = jnp.concatenate([g0w, jnp.zeros((2, B, GW), jnp.float32)], axis=0)

    args = [g0w, wbig, bias_slab,
            params["w1r"], params["bfc1"],
            params["w2"], params["bfc2"],
            params["w3"], params["bfc3"]]

    vmem = pl.BlockSpec(memory_space=pltpu.MemorySpace.VMEM)
    return pl.pallas_call(
        lstm_embed_kernel,
        out_shape=jax.ShapeDtypeStruct((B, 2), jnp.float32),
        in_specs=[vmem] * len(args),
        out_specs=vmem,
        scratch_shapes=[pltpu.VMEM((T, B, H), jnp.float32)],
    )(*args)


# single dispatch: wrapper prep (renorm-after-gather, layer-0 einsum, weight packing)
# fuses with the pallas_call under one jit.
lstm_embed_forward = jax.jit(_lstm_embed_forward)


def reference_forward(seq_in, params):
    """Pure-JAX (non-Pallas) reference for correctness checking."""
    x = embed_lookup(seq_in, params["emb"])        # (B, T, E)
    B = seq_in.shape[0]

    def run_layer(inp, wih, whh, b):
        h = jnp.zeros((B, HIDDEN), jnp.float32)
        c = jnp.zeros((B, HIDDEN), jnp.float32)
        outs = []
        for t in range(SEQ_LEN):
            g = inp[:, t, :] @ wih + h @ whh + b
            i_g = jax.nn.sigmoid(g[:, :HIDDEN])
            f_g = jax.nn.sigmoid(g[:, HIDDEN:2 * HIDDEN])
            g_g = jnp.tanh(g[:, 2 * HIDDEN:3 * HIDDEN])
            o_g = jax.nn.sigmoid(g[:, 3 * HIDDEN:])
            c = f_g * c + i_g * g_g
            h = o_g * jnp.tanh(c)
            outs.append(h)
        return jnp.stack(outs, axis=1)             # (B, T, H)

    h1 = run_layer(x, params["wih0"], params["whh0"], params["b0"])
    h1 = run_layer(h1, params["wih1"], params["whh1"], params["b1"])
    h1 = run_layer(h1, params["wih2"], params["whh2"], params["b2"])
    h1_flat = h1.reshape(B, SEQ_LEN * HIDDEN)      # torch.flatten(h1, 1, 2)
    w1 = params["w1r"].reshape(SEQ_LEN * HIDDEN, 32)
    z1 = jnp.maximum(h1_flat, 0.0) @ w1 + params["bfc1"]
    z2 = jnp.maximum(z1, 0.0) @ params["w2"] + params["bfc2"]
    z3 = z2 @ params["w3"] + params["bfc3"]
    return jax.nn.softmax(z3, axis=1)


if __name__ == "__main__":
    key = jax.random.PRNGKey(0)
    kp, kx = jax.random.split(key)
    params = init_params(kp)
    seq_in = jax.random.randint(kx, (BATCH, SEQ_LEN), 0, NUM_VOCAB, dtype=jnp.int32)

    out = lstm_embed_forward(seq_in, params)
    out = jax.block_until_ready(out)

    ref = reference_forward(seq_in, params)
    # bf16 operands on the recurrent MXU matmul (f32 state/accumulation) change
    # rounding on a 33-step chain; tolerance relaxed accordingly (outputs are
    # 2-class softmax probabilities, observed error is O(1e-3)).
    np.testing.assert_allclose(np.asarray(out), np.asarray(ref), rtol=2e-2, atol=5e-3)

    print("KERNEL_OK")
</pallas_src>

<mosaic_0001>
module attributes {stable_mosaic.version = 11 : i64} {
  func.func @lstm_embed_kernel(%arg0: memref<35x2x240xf32, #tpu.memory_space<vmem>>, %arg1: memref<60x240xbf16, #tpu.memory_space<vmem>>, %arg2: memref<1x240xf32, #tpu.memory_space<vmem>>, %arg3: memref<33x20x32xf32, #tpu.memory_space<vmem>>, %arg4: memref<1x32xf32, #tpu.memory_space<vmem>>, %arg5: memref<32x16xf32, #tpu.memory_space<vmem>>, %arg6: memref<1x16xf32, #tpu.memory_space<vmem>>, %arg7: memref<16x2xf32, #tpu.memory_space<vmem>>, %arg8: memref<1x2xf32, #tpu.memory_space<vmem>>, %arg9: memref<2x2xf32, #tpu.memory_space<vmem>>, %arg10: memref<33x2x20xf32, #tpu.memory_space<vmem>>) attributes {dimension_semantics = [], scalar_prefetch = 0 : i64, scratch_operands = 1 : i64, tpu.core_type = #tpu.core_type<tc>} {
    %c0 = arith.constant 0 : index
    %c0_0 = arith.constant 0 : index
    %0 = vector.load %arg1[%c0, %c0_0] : memref<60x240xbf16, #tpu.memory_space<vmem>>, vector<60x240xbf16>
    %c0_1 = arith.constant 0 : index
    %c0_2 = arith.constant 0 : index
    %1 = vector.load %arg2[%c0_1, %c0_2] : memref<1x240xf32, #tpu.memory_space<vmem>>, vector<1x240xf32>
    %2 = vector.shape_cast %1 : vector<1x240xf32> to vector<1x240xf32>
    %3 = vector.broadcast %2 : vector<1x240xf32> to vector<2x240xf32>
    %cst = arith.constant 0.000000e+00 : f32
    %4 = vector.broadcast %cst : f32 to vector<2x60xf32>
    %cst_3 = arith.constant 0.000000e+00 : f32
    %5 = vector.broadcast %cst_3 : f32 to vector<2x60xf32>
    %6 = arith.truncf %4 : vector<2x60xf32> to vector<2x60xbf16>
    %cst_4 = arith.constant dense<0.000000e+00> : vector<2x240xf32>
    %7 = tpu.matmul %6, %0, %cst_4 {dimension_numbers = #tpu.dot_dimension_numbers<[1], [0], [0], [1], [0, 0, 1, 1], [], []>} : vector<2x60xbf16>, vector<60x240xbf16>, vector<2x240xf32> -> vector<2x240xf32>
    %c0_5 = arith.constant 0 : index
    %c0_6 = arith.constant 0 : index
    %c0_7 = arith.constant 0 : index
    %8 = vector.load %arg0[%c0_5, %c0_6, %c0_7] : memref<35x2x240xf32, #tpu.memory_space<vmem>>, vector<1x2x240xf32>
    %9 = vector.shape_cast %8 : vector<1x2x240xf32> to vector<2x240xf32>
    %10 = arith.addf %7, %9 : vector<2x240xf32>
    %11 = arith.addf %10, %3 : vector<2x240xf32>
    %12 = arith.negf %11 : vector<2x240xf32>
    %13 = math.exp %12 : vector<2x240xf32>
    %cst_8 = arith.constant 1.000000e+00 : f32
    %14 = vector.broadcast %cst_8 : f32 to vector<2x240xf32>
    %15 = arith.addf %14, %13 : vector<2x240xf32>
    %16 = arith.divf %14, %15 : vector<2x240xf32>
    %17 = math.tanh %11 : vector<2x240xf32>
    %18 = vector.extract_strided_slice %16 {offsets = [0, 0], sizes = [2, 60], strides = [1, 1]} : vector<2x240xf32> to vector<2x60xf32>
    %19 = vector.extract_strided_slice %16 {offsets = [0, 60], sizes = [2, 60], strides = [1, 1]} : vector<2x240xf32> to vector<2x60xf32>
    %20 = vector.extract_strided_slice %17 {offsets = [0, 120], sizes = [2, 60], strides = [1, 1]} : vector<2x240xf32> to vector<2x60xf32>
    %21 = vector.extract_strided_slice %16 {offsets = [0, 180], sizes = [2, 60], strides = [1, 1]} : vector<2x240xf32> to vector<2x60xf32>
    %22 = arith.mulf %19, %5 : vector<2x60xf32>
    %23 = arith.mulf %18, %20 : vector<2x60xf32>
    %24 = arith.addf %22, %23 : vector<2x60xf32>
    %25 = math.tanh %24 : vector<2x60xf32>
    %26 = arith.mulf %21, %25 : vector<2x60xf32>
    %27 = tpu.iota {dimensions = array<i32: 1>} : vector<2x60xi32>
    %c0_i32 = arith.constant 0 : i32
    %28 = vector.broadcast %c0_i32 : i32 to vector<2x60xi32>
    %29 = arith.cmpi sge, %27, %28 : vector<2x60xi32>
    %c20_i32 = arith.constant 20 : i32
    %30 = vector.broadcast %c20_i32 : i32 to vector<2x60xi32>
    %31 = arith.cmpi slt, %27, %30 : vector<2x60xi32>
    %32 = arith.andi %29, %31 : vector<2x60xi1>
    %33 = arith.select %32, %26, %4 : vector<2x60xi1>, vector<2x60xf32>
    %34 = arith.select %32, %24, %5 : vector<2x60xi1>, vector<2x60xf32>
    %35 = arith.truncf %33 : vector<2x60xf32> to vector<2x60xbf16>
    %cst_9 = arith.constant dense<0.000000e+00> : vector<2x240xf32>
    %36 = tpu.matmul %35, %0, %cst_9 {dimension_numbers = #tpu.dot_dimension_numbers<[1], [0], [0], [1], [0, 0, 1, 1], [], []>} : vector<2x60xbf16>, vector<60x240xbf16>, vector<2x240xf32> -> vector<2x240xf32>
    %c1 = arith.constant 1 : index
    %c0_10 = arith.constant 0 : index
    %c0_11 = arith.constant 0 : index
    %37 = vector.load %arg0[%c1, %c0_10, %c0_11] : memref<35x2x240xf32, #tpu.memory_space<vmem>>, vector<1x2x240xf32>
    %38 = vector.shape_cast %37 : vector<1x2x240xf32> to vector<2x240xf32>
    %39 = arith.addf %36, %38 : vector<2x240xf32>
    %40 = arith.addf %39, %3 : vector<2x240xf32>
    %41 = arith.negf %40 : vector<2x240xf32>
    %42 = math.exp %41 : vector<2x240xf32>
    %cst_12 = arith.constant 1.000000e+00 : f32
    %43 = vector.broadcast %cst_12 : f32 to vector<2x240xf32>
    %44 = arith.addf %43, %42 : vector<2x240xf32>
    %45 = arith.divf %43, %44 : vector<2x240xf32>
    %46 = math.tanh %40 : vector<2x240xf32>
    %47 = vector.extract_strided_slice %45 {offsets = [0, 0], sizes = [2, 60], strides = [1, 1]} : vector<2x240xf32> to vector<2x60xf32>
    %48 = vector.extract_strided_slice %45 {offsets = [0, 60], sizes = [2, 60], strides = [1, 1]} : vector<2x240xf32> to vector<2x60xf32>
    %49 = vector.extract_strided_slice %46 {offsets = [0, 120], sizes = [2, 60], strides = [1, 1]} : vector<2x240xf32> to vector<2x60xf32>
    %50 = vector.extract_strided_slice %45 {offsets = [0, 180], sizes = [2, 60], strides = [1, 1]} : vector<2x240xf32> to vector<2x60xf32>
    %51 = arith.mulf %48, %34 : vector<2x60xf32>
    %52 = arith.mulf %47, %49 : vector<2x60xf32>
    %53 = arith.addf %51, %52 : vector<2x60xf32>
    %54 = math.tanh %53 : vector<2x60xf32>
    %55 = arith.mulf %50, %54 : vector<2x60xf32>
    %56 = tpu.iota {dimensions = array<i32: 1>} : vector<2x60xi32>
    %c0_i32_13 = arith.constant 0 : i32
    %57 = vector.broadcast %c0_i32_13 : i32 to vector<2x60xi32>
    %58 = arith.cmpi sge, %56, %57 : vector<2x60xi32>
    %c40_i32 = arith.constant 40 : i32
    %59 = vector.broadcast %c40_i32 : i32 to vector<2x60xi32>
    %60 = arith.cmpi slt, %56, %59 : vector<2x60xi32>
    %61 = arith.andi %58, %60 : vector<2x60xi1>
    %62 = arith.select %61, %55, %33 : vector<2x60xi1>, vector<2x60xf32>
    %63 = arith.select %61, %53, %34 : vector<2x60xi1>, vector<2x60xf32>
    %64 = arith.truncf %62 : vector<2x60xf32> to vector<2x60xbf16>
    %cst_14 = arith.constant dense<0.000000e+00> : vector<2x240xf32>
    %65 = tpu.matmul %64, %0, %cst_14 {dimension_numbers = #tpu.dot_dimension_numbers<[1], [0], [0], [1], [0, 0, 1, 1], [], []>} : vector<2x60xbf16>, vector<60x240xbf16>, vector<2x240xf32> -> vector<2x240xf32>
    %c2 = arith.constant 2 : index
    %c0_15 = arith.constant 0 : index
    %c0_16 = arith.constant 0 : index
    %66 = vector.load %arg0[%c2, %c0_15, %c0_16] : memref<35x2x240xf32, #tpu.memory_space<vmem>>, vector<1x2x240xf32>
    %67 = vector.shape_cast %66 : vector<1x2x240xf32> to vector<2x240xf32>
    %68 = arith.addf %65, %67 : vector<2x240xf32>
    %69 = arith.addf %68, %3 : vector<2x240xf32>
    %70 = arith.negf %69 : vector<2x240xf32>
    %71 = math.exp %70 : vector<2x240xf32>
    %cst_17 = arith.constant 1.000000e+00 : f32
    %72 = vector.broadcast %cst_17 : f32 to vector<2x240xf32>
    %73 = arith.addf %72, %71 : vector<2x240xf32>
    %74 = arith.divf %72, %73 : vector<2x240xf32>
    %75 = math.tanh %69 : vector<2x240xf32>
    %76 = vector.extract_strided_slice %74 {offsets = [0, 0], sizes = [2, 60], strides = [1, 1]} : vector<2x240xf32> to vector<2x60xf32>
    %77 = vector.extract_strided_slice %74 {offsets = [0, 60], sizes = [2, 60], strides = [1, 1]} : vector<2x240xf32> to vector<2x60xf32>
    %78 = vector.extract_strided_slice %75 {offsets = [0, 120], sizes = [2, 60], strides = [1, 1]} : vector<2x240xf32> to vector<2x60xf32>
    %79 = vector.extract_strided_slice %74 {offsets = [0, 180], sizes = [2, 60], strides = [1, 1]} : vector<2x240xf32> to vector<2x60xf32>
    %80 = arith.mulf %77, %63 : vector<2x60xf32>
    %81 = arith.mulf %76, %78 : vector<2x60xf32>
    %82 = arith.addf %80, %81 : vector<2x60xf32>
    %83 = math.tanh %82 : vector<2x60xf32>
    %84 = arith.mulf %79, %83 : vector<2x60xf32>
    %85 = vector.extract_strided_slice %84 {offsets = [0, 40], sizes = [2, 20], strides = [1, 1]} : vector<2x60xf32> to vector<2x20xf32>
    %cst_18 = arith.constant 0.000000e+00 : f32
    %86 = vector.broadcast %cst_18 : f32 to vector<2x20xf32>
    %87 = arith.maximumf %85, %86 : vector<2x20xf32>
    %c0_19 = arith.constant 0 : index
    %c0_20 = arith.constant 0 : index
    %c0_21 = arith.constant 0 : index
    %88 = vector.load %arg10[%c0_19, %c0_20, %c0_21] : memref<33x2x20xf32, #tpu.memory_space<vmem>>, vector<1x2x20xf32>
    %89 = vector.shape_cast %88 : vector<1x2x20xf32> to vector<2x20xf32>
    %90 = vector.shape_cast %87 : vector<2x20xf32> to vector<1x2x20xf32>
    tpu.vector_store %arg10[%c0_19, %c0_20, %c0_21], %90 {strides = array<i32>} : memref<33x2x20xf32, #tpu.memory_space<vmem>>, vector<1x2x20xf32>,
    %91 = arith.truncf %84 : vector<2x60xf32> to vector<2x60xbf16>
    %cst_22 = arith.constant dense<0.000000e+00> : vector<2x240xf32>
    %92 = tpu.matmul %91, %0, %cst_22 {dimension_numbers = #tpu.dot_dimension_numbers<[1], [0], [0], [1], [0, 0, 1, 1], [], []>} : vector<2x60xbf16>, vector<60x240xbf16>, vector<2x240xf32> -> vector<2x240xf32>
    %c3 = arith.constant 3 : index
    %c0_23 = arith.constant 0 : index
    %c0_24 = arith.constant 0 : index
    %93 = vector.load %arg0[%c3, %c0_23, %c0_24] : memref<35x2x240xf32, #tpu.memory_space<vmem>>, vector<1x2x240xf32>
    %94 = vector.shape_cast %93 : vector<1x2x240xf32> to vector<2x240xf32>
    %95 = arith.addf %92, %94 : vector<2x240xf32>
    %96 = arith.addf %95, %3 : vector<2x240xf32>
    %97 = arith.negf %96 : vector<2x240xf32>
    %98 = math.exp %97 : vector<2x240xf32>
    %cst_25 = arith.constant 1.000000e+00 : f32
    %99 = vector.broadcast %cst_25 : f32 to vector<2x240xf32>
    %100 = arith.addf %99, %98 : vector<2x240xf32>
    %101 = arith.divf %99, %100 : vector<2x240xf32>
    %102 = math.tanh %96 : vector<2x240xf32>
    %103 = vector.extract_strided_slice %101 {offsets = [0, 0], sizes = [2, 60], strides = [1, 1]} : vector<2x240xf32> to vector<2x60xf32>
    %104 = vector.extract_strided_slice %101 {offsets = [0, 60], sizes = [2, 60], strides = [1, 1]} : vector<2x240xf32> to vector<2x60xf32>
    %105 = vector.extract_strided_slice %102 {offsets = [0, 120], sizes = [2, 60], strides = [1, 1]} : vector<2x240xf32> to vector<2x60xf32>
    %106 = vector.extract_strided_slice %101 {offsets = [0, 180], sizes = [2, 60], strides = [1, 1]} : vector<2x240xf32> to vector<2x60xf32>
    %107 = arith.mulf %104, %82 : vector<2x60xf32>
    %108 = arith.mulf %103, %105 : vector<2x60xf32>
    %109 = arith.addf %107, %108 : vector<2x60xf32>
    %110 = math.tanh %109 : vector<2x60xf32>
    %111 = arith.mulf %106, %110 : vector<2x60xf32>
    %112 = vector.extract_strided_slice %111 {offsets = [0, 40], sizes = [2, 20], strides = [1, 1]} : vector<2x60xf32> to vector<2x20xf32>
    %cst_26 = arith.constant 0.000000e+00 : f32
    %113 = vector.broadcast %cst_26 : f32 to vector<2x20xf32>
    %114 = arith.maximumf %112, %113 : vector<2x20xf32>
    %c1_27 = arith.constant 1 : index
    %c0_28 = arith.constant 0 : index
    %c0_29 = arith.constant 0 : index
    %115 = vector.load %arg10[%c1_27, %c0_28, %c0_29] : memref<33x2x20xf32, #tpu.memory_space<vmem>>, vector<1x2x20xf32>
    %116 = vector.shape_cast %115 : vector<1x2x20xf32> to vector<2x20xf32>
    %117 = vector.shape_cast %114 : vector<2x20xf32> to vector<1x2x20xf32>
    tpu.vector_store %arg10[%c1_27, %c0_28, %c0_29], %117 {strides = array<i32>} : memref<33x2x20xf32, #tpu.memory_space<vmem>>, vector<1x2x20xf32>,
    %118 = arith.truncf %111 : vector<2x60xf32> to vector<2x60xbf16>
    %cst_30 = arith.constant dense<0.000000e+00> : vector<2x240xf32>
    %119 = tpu.matmul %118, %0, %cst_30 {dimension_numbers = #tpu.dot_dimension_numbers<[1], [0], [0], [1], [0, 0, 1, 1], [], []>} : vector<2x60xbf16>, vector<60x240xbf16>, vector<2x240xf32> -> vector<2x240xf32>
    %c4 = arith.constant 4 : index
    %c0_31 = arith.constant 0 : index
    %c0_32 = arith.constant 0 : index
    %120 = vector.load %arg0[%c4, %c0_31, %c0_32] : memref<35x2x240xf32, #tpu.memory_space<vmem>>, vector<1x2x240xf32>
    %121 = vector.shape_cast %120 : vector<1x2x240xf32> to vector<2x240xf32>
    %122 = arith.addf %119, %121 : vector<2x240xf32>
    %123 = arith.addf %122, %3 : vector<2x240xf32>
    %124 = arith.negf %123 : vector<2x240xf32>
    %125 = math.exp %124 : vector<2x240xf32>
    %cst_33 = arith.constant 1.000000e+00 : f32
    %126 = vector.broadcast %cst_33 : f32 to vector<2x240xf32>
    %127 = arith.addf %126, %125 : vector<2x240xf32>
    %128 = arith.divf %126, %127 : vector<2x240xf32>
    %129 = math.tanh %123 : vector<2x240xf32>
    %130 = vector.extract_strided_slice %128 {offsets = [0, 0], sizes = [2, 60], strides = [1, 1]} : vector<2x240xf32> to vector<2x60xf32>
    %131 = vector.extract_strided_slice %128 {offsets = [0, 60], sizes = [2, 60], strides = [1, 1]} : vector<2x240xf32> to vector<2x60xf32>
    %132 = vector.extract_strided_slice %129 {offsets = [0, 120], sizes = [2, 60], strides = [1, 1]} : vector<2x240xf32> to vector<2x60xf32>
    %133 = vector.extract_strided_slice %128 {offsets = [0, 180], sizes = [2, 60], strides = [1, 1]} : vector<2x240xf32> to vector<2x60xf32>
    %134 = arith.mulf %131, %109 : vector<2x60xf32>
    %135 = arith.mulf %130, %132 : vector<2x60xf32>
    %136 = arith.addf %134, %135 : vector<2x60xf32>
    %137 = math.tanh %136 : vector<2x60xf32>
    %138 = arith.mulf %133, %137 : vector<2x60xf32>
    %139 = vector.extract_strided_slice %138 {offsets = [0, 40], sizes = [2, 20], strides = [1, 1]} : vector<2x60xf32> to vector<2x20xf32>
    %cst_34 = arith.constant 0.000000e+00 : f32
    %140 = vector.broadcast %cst_34 : f32 to vector<2x20xf32>
    %141 = arith.maximumf %139, %140 : vector<2x20xf32>
    %c2_35 = arith.constant 2 : index
    %c0_36 = arith.constant 0 : index
    %c0_37 = arith.constant 0 : index
    %142 = vector.load %arg10[%c2_35, %c0_36, %c0_37] : memref<33x2x20xf32, #tpu.memory_space<vmem>>, vector<1x2x20xf32>
    %143 = vector.shape_cast %142 : vector<1x2x20xf32> to vector<2x20xf32>
    %144 = vector.shape_cast %141 : vector<2x20xf32> to vector<1x2x20xf32>
    tpu.vector_store %arg10[%c2_35, %c0_36, %c0_37], %144 {strides = array<i32>} : memref<33x2x20xf32, #tpu.memory_space<vmem>>, vector<1x2x20xf32>,
    %145 = arith.truncf %138 : vector<2x60xf32> to vector<2x60xbf16>
    %cst_38 = arith.constant dense<0.000000e+00> : vector<2x240xf32>
    %146 = tpu.matmul %145, %0, %cst_38 {dimension_numbers = #tpu.dot_dimension_numbers<[1], [0], [0], [1], [0, 0, 1, 1], [], []>} : vector<2x60xbf16>, vector<60x240xbf16>, vector<2x240xf32> -> vector<2x240xf32>
    %c5 = arith.constant 5 : index
    %c0_39 = arith.constant 0 : index
    %c0_40 = arith.constant 0 : index
    %147 = vector.load %arg0[%c5, %c0_39, %c0_40] : memref<35x2x240xf32, #tpu.memory_space<vmem>>, vector<1x2x240xf32>
    %148 = vector.shape_cast %147 : vector<1x2x240xf32> to vector<2x240xf32>
    %149 = arith.addf %146, %148 : vector<2x240xf32>
    %150 = arith.addf %149, %3 : vector<2x240xf32>
    %151 = arith.negf %150 : vector<2x240xf32>
    %152 = math.exp %151 : vector<2x240xf32>
    %cst_41 = arith.constant 1.000000e+00 : f32
    %153 = vector.broadcast %cst_41 : f32 to vector<2x240xf32>
    %154 = arith.addf %153, %152 : vector<2x240xf32>
    %155 = arith.divf %153, %154 : vector<2x240xf32>
    %156 = math.tanh %150 : vector<2x240xf32>
    %157 = vector.extract_strided_slice %155 {offsets = [0, 0], sizes = [2, 60], strides = [1, 1]} : vector<2x240xf32> to vector<2x60xf32>
    %158 = vector.extract_strided_slice %155 {offsets = [0, 60], sizes = [2, 60], strides = [1, 1]} : vector<2x240xf32> to vector<2x60xf32>
    %159 = vector.extract_strided_slice %156 {offsets = [0, 120], sizes = [2, 60], strides = [1, 1]} : vector<2x240xf32> to vector<2x60xf32>
    %160 = vector.extract_strided_slice %155 {offsets = [0, 180], sizes = [2, 60], strides = [1, 1]} : vector<2x240xf32> to vector<2x60xf32>
    %161 = arith.mulf %158, %136 : vector<2x60xf32>
    %162 = arith.mulf %157, %159 : vector<2x60xf32>
    %163 = arith.addf %161, %162 : vector<2x60xf32>
    %164 = math.tanh %163 : vector<2x60xf32>
    %165 = arith.mulf %160, %164 : vector<2x60xf32>
    %166 = vector.extract_strided_slice %165 {offsets = [0, 40], sizes = [2, 20], strides = [1, 1]} : vector<2x60xf32> to vector<2x20xf32>
    %cst_42 = arith.constant 0.000000e+00 : f32
    %167 = vector.broadcast %cst_42 : f32 to vector<2x20xf32>
    %168 = arith.maximumf %166, %167 : vector<2x20xf32>
    %c3_43 = arith.constant 3 : index
    %c0_44 = arith.constant 0 : index
    %c0_45 = arith.constant 0 : index
    %169 = vector.load %arg10[%c3_43, %c0_44, %c0_45] : memref<33x2x20xf32, #tpu.memory_space<vmem>>, vector<1x2x20xf32>
    %170 = vector.shape_cast %169 : vector<1x2x20xf32> to vector<2x20xf32>
    %171 = vector.shape_cast %168 : vector<2x20xf32> to vector<1x2x20xf32>
    tpu.vector_store %arg10[%c3_43, %c0_44, %c0_45], %171 {strides = array<i32>} : memref<33x2x20xf32, #tpu.memory_space<vmem>>, vector<1x2x20xf32>,
    %172 = arith.truncf %165 : vector<2x60xf32> to vector<2x60xbf16>
    %cst_46 = arith.constant dense<0.000000e+00> : vector<2x240xf32>
    %173 = tpu.matmul %172, %0, %cst_46 {dimension_numbers = #tpu.dot_dimension_numbers<[1], [0], [0], [1], [0, 0, 1, 1], [], []>} : vector<2x60xbf16>, vector<60x240xbf16>, vector<2x240xf32> -> vector<2x240xf32>
    %c6 = arith.constant 6 : index
    %c0_47 = arith.constant 0 : index
    %c0_48 = arith.constant 0 : index
    %174 = vector.load %arg0[%c6, %c0_47, %c0_48] : memref<35x2x240xf32, #tpu.memory_space<vmem>>, vector<1x2x240xf32>
    %175 = vector.shape_cast %174 : vector<1x2x240xf32> to vector<2x240xf32>
    %176 = arith.addf %173, %175 : vector<2x240xf32>
    %177 = arith.addf %176, %3 : vector<2x240xf32>
    %178 = arith.negf %177 : vector<2x240xf32>
    %179 = math.exp %178 : vector<2x240xf32>
    %cst_49 = arith.constant 1.000000e+00 : f32
    %180 = vector.broadcast %cst_49 : f32 to vector<2x240xf32>
    %181 = arith.addf %180, %179 : vector<2x240xf32>
    %182 = arith.divf %180, %181 : vector<2x240xf32>
    %183 = math.tanh %177 : vector<2x240xf32>
    %184 = vector.extract_strided_slice %182 {offsets = [0, 0], sizes = [2, 60], strides = [1, 1]} : vector<2x240xf32> to vector<2x60xf32>
    %185 = vector.extract_strided_slice %182 {offsets = [0, 60], sizes = [2, 60], strides = [1, 1]} : vector<2x240xf32> to vector<2x60xf32>
    %186 = vector.extract_strided_slice %183 {offsets = [0, 120], sizes = [2, 60], strides = [1, 1]} : vector<2x240xf32> to vector<2x60xf32>
    %187 = vector.extract_strided_slice %182 {offsets = [0, 180], sizes = [2, 60], strides = [1, 1]} : vector<2x240xf32> to vector<2x60xf32>
    %188 = arith.mulf %185, %163 : vector<2x60xf32>
    %189 = arith.mulf %184, %186 : vector<2x60xf32>
    %190 = arith.addf %188, %189 : vector<2x60xf32>
    %191 = math.tanh %190 : vector<2x60xf32>
    %192 = arith.mulf %187, %191 : vector<2x60xf32>
    %193 = vector.extract_strided_slice %192 {offsets = [0, 40], sizes = [2, 20], strides = [1, 1]} : vector<2x60xf32> to vector<2x20xf32>
    %cst_50 = arith.constant 0.000000e+00 : f32
    %194 = vector.broadcast %cst_50 : f32 to vector<2x20xf32>
    %195 = arith.maximumf %193, %194 : vector<2x20xf32>
    %c4_51 = arith.constant 4 : index
    %c0_52 = arith.constant 0 : index
    %c0_53 = arith.constant 0 : index
    %196 = vector.load %arg10[%c4_51, %c0_52, %c0_53] : memref<33x2x20xf32, #tpu.memory_space<vmem>>, vector<1x2x20xf32>
    %197 = vector.shape_cast %196 : vector<1x2x20xf32> to vector<2x20xf32>
    %198 = vector.shape_cast %195 : vector<2x20xf32> to vector<1x2x20xf32>
    tpu.vector_store %arg10[%c4_51, %c0_52, %c0_53], %198 {strides = array<i32>} : memref<33x2x20xf32, #tpu.memory_space<vmem>>, vector<1x2x20xf32>,
    %199 = arith.truncf %192 : vector<2x60xf32> to vector<2x60xbf16>
    %cst_54 = arith.constant dense<0.000000e+00> : vector<2x240xf32>
    %200 = tpu.matmul %199, %0, %cst_54 {dimension_numbers = #tpu.dot_dimension_numbers<[1], [0], [0], [1], [0, 0, 1, 1], [], []>} : vector<2x60xbf16>, vector<60x240xbf16>, vector<2x240xf32> -> vector<2x240xf32>
    %c7 = arith.constant 7 : index
    %c0_55 = arith.constant 0 : index
    %c0_56 = arith.constant 0 : index
    %201 = vector.load %arg0[%c7, %c0_55, %c0_56] : memref<35x2x240xf32, #tpu.memory_space<vmem>>, vector<1x2x240xf32>
    %202 = vector.shape_cast %201 : vector<1x2x240xf32> to vector<2x240xf32>
    %203 = arith.addf %200, %202 : vector<2x240xf32>
    %204 = arith.addf %203, %3 : vector<2x240xf32>
    %205 = arith.negf %204 : vector<2x240xf32>
    %206 = math.exp %205 : vector<2x240xf32>
    %cst_57 = arith.constant 1.000000e+00 : f32
    %207 = vector.broadcast %cst_57 : f32 to vector<2x240xf32>
    %208 = arith.addf %207, %206 : vector<2x240xf32>
    %209 = arith.divf %207, %208 : vector<2x240xf32>
    %210 = math.tanh %204 : vector<2x240xf32>
    %211 = vector.extract_strided_slice %209 {offsets = [0, 0], sizes = [2, 60], strides = [1, 1]} : vector<2x240xf32> to vector<2x60xf32>
    %212 = vector.extract_strided_slice %209 {offsets = [0, 60], sizes = [2, 60], strides = [1, 1]} : vector<2x240xf32> to vector<2x60xf32>
    %213 = vector.extract_strided_slice %210 {offsets = [0, 120], sizes = [2, 60], strides = [1, 1]} : vector<2x240xf32> to vector<2x60xf32>
    %214 = vector.extract_strided_slice %209 {offsets = [0, 180], sizes = [2, 60], strides = [1, 1]} : vector<2x240xf32> to vector<2x60xf32>
    %215 = arith.mulf %212, %190 : vector<2x60xf32>
    %216 = arith.mulf %211, %213 : vector<2x60xf32>
    %217 = arith.addf %215, %216 : vector<2x60xf32>
    %218 = math.tanh %217 : vector<2x60xf32>
    %219 = arith.mulf %214, %218 : vector<2x60xf32>
    %220 = vector.extract_strided_slice %219 {offsets = [0, 40], sizes = [2, 20], strides = [1, 1]} : vector<2x60xf32> to vector<2x20xf32>
    %cst_58 = arith.constant 0.000000e+00 : f32
    %221 = vector.broadcast %cst_58 : f32 to vector<2x20xf32>
    %222 = arith.maximumf %220, %221 : vector<2x20xf32>
    %c5_59 = arith.constant 5 : index
    %c0_60 = arith.constant 0 : index
    %c0_61 = arith.constant 0 : index
    %223 = vector.load %arg10[%c5_59, %c0_60, %c0_61] : memref<33x2x20xf32, #tpu.memory_space<vmem>>, vector<1x2x20xf32>
    %224 = vector.shape_cast %223 : vector<1x2x20xf32> to vector<2x20xf32>
    %225 = vector.shape_cast %222 : vector<2x20xf32> to vector<1x2x20xf32>
    tpu.vector_store %arg10[%c5_59, %c0_60, %c0_61], %225 {strides = array<i32>} : memref<33x2x20xf32, #tpu.memory_space<vmem>>, vector<1x2x20xf32>,
    %226 = arith.truncf %219 : vector<2x60xf32> to vector<2x60xbf16>
    %cst_62 = arith.constant dense<0.000000e+00> : vector<2x240xf32>
    %227 = tpu.matmul %226, %0, %cst_62 {dimension_numbers = #tpu.dot_dimension_numbers<[1], [0], [0], [1], [0, 0, 1, 1], [], []>} : vector<2x60xbf16>, vector<60x240xbf16>, vector<2x240xf32> -> vector<2x240xf32>
    %c8 = arith.constant 8 : index
    %c0_63 = arith.constant 0 : index
    %c0_64 = arith.constant 0 : index
    %228 = vector.load %arg0[%c8, %c0_63, %c0_64] : memref<35x2x240xf32, #tpu.memory_space<vmem>>, vector<1x2x240xf32>
    %229 = vector.shape_cast %228 : vector<1x2x240xf32> to vector<2x240xf32>
    %230 = arith.addf %227, %229 : vector<2x240xf32>
    %231 = arith.addf %230, %3 : vector<2x240xf32>
    %232 = arith.negf %231 : vector<2x240xf32>
    %233 = math.exp %232 : vector<2x240xf32>
    %cst_65 = arith.constant 1.000000e+00 : f32
    %234 = vector.broadcast %cst_65 : f32 to vector<2x240xf32>
    %235 = arith.addf %234, %233 : vector<2x240xf32>
    %236 = arith.divf %234, %235 : vector<2x240xf32>
    %237 = math.tanh %231 : vector<2x240xf32>
    %238 = vector.extract_strided_slice %236 {offsets = [0, 0], sizes = [2, 60], strides = [1, 1]} : vector<2x240xf32> to vector<2x60xf32>
    %239 = vector.extract_strided_slice %236 {offsets = [0, 60], sizes = [2, 60], strides = [1, 1]} : vector<2x240xf32> to vector<2x60xf32>
    %240 = vector.extract_strided_slice %237 {offsets = [0, 120], sizes = [2, 60], strides = [1, 1]} : vector<2x240xf32> to vector<2x60xf32>
    %241 = vector.extract_strided_slice %236 {offsets = [0, 180], sizes = [2, 60], strides = [1, 1]} : vector<2x240xf32> to vector<2x60xf32>
    %242 = arith.mulf %239, %217 : vector<2x60xf32>
    %243 = arith.mulf %238, %240 : vector<2x60xf32>
    %244 = arith.addf %242, %243 : vector<2x60xf32>
    %245 = math.tanh %244 : vector<2x60xf32>
    %246 = arith.mulf %241, %245 : vector<2x60xf32>
    %247 = vector.extract_strided_slice %246 {offsets = [0, 40], sizes = [2, 20], strides = [1, 1]} : vector<2x60xf32> to vector<2x20xf32>
    %cst_66 = arith.constant 0.000000e+00 : f32
    %248 = vector.broadcast %cst_66 : f32 to vector<2x20xf32>
    %249 = arith.maximumf %247, %248 : vector<2x20xf32>
    %c6_67 = arith.constant 6 : index
    %c0_68 = arith.constant 0 : index
    %c0_69 = arith.constant 0 : index
    %250 = vector.load %arg10[%c6_67, %c0_68, %c0_69] : memref<33x2x20xf32, #tpu.memory_space<vmem>>, vector<1x2x20xf32>
    %251 = vector.shape_cast %250 : vector<1x2x20xf32> to vector<2x20xf32>
    %252 = vector.shape_cast %249 : vector<2x20xf32> to vector<1x2x20xf32>
    tpu.vector_store %arg10[%c6_67, %c0_68, %c0_69], %252 {strides = array<i32>} : memref<33x2x20xf32, #tpu.memory_space<vmem>>, vector<1x2x20xf32>,
    %253 = arith.truncf %246 : vector<2x60xf32> to vector<2x60xbf16>
    %cst_70 = arith.constant dense<0.000000e+00> : vector<2x240xf32>
    %254 = tpu.matmul %253, %0, %cst_70 {dimension_numbers = #tpu.dot_dimension_numbers<[1], [0], [0], [1], [0, 0, 1, 1], [], []>} : vector<2x60xbf16>, vector<60x240xbf16>, vector<2x240xf32> -> vector<2x240xf32>
    %c9 = arith.constant 9 : index
    %c0_71 = arith.constant 0 : index
    %c0_72 = arith.constant 0 : index
    %255 = vector.load %arg0[%c9, %c0_71, %c0_72] : memref<35x2x240xf32, #tpu.memory_space<vmem>>, vector<1x2x240xf32>
    %256 = vector.shape_cast %255 : vector<1x2x240xf32> to vector<2x240xf32>
    %257 = arith.addf %254, %256 : vector<2x240xf32>
    %258 = arith.addf %257, %3 : vector<2x240xf32>
    %259 = arith.negf %258 : vector<2x240xf32>
    %260 = math.exp %259 : vector<2x240xf32>
    %cst_73 = arith.constant 1.000000e+00 : f32
    %261 = vector.broadcast %cst_73 : f32 to vector<2x240xf32>
    %262 = arith.addf %261, %260 : vector<2x240xf32>
    %263 = arith.divf %261, %262 : vector<2x240xf32>
    %264 = math.tanh %258 : vector<2x240xf32>
    %265 = vector.extract_strided_slice %263 {offsets = [0, 0], sizes = [2, 60], strides = [1, 1]} : vector<2x240xf32> to vector<2x60xf32>
    %266 = vector.extract_strided_slice %263 {offsets = [0, 60], sizes = [2, 60], strides = [1, 1]} : vector<2x240xf32> to vector<2x60xf32>
    %267 = vector.extract_strided_slice %264 {offsets = [0, 120], sizes = [2, 60], strides = [1, 1]} : vector<2x240xf32> to vector<2x60xf32>
    %268 = vector.extract_strided_slice %263 {offsets = [0, 180], sizes = [2, 60], strides = [1, 1]} : vector<2x240xf32> to vector<2x60xf32>
    %269 = arith.mulf %266, %244 : vector<2x60xf32>
    %270 = arith.mulf %265, %267 : vector<2x60xf32>
    %271 = arith.addf %269, %270 : vector<2x60xf32>
    %272 = math.tanh %271 : vector<2x60xf32>
    %273 = arith.mulf %268, %272 : vector<2x60xf32>
    %274 = vector.extract_strided_slice %273 {offsets = [0, 40], sizes = [2, 20], strides = [1, 1]} : vector<2x60xf32> to vector<2x20xf32>
    %cst_74 = arith.constant 0.000000e+00 : f32
    %275 = vector.broadcast %cst_74 : f32 to vector<2x20xf32>
    %276 = arith.maximumf %274, %275 : vector<2x20xf32>
    %c7_75 = arith.constant 7 : index
    %c0_76 = arith.constant 0 : index
    %c0_77 = arith.constant 0 : index
    %277 = vector.load %arg10[%c7_75, %c0_76, %c0_77] : memref<33x2x20xf32, #tpu.memory_space<vmem>>, vector<1x2x20xf32>
    %278 = vector.shape_cast %277 : vector<1x2x20xf32> to vector<2x20xf32>
    %279 = vector.shape_cast %276 : vector<2x20xf32> to vector<1x2x20xf32>
    tpu.vector_store %arg10[%c7_75, %c0_76, %c0_77], %279 {strides = array<i32>} : memref<33x2x20xf32, #tpu.memory_space<vmem>>, vector<1x2x20xf32>,
    %280 = arith.truncf %273 : vector<2x60xf32> to vector<2x60xbf16>
    %cst_78 = arith.constant dense<0.000000e+00> : vector<2x240xf32>
    %281 = tpu.matmul %280, %0, %cst_78 {dimension_numbers = #tpu.dot_dimension_numbers<[1], [0], [0], [1], [0, 0, 1, 1], [], []>} : vector<2x60xbf16>, vector<60x240xbf16>, vector<2x240xf32> -> vector<2x240xf32>
    %c10 = arith.constant 10 : index
    %c0_79 = arith.constant 0 : index
    %c0_80 = arith.constant 0 : index
    %282 = vector.load %arg0[%c10, %c0_79, %c0_80] : memref<35x2x240xf32, #tpu.memory_space<vmem>>, vector<1x2x240xf32>
    %283 = vector.shape_cast %282 : vector<1x2x240xf32> to vector<2x240xf32>
    %284 = arith.addf %281, %283 : vector<2x240xf32>
    %285 = arith.addf %284, %3 : vector<2x240xf32>
    %286 = arith.negf %285 : vector<2x240xf32>
    %287 = math.exp %286 : vector<2x240xf32>
    %cst_81 = arith.constant 1.000000e+00 : f32
    %288 = vector.broadcast %cst_81 : f32 to vector<2x240xf32>
    %289 = arith.addf %288, %287 : vector<2x240xf32>
    %290 = arith.divf %288, %289 : vector<2x240xf32>
    %291 = math.tanh %285 : vector<2x240xf32>
    %292 = vector.extract_strided_slice %290 {offsets = [0, 0], sizes = [2, 60], strides = [1, 1]} : vector<2x240xf32> to vector<2x60xf32>
    %293 = vector.extract_strided_slice %290 {offsets = [0, 60], sizes = [2, 60], strides = [1, 1]} : vector<2x240xf32> to vector<2x60xf32>
    %294 = vector.extract_strided_slice %291 {offsets = [0, 120], sizes = [2, 60], strides = [1, 1]} : vector<2x240xf32> to vector<2x60xf32>
    %295 = vector.extract_strided_slice %290 {offsets = [0, 180], sizes = [2, 60], strides = [1, 1]} : vector<2x240xf32> to vector<2x60xf32>
    %296 = arith.mulf %293, %271 : vector<2x60xf32>
    %297 = arith.mulf %292, %294 : vector<2x60xf32>
    %298 = arith.addf %296, %297 : vector<2x60xf32>
    %299 = math.tanh %298 : vector<2x60xf32>
    %300 = arith.mulf %295, %299 : vector<2x60xf32>
    %301 = vector.extract_strided_slice %300 {offsets = [0, 40], sizes = [2, 20], strides = [1, 1]} : vector<2x60xf32> to vector<2x20xf32>
    %cst_82 = arith.constant 0.000000e+00 : f32
    %302 = vector.broadcast %cst_82 : f32 to vector<2x20xf32>
    %303 = arith.maximumf %301, %302 : vector<2x20xf32>
    %c8_83 = arith.constant 8 : index
    %c0_84 = arith.constant 0 : index
    %c0_85 = arith.constant 0 : index
    %304 = vector.load %arg10[%c8_83, %c0_84, %c0_85] : memref<33x2x20xf32, #tpu.memory_space<vmem>>, vector<1x2x20xf32>
    %305 = vector.shape_cast %304 : vector<1x2x20xf32> to vector<2x20xf32>
    %306 = vector.shape_cast %303 : vector<2x20xf32> to vector<1x2x20xf32>
    tpu.vector_store %arg10[%c8_83, %c0_84, %c0_85], %306 {strides = array<i32>} : memref<33x2x20xf32, #tpu.memory_space<vmem>>, vector<1x2x20xf32>,
    %307 = arith.truncf %300 : vector<2x60xf32> to vector<2x60xbf16>
    %cst_86 = arith.constant dense<0.000000e+00> : vector<2x240xf32>
    %308 = tpu.matmul %307, %0, %cst_86 {dimension_numbers = #tpu.dot_dimension_numbers<[1], [0], [0], [1], [0, 0, 1, 1], [], []>} : vector<2x60xbf16>, vector<60x240xbf16>, vector<2x240xf32> -> vector<2x240xf32>
    %c11 = arith.constant 11 : index
    %c0_87 = arith.constant 0 : index
    %c0_88 = arith.constant 0 : index
    %309 = vector.load %arg0[%c11, %c0_87, %c0_88] : memref<35x2x240xf32, #tpu.memory_space<vmem>>, vector<1x2x240xf32>
    %310 = vector.shape_cast %309 : vector<1x2x240xf32> to vector<2x240xf32>
    %311 = arith.addf %308, %310 : vector<2x240xf32>
    %312 = arith.addf %311, %3 : vector<2x240xf32>
    %313 = arith.negf %312 : vector<2x240xf32>
    %314 = math.exp %313 : vector<2x240xf32>
    %cst_89 = arith.constant 1.000000e+00 : f32
    %315 = vector.broadcast %cst_89 : f32 to vector<2x240xf32>
    %316 = arith.addf %315, %314 : vector<2x240xf32>
    %317 = arith.divf %315, %316 : vector<2x240xf32>
    %318 = math.tanh %312 : vector<2x240xf32>
    %319 = vector.extract_strided_slice %317 {offsets = [0, 0], sizes = [2, 60], strides = [1, 1]} : vector<2x240xf32> to vector<2x60xf32>
    %320 = vector.extract_strided_slice %317 {offsets = [0, 60], sizes = [2, 60], strides = [1, 1]} : vector<2x240xf32> to vector<2x60xf32>
    %321 = vector.extract_strided_slice %318 {offsets = [0, 120], sizes = [2, 60], strides = [1, 1]} : vector<2x240xf32> to vector<2x60xf32>
    %322 = vector.extract_strided_slice %317 {offsets = [0, 180], sizes = [2, 60], strides = [1, 1]} : vector<2x240xf32> to vector<2x60xf32>
    %323 = arith.mulf %320, %298 : vector<2x60xf32>
    %324 = arith.mulf %319, %321 : vector<2x60xf32>
    %325 = arith.addf %323, %324 : vector<2x60xf32>
    %326 = math.tanh %325 : vector<2x60xf32>
    %327 = arith.mulf %322, %326 : vector<2x60xf32>
    %328 = vector.extract_strided_slice %327 {offsets = [0, 40], sizes = [2, 20], strides = [1, 1]} : vector<2x60xf32> to vector<2x20xf32>
    %cst_90 = arith.constant 0.000000e+00 : f32
    %329 = vector.broadcast %cst_90 : f32 to vector<2x20xf32>
    %330 = arith.maximumf %328, %329 : vector<2x20xf32>
    %c9_91 = arith.constant 9 : index
    %c0_92 = arith.constant 0 : index
    %c0_93 = arith.constant 0 : index
    %331 = vector.load %arg10[%c9_91, %c0_92, %c0_93] : memref<33x2x20xf32, #tpu.memory_space<vmem>>, vector<1x2x20xf32>
    %332 = vector.shape_cast %331 : vector<1x2x20xf32> to vector<2x20xf32>
    %333 = vector.shape_cast %330 : vector<2x20xf32> to vector<1x2x20xf32>
    tpu.vector_store %arg10[%c9_91, %c0_92, %c0_93], %333 {strides = array<i32>} : memref<33x2x20xf32, #tpu.memory_space<vmem>>, vector<1x2x20xf32>,
    %334 = arith.truncf %327 : vector<2x60xf32> to vector<2x60xbf16>
    %cst_94 = arith.constant dense<0.000000e+00> : vector<2x240xf32>
    %335 = tpu.matmul %334, %0, %cst_94 {dimension_numbers = #tpu.dot_dimension_numbers<[1], [0], [0], [1], [0, 0, 1, 1], [], []>} : vector<2x60xbf16>, vector<60x240xbf16>, vector<2x240xf32> -> vector<2x240xf32>
    %c12 = arith.constant 12 : index
    %c0_95 = arith.constant 0 : index
    %c0_96 = arith.constant 0 : index
    %336 = vector.load %arg0[%c12, %c0_95, %c0_96] : memref<35x2x240xf32, #tpu.memory_space<vmem>>, vector<1x2x240xf32>
    %337 = vector.shape_cast %336 : vector<1x2x240xf32> to vector<2x240xf32>
    %338 = arith.addf %335, %337 : vector<2x240xf32>
    %339 = arith.addf %338, %3 : vector<2x240xf32>
    %340 = arith.negf %339 : vector<2x240xf32>
    %341 = math.exp %340 : vector<2x240xf32>
    %cst_97 = arith.constant 1.000000e+00 : f32
    %342 = vector.broadcast %cst_97 : f32 to vector<2x240xf32>
    %343 = arith.addf %342, %341 : vector<2x240xf32>
    %344 = arith.divf %342, %343 : vector<2x240xf32>
    %345 = math.tanh %339 : vector<2x240xf32>
    %346 = vector.extract_strided_slice %344 {offsets = [0, 0], sizes = [2, 60], strides = [1, 1]} : vector<2x240xf32> to vector<2x60xf32>
    %347 = vector.extract_strided_slice %344 {offsets = [0, 60], sizes = [2, 60], strides = [1, 1]} : vector<2x240xf32> to vector<2x60xf32>
    %348 = vector.extract_strided_slice %345 {offsets = [0, 120], sizes = [2, 60], strides = [1, 1]} : vector<2x240xf32> to vector<2x60xf32>
    %349 = vector.extract_strided_slice %344 {offsets = [0, 180], sizes = [2, 60], strides = [1, 1]} : vector<2x240xf32> to vector<2x60xf32>
    %350 = arith.mulf %347, %325 : vector<2x60xf32>
    %351 = arith.mulf %346, %348 : vector<2x60xf32>
    %352 = arith.addf %350, %351 : vector<2x60xf32>
    %353 = math.tanh %352 : vector<2x60xf32>
    %354 = arith.mulf %349, %353 : vector<2x60xf32>
    %355 = vector.extract_strided_slice %354 {offsets = [0, 40], sizes = [2, 20], strides = [1, 1]} : vector<2x60xf32> to vector<2x20xf32>
    %cst_98 = arith.constant 0.000000e+00 : f32
    %356 = vector.broadcast %cst_98 : f32 to vector<2x20xf32>
    %357 = arith.maximumf %355, %356 : vector<2x20xf32>
    %c10_99 = arith.constant 10 : index
    %c0_100 = arith.constant 0 : index
    %c0_101 = arith.constant 0 : index
    %358 = vector.load %arg10[%c10_99, %c0_100, %c0_101] : memref<33x2x20xf32, #tpu.memory_space<vmem>>, vector<1x2x20xf32>
    %359 = vector.shape_cast %358 : vector<1x2x20xf32> to vector<2x20xf32>
    %360 = vector.shape_cast %357 : vector<2x20xf32> to vector<1x2x20xf32>
    tpu.vector_store %arg10[%c10_99, %c0_100, %c0_101], %360 {strides = array<i32>} : memref<33x2x20xf32, #tpu.memory_space<vmem>>, vector<1x2x20xf32>,
    %361 = arith.truncf %354 : vector<2x60xf32> to vector<2x60xbf16>
    %cst_102 = arith.constant dense<0.000000e+00> : vector<2x240xf32>
    %362 = tpu.matmul %361, %0, %cst_102 {dimension_numbers = #tpu.dot_dimension_numbers<[1], [0], [0], [1], [0, 0, 1, 1], [], []>} : vector<2x60xbf16>, vector<60x240xbf16>, vector<2x240xf32> -> vector<2x240xf32>
    %c13 = arith.constant 13 : index
    %c0_103 = arith.constant 0 : index
    %c0_104 = arith.constant 0 : index
    %363 = vector.load %arg0[%c13, %c0_103, %c0_104] : memref<35x2x240xf32, #tpu.memory_space<vmem>>, vector<1x2x240xf32>
    %364 = vector.shape_cast %363 : vector<1x2x240xf32> to vector<2x240xf32>
    %365 = arith.addf %362, %364 : vector<2x240xf32>
    %366 = arith.addf %365, %3 : vector<2x240xf32>
    %367 = arith.negf %366 : vector<2x240xf32>
    %368 = math.exp %367 : vector<2x240xf32>
    %cst_105 = arith.constant 1.000000e+00 : f32
    %369 = vector.broadcast %cst_105 : f32 to vector<2x240xf32>
    %370 = arith.addf %369, %368 : vector<2x240xf32>
    %371 = arith.divf %369, %370 : vector<2x240xf32>
    %372 = math.tanh %366 : vector<2x240xf32>
    %373 = vector.extract_strided_slice %371 {offsets = [0, 0], sizes = [2, 60], strides = [1, 1]} : vector<2x240xf32> to vector<2x60xf32>
    %374 = vector.extract_strided_slice %371 {offsets = [0, 60], sizes = [2, 60], strides = [1, 1]} : vector<2x240xf32> to vector<2x60xf32>
    %375 = vector.extract_strided_slice %372 {offsets = [0, 120], sizes = [2, 60], strides = [1, 1]} : vector<2x240xf32> to vector<2x60xf32>
    %376 = vector.extract_strided_slice %371 {offsets = [0, 180], sizes = [2, 60], strides = [1, 1]} : vector<2x240xf32> to vector<2x60xf32>
    %377 = arith.mulf %374, %352 : vector<2x60xf32>
    %378 = arith.mulf %373, %375 : vector<2x60xf32>
    %379 = arith.addf %377, %378 : vector<2x60xf32>
    %380 = math.tanh %379 : vector<2x60xf32>
    %381 = arith.mulf %376, %380 : vector<2x60xf32>
    %382 = vector.extract_strided_slice %381 {offsets = [0, 40], sizes = [2, 20], strides = [1, 1]} : vector<2x60xf32> to vector<2x20xf32>
    %cst_106 = arith.constant 0.000000e+00 : f32
    %383 = vector.broadcast %cst_106 : f32 to vector<2x20xf32>
    %384 = arith.maximumf %382, %383 : vector<2x20xf32>
    %c11_107 = arith.constant 11 : index
    %c0_108 = arith.constant 0 : index
    %c0_109 = arith.constant 0 : index
    %385 = vector.load %arg10[%c11_107, %c0_108, %c0_109] : memref<33x2x20xf32, #tpu.memory_space<vmem>>, vector<1x2x20xf32>
    %386 = vector.shape_cast %385 : vector<1x2x20xf32> to vector<2x20xf32>
    %387 = vector.shape_cast %384 : vector<2x20xf32> to vector<1x2x20xf32>
    tpu.vector_store %arg10[%c11_107, %c0_108, %c0_109], %387 {strides = array<i32>} : memref<33x2x20xf32, #tpu.memory_space<vmem>>, vector<1x2x20xf32>,
    %388 = arith.truncf %381 : vector<2x60xf32> to vector<2x60xbf16>
    %cst_110 = arith.constant dense<0.000000e+00> : vector<2x240xf32>
    %389 = tpu.matmul %388, %0, %cst_110 {dimension_numbers = #tpu.dot_dimension_numbers<[1], [0], [0], [1], [0, 0, 1, 1], [], []>} : vector<2x60xbf16>, vector<60x240xbf16>, vector<2x240xf32> -> vector<2x240xf32>
    %c14 = arith.constant 14 : index
    %c0_111 = arith.constant 0 : index
    %c0_112 = arith.constant 0 : index
    %390 = vector.load %arg0[%c14, %c0_111, %c0_112] : memref<35x2x240xf32, #tpu.memory_space<vmem>>, vector<1x2x240xf32>
    %391 = vector.shape_cast %390 : vector<1x2x240xf32> to vector<2x240xf32>
    %392 = arith.addf %389, %391 : vector<2x240xf32>
    %393 = arith.addf %392, %3 : vector<2x240xf32>
    %394 = arith.negf %393 : vector<2x240xf32>
    %395 = math.exp %394 : vector<2x240xf32>
    %cst_113 = arith.constant 1.000000e+00 : f32
    %396 = vector.broadcast %cst_113 : f32 to vector<2x240xf32>
    %397 = arith.addf %396, %395 : vector<2x240xf32>
    %398 = arith.divf %396, %397 : vector<2x240xf32>
    %399 = math.tanh %393 : vector<2x240xf32>
    %400 = vector.extract_strided_slice %398 {offsets = [0, 0], sizes = [2, 60], strides = [1, 1]} : vector<2x240xf32> to vector<2x60xf32>
    %401 = vector.extract_strided_slice %398 {offsets = [0, 60], sizes = [2, 60], strides = [1, 1]} : vector<2x240xf32> to vector<2x60xf32>
    %402 = vector.extract_strided_slice %399 {offsets = [0, 120], sizes = [2, 60], strides = [1, 1]} : vector<2x240xf32> to vector<2x60xf32>
    %403 = vector.extract_strided_slice %398 {offsets = [0, 180], sizes = [2, 60], strides = [1, 1]} : vector<2x240xf32> to vector<2x60xf32>
    %404 = arith.mulf %401, %379 : vector<2x60xf32>
    %405 = arith.mulf %400, %402 : vector<2x60xf32>
    %406 = arith.addf %404, %405 : vector<2x60xf32>
    %407 = math.tanh %406 : vector<2x60xf32>
    %408 = arith.mulf %403, %407 : vector<2x60xf32>
    %409 = vector.extract_strided_slice %408 {offsets = [0, 40], sizes = [2, 20], strides = [1, 1]} : vector<2x60xf32> to vector<2x20xf32>
    %cst_114 = arith.constant 0.000000e+00 : f32
    %410 = vector.broadcast %cst_114 : f32 to vector<2x20xf32>
    %411 = arith.maximumf %409, %410 : vector<2x20xf32>
    %c12_115 = arith.constant 12 : index
    %c0_116 = arith.constant 0 : index
    %c0_117 = arith.constant 0 : index
    %412 = vector.load %arg10[%c12_115, %c0_116, %c0_117] : memref<33x2x20xf32, #tpu.memory_space<vmem>>, vector<1x2x20xf32>
    %413 = vector.shape_cast %412 : vector<1x2x20xf32> to vector<2x20xf32>
    %414 = vector.shape_cast %411 : vector<2x20xf32> to vector<1x2x20xf32>
    tpu.vector_store %arg10[%c12_115, %c0_116, %c0_117], %414 {strides = array<i32>} : memref<33x2x20xf32, #tpu.memory_space<vmem>>, vector<1x2x20xf32>,
    %415 = arith.truncf %408 : vector<2x60xf32> to vector<2x60xbf16>
    %cst_118 = arith.constant dense<0.000000e+00> : vector<2x240xf32>
    %416 = tpu.matmul %415, %0, %cst_118 {dimension_numbers = #tpu.dot_dimension_numbers<[1], [0], [0], [1], [0, 0, 1, 1], [], []>} : vector<2x60xbf16>, vector<60x240xbf16>, vector<2x240xf32> -> vector<2x240xf32>
    %c15 = arith.constant 15 : index
    %c0_119 = arith.constant 0 : index
    %c0_120 = arith.constant 0 : index
    %417 = vector.load %arg0[%c15, %c0_119, %c0_120] : memref<35x2x240xf32, #tpu.memory_space<vmem>>, vector<1x2x240xf32>
    %418 = vector.shape_cast %417 : vector<1x2x240xf32> to vector<2x240xf32>
    %419 = arith.addf %416, %418 : vector<2x240xf32>
    %420 = arith.addf %419, %3 : vector<2x240xf32>
    %421 = arith.negf %420 : vector<2x240xf32>
    %422 = math.exp %421 : vector<2x240xf32>
    %cst_121 = arith.constant 1.000000e+00 : f32
    %423 = vector.broadcast %cst_121 : f32 to vector<2x240xf32>
    %424 = arith.addf %423, %422 : vector<2x240xf32>
    %425 = arith.divf %423, %424 : vector<2x240xf32>
    %426 = math.tanh %420 : vector<2x240xf32>
    %427 = vector.extract_strided_slice %425 {offsets = [0, 0], sizes = [2, 60], strides = [1, 1]} : vector<2x240xf32> to vector<2x60xf32>
    %428 = vector.extract_strided_slice %425 {offsets = [0, 60], sizes = [2, 60], strides = [1, 1]} : vector<2x240xf32> to vector<2x60xf32>
    %429 = vector.extract_strided_slice %426 {offsets = [0, 120], sizes = [2, 60], strides = [1, 1]} : vector<2x240xf32> to vector<2x60xf32>
    %430 = vector.extract_strided_slice %425 {offsets = [0, 180], sizes = [2, 60], strides = [1, 1]} : vector<2x240xf32> to vector<2x60xf32>
    %431 = arith.mulf %428, %406 : vector<2x60xf32>
    %432 = arith.mulf %427, %429 : vector<2x60xf32>
    %433 = arith.addf %431, %432 : vector<2x60xf32>
    %434 = math.tanh %433 : vector<2x60xf32>
    %435 = arith.mulf %430, %434 : vector<2x60xf32>
    %436 = vector.extract_strided_slice %435 {offsets = [0, 40], sizes = [2, 20], strides = [1, 1]} : vector<2x60xf32> to vector<2x20xf32>
    %cst_122 = arith.constant 0.000000e+00 : f32
    %437 = vector.broadcast %cst_122 : f32 to vector<2x20xf32>
    %438 = arith.maximumf %436, %437 : vector<2x20xf32>
    %c13_123 = arith.constant 13 : index
    %c0_124 = arith.constant 0 : index
    %c0_125 = arith.constant 0 : index
    %439 = vector.load %arg10[%c13_123, %c0_124, %c0_125] : memref<33x2x20xf32, #tpu.memory_space<vmem>>, vector<1x2x20xf32>
    %440 = vector.shape_cast %439 : vector<1x2x20xf32> to vector<2x20xf32>
    %441 = vector.shape_cast %438 : vector<2x20xf32> to vector<1x2x20xf32>
    tpu.vector_store %arg10[%c13_123, %c0_124, %c0_125], %441 {strides = array<i32>} : memref<33x2x20xf32, #tpu.memory_space<vmem>>, vector<1x2x20xf32>,
    %442 = arith.truncf %435 : vector<2x60xf32> to vector<2x60xbf16>
    %cst_126 = arith.constant dense<0.000000e+00> : vector<2x240xf32>
    %443 = tpu.matmul %442, %0, %cst_126 {dimension_numbers = #tpu.dot_dimension_numbers<[1], [0], [0], [1], [0, 0, 1, 1], [], []>} : vector<2x60xbf16>, vector<60x240xbf16>, vector<2x240xf32> -> vector<2x240xf32>
    %c16 = arith.constant 16 : index
    %c0_127 = arith.constant 0 : index
    %c0_128 = arith.constant 0 : index
    %444 = vector.load %arg0[%c16, %c0_127, %c0_128] : memref<35x2x240xf32, #tpu.memory_space<vmem>>, vector<1x2x240xf32>
    %445 = vector.shape_cast %444 : vector<1x2x240xf32> to vector<2x240xf32>
    %446 = arith.addf %443, %445 : vector<2x240xf32>
    %447 = arith.addf %446, %3 : vector<2x240xf32>
    %448 = arith.negf %447 : vector<2x240xf32>
    %449 = math.exp %448 : vector<2x240xf32>
    %cst_129 = arith.constant 1.000000e+00 : f32
    %450 = vector.broadcast %cst_129 : f32 to vector<2x240xf32>
    %451 = arith.addf %450, %449 : vector<2x240xf32>
    %452 = arith.divf %450, %451 : vector<2x240xf32>
    %453 = math.tanh %447 : vector<2x240xf32>
    %454 = vector.extract_strided_slice %452 {offsets = [0, 0], sizes = [2, 60], strides = [1, 1]} : vector<2x240xf32> to vector<2x60xf32>
    %455 = vector.extract_strided_slice %452 {offsets = [0, 60], sizes = [2, 60], strides = [1, 1]} : vector<2x240xf32> to vector<2x60xf32>
    %456 = vector.extract_strided_slice %453 {offsets = [0, 120], sizes = [2, 60], strides = [1, 1]} : vector<2x240xf32> to vector<2x60xf32>
    %457 = vector.extract_strided_slice %452 {offsets = [0, 180], sizes = [2, 60], strides = [1, 1]} : vector<2x240xf32> to vector<2x60xf32>
    %458 = arith.mulf %455, %433 : vector<2x60xf32>
    %459 = arith.mulf %454, %456 : vector<2x60xf32>
    %460 = arith.addf %458, %459 : vector<2x60xf32>
    %461 = math.tanh %460 : vector<2x60xf32>
    %462 = arith.mulf %457, %461 : vector<2x60xf32>
    %463 = vector.extract_strided_slice %462 {offsets = [0, 40], sizes = [2, 20], strides = [1, 1]} : vector<2x60xf32> to vector<2x20xf32>
    %cst_130 = arith.constant 0.000000e+00 : f32
    %464 = vector.broadcast %cst_130 : f32 to vector<2x20xf32>
    %465 = arith.maximumf %463, %464 : vector<2x20xf32>
    %c14_131 = arith.constant 14 : index
    %c0_132 = arith.constant 0 : index
    %c0_133 = arith.constant 0 : index
    %466 = vector.load %arg10[%c14_131, %c0_132, %c0_133] : memref<33x2x20xf32, #tpu.memory_space<vmem>>, vector<1x2x20xf32>
    %467 = vector.shape_cast %466 : vector<1x2x20xf32> to vector<2x20xf32>
    %468 = vector.shape_cast %465 : vector<2x20xf32> to vector<1x2x20xf32>
    tpu.vector_store %arg10[%c14_131, %c0_132, %c0_133], %468 {strides = array<i32>} : memref<33x2x20xf32, #tpu.memory_space<vmem>>, vector<1x2x20xf32>,
    %469 = arith.truncf %462 : vector<2x60xf32> to vector<2x60xbf16>
    %cst_134 = arith.constant dense<0.000000e+00> : vector<2x240xf32>
    %470 = tpu.matmul %469, %0, %cst_134 {dimension_numbers = #tpu.dot_dimension_numbers<[1], [0], [0], [1], [0, 0, 1, 1], [], []>} : vector<2x60xbf16>, vector<60x240xbf16>, vector<2x240xf32> -> vector<2x240xf32>
    %c17 = arith.constant 17 : index
    %c0_135 = arith.constant 0 : index
    %c0_136 = arith.constant 0 : index
    %471 = vector.load %arg0[%c17, %c0_135, %c0_136] : memref<35x2x240xf32, #tpu.memory_space<vmem>>, vector<1x2x240xf32>
    %472 = vector.shape_cast %471 : vector<1x2x240xf32> to vector<2x240xf32>
    %473 = arith.addf %470, %472 : vector<2x240xf32>
    %474 = arith.addf %473, %3 : vector<2x240xf32>
    %475 = arith.negf %474 : vector<2x240xf32>
    %476 = math.exp %475 : vector<2x240xf32>
    %cst_137 = arith.constant 1.000000e+00 : f32
    %477 = vector.broadcast %cst_137 : f32 to vector<2x240xf32>
    %478 = arith.addf %477, %476 : vector<2x240xf32>
    %479 = arith.divf %477, %478 : vector<2x240xf32>
    %480 = math.tanh %474 : vector<2x240xf32>
    %481 = vector.extract_strided_slice %479 {offsets = [0, 0], sizes = [2, 60], strides = [1, 1]} : vector<2x240xf32> to vector<2x60xf32>
    %482 = vector.extract_strided_slice %479 {offsets = [0, 60], sizes = [2, 60], strides = [1, 1]} : vector<2x240xf32> to vector<2x60xf32>
    %483 = vector.extract_strided_slice %480 {offsets = [0, 120], sizes = [2, 60], strides = [1, 1]} : vector<2x240xf32> to vector<2x60xf32>
    %484 = vector.extract_strided_slice %479 {offsets = [0, 180], sizes = [2, 60], strides = [1, 1]} : vector<2x240xf32> to vector<2x60xf32>
    %485 = arith.mulf %482, %460 : vector<2x60xf32>
    %486 = arith.mulf %481, %483 : vector<2x60xf32>
    %487 = arith.addf %485, %486 : vector<2x60xf32>
    %488 = math.tanh %487 : vector<2x60xf32>
    %489 = arith.mulf %484, %488 : vector<2x60xf32>
    %490 = vector.extract_strided_slice %489 {offsets = [0, 40], sizes = [2, 20], strides = [1, 1]} : vector<2x60xf32> to vector<2x20xf32>
    %cst_138 = arith.constant 0.000000e+00 : f32
    %491 = vector.broadcast %cst_138 : f32 to vector<2x20xf32>
    %492 = arith.maximumf %490, %491 : vector<2x20xf32>
    %c15_139 = arith.constant 15 : index
    %c0_140 = arith.constant 0 : index
    %c0_141 = arith.constant 0 : index
    %493 = vector.load %arg10[%c15_139, %c0_140, %c0_141] : memref<33x2x20xf32, #tpu.memory_space<vmem>>, vector<1x2x20xf32>
    %494 = vector.shape_cast %493 : vector<1x2x20xf32> to vector<2x20xf32>
    %495 = vector.shape_cast %492 : vector<2x20xf32> to vector<1x2x20xf32>
    tpu.vector_store %arg10[%c15_139, %c0_140, %c0_141], %495 {strides = array<i32>} : memref<33x2x20xf32, #tpu.memory_space<vmem>>, vector<1x2x20xf32>,
    %496 = arith.truncf %489 : vector<2x60xf32> to vector<2x60xbf16>
    %cst_142 = arith.constant dense<0.000000e+00> : vector<2x240xf32>
    %497 = tpu.matmul %496, %0, %cst_142 {dimension_numbers = #tpu.dot_dimension_numbers<[1], [0], [0], [1], [0, 0, 1, 1], [], []>} : vector<2x60xbf16>, vector<60x240xbf16>, vector<2x240xf32> -> vector<2x240xf32>
    %c18 = arith.constant 18 : index
    %c0_143 = arith.constant 0 : index
    %c0_144 = arith.constant 0 : index
    %498 = vector.load %arg0[%c18, %c0_143, %c0_144] : memref<35x2x240xf32, #tpu.memory_space<vmem>>, vector<1x2x240xf32>
    %499 = vector.shape_cast %498 : vector<1x2x240xf32> to vector<2x240xf32>
    %500 = arith.addf %497, %499 : vector<2x240xf32>
    %501 = arith.addf %500, %3 : vector<2x240xf32>
    %502 = arith.negf %501 : vector<2x240xf32>
    %503 = math.exp %502 : vector<2x240xf32>
    %cst_145 = arith.constant 1.000000e+00 : f32
    %504 = vector.broadcast %cst_145 : f32 to vector<2x240xf32>
    %505 = arith.addf %504, %503 : vector<2x240xf32>
    %506 = arith.divf %504, %505 : vector<2x240xf32>
    %507 = math.tanh %501 : vector<2x240xf32>
    %508 = vector.extract_strided_slice %506 {offsets = [0, 0], sizes = [2, 60], strides = [1, 1]} : vector<2x240xf32> to vector<2x60xf32>
    %509 = vector.extract_strided_slice %506 {offsets = [0, 60], sizes = [2, 60], strides = [1, 1]} : vector<2x240xf32> to vector<2x60xf32>
    %510 = vector.extract_strided_slice %507 {offsets = [0, 120], sizes = [2, 60], strides = [1, 1]} : vector<2x240xf32> to vector<2x60xf32>
    %511 = vector.extract_strided_slice %506 {offsets = [0, 180], sizes = [2, 60], strides = [1, 1]} : vector<2x240xf32> to vector<2x60xf32>
    %512 = arith.mulf %509, %487 : vector<2x60xf32>
    %513 = arith.mulf %508, %510 : vector<2x60xf32>
    %514 = arith.addf %512, %513 : vector<2x60xf32>
    %515 = math.tanh %514 : vector<2x60xf32>
    %516 = arith.mulf %511, %515 : vector<2x60xf32>
    %517 = vector.extract_strided_slice %516 {offsets = [0, 40], sizes = [2, 20], strides = [1, 1]} : vector<2x60xf32> to vector<2x20xf32>
    %cst_146 = arith.constant 0.000000e+00 : f32
    %518 = vector.broadcast %cst_146 : f32 to vector<2x20xf32>
    %519 = arith.maximumf %517, %518 : vector<2x20xf32>
    %c16_147 = arith.constant 16 : index
    %c0_148 = arith.constant 0 : index
    %c0_149 = arith.constant 0 : index
    %520 = vector.load %arg10[%c16_147, %c0_148, %c0_149] : memref<33x2x20xf32, #tpu.memory_space<vmem>>, vector<1x2x20xf32>
    %521 = vector.shape_cast %520 : vector<1x2x20xf32> to vector<2x20xf32>
    %522 = vector.shape_cast %519 : vector<2x20xf32> to vector<1x2x20xf32>
    tpu.vector_store %arg10[%c16_147, %c0_148, %c0_149], %522 {strides = array<i32>} : memref<33x2x20xf32, #tpu.memory_space<vmem>>, vector<1x2x20xf32>,
    %523 = arith.truncf %516 : vector<2x60xf32> to vector<2x60xbf16>
    %cst_150 = arith.constant dense<0.000000e+00> : vector<2x240xf32>
    %524 = tpu.matmul %523, %0, %cst_150 {dimension_numbers = #tpu.dot_dimension_numbers<[1], [0], [0], [1], [0, 0, 1, 1], [], []>} : vector<2x60xbf16>, vector<60x240xbf16>, vector<2x240xf32> -> vector<2x240xf32>
    %c19 = arith.constant 19 : index
    %c0_151 = arith.constant 0 : index
    %c0_152 = arith.constant 0 : index
    %525 = vector.load %arg0[%c19, %c0_151, %c0_152] : memref<35x2x240xf32, #tpu.memory_space<vmem>>, vector<1x2x240xf32>
    %526 = vector.shape_cast %525 : vector<1x2x240xf32> to vector<2x240xf32>
    %527 = arith.addf %524, %526 : vector<2x240xf32>
    %528 = arith.addf %527, %3 : vector<2x240xf32>
    %529 = arith.negf %528 : vector<2x240xf32>
    %530 = math.exp %529 : vector<2x240xf32>
    %cst_153 = arith.constant 1.000000e+00 : f32
    %531 = vector.broadcast %cst_153 : f32 to vector<2x240xf32>
    %532 = arith.addf %531, %530 : vector<2x240xf32>
    %533 = arith.divf %531, %532 : vector<2x240xf32>
    %534 = math.tanh %528 : vector<2x240xf32>
    %535 = vector.extract_strided_slice %533 {offsets = [0, 0], sizes = [2, 60], strides = [1, 1]} : vector<2x240xf32> to vector<2x60xf32>
    %536 = vector.extract_strided_slice %533 {offsets = [0, 60], sizes = [2, 60], strides = [1, 1]} : vector<2x240xf32> to vector<2x60xf32>
    %537 = vector.extract_strided_slice %534 {offsets = [0, 120], sizes = [2, 60], strides = [1, 1]} : vector<2x240xf32> to vector<2x60xf32>
    %538 = vector.extract_strided_slice %533 {offsets = [0, 180], sizes = [2, 60], strides = [1, 1]} : vector<2x240xf32> to vector<2x60xf32>
    %539 = arith.mulf %536, %514 : vector<2x60xf32>
    %540 = arith.mulf %535, %537 : vector<2x60xf32>
    %541 = arith.addf %539, %540 : vector<2x60xf32>
    %542 = math.tanh %541 : vector<2x60xf32>
    %543 = arith.mulf %538, %542 : vector<2x60xf32>
    %544 = vector.extract_strided_slice %543 {offsets = [0, 40], sizes = [2, 20], strides = [1, 1]} : vector<2x60xf32> to vector<2x20xf32>
    %cst_154 = arith.constant 0.000000e+00 : f32
    %545 = vector.broadcast %cst_154 : f32 to vector<2x20xf32>
    %546 = arith.maximumf %544, %545 : vector<2x20xf32>
    %c17_155 = arith.constant 17 : index
    %c0_156 = arith.constant 0 : index
    %c0_157 = arith.constant 0 : index
    %547 = vector.load %arg10[%c17_155, %c0_156, %c0_157] : memref<33x2x20xf32, #tpu.memory_space<vmem>>, vector<1x2x20xf32>
    %548 = vector.shape_cast %547 : vector<1x2x20xf32> to vector<2x20xf32>
    %549 = vector.shape_cast %546 : vector<2x20xf32> to vector<1x2x20xf32>
    tpu.vector_store %arg10[%c17_155, %c0_156, %c0_157], %549 {strides = array<i32>} : memref<33x2x20xf32, #tpu.memory_space<vmem>>, vector<1x2x20xf32>,
    %550 = arith.truncf %543 : vector<2x60xf32> to vector<2x60xbf16>
    %cst_158 = arith.constant dense<0.000000e+00> : vector<2x240xf32>
    %551 = tpu.matmul %550, %0, %cst_158 {dimension_numbers = #tpu.dot_dimension_numbers<[1], [0], [0], [1], [0, 0, 1, 1], [], []>} : vector<2x60xbf16>, vector<60x240xbf16>, vector<2x240xf32> -> vector<2x240xf32>
    %c20 = arith.constant 20 : index
    %c0_159 = arith.constant 0 : index
    %c0_160 = arith.constant 0 : index
    %552 = vector.load %arg0[%c20, %c0_159, %c0_160] : memref<35x2x240xf32, #tpu.memory_space<vmem>>, vector<1x2x240xf32>
    %553 = vector.shape_cast %552 : vector<1x2x240xf32> to vector<2x240xf32>
    %554 = arith.addf %551, %553 : vector<2x240xf32>
    %555 = arith.addf %554, %3 : vector<2x240xf32>
    %556 = arith.negf %555 : vector<2x240xf32>
    %557 = math.exp %556 : vector<2x240xf32>
    %cst_161 = arith.constant 1.000000e+00 : f32
    %558 = vector.broadcast %cst_161 : f32 to vector<2x240xf32>
    %559 = arith.addf %558, %557 : vector<2x240xf32>
    %560 = arith.divf %558, %559 : vector<2x240xf32>
    %561 = math.tanh %555 : vector<2x240xf32>
    %562 = vector.extract_strided_slice %560 {offsets = [0, 0], sizes = [2, 60], strides = [1, 1]} : vector<2x240xf32> to vector<2x60xf32>
    %563 = vector.extract_strided_slice %560 {offsets = [0, 60], sizes = [2, 60], strides = [1, 1]} : vector<2x240xf32> to vector<2x60xf32>
    %564 = vector.extract_strided_slice %561 {offsets = [0, 120], sizes = [2, 60], strides = [1, 1]} : vector<2x240xf32> to vector<2x60xf32>
    %565 = vector.extract_strided_slice %560 {offsets = [0, 180], sizes = [2, 60], strides = [1, 1]} : vector<2x240xf32> to vector<2x60xf32>
    %566 = arith.mulf %563, %541 : vector<2x60xf32>
    %567 = arith.mulf %562, %564 : vector<2x60xf32>
    %568 = arith.addf %566, %567 : vector<2x60xf32>
    %569 = math.tanh %568 : vector<2x60xf32>
    %570 = arith.mulf %565, %569 : vector<2x60xf32>
    %571 = vector.extract_strided_slice %570 {offsets = [0, 40], sizes = [2, 20], strides = [1, 1]} : vector<2x60xf32> to vector<2x20xf32>
    %cst_162 = arith.constant 0.000000e+00 : f32
    %572 = vector.broadcast %cst_162 : f32 to vector<2x20xf32>
    %573 = arith.maximumf %571, %572 : vector<2x20xf32>
    %c18_163 = arith.constant 18 : index
    %c0_164 = arith.constant 0 : index
    %c0_165 = arith.constant 0 : index
    %574 = vector.load %arg10[%c18_163, %c0_164, %c0_165] : memref<33x2x20xf32, #tpu.memory_space<vmem>>, vector<1x2x20xf32>
    %575 = vector.shape_cast %574 : vector<1x2x20xf32> to vector<2x20xf32>
    %576 = vector.shape_cast %573 : vector<2x20xf32> to vector<1x2x20xf32>
    tpu.vector_store %arg10[%c18_163, %c0_164, %c0_165], %576 {strides = array<i32>} : memref<33x2x20xf32, #tpu.memory_space<vmem>>, vector<1x2x20xf32>,
    %577 = arith.truncf %570 : vector<2x60xf32> to vector<2x60xbf16>
    %cst_166 = arith.constant dense<0.000000e+00> : vector<2x240xf32>
    %578 = tpu.matmul %577, %0, %cst_166 {dimension_numbers = #tpu.dot_dimension_numbers<[1], [0], [0], [1], [0, 0, 1, 1], [], []>} : vector<2x60xbf16>, vector<60x240xbf16>, vector<2x240xf32> -> vector<2x240xf32>
    %c21 = arith.constant 21 : index
    %c0_167 = arith.constant 0 : index
    %c0_168 = arith.constant 0 : index
    %579 = vector.load %arg0[%c21, %c0_167, %c0_168] : memref<35x2x240xf32, #tpu.memory_space<vmem>>, vector<1x2x240xf32>
    %580 = vector.shape_cast %579 : vector<1x2x240xf32> to vector<2x240xf32>
    %581 = arith.addf %578, %580 : vector<2x240xf32>
    %582 = arith.addf %581, %3 : vector<2x240xf32>
    %583 = arith.negf %582 : vector<2x240xf32>
    %584 = math.exp %583 : vector<2x240xf32>
    %cst_169 = arith.constant 1.000000e+00 : f32
    %585 = vector.broadcast %cst_169 : f32 to vector<2x240xf32>
    %586 = arith.addf %585, %584 : vector<2x240xf32>
    %587 = arith.divf %585, %586 : vector<2x240xf32>
    %588 = math.tanh %582 : vector<2x240xf32>
    %589 = vector.extract_strided_slice %587 {offsets = [0, 0], sizes = [2, 60], strides = [1, 1]} : vector<2x240xf32> to vector<2x60xf32>
    %590 = vector.extract_strided_slice %587 {offsets = [0, 60], sizes = [2, 60], strides = [1, 1]} : vector<2x240xf32> to vector<2x60xf32>
    %591 = vector.extract_strided_slice %588 {offsets = [0, 120], sizes = [2, 60], strides = [1, 1]} : vector<2x240xf32> to vector<2x60xf32>
    %592 = vector.extract_strided_slice %587 {offsets = [0, 180], sizes = [2, 60], strides = [1, 1]} : vector<2x240xf32> to vector<2x60xf32>
    %593 = arith.mulf %590, %568 : vector<2x60xf32>
    %594 = arith.mulf %589, %591 : vector<2x60xf32>
    %595 = arith.addf %593, %594 : vector<2x60xf32>
    %596 = math.tanh %595 : vector<2x60xf32>
    %597 = arith.mulf %592, %596 : vector<2x60xf32>
    %598 = vector.extract_strided_slice %597 {offsets = [0, 40], sizes = [2, 20], strides = [1, 1]} : vector<2x60xf32> to vector<2x20xf32>
    %cst_170 = arith.constant 0.000000e+00 : f32
    %599 = vector.broadcast %cst_170 : f32 to vector<2x20xf32>
    %600 = arith.maximumf %598, %599 : vector<2x20xf32>
    %c19_171 = arith.constant 19 : index
    %c0_172 = arith.constant 0 : index
    %c0_173 = arith.constant 0 : index
    %601 = vector.load %arg10[%c19_171, %c0_172, %c0_173] : memref<33x2x20xf32, #tpu.memory_space<vmem>>, vector<1x2x20xf32>
    %602 = vector.shape_cast %601 : vector<1x2x20xf32> to vector<2x20xf32>
    %603 = vector.shape_cast %600 : vector<2x20xf32> to vector<1x2x20xf32>
    tpu.vector_store %arg10[%c19_171, %c0_172, %c0_173], %603 {strides = array<i32>} : memref<33x2x20xf32, #tpu.memory_space<vmem>>, vector<1x2x20xf32>,
    %604 = arith.truncf %597 : vector<2x60xf32> to vector<2x60xbf16>
    %cst_174 = arith.constant dense<0.000000e+00> : vector<2x240xf32>
    %605 = tpu.matmul %604, %0, %cst_174 {dimension_numbers = #tpu.dot_dimension_numbers<[1], [0], [0], [1], [0, 0, 1, 1], [], []>} : vector<2x60xbf16>, vector<60x240xbf16>, vector<2x240xf32> -> vector<2x240xf32>
    %c22 = arith.constant 22 : index
    %c0_175 = arith.constant 0 : index
    %c0_176 = arith.constant 0 : index
    %606 = vector.load %arg0[%c22, %c0_175, %c0_176] : memref<35x2x240xf32, #tpu.memory_space<vmem>>, vector<1x2x240xf32>
    %607 = vector.shape_cast %606 : vector<1x2x240xf32> to vector<2x240xf32>
    %608 = arith.addf %605, %607 : vector<2x240xf32>
    %609 = arith.addf %608, %3 : vector<2x240xf32>
    %610 = arith.negf %609 : vector<2x240xf32>
    %611 = math.exp %610 : vector<2x240xf32>
    %cst_177 = arith.constant 1.000000e+00 : f32
    %612 = vector.broadcast %cst_177 : f32 to vector<2x240xf32>
    %613 = arith.addf %612, %611 : vector<2x240xf32>
    %614 = arith.divf %612, %613 : vector<2x240xf32>
    %615 = math.tanh %609 : vector<2x240xf32>
    %616 = vector.extract_strided_slice %614 {offsets = [0, 0], sizes = [2, 60], strides = [1, 1]} : vector<2x240xf32> to vector<2x60xf32>
    %617 = vector.extract_strided_slice %614 {offsets = [0, 60], sizes = [2, 60], strides = [1, 1]} : vector<2x240xf32> to vector<2x60xf32>
    %618 = vector.extract_strided_slice %615 {offsets = [0, 120], sizes = [2, 60], strides = [1, 1]} : vector<2x240xf32> to vector<2x60xf32>
    %619 = vector.extract_strided_slice %614 {offsets = [0, 180], sizes = [2, 60], strides = [1, 1]} : vector<2x240xf32> to vector<2x60xf32>
    %620 = arith.mulf %617, %595 : vector<2x60xf32>
    %621 = arith.mulf %616, %618 : vector<2x60xf32>
    %622 = arith.addf %620, %621 : vector<2x60xf32>
    %623 = math.tanh %622 : vector<2x60xf32>
    %624 = arith.mulf %619, %623 : vector<2x60xf32>
    %625 = vector.extract_strided_slice %624 {offsets = [0, 40], sizes = [2, 20], strides = [1, 1]} : vector<2x60xf32> to vector<2x20xf32>
    %cst_178 = arith.constant 0.000000e+00 : f32
    %626 = vector.broadcast %cst_178 : f32 to vector<2x20xf32>
    %627 = arith.maximumf %625, %626 : vector<2x20xf32>
    %c20_179 = arith.constant 20 : index
    %c0_180 = arith.constant 0 : index
    %c0_181 = arith.constant 0 : index
    %628 = vector.load %arg10[%c20_179, %c0_180, %c0_181] : memref<33x2x20xf32, #tpu.memory_space<vmem>>, vector<1x2x20xf32>
    %629 = vector.shape_cast %628 : vector<1x2x20xf32> to vector<2x20xf32>
    %630 = vector.shape_cast %627 : vector<2x20xf32> to vector<1x2x20xf32>
    tpu.vector_store %arg10[%c20_179, %c0_180, %c0_181], %630 {strides = array<i32>} : memref<33x2x20xf32, #tpu.memory_space<vmem>>, vector<1x2x20xf32>,
    %631 = arith.truncf %624 : vector<2x60xf32> to vector<2x60xbf16>
    %cst_182 = arith.constant dense<0.000000e+00> : vector<2x240xf32>
    %632 = tpu.matmul %631, %0, %cst_182 {dimension_numbers = #tpu.dot_dimension_numbers<[1], [0], [0], [1], [0, 0, 1, 1], [], []>} : vector<2x60xbf16>, vector<60x240xbf16>, vector<2x240xf32> -> vector<2x240xf32>
    %c23 = arith.constant 23 : index
    %c0_183 = arith.constant 0 : index
    %c0_184 = arith.constant 0 : index
    %633 = vector.load %arg0[%c23, %c0_183, %c0_184] : memref<35x2x240xf32, #tpu.memory_space<vmem>>, vector<1x2x240xf32>
    %634 = vector.shape_cast %633 : vector<1x2x240xf32> to vector<2x240xf32>
    %635 = arith.addf %632, %634 : vector<2x240xf32>
    %636 = arith.addf %635, %3 : vector<2x240xf32>
    %637 = arith.negf %636 : vector<2x240xf32>
    %638 = math.exp %637 : vector<2x240xf32>
    %cst_185 = arith.constant 1.000000e+00 : f32
    %639 = vector.broadcast %cst_185 : f32 to vector<2x240xf32>
    %640 = arith.addf %639, %638 : vector<2x240xf32>
    %641 = arith.divf %639, %640 : vector<2x240xf32>
    %642 = math.tanh %636 : vector<2x240xf32>
    %643 = vector.extract_strided_slice %641 {offsets = [0, 0], sizes = [2, 60], strides = [1, 1]} : vector<2x240xf32> to vector<2x60xf32>
    %644 = vector.extract_strided_slice %641 {offsets = [0, 60], sizes = [2, 60], strides = [1, 1]} : vector<2x240xf32> to vector<2x60xf32>
    %645 = vector.extract_strided_slice %642 {offsets = [0, 120], sizes = [2, 60], strides = [1, 1]} : vector<2x240xf32> to vector<2x60xf32>
    %646 = vector.extract_strided_slice %641 {offsets = [0, 180], sizes = [2, 60], strides = [1, 1]} : vector<2x240xf32> to vector<2x60xf32>
    %647 = arith.mulf %644, %622 : vector<2x60xf32>
    %648 = arith.mulf %643, %645 : vector<2x60xf32>
    %649 = arith.addf %647, %648 : vector<2x60xf32>
    %650 = math.tanh %649 : vector<2x60xf32>
    %651 = arith.mulf %646, %650 : vector<2x60xf32>
    %652 = vector.extract_strided_slice %651 {offsets = [0, 40], sizes = [2, 20], strides = [1, 1]} : vector<2x60xf32> to vector<2x20xf32>
    %cst_186 = arith.constant 0.000000e+00 : f32
    %653 = vector.broadcast %cst_186 : f32 to vector<2x20xf32>
    %654 = arith.maximumf %652, %653 : vector<2x20xf32>
    %c21_187 = arith.constant 21 : index
    %c0_188 = arith.constant 0 : index
    %c0_189 = arith.constant 0 : index
    %655 = vector.load %arg10[%c21_187, %c0_188, %c0_189] : memref<33x2x20xf32, #tpu.memory_space<vmem>>, vector<1x2x20xf32>
    %656 = vector.shape_cast %655 : vector<1x2x20xf32> to vector<2x20xf32>
    %657 = vector.shape_cast %654 : vector<2x20xf32> to vector<1x2x20xf32>
    tpu.vector_store %arg10[%c21_187, %c0_188, %c0_189], %657 {strides = array<i32>} : memref<33x2x20xf32, #tpu.memory_space<vmem>>, vector<1x2x20xf32>,
    %658 = arith.truncf %651 : vector<2x60xf32> to vector<2x60xbf16>
    %cst_190 = arith.constant dense<0.000000e+00> : vector<2x240xf32>
    %659 = tpu.matmul %658, %0, %cst_190 {dimension_numbers = #tpu.dot_dimension_numbers<[1], [0], [0], [1], [0, 0, 1, 1], [], []>} : vector<2x60xbf16>, vector<60x240xbf16>, vector<2x240xf32> -> vector<2x240xf32>
    %c24 = arith.constant 24 : index
    %c0_191 = arith.constant 0 : index
    %c0_192 = arith.constant 0 : index
    %660 = vector.load %arg0[%c24, %c0_191, %c0_192] : memref<35x2x240xf32, #tpu.memory_space<vmem>>, vector<1x2x240xf32>
    %661 = vector.shape_cast %660 : vector<1x2x240xf32> to vector<2x240xf32>
    %662 = arith.addf %659, %661 : vector<2x240xf32>
    %663 = arith.addf %662, %3 : vector<2x240xf32>
    %664 = arith.negf %663 : vector<2x240xf32>
    %665 = math.exp %664 : vector<2x240xf32>
    %cst_193 = arith.constant 1.000000e+00 : f32
    %666 = vector.broadcast %cst_193 : f32 to vector<2x240xf32>
    %667 = arith.addf %666, %665 : vector<2x240xf32>
    %668 = arith.divf %666, %667 : vector<2x240xf32>
    %669 = math.tanh %663 : vector<2x240xf32>
    %670 = vector.extract_strided_slice %668 {offsets = [0, 0], sizes = [2, 60], strides = [1, 1]} : vector<2x240xf32> to vector<2x60xf32>
    %671 = vector.extract_strided_slice %668 {offsets = [0, 60], sizes = [2, 60], strides = [1, 1]} : vector<2x240xf32> to vector<2x60xf32>
    %672 = vector.extract_strided_slice %669 {offsets = [0, 120], sizes = [2, 60], strides = [1, 1]} : vector<2x240xf32> to vector<2x60xf32>
    %673 = vector.extract_strided_slice %668 {offsets = [0, 180], sizes = [2, 60], strides = [1, 1]} : vector<2x240xf32> to vector<2x60xf32>
    %674 = arith.mulf %671, %649 : vector<2x60xf32>
    %675 = arith.mulf %670, %672 : vector<2x60xf32>
    %676 = arith.addf %674, %675 : vector<2x60xf32>
    %677 = math.tanh %676 : vector<2x60xf32>
    %678 = arith.mulf %673, %677 : vector<2x60xf32>
    %679 = vector.extract_strided_slice %678 {offsets = [0, 40], sizes = [2, 20], strides = [1, 1]} : vector<2x60xf32> to vector<2x20xf32>
    %cst_194 = arith.constant 0.000000e+00 : f32
    %680 = vector.broadcast %cst_194 : f32 to vector<2x20xf32>
    %681 = arith.maximumf %679, %680 : vector<2x20xf32>
    %c22_195 = arith.constant 22 : index
    %c0_196 = arith.constant 0 : index
    %c0_197 = arith.constant 0 : index
    %682 = vector.load %arg10[%c22_195, %c0_196, %c0_197] : memref<33x2x20xf32, #tpu.memory_space<vmem>>, vector<1x2x20xf32>
    %683 = vector.shape_cast %682 : vector<1x2x20xf32> to vector<2x20xf32>
    %684 = vector.shape_cast %681 : vector<2x20xf32> to vector<1x2x20xf32>
    tpu.vector_store %arg10[%c22_195, %c0_196, %c0_197], %684 {strides = array<i32>} : memref<33x2x20xf32, #tpu.memory_space<vmem>>, vector<1x2x20xf32>,
    %685 = arith.truncf %678 : vector<2x60xf32> to vector<2x60xbf16>
    %cst_198 = arith.constant dense<0.000000e+00> : vector<2x240xf32>
    %686 = tpu.matmul %685, %0, %cst_198 {dimension_numbers = #tpu.dot_dimension_numbers<[1], [0], [0], [1], [0, 0, 1, 1], [], []>} : vector<2x60xbf16>, vector<60x240xbf16>, vector<2x240xf32> -> vector<2x240xf32>
    %c25 = arith.constant 25 : index
    %c0_199 = arith.constant 0 : index
    %c0_200 = arith.constant 0 : index
    %687 = vector.load %arg0[%c25, %c0_199, %c0_200] : memref<35x2x240xf32, #tpu.memory_space<vmem>>, vector<1x2x240xf32>
    %688 = vector.shape_cast %687 : vector<1x2x240xf32> to vector<2x240xf32>
    %689 = arith.addf %686, %688 : vector<2x240xf32>
    %690 = arith.addf %689, %3 : vector<2x240xf32>
    %691 = arith.negf %690 : vector<2x240xf32>
    %692 = math.exp %691 : vector<2x240xf32>
    %cst_201 = arith.constant 1.000000e+00 : f32
    %693 = vector.broadcast %cst_201 : f32 to vector<2x240xf32>
    %694 = arith.addf %693, %692 : vector<2x240xf32>
    %695 = arith.divf %693, %694 : vector<2x240xf32>
    %696 = math.tanh %690 : vector<2x240xf32>
    %697 = vector.extract_strided_slice %695 {offsets = [0, 0], sizes = [2, 60], strides = [1, 1]} : vector<2x240xf32> to vector<2x60xf32>
    %698 = vector.extract_strided_slice %695 {offsets = [0, 60], sizes = [2, 60], strides = [1, 1]} : vector<2x240xf32> to vector<2x60xf32>
    %699 = vector.extract_strided_slice %696 {offsets = [0, 120], sizes = [2, 60], strides = [1, 1]} : vector<2x240xf32> to vector<2x60xf32>
    %700 = vector.extract_strided_slice %695 {offsets = [0, 180], sizes = [2, 60], strides = [1, 1]} : vector<2x240xf32> to vector<2x60xf32>
    %701 = arith.mulf %698, %676 : vector<2x60xf32>
    %702 = arith.mulf %697, %699 : vector<2x60xf32>
    %703 = arith.addf %701, %702 : vector<2x60xf32>
    %704 = math.tanh %703 : vector<2x60xf32>
    %705 = arith.mulf %700, %704 : vector<2x60xf32>
    %706 = vector.extract_strided_slice %705 {offsets = [0, 40], sizes = [2, 20], strides = [1, 1]} : vector<2x60xf32> to vector<2x20xf32>
    %cst_202 = arith.constant 0.000000e+00 : f32
    %707 = vector.broadcast %cst_202 : f32 to vector<2x20xf32>
    %708 = arith.maximumf %706, %707 : vector<2x20xf32>
    %c23_203 = arith.constant 23 : index
    %c0_204 = arith.constant 0 : index
    %c0_205 = arith.constant 0 : index
    %709 = vector.load %arg10[%c23_203, %c0_204, %c0_205] : memref<33x2x20xf32, #tpu.memory_space<vmem>>, vector<1x2x20xf32>
    %710 = vector.shape_cast %709 : vector<1x2x20xf32> to vector<2x20xf32>
    %711 = vector.shape_cast %708 : vector<2x20xf32> to vector<1x2x20xf32>
    tpu.vector_store %arg10[%c23_203, %c0_204, %c0_205], %711 {strides = array<i32>} : memref<33x2x20xf32, #tpu.memory_space<vmem>>, vector<1x2x20xf32>,
    %712 = arith.truncf %705 : vector<2x60xf32> to vector<2x60xbf16>
    %cst_206 = arith.constant dense<0.000000e+00> : vector<2x240xf32>
    %713 = tpu.matmul %712, %0, %cst_206 {dimension_numbers = #tpu.dot_dimension_numbers<[1], [0], [0], [1], [0, 0, 1, 1], [], []>} : vector<2x60xbf16>, vector<60x240xbf16>, vector<2x240xf32> -> vector<2x240xf32>
    %c26 = arith.constant 26 : index
    %c0_207 = arith.constant 0 : index
    %c0_208 = arith.constant 0 : index
    %714 = vector.load %arg0[%c26, %c0_207, %c0_208] : memref<35x2x240xf32, #tpu.memory_space<vmem>>, vector<1x2x240xf32>
    %715 = vector.shape_cast %714 : vector<1x2x240xf32> to vector<2x240xf32>
    %716 = arith.addf %713, %715 : vector<2x240xf32>
    %717 = arith.addf %716, %3 : vector<2x240xf32>
    %718 = arith.negf %717 : vector<2x240xf32>
    %719 = math.exp %718 : vector<2x240xf32>
    %cst_209 = arith.constant 1.000000e+00 : f32
    %720 = vector.broadcast %cst_209 : f32 to vector<2x240xf32>
    %721 = arith.addf %720, %719 : vector<2x240xf32>
    %722 = arith.divf %720, %721 : vector<2x240xf32>
    %723 = math.tanh %717 : vector<2x240xf32>
    %724 = vector.extract_strided_slice %722 {offsets = [0, 0], sizes = [2, 60], strides = [1, 1]} : vector<2x240xf32> to vector<2x60xf32>
    %725 = vector.extract_strided_slice %722 {offsets = [0, 60], sizes = [2, 60], strides = [1, 1]} : vector<2x240xf32> to vector<2x60xf32>
    %726 = vector.extract_strided_slice %723 {offsets = [0, 120], sizes = [2, 60], strides = [1, 1]} : vector<2x240xf32> to vector<2x60xf32>
    %727 = vector.extract_strided_slice %722 {offsets = [0, 180], sizes = [2, 60], strides = [1, 1]} : vector<2x240xf32> to vector<2x60xf32>
    %728 = arith.mulf %725, %703 : vector<2x60xf32>
    %729 = arith.mulf %724, %726 : vector<2x60xf32>
    %730 = arith.addf %728, %729 : vector<2x60xf32>
    %731 = math.tanh %730 : vector<2x60xf32>
    %732 = arith.mulf %727, %731 : vector<2x60xf32>
    %733 = vector.extract_strided_slice %732 {offsets = [0, 40], sizes = [2, 20], strides = [1, 1]} : vector<2x60xf32> to vector<2x20xf32>
    %cst_210 = arith.constant 0.000000e+00 : f32
    %734 = vector.broadcast %cst_210 : f32 to vector<2x20xf32>
    %735 = arith.maximumf %733, %734 : vector<2x20xf32>
    %c24_211 = arith.constant 24 : index
    %c0_212 = arith.constant 0 : index
    %c0_213 = arith.constant 0 : index
    %736 = vector.load %arg10[%c24_211, %c0_212, %c0_213] : memref<33x2x20xf32, #tpu.memory_space<vmem>>, vector<1x2x20xf32>
    %737 = vector.shape_cast %736 : vector<1x2x20xf32> to vector<2x20xf32>
    %738 = vector.shape_cast %735 : vector<2x20xf32> to vector<1x2x20xf32>
    tpu.vector_store %arg10[%c24_211, %c0_212, %c0_213], %738 {strides = array<i32>} : memref<33x2x20xf32, #tpu.memory_space<vmem>>, vector<1x2x20xf32>,
    %739 = arith.truncf %732 : vector<2x60xf32> to vector<2x60xbf16>
    %cst_214 = arith.constant dense<0.000000e+00> : vector<2x240xf32>
    %740 = tpu.matmul %739, %0, %cst_214 {dimension_numbers = #tpu.dot_dimension_numbers<[1], [0], [0], [1], [0, 0, 1, 1], [], []>} : vector<2x60xbf16>, vector<60x240xbf16>, vector<2x240xf32> -> vector<2x240xf32>
    %c27 = arith.constant 27 : index
    %c0_215 = arith.constant 0 : index
    %c0_216 = arith.constant 0 : index
    %741 = vector.load %arg0[%c27, %c0_215, %c0_216] : memref<35x2x240xf32, #tpu.memory_space<vmem>>, vector<1x2x240xf32>
    %742 = vector.shape_cast %741 : vector<1x2x240xf32> to vector<2x240xf32>
    %743 = arith.addf %740, %742 : vector<2x240xf32>
    %744 = arith.addf %743, %3 : vector<2x240xf32>
    %745 = arith.negf %744 : vector<2x240xf32>
    %746 = math.exp %745 : vector<2x240xf32>
    %cst_217 = arith.constant 1.000000e+00 : f32
    %747 = vector.broadcast %cst_217 : f32 to vector<2x240xf32>
    %748 = arith.addf %747, %746 : vector<2x240xf32>
    %749 = arith.divf %747, %748 : vector<2x240xf32>
    %750 = math.tanh %744 : vector<2x240xf32>
    %751 = vector.extract_strided_slice %749 {offsets = [0, 0], sizes = [2, 60], strides = [1, 1]} : vector<2x240xf32> to vector<2x60xf32>
    %752 = vector.extract_strided_slice %749 {offsets = [0, 60], sizes = [2, 60], strides = [1, 1]} : vector<2x240xf32> to vector<2x60xf32>
    %753 = vector.extract_strided_slice %750 {offsets = [0, 120], sizes = [2, 60], strides = [1, 1]} : vector<2x240xf32> to vector<2x60xf32>
    %754 = vector.extract_strided_slice %749 {offsets = [0, 180], sizes = [2, 60], strides = [1, 1]} : vector<2x240xf32> to vector<2x60xf32>
    %755 = arith.mulf %752, %730 : vector<2x60xf32>
    %756 = arith.mulf %751, %753 : vector<2x60xf32>
    %757 = arith.addf %755, %756 : vector<2x60xf32>
    %758 = math.tanh %757 : vector<2x60xf32>
    %759 = arith.mulf %754, %758 : vector<2x60xf32>
    %760 = vector.extract_strided_slice %759 {offsets = [0, 40], sizes = [2, 20], strides = [1, 1]} : vector<2x60xf32> to vector<2x20xf32>
    %cst_218 = arith.constant 0.000000e+00 : f32
    %761 = vector.broadcast %cst_218 : f32 to vector<2x20xf32>
    %762 = arith.maximumf %760, %761 : vector<2x20xf32>
    %c25_219 = arith.constant 25 : index
    %c0_220 = arith.constant 0 : index
    %c0_221 = arith.constant 0 : index
    %763 = vector.load %arg10[%c25_219, %c0_220, %c0_221] : memref<33x2x20xf32, #tpu.memory_space<vmem>>, vector<1x2x20xf32>
    %764 = vector.shape_cast %763 : vector<1x2x20xf32> to vector<2x20xf32>
    %765 = vector.shape_cast %762 : vector<2x20xf32> to vector<1x2x20xf32>
    tpu.vector_store %arg10[%c25_219, %c0_220, %c0_221], %765 {strides = array<i32>} : memref<33x2x20xf32, #tpu.memory_space<vmem>>, vector<1x2x20xf32>,
    %766 = arith.truncf %759 : vector<2x60xf32> to vector<2x60xbf16>
    %cst_222 = arith.constant dense<0.000000e+00> : vector<2x240xf32>
    %767 = tpu.matmul %766, %0, %cst_222 {dimension_numbers = #tpu.dot_dimension_numbers<[1], [0], [0], [1], [0, 0, 1, 1], [], []>} : vector<2x60xbf16>, vector<60x240xbf16>, vector<2x240xf32> -> vector<2x240xf32>
    %c28 = arith.constant 28 : index
    %c0_223 = arith.constant 0 : index
    %c0_224 = arith.constant 0 : index
    %768 = vector.load %arg0[%c28, %c0_223, %c0_224] : memref<35x2x240xf32, #tpu.memory_space<vmem>>, vector<1x2x240xf32>
    %769 = vector.shape_cast %768 : vector<1x2x240xf32> to vector<2x240xf32>
    %770 = arith.addf %767, %769 : vector<2x240xf32>
    %771 = arith.addf %770, %3 : vector<2x240xf32>
    %772 = arith.negf %771 : vector<2x240xf32>
    %773 = math.exp %772 : vector<2x240xf32>
    %cst_225 = arith.constant 1.000000e+00 : f32
    %774 = vector.broadcast %cst_225 : f32 to vector<2x240xf32>
    %775 = arith.addf %774, %773 : vector<2x240xf32>
    %776 = arith.divf %774, %775 : vector<2x240xf32>
    %777 = math.tanh %771 : vector<2x240xf32>
    %778 = vector.extract_strided_slice %776 {offsets = [0, 0], sizes = [2, 60], strides = [1, 1]} : vector<2x240xf32> to vector<2x60xf32>
    %779 = vector.extract_strided_slice %776 {offsets = [0, 60], sizes = [2, 60], strides = [1, 1]} : vector<2x240xf32> to vector<2x60xf32>
    %780 = vector.extract_strided_slice %777 {offsets = [0, 120], sizes = [2, 60], strides = [1, 1]} : vector<2x240xf32> to vector<2x60xf32>
    %781 = vector.extract_strided_slice %776 {offsets = [0, 180], sizes = [2, 60], strides = [1, 1]} : vector<2x240xf32> to vector<2x60xf32>
    %782 = arith.mulf %779, %757 : vector<2x60xf32>
    %783 = arith.mulf %778, %780 : vector<2x60xf32>
    %784 = arith.addf %782, %783 : vector<2x60xf32>
    %785 = math.tanh %784 : vector<2x60xf32>
    %786 = arith.mulf %781, %785 : vector<2x60xf32>
    %787 = vector.extract_strided_slice %786 {offsets = [0, 40], sizes = [2, 20], strides = [1, 1]} : vector<2x60xf32> to vector<2x20xf32>
    %cst_226 = arith.constant 0.000000e+00 : f32
    %788 = vector.broadcast %cst_226 : f32 to vector<2x20xf32>
    %789 = arith.maximumf %787, %788 : vector<2x20xf32>
    %c26_227 = arith.constant 26 : index
    %c0_228 = arith.constant 0 : index
    %c0_229 = arith.constant 0 : index
    %790 = vector.load %arg10[%c26_227, %c0_228, %c0_229] : memref<33x2x20xf32, #tpu.memory_space<vmem>>, vector<1x2x20xf32>
    %791 = vector.shape_cast %790 : vector<1x2x20xf32> to vector<2x20xf32>
    %792 = vector.shape_cast %789 : vector<2x20xf32> to vector<1x2x20xf32>
    tpu.vector_store %arg10[%c26_227, %c0_228, %c0_229], %792 {strides = array<i32>} : memref<33x2x20xf32, #tpu.memory_space<vmem>>, vector<1x2x20xf32>,
    %793 = arith.truncf %786 : vector<2x60xf32> to vector<2x60xbf16>
    %cst_230 = arith.constant dense<0.000000e+00> : vector<2x240xf32>
    %794 = tpu.matmul %793, %0, %cst_230 {dimension_numbers = #tpu.dot_dimension_numbers<[1], [0], [0], [1], [0, 0, 1, 1], [], []>} : vector<2x60xbf16>, vector<60x240xbf16>, vector<2x240xf32> -> vector<2x240xf32>
    %c29 = arith.constant 29 : index
    %c0_231 = arith.constant 0 : index
    %c0_232 = arith.constant 0 : index
    %795 = vector.load %arg0[%c29, %c0_231, %c0_232] : memref<35x2x240xf32, #tpu.memory_space<vmem>>, vector<1x2x240xf32>
    %796 = vector.shape_cast %795 : vector<1x2x240xf32> to vector<2x240xf32>
    %797 = arith.addf %794, %796 : vector<2x240xf32>
    %798 = arith.addf %797, %3 : vector<2x240xf32>
    %799 = arith.negf %798 : vector<2x240xf32>
    %800 = math.exp %799 : vector<2x240xf32>
    %cst_233 = arith.constant 1.000000e+00 : f32
    %801 = vector.broadcast %cst_233 : f32 to vector<2x240xf32>
    %802 = arith.addf %801, %800 : vector<2x240xf32>
    %803 = arith.divf %801, %802 : vector<2x240xf32>
    %804 = math.tanh %798 : vector<2x240xf32>
    %805 = vector.extract_strided_slice %803 {offsets = [0, 0], sizes = [2, 60], strides = [1, 1]} : vector<2x240xf32> to vector<2x60xf32>
    %806 = vector.extract_strided_slice %803 {offsets = [0, 60], sizes = [2, 60], strides = [1, 1]} : vector<2x240xf32> to vector<2x60xf32>
    %807 = vector.extract_strided_slice %804 {offsets = [0, 120], sizes = [2, 60], strides = [1, 1]} : vector<2x240xf32> to vector<2x60xf32>
    %808 = vector.extract_strided_slice %803 {offsets = [0, 180], sizes = [2, 60], strides = [1, 1]} : vector<2x240xf32> to vector<2x60xf32>
    %809 = arith.mulf %806, %784 : vector<2x60xf32>
    %810 = arith.mulf %805, %807 : vector<2x60xf32>
    %811 = arith.addf %809, %810 : vector<2x60xf32>
    %812 = math.tanh %811 : vector<2x60xf32>
    %813 = arith.mulf %808, %812 : vector<2x60xf32>
    %814 = vector.extract_strided_slice %813 {offsets = [0, 40], sizes = [2, 20], strides = [1, 1]} : vector<2x60xf32> to vector<2x20xf32>
    %cst_234 = arith.constant 0.000000e+00 : f32
    %815 = vector.broadcast %cst_234 : f32 to vector<2x20xf32>
    %816 = arith.maximumf %814, %815 : vector<2x20xf32>
    %c27_235 = arith.constant 27 : index
    %c0_236 = arith.constant 0 : index
    %c0_237 = arith.constant 0 : index
    %817 = vector.load %arg10[%c27_235, %c0_236, %c0_237] : memref<33x2x20xf32, #tpu.memory_space<vmem>>, vector<1x2x20xf32>
    %818 = vector.shape_cast %817 : vector<1x2x20xf32> to vector<2x20xf32>
    %819 = vector.shape_cast %816 : vector<2x20xf32> to vector<1x2x20xf32>
    tpu.vector_store %arg10[%c27_235, %c0_236, %c0_237], %819 {strides = array<i32>} : memref<33x2x20xf32, #tpu.memory_space<vmem>>, vector<1x2x20xf32>,
    %820 = arith.truncf %813 : vector<2x60xf32> to vector<2x60xbf16>
    %cst_238 = arith.constant dense<0.000000e+00> : vector<2x240xf32>
    %821 = tpu.matmul %820, %0, %cst_238 {dimension_numbers = #tpu.dot_dimension_numbers<[1], [0], [0], [1], [0, 0, 1, 1], [], []>} : vector<2x60xbf16>, vector<60x240xbf16>, vector<2x240xf32> -> vector<2x240xf32>
    %c30 = arith.constant 30 : index
    %c0_239 = arith.constant 0 : index
    %c0_240 = arith.constant 0 : index
    %822 = vector.load %arg0[%c30, %c0_239, %c0_240] : memref<35x2x240xf32, #tpu.memory_space<vmem>>, vector<1x2x240xf32>
    %823 = vector.shape_cast %822 : vector<1x2x240xf32> to vector<2x240xf32>
    %824 = arith.addf %821, %823 : vector<2x240xf32>
    %825 = arith.addf %824, %3 : vector<2x240xf32>
    %826 = arith.negf %825 : vector<2x240xf32>
    %827 = math.exp %826 : vector<2x240xf32>
    %cst_241 = arith.constant 1.000000e+00 : f32
    %828 = vector.broadcast %cst_241 : f32 to vector<2x240xf32>
    %829 = arith.addf %828, %827 : vector<2x240xf32>
    %830 = arith.divf %828, %829 : vector<2x240xf32>
    %831 = math.tanh %825 : vector<2x240xf32>
    %832 = vector.extract_strided_slice %830 {offsets = [0, 0], sizes = [2, 60], strides = [1, 1]} : vector<2x240xf32> to vector<2x60xf32>
    %833 = vector.extract_strided_slice %830 {offsets = [0, 60], sizes = [2, 60], strides = [1, 1]} : vector<2x240xf32> to vector<2x60xf32>
    %834 = vector.extract_strided_slice %831 {offsets = [0, 120], sizes = [2, 60], strides = [1, 1]} : vector<2x240xf32> to vector<2x60xf32>
    %835 = vector.extract_strided_slice %830 {offsets = [0, 180], sizes = [2, 60], strides = [1, 1]} : vector<2x240xf32> to vector<2x60xf32>
    %836 = arith.mulf %833, %811 : vector<2x60xf32>
    %837 = arith.mulf %832, %834 : vector<2x60xf32>
    %838 = arith.addf %836, %837 : vector<2x60xf32>
    %839 = math.tanh %838 : vector<2x60xf32>
    %840 = arith.mulf %835, %839 : vector<2x60xf32>
    %841 = vector.extract_strided_slice %840 {offsets = [0, 40], sizes = [2, 20], strides = [1, 1]} : vector<2x60xf32> to vector<2x20xf32>
    %cst_242 = arith.constant 0.000000e+00 : f32
    %842 = vector.broadcast %cst_242 : f32 to vector<2x20xf32>
    %843 = arith.maximumf %841, %842 : vector<2x20xf32>
    %c28_243 = arith.constant 28 : index
    %c0_244 = arith.constant 0 : index
    %c0_245 = arith.constant 0 : index
    %844 = vector.load %arg10[%c28_243, %c0_244, %c0_245] : memref<33x2x20xf32, #tpu.memory_space<vmem>>, vector<1x2x20xf32>
    %845 = vector.shape_cast %844 : vector<1x2x20xf32> to vector<2x20xf32>
    %846 = vector.shape_cast %843 : vector<2x20xf32> to vector<1x2x20xf32>
    tpu.vector_store %arg10[%c28_243, %c0_244, %c0_245], %846 {strides = array<i32>} : memref<33x2x20xf32, #tpu.memory_space<vmem>>, vector<1x2x20xf32>,
    %847 = arith.truncf %840 : vector<2x60xf32> to vector<2x60xbf16>
    %cst_246 = arith.constant dense<0.000000e+00> : vector<2x240xf32>
    %848 = tpu.matmul %847, %0, %cst_246 {dimension_numbers = #tpu.dot_dimension_numbers<[1], [0], [0], [1], [0, 0, 1, 1], [], []>} : vector<2x60xbf16>, vector<60x240xbf16>, vector<2x240xf32> -> vector<2x240xf32>
    %c31 = arith.constant 31 : index
    %c0_247 = arith.constant 0 : index
    %c0_248 = arith.constant 0 : index
    %849 = vector.load %arg0[%c31, %c0_247, %c0_248] : memref<35x2x240xf32, #tpu.memory_space<vmem>>, vector<1x2x240xf32>
    %850 = vector.shape_cast %849 : vector<1x2x240xf32> to vector<2x240xf32>
    %851 = arith.addf %848, %850 : vector<2x240xf32>
    %852 = arith.addf %851, %3 : vector<2x240xf32>
    %853 = arith.negf %852 : vector<2x240xf32>
    %854 = math.exp %853 : vector<2x240xf32>
    %cst_249 = arith.constant 1.000000e+00 : f32
    %855 = vector.broadcast %cst_249 : f32 to vector<2x240xf32>
    %856 = arith.addf %855, %854 : vector<2x240xf32>
    %857 = arith.divf %855, %856 : vector<2x240xf32>
    %858 = math.tanh %852 : vector<2x240xf32>
    %859 = vector.extract_strided_slice %857 {offsets = [0, 0], sizes = [2, 60], strides = [1, 1]} : vector<2x240xf32> to vector<2x60xf32>
    %860 = vector.extract_strided_slice %857 {offsets = [0, 60], sizes = [2, 60], strides = [1, 1]} : vector<2x240xf32> to vector<2x60xf32>
    %861 = vector.extract_strided_slice %858 {offsets = [0, 120], sizes = [2, 60], strides = [1, 1]} : vector<2x240xf32> to vector<2x60xf32>
    %862 = vector.extract_strided_slice %857 {offsets = [0, 180], sizes = [2, 60], strides = [1, 1]} : vector<2x240xf32> to vector<2x60xf32>
    %863 = arith.mulf %860, %838 : vector<2x60xf32>
    %864 = arith.mulf %859, %861 : vector<2x60xf32>
    %865 = arith.addf %863, %864 : vector<2x60xf32>
    %866 = math.tanh %865 : vector<2x60xf32>
    %867 = arith.mulf %862, %866 : vector<2x60xf32>
    %868 = vector.extract_strided_slice %867 {offsets = [0, 40], sizes = [2, 20], strides = [1, 1]} : vector<2x60xf32> to vector<2x20xf32>
    %cst_250 = arith.constant 0.000000e+00 : f32
    %869 = vector.broadcast %cst_250 : f32 to vector<2x20xf32>
    %870 = arith.maximumf %868, %869 : vector<2x20xf32>
    %c29_251 = arith.constant 29 : index
    %c0_252 = arith.constant 0 : index
    %c0_253 = arith.constant 0 : index
    %871 = vector.load %arg10[%c29_251, %c0_252, %c0_253] : memref<33x2x20xf32, #tpu.memory_space<vmem>>, vector<1x2x20xf32>
    %872 = vector.shape_cast %871 : vector<1x2x20xf32> to vector<2x20xf32>
    %873 = vector.shape_cast %870 : vector<2x20xf32> to vector<1x2x20xf32>
    tpu.vector_store %arg10[%c29_251, %c0_252, %c0_253], %873 {strides = array<i32>} : memref<33x2x20xf32, #tpu.memory_space<vmem>>, vector<1x2x20xf32>,
    %874 = arith.truncf %867 : vector<2x60xf32> to vector<2x60xbf16>
    %cst_254 = arith.constant dense<0.000000e+00> : vector<2x240xf32>
    %875 = tpu.matmul %874, %0, %cst_254 {dimension_numbers = #tpu.dot_dimension_numbers<[1], [0], [0], [1], [0, 0, 1, 1], [], []>} : vector<2x60xbf16>, vector<60x240xbf16>, vector<2x240xf32> -> vector<2x240xf32>
    %c32 = arith.constant 32 : index
    %c0_255 = arith.constant 0 : index
    %c0_256 = arith.constant 0 : index
    %876 = vector.load %arg0[%c32, %c0_255, %c0_256] : memref<35x2x240xf32, #tpu.memory_space<vmem>>, vector<1x2x240xf32>
    %877 = vector.shape_cast %876 : vector<1x2x240xf32> to vector<2x240xf32>
    %878 = arith.addf %875, %877 : vector<2x240xf32>
    %879 = arith.addf %878, %3 : vector<2x240xf32>
    %880 = arith.negf %879 : vector<2x240xf32>
    %881 = math.exp %880 : vector<2x240xf32>
    %cst_257 = arith.constant 1.000000e+00 : f32
    %882 = vector.broadcast %cst_257 : f32 to vector<2x240xf32>
    %883 = arith.addf %882, %881 : vector<2x240xf32>
    %884 = arith.divf %882, %883 : vector<2x240xf32>
    %885 = math.tanh %879 : vector<2x240xf32>
    %886 = vector.extract_strided_slice %884 {offsets = [0, 0], sizes = [2, 60], strides = [1, 1]} : vector<2x240xf32> to vector<2x60xf32>
    %887 = vector.extract_strided_slice %884 {offsets = [0, 60], sizes = [2, 60], strides = [1, 1]} : vector<2x240xf32> to vector<2x60xf32>
    %888 = vector.extract_strided_slice %885 {offsets = [0, 120], sizes = [2, 60], strides = [1, 1]} : vector<2x240xf32> to vector<2x60xf32>
    %889 = vector.extract_strided_slice %884 {offsets = [0, 180], sizes = [2, 60], strides = [1, 1]} : vector<2x240xf32> to vector<2x60xf32>
    %890 = arith.mulf %887, %865 : vector<2x60xf32>
    %891 = arith.mulf %886, %888 : vector<2x60xf32>
    %892 = arith.addf %890, %891 : vector<2x60xf32>
    %893 = math.tanh %892 : vector<2x60xf32>
    %894 = arith.mulf %889, %893 : vector<2x60xf32>
    %895 = vector.extract_strided_slice %894 {offsets = [0, 40], sizes = [2, 20], strides = [1, 1]} : vector<2x60xf32> to vector<2x20xf32>
    %cst_258 = arith.constant 0.000000e+00 : f32
    %896 = vector.broadcast %cst_258 : f32 to vector<2x20xf32>
    %897 = arith.maximumf %895, %896 : vector<2x20xf32>
    %c30_259 = arith.constant 30 : index
    %c0_260 = arith.constant 0 : index
    %c0_261 = arith.constant 0 : index
    %898 = vector.load %arg10[%c30_259, %c0_260, %c0_261] : memref<33x2x20xf32, #tpu.memory_space<vmem>>, vector<1x2x20xf32>
    %899 = vector.shape_cast %898 : vector<1x2x20xf32> to vector<2x20xf32>
    %900 = vector.shape_cast %897 : vector<2x20xf32> to vector<1x2x20xf32>
    tpu.vector_store %arg10[%c30_259, %c0_260, %c0_261], %900 {strides = array<i32>} : memref<33x2x20xf32, #tpu.memory_space<vmem>>, vector<1x2x20xf32>,
    %901 = arith.truncf %894 : vector<2x60xf32> to vector<2x60xbf16>
    %cst_262 = arith.constant dense<0.000000e+00> : vector<2x240xf32>
    %902 = tpu.matmul %901, %0, %cst_262 {dimension_numbers = #tpu.dot_dimension_numbers<[1], [0], [0], [1], [0, 0, 1, 1], [], []>} : vector<2x60xbf16>, vector<60x240xbf16>, vector<2x240xf32> -> vector<2x240xf32>
    %c33 = arith.constant 33 : index
    %c0_263 = arith.constant 0 : index
    %c0_264 = arith.constant 0 : index
    %903 = vector.load %arg0[%c33, %c0_263, %c0_264] : memref<35x2x240xf32, #tpu.memory_space<vmem>>, vector<1x2x240xf32>
    %904 = vector.shape_cast %903 : vector<1x2x240xf32> to vector<2x240xf32>
    %905 = arith.addf %902, %904 : vector<2x240xf32>
    %906 = arith.addf %905, %3 : vector<2x240xf32>
    %907 = arith.negf %906 : vector<2x240xf32>
    %908 = math.exp %907 : vector<2x240xf32>
    %cst_265 = arith.constant 1.000000e+00 : f32
    %909 = vector.broadcast %cst_265 : f32 to vector<2x240xf32>
    %910 = arith.addf %909, %908 : vector<2x240xf32>
    %911 = arith.divf %909, %910 : vector<2x240xf32>
    %912 = math.tanh %906 : vector<2x240xf32>
    %913 = vector.extract_strided_slice %911 {offsets = [0, 0], sizes = [2, 60], strides = [1, 1]} : vector<2x240xf32> to vector<2x60xf32>
    %914 = vector.extract_strided_slice %911 {offsets = [0, 60], sizes = [2, 60], strides = [1, 1]} : vector<2x240xf32> to vector<2x60xf32>
    %915 = vector.extract_strided_slice %912 {offsets = [0, 120], sizes = [2, 60], strides = [1, 1]} : vector<2x240xf32> to vector<2x60xf32>
    %916 = vector.extract_strided_slice %911 {offsets = [0, 180], sizes = [2, 60], strides = [1, 1]} : vector<2x240xf32> to vector<2x60xf32>
    %917 = arith.mulf %914, %892 : vector<2x60xf32>
    %918 = arith.mulf %913, %915 : vector<2x60xf32>
    %919 = arith.addf %917, %918 : vector<2x60xf32>
    %920 = math.tanh %919 : vector<2x60xf32>
    %921 = arith.mulf %916, %920 : vector<2x60xf32>
    %922 = vector.extract_strided_slice %921 {offsets = [0, 40], sizes = [2, 20], strides = [1, 1]} : vector<2x60xf32> to vector<2x20xf32>
    %cst_266 = arith.constant 0.000000e+00 : f32
    %923 = vector.broadcast %cst_266 : f32 to vector<2x20xf32>
    %924 = arith.maximumf %922, %923 : vector<2x20xf32>
    %c31_267 = arith.constant 31 : index
    %c0_268 = arith.constant 0 : index
    %c0_269 = arith.constant 0 : index
    %925 = vector.load %arg10[%c31_267, %c0_268, %c0_269] : memref<33x2x20xf32, #tpu.memory_space<vmem>>, vector<1x2x20xf32>
    %926 = vector.shape_cast %925 : vector<1x2x20xf32> to vector<2x20xf32>
    %927 = vector.shape_cast %924 : vector<2x20xf32> to vector<1x2x20xf32>
    tpu.vector_store %arg10[%c31_267, %c0_268, %c0_269], %927 {strides = array<i32>} : memref<33x2x20xf32, #tpu.memory_space<vmem>>, vector<1x2x20xf32>,
    %928 = tpu.iota {dimensions = array<i32: 1>} : vector<2x60xi32>
    %c20_i32_270 = arith.constant 20 : i32
    %929 = vector.broadcast %c20_i32_270 : i32 to vector<2x60xi32>
    %930 = arith.cmpi sge, %928, %929 : vector<2x60xi32>
    %c60_i32 = arith.constant 60 : i32
    %931 = vector.broadcast %c60_i32 : i32 to vector<2x60xi32>
    %932 = arith.cmpi slt, %928, %931 : vector<2x60xi32>
    %933 = arith.andi %930, %932 : vector<2x60xi1>
    %934 = arith.select %933, %921, %894 : vector<2x60xi1>, vector<2x60xf32>
    %935 = arith.select %933, %919, %892 : vector<2x60xi1>, vector<2x60xf32>
    %936 = arith.truncf %934 : vector<2x60xf32> to vector<2x60xbf16>
    %cst_271 = arith.constant dense<0.000000e+00> : vector<2x240xf32>
    %937 = tpu.matmul %936, %0, %cst_271 {dimension_numbers = #tpu.dot_dimension_numbers<[1], [0], [0], [1], [0, 0, 1, 1], [], []>} : vector<2x60xbf16>, vector<60x240xbf16>, vector<2x240xf32> -> vector<2x240xf32>
    %c34 = arith.constant 34 : index
    %c0_272 = arith.constant 0 : index
    %c0_273 = arith.constant 0 : index
    %938 = vector.load %arg0[%c34, %c0_272, %c0_273] : memref<35x2x240xf32, #tpu.memory_space<vmem>>, vector<1x2x240xf32>
    %939 = vector.shape_cast %938 : vector<1x2x240xf32> to vector<2x240xf32>
    %940 = arith.addf %937, %939 : vector<2x240xf32>
    %941 = arith.addf %940, %3 : vector<2x240xf32>
    %942 = arith.negf %941 : vector<2x240xf32>
    %943 = math.exp %942 : vector<2x240xf32>
    %cst_274 = arith.constant 1.000000e+00 : f32
    %944 = vector.broadcast %cst_274 : f32 to vector<2x240xf32>
    %945 = arith.addf %944, %943 : vector<2x240xf32>
    %946 = arith.divf %944, %945 : vector<2x240xf32>
    %947 = math.tanh %941 : vector<2x240xf32>
    %948 = vector.extract_strided_slice %946 {offsets = [0, 0], sizes = [2, 60], strides = [1, 1]} : vector<2x240xf32> to vector<2x60xf32>
    %949 = vector.extract_strided_slice %946 {offsets = [0, 60], sizes = [2, 60], strides = [1, 1]} : vector<2x240xf32> to vector<2x60xf32>
    %950 = vector.extract_strided_slice %947 {offsets = [0, 120], sizes = [2, 60], strides = [1, 1]} : vector<2x240xf32> to vector<2x60xf32>
    %951 = vector.extract_strided_slice %946 {offsets = [0, 180], sizes = [2, 60], strides = [1, 1]} : vector<2x240xf32> to vector<2x60xf32>
    %952 = arith.mulf %949, %935 : vector<2x60xf32>
    %953 = arith.mulf %948, %950 : vector<2x60xf32>
    %954 = arith.addf %952, %953 : vector<2x60xf32>
    %955 = math.tanh %954 : vector<2x60xf32>
    %956 = arith.mulf %951, %955 : vector<2x60xf32>
    %957 = vector.extract_strided_slice %956 {offsets = [0, 40], sizes = [2, 20], strides = [1, 1]} : vector<2x60xf32> to vector<2x20xf32>
    %cst_275 = arith.constant 0.000000e+00 : f32
    %958 = vector.broadcast %cst_275 : f32 to vector<2x20xf32>
    %959 = arith.maximumf %957, %958 : vector<2x20xf32>
    %c32_276 = arith.constant 32 : index
    %c0_277 = arith.constant 0 : index
    %c0_278 = arith.constant 0 : index
    %960 = vector.load %arg10[%c32_276, %c0_277, %c0_278] : memref<33x2x20xf32, #tpu.memory_space<vmem>>, vector<1x2x20xf32>
    %961 = vector.shape_cast %960 : vector<1x2x20xf32> to vector<2x20xf32>
    %962 = vector.shape_cast %959 : vector<2x20xf32> to vector<1x2x20xf32>
    tpu.vector_store %arg10[%c32_276, %c0_277, %c0_278], %962 {strides = array<i32>} : memref<33x2x20xf32, #tpu.memory_space<vmem>>, vector<1x2x20xf32>,
    %cst_279 = arith.constant 0.000000e+00 : f32
    %963 = vector.broadcast %cst_279 : f32 to vector<2x32xf32>
    %c0_280 = arith.constant 0 : index
    %c0_281 = arith.constant 0 : index
    %c0_282 = arith.constant 0 : index
    %964 = vector.load %arg10[%c0_280, %c0_281, %c0_282] : memref<33x2x20xf32, #tpu.memory_space<vmem>>, vector<1x2x20xf32>
    %965 = vector.shape_cast %964 : vector<1x2x20xf32> to vector<2x20xf32>
    %c0_283 = arith.constant 0 : index
    %c0_284 = arith.constant 0 : index
    %c0_285 = arith.constant 0 : index
    %966 = vector.load %arg3[%c0_283, %c0_284, %c0_285] : memref<33x20x32xf32, #tpu.memory_space<vmem>>, vector<1x20x32xf32>
    %967 = vector.shape_cast %966 : vector<1x20x32xf32> to vector<20x32xf32>
    %cst_286 = arith.constant dense<0.000000e+00> : vector<2x32xf32>
    %968 = tpu.matmul %965, %967, %cst_286 {dimension_numbers = #tpu.dot_dimension_numbers<[1], [0], [0], [1], [0, 0, 1, 1], [], []>} : vector<2x20xf32>, vector<20x32xf32>, vector<2x32xf32> -> vector<2x32xf32>
    %969 = arith.addf %963, %968 : vector<2x32xf32>
    %c1_287 = arith.constant 1 : index
    %c0_288 = arith.constant 0 : index
    %c0_289 = arith.constant 0 : index
    %970 = vector.load %arg10[%c1_287, %c0_288, %c0_289] : memref<33x2x20xf32, #tpu.memory_space<vmem>>, vector<1x2x20xf32>
    %971 = vector.shape_cast %970 : vector<1x2x20xf32> to vector<2x20xf32>
    %c1_290 = arith.constant 1 : index
    %c0_291 = arith.constant 0 : index
    %c0_292 = arith.constant 0 : index
    %972 = vector.load %arg3[%c1_290, %c0_291, %c0_292] : memref<33x20x32xf32, #tpu.memory_space<vmem>>, vector<1x20x32xf32>
    %973 = vector.shape_cast %972 : vector<1x20x32xf32> to vector<20x32xf32>
    %cst_293 = arith.constant dense<0.000000e+00> : vector<2x32xf32>
    %974 = tpu.matmul %971, %973, %cst_293 {dimension_numbers = #tpu.dot_dimension_numbers<[1], [0], [0], [1], [0, 0, 1, 1], [], []>} : vector<2x20xf32>, vector<20x32xf32>, vector<2x32xf32> -> vector<2x32xf32>
    %975 = arith.addf %969, %974 : vector<2x32xf32>
    %c2_294 = arith.constant 2 : index
    %c0_295 = arith.constant 0 : index
    %c0_296 = arith.constant 0 : index
    %976 = vector.load %arg10[%c2_294, %c0_295, %c0_296] : memref<33x2x20xf32, #tpu.memory_space<vmem>>, vector<1x2x20xf32>
    %977 = vector.shape_cast %976 : vector<1x2x20xf32> to vector<2x20xf32>
    %c2_297 = arith.constant 2 : index
    %c0_298 = arith.constant 0 : index
    %c0_299 = arith.constant 0 : index
    %978 = vector.load %arg3[%c2_297, %c0_298, %c0_299] : memref<33x20x32xf32, #tpu.memory_space<vmem>>, vector<1x20x32xf32>
    %979 = vector.shape_cast %978 : vector<1x20x32xf32> to vector<20x32xf32>
    %cst_300 = arith.constant dense<0.000000e+00> : vector<2x32xf32>
    %980 = tpu.matmul %977, %979, %cst_300 {dimension_numbers = #tpu.dot_dimension_numbers<[1], [0], [0], [1], [0, 0, 1, 1], [], []>} : vector<2x20xf32>, vector<20x32xf32>, vector<2x32xf32> -> vector<2x32xf32>
    %981 = arith.addf %975, %980 : vector<2x32xf32>
    %c3_301 = arith.constant 3 : index
    %c0_302 = arith.constant 0 : index
    %c0_303 = arith.constant 0 : index
    %982 = vector.load %arg10[%c3_301, %c0_302, %c0_303] : memref<33x2x20xf32, #tpu.memory_space<vmem>>, vector<1x2x20xf32>
    %983 = vector.shape_cast %982 : vector<1x2x20xf32> to vector<2x20xf32>
    %c3_304 = arith.constant 3 : index
    %c0_305 = arith.constant 0 : index
    %c0_306 = arith.constant 0 : index
    %984 = vector.load %arg3[%c3_304, %c0_305, %c0_306] : memref<33x20x32xf32, #tpu.memory_space<vmem>>, vector<1x20x32xf32>
    %985 = vector.shape_cast %984 : vector<1x20x32xf32> to vector<20x32xf32>
    %cst_307 = arith.constant dense<0.000000e+00> : vector<2x32xf32>
    %986 = tpu.matmul %983, %985, %cst_307 {dimension_numbers = #tpu.dot_dimension_numbers<[1], [0], [0], [1], [0, 0, 1, 1], [], []>} : vector<2x20xf32>, vector<20x32xf32>, vector<2x32xf32> -> vector<2x32xf32>
    %987 = arith.addf %981, %986 : vector<2x32xf32>
    %c4_308 = arith.constant 4 : index
    %c0_309 = arith.constant 0 : index
    %c0_310 = arith.constant 0 : index
    %988 = vector.load %arg10[%c4_308, %c0_309, %c0_310] : memref<33x2x20xf32, #tpu.memory_space<vmem>>, vector<1x2x20xf32>
    %989 = vector.shape_cast %988 : vector<1x2x20xf32> to vector<2x20xf32>
    %c4_311 = arith.constant 4 : index
    %c0_312 = arith.constant 0 : index
    %c0_313 = arith.constant 0 : index
    %990 = vector.load %arg3[%c4_311, %c0_312, %c0_313] : memref<33x20x32xf32, #tpu.memory_space<vmem>>, vector<1x20x32xf32>
    %991 = vector.shape_cast %990 : vector<1x20x32xf32> to vector<20x32xf32>
    %cst_314 = arith.constant dense<0.000000e+00> : vector<2x32xf32>
    %992 = tpu.matmul %989, %991, %cst_314 {dimension_numbers = #tpu.dot_dimension_numbers<[1], [0], [0], [1], [0, 0, 1, 1], [], []>} : vector<2x20xf32>, vector<20x32xf32>, vector<2x32xf32> -> vector<2x32xf32>
    %993 = arith.addf %987, %992 : vector<2x32xf32>
    %c5_315 = arith.constant 5 : index
    %c0_316 = arith.constant 0 : index
    %c0_317 = arith.constant 0 : index
    %994 = vector.load %arg10[%c5_315, %c0_316, %c0_317] : memref<33x2x20xf32, #tpu.memory_space<vmem>>, vector<1x2x20xf32>
    %995 = vector.shape_cast %994 : vector<1x2x20xf32> to vector<2x20xf32>
    %c5_318 = arith.constant 5 : index
    %c0_319 = arith.constant 0 : index
    %c0_320 = arith.constant 0 : index
    %996 = vector.load %arg3[%c5_318, %c0_319, %c0_320] : memref<33x20x32xf32, #tpu.memory_space<vmem>>, vector<1x20x32xf32>
    %997 = vector.shape_cast %996 : vector<1x20x32xf32> to vector<20x32xf32>
    %cst_321 = arith.constant dense<0.000000e+00> : vector<2x32xf32>
    %998 = tpu.matmul %995, %997, %cst_321 {dimension_numbers = #tpu.dot_dimension_numbers<[1], [0], [0], [1], [0, 0, 1, 1], [], []>} : vector<2x20xf32>, vector<20x32xf32>, vector<2x32xf32> -> vector<2x32xf32>
    %999 = arith.addf %993, %998 : vector<2x32xf32>
    %c6_322 = arith.constant 6 : index
    %c0_323 = arith.constant 0 : index
    %c0_324 = arith.constant 0 : index
    %1000 = vector.load %arg10[%c6_322, %c0_323, %c0_324] : memref<33x2x20xf32, #tpu.memory_space<vmem>>, vector<1x2x20xf32>
    %1001 = vector.shape_cast %1000 : vector<1x2x20xf32> to vector<2x20xf32>
    %c6_325 = arith.constant 6 : index
    %c0_326 = arith.constant 0 : index
    %c0_327 = arith.constant 0 : index
    %1002 = vector.load %arg3[%c6_325, %c0_326, %c0_327] : memref<33x20x32xf32, #tpu.memory_space<vmem>>, vector<1x20x32xf32>
    %1003 = vector.shape_cast %1002 : vector<1x20x32xf32> to vector<20x32xf32>
    %cst_328 = arith.constant dense<0.000000e+00> : vector<2x32xf32>
    %1004 = tpu.matmul %1001, %1003, %cst_328 {dimension_numbers = #tpu.dot_dimension_numbers<[1], [0], [0], [1], [0, 0, 1, 1], [], []>} : vector<2x20xf32>, vector<20x32xf32>, vector<2x32xf32> -> vector<2x32xf32>
    %1005 = arith.addf %999, %1004 : vector<2x32xf32>
    %c7_329 = arith.constant 7 : index
    %c0_330 = arith.constant 0 : index
    %c0_331 = arith.constant 0 : index
    %1006 = vector.load %arg10[%c7_329, %c0_330, %c0_331] : memref<33x2x20xf32, #tpu.memory_space<vmem>>, vector<1x2x20xf32>
    %1007 = vector.shape_cast %1006 : vector<1x2x20xf32> to vector<2x20xf32>
    %c7_332 = arith.constant 7 : index
    %c0_333 = arith.constant 0 : index
    %c0_334 = arith.constant 0 : index
    %1008 = vector.load %arg3[%c7_332, %c0_333, %c0_334] : memref<33x20x32xf32, #tpu.memory_space<vmem>>, vector<1x20x32xf32>
    %1009 = vector.shape_cast %1008 : vector<1x20x32xf32> to vector<20x32xf32>
    %cst_335 = arith.constant dense<0.000000e+00> : vector<2x32xf32>
    %1010 = tpu.matmul %1007, %1009, %cst_335 {dimension_numbers = #tpu.dot_dimension_numbers<[1], [0], [0], [1], [0, 0, 1, 1], [], []>} : vector<2x20xf32>, vector<20x32xf32>, vector<2x32xf32> -> vector<2x32xf32>
    %1011 = arith.addf %1005, %1010 : vector<2x32xf32>
    %c8_336 = arith.constant 8 : index
    %c0_337 = arith.constant 0 : index
    %c0_338 = arith.constant 0 : index
    %1012 = vector.load %arg10[%c8_336, %c0_337, %c0_338] : memref<33x2x20xf32, #tpu.memory_space<vmem>>, vector<1x2x20xf32>
    %1013 = vector.shape_cast %1012 : vector<1x2x20xf32> to vector<2x20xf32>
    %c8_339 = arith.constant 8 : index
    %c0_340 = arith.constant 0 : index
    %c0_341 = arith.constant 0 : index
    %1014 = vector.load %arg3[%c8_339, %c0_340, %c0_341] : memref<33x20x32xf32, #tpu.memory_space<vmem>>, vector<1x20x32xf32>
    %1015 = vector.shape_cast %1014 : vector<1x20x32xf32> to vector<20x32xf32>
    %cst_342 = arith.constant dense<0.000000e+00> : vector<2x32xf32>
    %1016 = tpu.matmul %1013, %1015, %cst_342 {dimension_numbers = #tpu.dot_dimension_numbers<[1], [0], [0], [1], [0, 0, 1, 1], [], []>} : vector<2x20xf32>, vector<20x32xf32>, vector<2x32xf32> -> vector<2x32xf32>
    %1017 = arith.addf %1011, %1016 : vector<2x32xf32>
    %c9_343 = arith.constant 9 : index
    %c0_344 = arith.constant 0 : index
    %c0_345 = arith.constant 0 : index
    %1018 = vector.load %arg10[%c9_343, %c0_344, %c0_345] : memref<33x2x20xf32, #tpu.memory_space<vmem>>, vector<1x2x20xf32>
    %1019 = vector.shape_cast %1018 : vector<1x2x20xf32> to vector<2x20xf32>
    %c9_346 = arith.constant 9 : index
    %c0_347 = arith.constant 0 : index
    %c0_348 = arith.constant 0 : index
    %1020 = vector.load %arg3[%c9_346, %c0_347, %c0_348] : memref<33x20x32xf32, #tpu.memory_space<vmem>>, vector<1x20x32xf32>
    %1021 = vector.shape_cast %1020 : vector<1x20x32xf32> to vector<20x32xf32>
    %cst_349 = arith.constant dense<0.000000e+00> : vector<2x32xf32>
    %1022 = tpu.matmul %1019, %1021, %cst_349 {dimension_numbers = #tpu.dot_dimension_numbers<[1], [0], [0], [1], [0, 0, 1, 1], [], []>} : vector<2x20xf32>, vector<20x32xf32>, vector<2x32xf32> -> vector<2x32xf32>
    %1023 = arith.addf %1017, %1022 : vector<2x32xf32>
    %c10_350 = arith.constant 10 : index
    %c0_351 = arith.constant 0 : index
    %c0_352 = arith.constant 0 : index
    %1024 = vector.load %arg10[%c10_350, %c0_351, %c0_352] : memref<33x2x20xf32, #tpu.memory_space<vmem>>, vector<1x2x20xf32>
    %1025 = vector.shape_cast %1024 : vector<1x2x20xf32> to vector<2x20xf32>
    %c10_353 = arith.constant 10 : index
    %c0_354 = arith.constant 0 : index
    %c0_355 = arith.constant 0 : index
    %1026 = vector.load %arg3[%c10_353, %c0_354, %c0_355] : memref<33x20x32xf32, #tpu.memory_space<vmem>>, vector<1x20x32xf32>
    %1027 = vector.shape_cast %1026 : vector<1x20x32xf32> to vector<20x32xf32>
    %cst_356 = arith.constant dense<0.000000e+00> : vector<2x32xf32>
    %1028 = tpu.matmul %1025, %1027, %cst_356 {dimension_numbers = #tpu.dot_dimension_numbers<[1], [0], [0], [1], [0, 0, 1, 1], [], []>} : vector<2x20xf32>, vector<20x32xf32>, vector<2x32xf32> -> vector<2x32xf32>
    %1029 = arith.addf %1023, %1028 : vector<2x32xf32>
    %c11_357 = arith.constant 11 : index
    %c0_358 = arith.constant 0 : index
    %c0_359 = arith.constant 0 : index
    %1030 = vector.load %arg10[%c11_357, %c0_358, %c0_359] : memref<33x2x20xf32, #tpu.memory_space<vmem>>, vector<1x2x20xf32>
    %1031 = vector.shape_cast %1030 : vector<1x2x20xf32> to vector<2x20xf32>
    %c11_360 = arith.constant 11 : index
    %c0_361 = arith.constant 0 : index
    %c0_362 = arith.constant 0 : index
    %1032 = vector.load %arg3[%c11_360, %c0_361, %c0_362] : memref<33x20x32xf32, #tpu.memory_space<vmem>>, vector<1x20x32xf32>
    %1033 = vector.shape_cast %1032 : vector<1x20x32xf32> to vector<20x32xf32>
    %cst_363 = arith.constant dense<0.000000e+00> : vector<2x32xf32>
    %1034 = tpu.matmul %1031, %1033, %cst_363 {dimension_numbers = #tpu.dot_dimension_numbers<[1], [0], [0], [1], [0, 0, 1, 1], [], []>} : vector<2x20xf32>, vector<20x32xf32>, vector<2x32xf32> -> vector<2x32xf32>
    %1035 = arith.addf %1029, %1034 : vector<2x32xf32>
    %c12_364 = arith.constant 12 : index
    %c0_365 = arith.constant 0 : index
    %c0_366 = arith.constant 0 : index
    %1036 = vector.load %arg10[%c12_364, %c0_365, %c0_366] : memref<33x2x20xf32, #tpu.memory_space<vmem>>, vector<1x2x20xf32>
    %1037 = vector.shape_cast %1036 : vector<1x2x20xf32> to vector<2x20xf32>
    %c12_367 = arith.constant 12 : index
    %c0_368 = arith.constant 0 : index
    %c0_369 = arith.constant 0 : index
    %1038 = vector.load %arg3[%c12_367, %c0_368, %c0_369] : memref<33x20x32xf32, #tpu.memory_space<vmem>>, vector<1x20x32xf32>
    %1039 = vector.shape_cast %1038 : vector<1x20x32xf32> to vector<20x32xf32>
    %cst_370 = arith.constant dense<0.000000e+00> : vector<2x32xf32>
    %1040 = tpu.matmul %1037, %1039, %cst_370 {dimension_numbers = #tpu.dot_dimension_numbers<[1], [0], [0], [1], [0, 0, 1, 1], [], []>} : vector<2x20xf32>, vector<20x32xf32>, vector<2x32xf32> -> vector<2x32xf32>
    %1041 = arith.addf %1035, %1040 : vector<2x32xf32>
    %c13_371 = arith.constant 13 : index
    %c0_372 = arith.constant 0 : index
    %c0_373 = arith.constant 0 : index
    %1042 = vector.load %arg10[%c13_371, %c0_372, %c0_373] : memref<33x2x20xf32, #tpu.memory_space<vmem>>, vector<1x2x20xf32>
    %1043 = vector.shape_cast %1042 : vector<1x2x20xf32> to vector<2x20xf32>
    %c13_374 = arith.constant 13 : index
    %c0_375 = arith.constant 0 : index
    %c0_376 = arith.constant 0 : index
    %1044 = vector.load %arg3[%c13_374, %c0_375, %c0_376] : memref<33x20x32xf32, #tpu.memory_space<vmem>>, vector<1x20x32xf32>
    %1045 = vector.shape_cast %1044 : vector<1x20x32xf32> to vector<20x32xf32>
    %cst_377 = arith.constant dense<0.000000e+00> : vector<2x32xf32>
    %1046 = tpu.matmul %1043, %1045, %cst_377 {dimension_numbers = #tpu.dot_dimension_numbers<[1], [0], [0], [1], [0, 0, 1, 1], [], []>} : vector<2x20xf32>, vector<20x32xf32>, vector<2x32xf32> -> vector<2x32xf32>
    %1047 = arith.addf %1041, %1046 : vector<2x32xf32>
    %c14_378 = arith.constant 14 : index
    %c0_379 = arith.constant 0 : index
    %c0_380 = arith.constant 0 : index
    %1048 = vector.load %arg10[%c14_378, %c0_379, %c0_380] : memref<33x2x20xf32, #tpu.memory_space<vmem>>, vector<1x2x20xf32>
    %1049 = vector.shape_cast %1048 : vector<1x2x20xf32> to vector<2x20xf32>
    %c14_381 = arith.constant 14 : index
    %c0_382 = arith.constant 0 : index
    %c0_383 = arith.constant 0 : index
    %1050 = vector.load %arg3[%c14_381, %c0_382, %c0_383] : memref<33x20x32xf32, #tpu.memory_space<vmem>>, vector<1x20x32xf32>
    %1051 = vector.shape_cast %1050 : vector<1x20x32xf32> to vector<20x32xf32>
    %cst_384 = arith.constant dense<0.000000e+00> : vector<2x32xf32>
    %1052 = tpu.matmul %1049, %1051, %cst_384 {dimension_numbers = #tpu.dot_dimension_numbers<[1], [0], [0], [1], [0, 0, 1, 1], [], []>} : vector<2x20xf32>, vector<20x32xf32>, vector<2x32xf32> -> vector<2x32xf32>
    %1053 = arith.addf %1047, %1052 : vector<2x32xf32>
    %c15_385 = arith.constant 15 : index
    %c0_386 = arith.constant 0 : index
    %c0_387 = arith.constant 0 : index
    %1054 = vector.load %arg10[%c15_385, %c0_386, %c0_387] : memref<33x2x20xf32, #tpu.memory_space<vmem>>, vector<1x2x20xf32>
    %1055 = vector.shape_cast %1054 : vector<1x2x20xf32> to vector<2x20xf32>
    %c15_388 = arith.constant 15 : index
    %c0_389 = arith.constant 0 : index
    %c0_390 = arith.constant 0 : index
    %1056 = vector.load %arg3[%c15_388, %c0_389, %c0_390] : memref<33x20x32xf32, #tpu.memory_space<vmem>>, vector<1x20x32xf32>
    %1057 = vector.shape_cast %1056 : vector<1x20x32xf32> to vector<20x32xf32>
    %cst_391 = arith.constant dense<0.000000e+00> : vector<2x32xf32>
    %1058 = tpu.matmul %1055, %1057, %cst_391 {dimension_numbers = #tpu.dot_dimension_numbers<[1], [0], [0], [1], [0, 0, 1, 1], [], []>} : vector<2x20xf32>, vector<20x32xf32>, vector<2x32xf32> -> vector<2x32xf32>
    %1059 = arith.addf %1053, %1058 : vector<2x32xf32>
    %c16_392 = arith.constant 16 : index
    %c0_393 = arith.constant 0 : index
    %c0_394 = arith.constant 0 : index
    %1060 = vector.load %arg10[%c16_392, %c0_393, %c0_394] : memref<33x2x20xf32, #tpu.memory_space<vmem>>, vector<1x2x20xf32>
    %1061 = vector.shape_cast %1060 : vector<1x2x20xf32> to vector<2x20xf32>
    %c16_395 = arith.constant 16 : index
    %c0_396 = arith.constant 0 : index
    %c0_397 = arith.constant 0 : index
    %1062 = vector.load %arg3[%c16_395, %c0_396, %c0_397] : memref<33x20x32xf32, #tpu.memory_space<vmem>>, vector<1x20x32xf32>
    %1063 = vector.shape_cast %1062 : vector<1x20x32xf32> to vector<20x32xf32>
    %cst_398 = arith.constant dense<0.000000e+00> : vector<2x32xf32>
    %1064 = tpu.matmul %1061, %1063, %cst_398 {dimension_numbers = #tpu.dot_dimension_numbers<[1], [0], [0], [1], [0, 0, 1, 1], [], []>} : vector<2x20xf32>, vector<20x32xf32>, vector<2x32xf32> -> vector<2x32xf32>
    %1065 = arith.addf %1059, %1064 : vector<2x32xf32>
    %c17_399 = arith.constant 17 : index
    %c0_400 = arith.constant 0 : index
    %c0_401 = arith.constant 0 : index
    %1066 = vector.load %arg10[%c17_399, %c0_400, %c0_401] : memref<33x2x20xf32, #tpu.memory_space<vmem>>, vector<1x2x20xf32>
    %1067 = vector.shape_cast %1066 : vector<1x2x20xf32> to vector<2x20xf32>
    %c17_402 = arith.constant 17 : index
    %c0_403 = arith.constant 0 : index
    %c0_404 = arith.constant 0 : index
    %1068 = vector.load %arg3[%c17_402, %c0_403, %c0_404] : memref<33x20x32xf32, #tpu.memory_space<vmem>>, vector<1x20x32xf32>
    %1069 = vector.shape_cast %1068 : vector<1x20x32xf32> to vector<20x32xf32>
    %cst_405 = arith.constant dense<0.000000e+00> : vector<2x32xf32>
    %1070 = tpu.matmul %1067, %1069, %cst_405 {dimension_numbers = #tpu.dot_dimension_numbers<[1], [0], [0], [1], [0, 0, 1, 1], [], []>} : vector<2x20xf32>, vector<20x32xf32>, vector<2x32xf32> -> vector<2x32xf32>
    %1071 = arith.addf %1065, %1070 : vector<2x32xf32>
    %c18_406 = arith.constant 18 : index
    %c0_407 = arith.constant 0 : index
    %c0_408 = arith.constant 0 : index
    %1072 = vector.load %arg10[%c18_406, %c0_407, %c0_408] : memref<33x2x20xf32, #tpu.memory_space<vmem>>, vector<1x2x20xf32>
    %1073 = vector.shape_cast %1072 : vector<1x2x20xf32> to vector<2x20xf32>
    %c18_409 = arith.constant 18 : index
    %c0_410 = arith.constant 0 : index
    %c0_411 = arith.constant 0 : index
    %1074 = vector.load %arg3[%c18_409, %c0_410, %c0_411] : memref<33x20x32xf32, #tpu.memory_space<vmem>>, vector<1x20x32xf32>
    %1075 = vector.shape_cast %1074 : vector<1x20x32xf32> to vector<20x32xf32>
    %cst_412 = arith.constant dense<0.000000e+00> : vector<2x32xf32>
    %1076 = tpu.matmul %1073, %1075, %cst_412 {dimension_numbers = #tpu.dot_dimension_numbers<[1], [0], [0], [1], [0, 0, 1, 1], [], []>} : vector<2x20xf32>, vector<20x32xf32>, vector<2x32xf32> -> vector<2x32xf32>
    %1077 = arith.addf %1071, %1076 : vector<2x32xf32>
    %c19_413 = arith.constant 19 : index
    %c0_414 = arith.constant 0 : index
    %c0_415 = arith.constant 0 : index
    %1078 = vector.load %arg10[%c19_413, %c0_414, %c0_415] : memref<33x2x20xf32, #tpu.memory_space<vmem>>, vector<1x2x20xf32>
    %1079 = vector.shape_cast %1078 : vector<1x2x20xf32> to vector<2x20xf32>
    %c19_416 = arith.constant 19 : index
    %c0_417 = arith.constant 0 : index
    %c0_418 = arith.constant 0 : index
    %1080 = vector.load %arg3[%c19_416, %c0_417, %c0_418] : memref<33x20x32xf32, #tpu.memory_space<vmem>>, vector<1x20x32xf32>
    %1081 = vector.shape_cast %1080 : vector<1x20x32xf32> to vector<20x32xf32>
    %cst_419 = arith.constant dense<0.000000e+00> : vector<2x32xf32>
    %1082 = tpu.matmul %1079, %1081, %cst_419 {dimension_numbers = #tpu.dot_dimension_numbers<[1], [0], [0], [1], [0, 0, 1, 1], [], []>} : vector<2x20xf32>, vector<20x32xf32>, vector<2x32xf32> -> vector<2x32xf32>
    %1083 = arith.addf %1077, %1082 : vector<2x32xf32>
    %c20_420 = arith.constant 20 : index
    %c0_421 = arith.constant 0 : index
    %c0_422 = arith.constant 0 : index
    %1084 = vector.load %arg10[%c20_420, %c0_421, %c0_422] : memref<33x2x20xf32, #tpu.memory_space<vmem>>, vector<1x2x20xf32>
    %1085 = vector.shape_cast %1084 : vector<1x2x20xf32> to vector<2x20xf32>
    %c20_423 = arith.constant 20 : index
    %c0_424 = arith.constant 0 : index
    %c0_425 = arith.constant 0 : index
    %1086 = vector.load %arg3[%c20_423, %c0_424, %c0_425] : memref<33x20x32xf32, #tpu.memory_space<vmem>>, vector<1x20x32xf32>
    %1087 = vector.shape_cast %1086 : vector<1x20x32xf32> to vector<20x32xf32>
    %cst_426 = arith.constant dense<0.000000e+00> : vector<2x32xf32>
    %1088 = tpu.matmul %1085, %1087, %cst_426 {dimension_numbers = #tpu.dot_dimension_numbers<[1], [0], [0], [1], [0, 0, 1, 1], [], []>} : vector<2x20xf32>, vector<20x32xf32>, vector<2x32xf32> -> vector<2x32xf32>
    %1089 = arith.addf %1083, %1088 : vector<2x32xf32>
    %c21_427 = arith.constant 21 : index
    %c0_428 = arith.constant 0 : index
    %c0_429 = arith.constant 0 : index
    %1090 = vector.load %arg10[%c21_427, %c0_428, %c0_429] : memref<33x2x20xf32, #tpu.memory_space<vmem>>, vector<1x2x20xf32>
    %1091 = vector.shape_cast %1090 : vector<1x2x20xf32> to vector<2x20xf32>
    %c21_430 = arith.constant 21 : index
    %c0_431 = arith.constant 0 : index
    %c0_432 = arith.constant 0 : index
    %1092 = vector.load %arg3[%c21_430, %c0_431, %c0_432] : memref<33x20x32xf32, #tpu.memory_space<vmem>>, vector<1x20x32xf32>
    %1093 = vector.shape_cast %1092 : vector<1x20x32xf32> to vector<20x32xf32>
    %cst_433 = arith.constant dense<0.000000e+00> : vector<2x32xf32>
    %1094 = tpu.matmul %1091, %1093, %cst_433 {dimension_numbers = #tpu.dot_dimension_numbers<[1], [0], [0], [1], [0, 0, 1, 1], [], []>} : vector<2x20xf32>, vector<20x32xf32>, vector<2x32xf32> -> vector<2x32xf32>
    %1095 = arith.addf %1089, %1094 : vector<2x32xf32>
    %c22_434 = arith.constant 22 : index
    %c0_435 = arith.constant 0 : index
    %c0_436 = arith.constant 0 : index
    %1096 = vector.load %arg10[%c22_434, %c0_435, %c0_436] : memref<33x2x20xf32, #tpu.memory_space<vmem>>, vector<1x2x20xf32>
    %1097 = vector.shape_cast %1096 : vector<1x2x20xf32> to vector<2x20xf32>
    %c22_437 = arith.constant 22 : index
    %c0_438 = arith.constant 0 : index
    %c0_439 = arith.constant 0 : index
    %1098 = vector.load %arg3[%c22_437, %c0_438, %c0_439] : memref<33x20x32xf32, #tpu.memory_space<vmem>>, vector<1x20x32xf32>
    %1099 = vector.shape_cast %1098 : vector<1x20x32xf32> to vector<20x32xf32>
    %cst_440 = arith.constant dense<0.000000e+00> : vector<2x32xf32>
    %1100 = tpu.matmul %1097, %1099, %cst_440 {dimension_numbers = #tpu.dot_dimension_numbers<[1], [0], [0], [1], [0, 0, 1, 1], [], []>} : vector<2x20xf32>, vector<20x32xf32>, vector<2x32xf32> -> vector<2x32xf32>
    %1101 = arith.addf %1095, %1100 : vector<2x32xf32>
    %c23_441 = arith.constant 23 : index
    %c0_442 = arith.constant 0 : index
    %c0_443 = arith.constant 0 : index
    %1102 = vector.load %arg10[%c23_441, %c0_442, %c0_443] : memref<33x2x20xf32, #tpu.memory_space<vmem>>, vector<1x2x20xf32>
    %1103 = vector.shape_cast %1102 : vector<1x2x20xf32> to vector<2x20xf32>
    %c23_444 = arith.constant 23 : index
    %c0_445 = arith.constant 0 : index
    %c0_446 = arith.constant 0 : index
    %1104 = vector.load %arg3[%c23_444, %c0_445, %c0_446] : memref<33x20x32xf32, #tpu.memory_space<vmem>>, vector<1x20x32xf32>
    %1105 = vector.shape_cast %1104 : vector<1x20x32xf32> to vector<20x32xf32>
    %cst_447 = arith.constant dense<0.000000e+00> : vector<2x32xf32>
    %1106 = tpu.matmul %1103, %1105, %cst_447 {dimension_numbers = #tpu.dot_dimension_numbers<[1], [0], [0], [1], [0, 0, 1, 1], [], []>} : vector<2x20xf32>, vector<20x32xf32>, vector<2x32xf32> -> vector<2x32xf32>
    %1107 = arith.addf %1101, %1106 : vector<2x32xf32>
    %c24_448 = arith.constant 24 : index
    %c0_449 = arith.constant 0 : index
    %c0_450 = arith.constant 0 : index
    %1108 = vector.load %arg10[%c24_448, %c0_449, %c0_450] : memref<33x2x20xf32, #tpu.memory_space<vmem>>, vector<1x2x20xf32>
    %1109 = vector.shape_cast %1108 : vector<1x2x20xf32> to vector<2x20xf32>
    %c24_451 = arith.constant 24 : index
    %c0_452 = arith.constant 0 : index
    %c0_453 = arith.constant 0 : index
    %1110 = vector.load %arg3[%c24_451, %c0_452, %c0_453] : memref<33x20x32xf32, #tpu.memory_space<vmem>>, vector<1x20x32xf32>
    %1111 = vector.shape_cast %1110 : vector<1x20x32xf32> to vector<20x32xf32>
    %cst_454 = arith.constant dense<0.000000e+00> : vector<2x32xf32>
    %1112 = tpu.matmul %1109, %1111, %cst_454 {dimension_numbers = #tpu.dot_dimension_numbers<[1], [0], [0], [1], [0, 0, 1, 1], [], []>} : vector<2x20xf32>, vector<20x32xf32>, vector<2x32xf32> -> vector<2x32xf32>
    %1113 = arith.addf %1107, %1112 : vector<2x32xf32>
    %c25_455 = arith.constant 25 : index
    %c0_456 = arith.constant 0 : index
    %c0_457 = arith.constant 0 : index
    %1114 = vector.load %arg10[%c25_455, %c0_456, %c0_457] : memref<33x2x20xf32, #tpu.memory_space<vmem>>, vector<1x2x20xf32>
    %1115 = vector.shape_cast %1114 : vector<1x2x20xf32> to vector<2x20xf32>
    %c25_458 = arith.constant 25 : index
    %c0_459 = arith.constant 0 : index
    %c0_460 = arith.constant 0 : index
    %1116 = vector.load %arg3[%c25_458, %c0_459, %c0_460] : memref<33x20x32xf32, #tpu.memory_space<vmem>>, vector<1x20x32xf32>
    %1117 = vector.shape_cast %1116 : vector<1x20x32xf32> to vector<20x32xf32>
    %cst_461 = arith.constant dense<0.000000e+00> : vector<2x32xf32>
    %1118 = tpu.matmul %1115, %1117, %cst_461 {dimension_numbers = #tpu.dot_dimension_numbers<[1], [0], [0], [1], [0, 0, 1, 1], [], []>} : vector<2x20xf32>, vector<20x32xf32>, vector<2x32xf32> -> vector<2x32xf32>
    %1119 = arith.addf %1113, %1118 : vector<2x32xf32>
    %c26_462 = arith.constant 26 : index
    %c0_463 = arith.constant 0 : index
    %c0_464 = arith.constant 0 : index
    %1120 = vector.load %arg10[%c26_462, %c0_463, %c0_464] : memref<33x2x20xf32, #tpu.memory_space<vmem>>, vector<1x2x20xf32>
    %1121 = vector.shape_cast %1120 : vector<1x2x20xf32> to vector<2x20xf32>
    %c26_465 = arith.constant 26 : index
    %c0_466 = arith.constant 0 : index
    %c0_467 = arith.constant 0 : index
    %1122 = vector.load %arg3[%c26_465, %c0_466, %c0_467] : memref<33x20x32xf32, #tpu.memory_space<vmem>>, vector<1x20x32xf32>
    %1123 = vector.shape_cast %1122 : vector<1x20x32xf32> to vector<20x32xf32>
    %cst_468 = arith.constant dense<0.000000e+00> : vector<2x32xf32>
    %1124 = tpu.matmul %1121, %1123, %cst_468 {dimension_numbers = #tpu.dot_dimension_numbers<[1], [0], [0], [1], [0, 0, 1, 1], [], []>} : vector<2x20xf32>, vector<20x32xf32>, vector<2x32xf32> -> vector<2x32xf32>
    %1125 = arith.addf %1119, %1124 : vector<2x32xf32>
    %c27_469 = arith.constant 27 : index
    %c0_470 = arith.constant 0 : index
    %c0_471 = arith.constant 0 : index
    %1126 = vector.load %arg10[%c27_469, %c0_470, %c0_471] : memref<33x2x20xf32, #tpu.memory_space<vmem>>, vector<1x2x20xf32>
    %1127 = vector.shape_cast %1126 : vector<1x2x20xf32> to vector<2x20xf32>
    %c27_472 = arith.constant 27 : index
    %c0_473 = arith.constant 0 : index
    %c0_474 = arith.constant 0 : index
    %1128 = vector.load %arg3[%c27_472, %c0_473, %c0_474] : memref<33x20x32xf32, #tpu.memory_space<vmem>>, vector<1x20x32xf32>
    %1129 = vector.shape_cast %1128 : vector<1x20x32xf32> to vector<20x32xf32>
    %cst_475 = arith.constant dense<0.000000e+00> : vector<2x32xf32>
    %1130 = tpu.matmul %1127, %1129, %cst_475 {dimension_numbers = #tpu.dot_dimension_numbers<[1], [0], [0], [1], [0, 0, 1, 1], [], []>} : vector<2x20xf32>, vector<20x32xf32>, vector<2x32xf32> -> vector<2x32xf32>
    %1131 = arith.addf %1125, %1130 : vector<2x32xf32>
    %c28_476 = arith.constant 28 : index
    %c0_477 = arith.constant 0 : index
    %c0_478 = arith.constant 0 : index
    %1132 = vector.load %arg10[%c28_476, %c0_477, %c0_478] : memref<33x2x20xf32, #tpu.memory_space<vmem>>, vector<1x2x20xf32>
    %1133 = vector.shape_cast %1132 : vector<1x2x20xf32> to vector<2x20xf32>
    %c28_479 = arith.constant 28 : index
    %c0_480 = arith.constant 0 : index
    %c0_481 = arith.constant 0 : index
    %1134 = vector.load %arg3[%c28_479, %c0_480, %c0_481] : memref<33x20x32xf32, #tpu.memory_space<vmem>>, vector<1x20x32xf32>
    %1135 = vector.shape_cast %1134 : vector<1x20x32xf32> to vector<20x32xf32>
    %cst_482 = arith.constant dense<0.000000e+00> : vector<2x32xf32>
    %1136 = tpu.matmul %1133, %1135, %cst_482 {dimension_numbers = #tpu.dot_dimension_numbers<[1], [0], [0], [1], [0, 0, 1, 1], [], []>} : vector<2x20xf32>, vector<20x32xf32>, vector<2x32xf32> -> vector<2x32xf32>
    %1137 = arith.addf %1131, %1136 : vector<2x32xf32>
    %c29_483 = arith.constant 29 : index
    %c0_484 = arith.constant 0 : index
    %c0_485 = arith.constant 0 : index
    %1138 = vector.load %arg10[%c29_483, %c0_484, %c0_485] : memref<33x2x20xf32, #tpu.memory_space<vmem>>, vector<1x2x20xf32>
    %1139 = vector.shape_cast %1138 : vector<1x2x20xf32> to vector<2x20xf32>
    %c29_486 = arith.constant 29 : index
    %c0_487 = arith.constant 0 : index
    %c0_488 = arith.constant 0 : index
    %1140 = vector.load %arg3[%c29_486, %c0_487, %c0_488] : memref<33x20x32xf32, #tpu.memory_space<vmem>>, vector<1x20x32xf32>
    %1141 = vector.shape_cast %1140 : vector<1x20x32xf32> to vector<20x32xf32>
    %cst_489 = arith.constant dense<0.000000e+00> : vector<2x32xf32>
    %1142 = tpu.matmul %1139, %1141, %cst_489 {dimension_numbers = #tpu.dot_dimension_numbers<[1], [0], [0], [1], [0, 0, 1, 1], [], []>} : vector<2x20xf32>, vector<20x32xf32>, vector<2x32xf32> -> vector<2x32xf32>
    %1143 = arith.addf %1137, %1142 : vector<2x32xf32>
    %c30_490 = arith.constant 30 : index
    %c0_491 = arith.constant 0 : index
    %c0_492 = arith.constant 0 : index
    %1144 = vector.load %arg10[%c30_490, %c0_491, %c0_492] : memref<33x2x20xf32, #tpu.memory_space<vmem>>, vector<1x2x20xf32>
    %1145 = vector.shape_cast %1144 : vector<1x2x20xf32> to vector<2x20xf32>
    %c30_493 = arith.constant 30 : index
    %c0_494 = arith.constant 0 : index
    %c0_495 = arith.constant 0 : index
    %1146 = vector.load %arg3[%c30_493, %c0_494, %c0_495] : memref<33x20x32xf32, #tpu.memory_space<vmem>>, vector<1x20x32xf32>
    %1147 = vector.shape_cast %1146 : vector<1x20x32xf32> to vector<20x32xf32>
    %cst_496 = arith.constant dense<0.000000e+00> : vector<2x32xf32>
    %1148 = tpu.matmul %1145, %1147, %cst_496 {dimension_numbers = #tpu.dot_dimension_numbers<[1], [0], [0], [1], [0, 0, 1, 1], [], []>} : vector<2x20xf32>, vector<20x32xf32>, vector<2x32xf32> -> vector<2x32xf32>
    %1149 = arith.addf %1143, %1148 : vector<2x32xf32>
    %c31_497 = arith.constant 31 : index
    %c0_498 = arith.constant 0 : index
    %c0_499 = arith.constant 0 : index
    %1150 = vector.load %arg10[%c31_497, %c0_498, %c0_499] : memref<33x2x20xf32, #tpu.memory_space<vmem>>, vector<1x2x20xf32>
    %1151 = vector.shape_cast %1150 : vector<1x2x20xf32> to vector<2x20xf32>
    %c31_500 = arith.constant 31 : index
    %c0_501 = arith.constant 0 : index
    %c0_502 = arith.constant 0 : index
    %1152 = vector.load %arg3[%c31_500, %c0_501, %c0_502] : memref<33x20x32xf32, #tpu.memory_space<vmem>>, vector<1x20x32xf32>
    %1153 = vector.shape_cast %1152 : vector<1x20x32xf32> to vector<20x32xf32>
    %cst_503 = arith.constant dense<0.000000e+00> : vector<2x32xf32>
    %1154 = tpu.matmul %1151, %1153, %cst_503 {dimension_numbers = #tpu.dot_dimension_numbers<[1], [0], [0], [1], [0, 0, 1, 1], [], []>} : vector<2x20xf32>, vector<20x32xf32>, vector<2x32xf32> -> vector<2x32xf32>
    %1155 = arith.addf %1149, %1154 : vector<2x32xf32>
    %c32_504 = arith.constant 32 : index
    %c0_505 = arith.constant 0 : index
    %c0_506 = arith.constant 0 : index
    %1156 = vector.load %arg10[%c32_504, %c0_505, %c0_506] : memref<33x2x20xf32, #tpu.memory_space<vmem>>, vector<1x2x20xf32>
    %1157 = vector.shape_cast %1156 : vector<1x2x20xf32> to vector<2x20xf32>
    %c32_507 = arith.constant 32 : index
    %c0_508 = arith.constant 0 : index
    %c0_509 = arith.constant 0 : index
    %1158 = vector.load %arg3[%c32_507, %c0_508, %c0_509] : memref<33x20x32xf32, #tpu.memory_space<vmem>>, vector<1x20x32xf32>
    %1159 = vector.shape_cast %1158 : vector<1x20x32xf32> to vector<20x32xf32>
    %cst_510 = arith.constant dense<0.000000e+00> : vector<2x32xf32>
    %1160 = tpu.matmul %1157, %1159, %cst_510 {dimension_numbers = #tpu.dot_dimension_numbers<[1], [0], [0], [1], [0, 0, 1, 1], [], []>} : vector<2x20xf32>, vector<20x32xf32>, vector<2x32xf32> -> vector<2x32xf32>
    %1161 = arith.addf %1155, %1160 : vector<2x32xf32>
    %c0_511 = arith.constant 0 : index
    %c0_512 = arith.constant 0 : index
    %1162 = vector.load %arg4[%c0_511, %c0_512] : memref<1x32xf32, #tpu.memory_space<vmem>>, vector<1x32xf32>
    %1163 = vector.broadcast %1162 : vector<1x32xf32> to vector<2x32xf32>
    %1164 = arith.addf %1161, %1163 : vector<2x32xf32>
    %cst_513 = arith.constant 0.000000e+00 : f32
    %1165 = vector.broadcast %cst_513 : f32 to vector<2x32xf32>
    %1166 = arith.maximumf %1164, %1165 : vector<2x32xf32>
    %c0_514 = arith.constant 0 : index
    %c0_515 = arith.constant 0 : index
    %1167 = vector.load %arg5[%c0_514, %c0_515] : memref<32x16xf32, #tpu.memory_space<vmem>>, vector<32x16xf32>
    %cst_516 = arith.constant dense<0.000000e+00> : vector<2x16xf32>
    %1168 = tpu.matmul %1166, %1167, %cst_516 {dimension_numbers = #tpu.dot_dimension_numbers<[1], [0], [0], [1], [0, 0, 1, 1], [], []>} : vector<2x32xf32>, vector<32x16xf32>, vector<2x16xf32> -> vector<2x16xf32>
    %c0_517 = arith.constant 0 : index
    %c0_518 = arith.constant 0 : index
    %1169 = vector.load %arg6[%c0_517, %c0_518] : memref<1x16xf32, #tpu.memory_space<vmem>>, vector<1x16xf32>
    %1170 = vector.broadcast %1169 : vector<1x16xf32> to vector<2x16xf32>
    %1171 = arith.addf %1168, %1170 : vector<2x16xf32>
    %c0_519 = arith.constant 0 : index
    %c0_520 = arith.constant 0 : index
    %1172 = vector.load %arg7[%c0_519, %c0_520] : memref<16x2xf32, #tpu.memory_space<vmem>>, vector<16x2xf32>
    %cst_521 = arith.constant dense<0.000000e+00> : vector<2x2xf32>
    %1173 = tpu.matmul %1171, %1172, %cst_521 {dimension_numbers = #tpu.dot_dimension_numbers<[1], [0], [0], [1], [0, 0, 1, 1], [], []>} : vector<2x16xf32>, vector<16x2xf32>, vector<2x2xf32> -> vector<2x2xf32>
    %c0_522 = arith.constant 0 : index
    %c0_523 = arith.constant 0 : index
    %1174 = vector.load %arg8[%c0_522, %c0_523] : memref<1x2xf32, #tpu.memory_space<vmem>>, vector<1x2xf32>
    %1175 = vector.broadcast %1174 : vector<1x2xf32> to vector<2x2xf32>
    %1176 = arith.addf %1173, %1175 : vector<2x2xf32>
    %cst_524 = arith.constant dense<0xFF800000> : vector<2xf32>
    %1177 = vector.multi_reduction <maximumf>, %1176, %cst_524 [1] : vector<2x2xf32> to vector<2xf32>
    %1178 = vector.shape_cast %1177 : vector<2xf32> to vector<2x1xf32>
    %1179 = vector.broadcast %1178 : vector<2x1xf32> to vector<2x2xf32>
    %1180 = arith.subf %1176, %1179 : vector<2x2xf32>
    %1181 = math.exp %1180 : vector<2x2xf32>
    %cst_525 = arith.constant dense<0.000000e+00> : vector<2xf32>
    %1182 = vector.multi_reduction <add>, %1181, %cst_525 [1] : vector<2x2xf32> to vector<2xf32>
    %1183 = vector.shape_cast %1182 : vector<2xf32> to vector<2x1xf32>
    %1184 = vector.broadcast %1183 : vector<2x1xf32> to vector<2x2xf32>
    %1185 = arith.divf %1181, %1184 : vector<2x2xf32>
    %c0_526 = arith.constant 0 : index
    %c0_527 = arith.constant 0 : index
    %1186 = vector.load %arg9[%c0_526, %c0_527] : memref<2x2xf32, #tpu.memory_space<vmem>>, vector<2x2xf32>
    tpu.vector_store %arg9[%c0_526, %c0_527], %1185 {strides = array<i32>} : memref<2x2xf32, #tpu.memory_space<vmem>>, vector<2x2xf32>,
    return
  }
}

</mosaic_0001>

<bundles_post_ra>
// kernel: _lstm_embed_forward.1
= control target key start
LH: loop header
LB: loop body
LE: loop exit
PB: predicated region body
PF: predicated region fallthrough
CT: control target
= control target key end

     0   :  { %vm108_vm0 = vcmask 1045504   ;;  %v8119_v4 = vmov 0   ;;  %s9942_s0 = inlined_call_operand.vmem [shape: f32[35,2,240], index: 0, kind: input, shape index: {}]   ;;  %s9943_s1 = inlined_call_operand.vmem [shape: bf16[60,240], index: 1, kind: input, shape index: {}]   ;;  %s9944_s2 = inlined_call_operand.vmem [shape: f32[1,240], index: 2, kind: input, shape index: {}]   ;;  %s9945_s3 = inlined_call_operand.vmem [shape: f32[33,20,32], index: 3, kind: input, shape index: {}]   ;;  %s9946_s4 = inlined_call_operand.vmem [shape: f32[1,32], index: 4, kind: input, shape index: {}]   ;;  %s9947_s5 = inlined_call_operand.vmem [shape: f32[32,16], index: 5, kind: input, shape index: {}]   ;;  %s9948_s6 = inlined_call_operand.vmem [shape: f32[1,16], index: 6, kind: input, shape index: {}]   ;;  %s9949_s7 = inlined_call_operand.vmem [shape: f32[16,2], index: 7, kind: input, shape index: {}]   ;;  %s9950_s8 = inlined_call_operand.vmem [shape: f32[1,2], index: 8, kind: input, shape index: {}]   ;;  %s9951_s9 = inlined_call_operand.hbm [shape: f32[2,2], index: 9, kind: output, shape index: {}]  }
   0x1   :  { %v8182_v0 = vld [vmem:[%s9943_s1 + $0x34] ss:$8 sps:$4 sm:$0x3f]   ;;  %v7572_v1 = vld [vmem:[%s9943_s1 + $0x30] ss:$8 sps:$4 sm:$0x3f]   ;;  %147 = vmatprep.mubr.bf16.mxu0 %v8119_v4  ;;  %258 = vmatprep.mubr.bf16.mxu1 %v8119_v4 }
   0x2   :  { %6726 = vmatprep.subr.msk.bf16.mxu0 %vm108_vm0, %v8182_v0  ;;  %v8192_v2 = vld [vmem:[%s9943_s1 + $0x24] ss:$8 sps:$4 sm:$0xff]   ;;  %6731 = vmatprep.subr.msk.bf16.mxu1 %vm108_vm0, %v8182_v0  ;;  %v8197_v3 = vsel %vm108_vm0, %v7572_v1, 0  ;;  %v8205_v5 = vld [vmem:[%s9943_s1 + $0x20] ss:$8 sps:$4 sm:$0xff]  }
   0x3   :  { %124 = vmatpush1.bf16.msra.mxu0 %v8197_v3  ;;  %235 = vmatpush1.bf16.msra.mxu1 %v8197_v3  ;;  %v8212_v6 = vld [vmem:[%s9943_s1 + $0x14] ss:$8 sps:$4 sm:$0xff]  }
   0x4   :  { %125 = vmatprep.subr.bf16.mxu0 %v8192_v2  ;;  %236 = vmatprep.subr.bf16.mxu1 %v8192_v2 }
   0x5   :  { %14 = vsyncpa [#allocation4], 0  ;;  %v8219_v7 = vld [vmem:[%s9943_s1 + $0x10] ss:$8 sps:$4 sm:$0xff]   ;;  %v8226_v8 = vld [vmem:[%s9943_s1 + $0x4] ss:$8 sps:$4 sm:$0xff]   ;;  %v44_v10 = vlaneseq }
   0x6   :  { %v8233_v9 = vld [vmem:[%s9943_s1] ss:$8 sps:$4 sm:$0xff]   ;;  %vm179_vm1 = vcmask 64512   ;;  %s8121_s29 = smov 60   ;;  %s8122_s30 = smov 120   ;;  %vm104_vm3 = vcmask 490496  }
   0x7   :  { %126 = vmatpush1.bf16.msra.mxu0 %v8205_v5  ;;  %237 = vmatpush1.bf16.msra.mxu1 %v8205_v5  ;;  %v45_v11 = vshrl.u32 %v44_v10, 7  ;;  %v42_v13 = vld [vmem:[%s9944_s2] sm:$0x3]  ;;  %s8120_s2 = smov 8   ;;  %s8123_s10 = smov 68   ;;  %v8274_v47 = vand.u32 127, %v44_v10 }
   0x8   :  { %127 = vmatprep.subr.bf16.mxu0 %v8212_v6  ;;  %238 = vmatprep.subr.bf16.mxu1 %v8212_v6  ;;  %v6725_v14 = vld.sshfl [vmem:[%s9942_s0] sm:$0x33 pattern:$0x76325410]  ;;  %s8124_s11 = smov 76   ;;  %vm3821_vm8 = vcmask 1043456  }
   0x9   :  { %v46_v12 = vsub.s32 0, %v45_v11  ;;  %v50_v15 = vsub.s32 1, %v45_v11  ;;  %v101_v17 = vcombine.high %v6725_v14, %v6725_v14  ;;  %vm197_vm2 = vcmp.lt.s32.totalorder %v8274_v47, 20  ;;  %s8127_s22 = smov 36  }
   0xa   :  { %v6730_v51 = vld.sshfl [vmem:[%s9942_s0 + $0x4] sm:$0x33 pattern:$0x76325410]  ;;  %vm308_vm4 = vcmp.lt.s32.totalorder %v8274_v47, 40  ;;  %vm3681_vm5 = vcmp.ge.s32.totalorder %v8274_v47, 20 }
   0xb   :  { %128 = vmatpush1.bf16.msra.mxu0 %v8219_v7  ;;  %239 = vmatpush1.bf16.msra.mxu1 %v8219_v7  ;;  %v8261_v16 = vrot.slane %v42_v13, %v46_v12  ;;  %v8263_v20 = vrot.slane %v42_v13, %v50_v15  ;;  %v220_v52 = vcombine.high %v6730_v51, %v6730_v51  ;;  %vm3682_vm6 = vcmp.lt.s32.totalorder %v8274_v47, 60 }
   0xc   :  { %129 = vmatprep.subr.bf16.mxu0 %v8226_v8  ;;  %240 = vmatprep.subr.bf16.mxu1 %v8226_v8  ;;  %vm9239_vm7 = vmand %vm3681_vm5, %vm3682_vm6  ;;  %vm8126_vm9 = vmmov 0   ;;  %vm424_vm10 = vcmask 156672   ;;  %vm3817_vm11 = vcmask 162816   ;;  %vm6533_vm12 = vcmask 261120  }
   0xd   :  { %vm6616_vm13 = vcmask 130048   ;;  %vm6690_vm14 = vcmask 9216  }
   0xf   :  { %130 = vmatpush1.bf16.msra.mxu0 %v8233_v9  ;;  %241 = vmatpush1.bf16.msra.mxu1 %v8233_v9 }
  0x10   :  { %6737 = vmatprep.subr.msk.bf16.mxu0 %vm108_vm0, %v8182_v0  ;;  %6743 = vmatprep.subr.msk.bf16.mxu1 %vm108_vm0, %v8182_v0 }
  0x12   :  { %148 = vmatmul.mubr.bf16.vlgmr.msra.gmra.mxu0 %v8119_v4 }
  0x13   :  { %346 = vmatpush1.bf16.msra.mxu0 %v8197_v3  ;;  %369 = vmatprep.mubr.bf16.mxu0 %v8119_v4 }
  0x14   :  { %347 = vmatprep.subr.bf16.mxu0 %v8192_v2 }
  0x17   :  { %348 = vmatpush1.bf16.msra.mxu0 %v8205_v5 }
  0x18   :  { %349 = vmatprep.subr.bf16.mxu0 %v8212_v6 }
  0x1b   :  { %350 = vmatpush1.bf16.msra.mxu0 %v8219_v7 }
  0x1c   :  { %351 = vmatprep.subr.bf16.mxu0 %v8226_v8 }
  0x1f   :  { %352 = vmatpush1.bf16.msra.mxu0 %v8233_v9 }
  0x20   :  { %6749 = vmatprep.subr.msk.bf16.mxu0 %vm108_vm0, %v8182_v0 }
  0xd2   :  { %v149_v18 = vpop.f32.mrf.mxu0 }
  0xd3   :  { %v150_v19 = vadd.f32 %v6725_v14, %v149_v18 }
  0xd4   :  { %v151_v21 = vpop.f32.mrf.mxu0 }
  0xd5   :  { %v156_v22 = vadd.f32 %v150_v19, %v8261_v16  ;;  %v152_v23 = vadd.f32 %v151_v21, %v101_v17 }
  0xd6   :  { %v153_v24 = vpop.f32.mrf.mxu0 }
  0xd7   :  { %7582 = vtanh.f32 %v156_v22  ;;  %v157_v25 = vadd.f32 %v152_v23, %v8263_v20  ;;  %v6727_v29 = vmul.f32 -1.442695, %v156_v22 }
  0xd8   :  { %v154_v26 = vpop.f32.mrf.mxu0 }
  0xd9   :  { %7584 = vtanh.f32 %v157_v25  ;;  %v6728_v41 = vmul.f32 -1.442695, %v157_v25 }
  0xda   :  { %7586 = vpow2.f32 %v6727_v29 }
  0xe4   :  { %v7583_v27 = vpop.eup %7582 }
  0xe5   :  { %175 = vrot.lane.b32.xlu0 %v7583_v27, %s8120_s2 }
  0xe6   :  { %v7585_v28 = vpop.eup %7584 }
  0xe7   :  { %v7587_v30 = vpop.eup %7586 }
  0xe8   :  { %v164_v31 = vadd.f32 1.0, %v7587_v30 }
  0xe9   :  { %177 = vrot.lane.b32.xlu0 %v7585_v28, %s8120_s2 }
  0xea   :  { %7588 = vrcp.f32 %v164_v31 }
  0xf7   :  { %v7589_v34 = vpop.eup %7588 }
  0xf8   :  { %v172_v37 = vmul.f32 0.0, %v7589_v34 }
 0x157   :  { %v176_v32 = vpop.permute.xlu0 %175 }
 0x15b   :  { %v178_v33 = vpop.permute.xlu0 %177 }
 0x15c   :  { %v180_v35 = vsel %vm179_vm1, %v176_v32, %v178_v33 }
 0x15d   :  { %v182_v36 = vmul.f32 %v7589_v34, %v180_v35  ;;  %v6736_v34 = vld.sshfl [vmem:[%s9942_s0 + $0x8] sm:$0x33 pattern:$0x76325410] }
 0x15e   :  { %v331_v35 = vcombine.high %v6736_v34, %v6736_v34 }
 0x15f   :  { %184 = vrot.lane.b32.xlu1 %v182_v36, %s8121_s29 }
 0x1d1   :  { %v185_v38 = vpop.permute.xlu1 %184 }
 0x1d2   :  { %v187_v39 = vadd.f32 %v185_v38, %v172_v37 }
 0x1d4   :  { %7590 = vtanh.f32 %v187_v39 }
 0x1d5   :  { %7592 = vpow2.f32 %v6728_v41 }
 0x1e1   :  { %v7591_v40 = vpop.eup %7590 }
 0x1e2   :  { %190 = vrot.lane.b32.xlu1 %v7591_v40, %s8122_s30  ;;  %v7593_v42 = vpop.eup %7592 }
 0x1e3   :  { %v165_v43 = vadd.f32 1.0, %v7593_v42 }
 0x1e5   :  { %7594 = vrcp.f32 %v165_v43 }
 0x1e6   :  { %205 = vrot.lane.b32.xlu1 %v187_v39, %s8123_s10 }
 0x1f2   :  { %v7595_v44 = vpop.eup %7594 }
 0x254   :  { %v191_v45 = vpop.permute.xlu1 %190 }
 0x255   :  { %v193_v46 = vmul.f32 %v7595_v44, %v191_v45 }
 0x257   :  { %200 = vrot.lane.b32.xlu0 %v193_v46, %s8124_s11 }
 0x258   :  { %v206_v62 = vpop.permute.xlu1 %205 }
 0x259   :  { %v208_v1 = vsel %vm197_vm2, %v206_v62, 0.0 }
 0x2c9   :  { %v201_v48 = vpop.permute.xlu0 %200 }
 0x2ca   :  { %v8279_v49 = vsel %vm197_vm2, %v201_v48, 0.0 }
 0x2cb   :  { %v209_v50 = vpack.c.bf16 %v8279_v49, %v8279_v49 }
 0x2cd   :  { %6732 = vmatmul.mubr.msk.bf16.vlgmr.msra.gmra.mxu1 %vm104_vm3, %v209_v50 }
 0x2ce   :  { %455 = vmatpush1.bf16.msra.mxu1 %v8197_v3  ;;  %478 = vmatprep.mubr.bf16.mxu1 %v8119_v4 }
 0x2cf   :  { %456 = vmatprep.subr.bf16.mxu1 %v8192_v2 }
 0x2d2   :  { %457 = vmatpush1.bf16.msra.mxu1 %v8205_v5 }
 0x2d3   :  { %458 = vmatprep.subr.bf16.mxu1 %v8212_v6 }
 0x2d6   :  { %459 = vmatpush1.bf16.msra.mxu1 %v8219_v7 }
 0x2d7   :  { %460 = vmatprep.subr.bf16.mxu1 %v8226_v8 }
 0x2da   :  { %461 = vmatpush1.bf16.msra.mxu1 %v8233_v9 }
 0x2db   :  { %6755 = vmatprep.subr.msk.bf16.mxu1 %vm108_vm0, %v8182_v0 }
 0x38d   :  { %v260_v53 = vpop.f32.mrf.mxu1 }
 0x38e   :  { %v261_v54 = vadd.f32 %v6730_v51, %v260_v53 }
 0x38f   :  { %v262_v55 = vpop.f32.mrf.mxu1 }
 0x390   :  { %v267_v56 = vadd.f32 %v261_v54, %v8261_v16  ;;  %v263_v57 = vadd.f32 %v262_v55, %v220_v52 }
 0x391   :  { %v264_v58 = vpop.f32.mrf.mxu1 }
 0x392   :  { %7596 = vtanh.f32 %v267_v56  ;;  %v268_v59 = vadd.f32 %v263_v57, %v8263_v20  ;;  %v6733_v10 = vmul.f32 -1.442695, %v267_v56 }
 0x393   :  { %v265_v60 = vpop.f32.mrf.mxu1 }
 0x394   :  { %7598 = vtanh.f32 %v268_v59  ;;  %v6734_v25 = vmul.f32 -1.442695, %v268_v59 }
 0x395   :  { %7600 = vpow2.f32 %v6733_v10 }
 0x39f   :  { %v7597_v61 = vpop.eup %7596 }
 0x3a0   :  { %290 = vrot.lane.b32.xlu0 %v7597_v61, %s8120_s2 }
 0x3a1   :  { %v7599_v63 = vpop.eup %7598 }
 0x3a2   :  { %292 = vrot.lane.b32.xlu1 %v7599_v63, %s8120_s2  ;;  %v7601_v11 = vpop.eup %7600 }
 0x3a3   :  { %v275_v12 = vadd.f32 1.0, %v7601_v11 }
 0x3a4   :  { %284 = vrot.lane.b32.xlu0 %v208_v1, %s8121_s29 }
 0x3a5   :  { %7602 = vrcp.f32 %v275_v12 }
 0x3b2   :  { %v7603_v15 = vpop.eup %7602 }
 0x412   :  { %v291_v13 = vpop.permute.xlu0 %290 }
 0x414   :  { %v293_v14 = vpop.permute.xlu1 %292 }
 0x415   :  { %v294_v17 = vsel %vm179_vm1, %v291_v13, %v293_v14 }
 0x416   :  { %v296_v18 = vmul.f32 %v7603_v15, %v294_v17  ;;  %v285_v19 = vpop.permute.xlu0 %284 }
 0x417   :  { %v287_v21 = vmul.f32 %v7603_v15, %v285_v19  ;;  %v6742_v15 = vld.sshfl [vmem:[%s9942_s0 + $0xc] sm:$0x33 pattern:$0x76325410] }
 0x418   :  { %298 = vrot.lane.b32.xlu1 %v296_v18, %s8121_s29  ;;  %v440_v17 = vcombine.high %v6742_v15, %v6742_v15 }
 0x48a   :  { %v299_v22 = vpop.permute.xlu1 %298 }
 0x48b   :  { %v301_v23 = vadd.f32 %v299_v22, %v287_v21 }
 0x48d   :  { %7604 = vtanh.f32 %v301_v23 }
 0x48e   :  { %7606 = vpow2.f32 %v6734_v25 }
 0x49a   :  { %v7605_v24 = vpop.eup %7604 }
 0x49b   :  { %304 = vrot.lane.b32.xlu0 %v7605_v24, %s8122_s30  ;;  %v7607_v26 = vpop.eup %7606 }
 0x49c   :  { %v276_v27 = vadd.f32 1.0, %v7607_v26 }
 0x49e   :  { %7608 = vrcp.f32 %v276_v27 }
 0x49f   :  { %316 = vrot.lane.b32.xlu0 %v301_v23, %s8123_s10 }
 0x4ab   :  { %v7609_v28 = vpop.eup %7608 }
 0x50d   :  { %v305_v29 = vpop.permute.xlu0 %304 }
 0x50e   :  { %v307_v30 = vmul.f32 %v7609_v28, %v305_v29 }
 0x510   :  { %311 = vrot.lane.b32.xlu1 %v307_v30, %s8124_s11 }
 0x511   :  { %v317_v45 = vpop.permute.xlu0 %316 }
 0x512   :  { %v319_v48 = vsel %vm308_vm4, %v317_v45, %v208_v1 }
 0x582   :  { %v312_v31 = vpop.permute.xlu1 %311 }
 0x583   :  { %v314_v32 = vsel %vm308_vm4, %v312_v31, %v8279_v49 }
 0x584   :  { %v320_v33 = vpack.c.bf16 %v314_v32, %v314_v32 }
 0x586   :  { %6738 = vmatmul.mubr.msk.bf16.vlgmr.msra.gmra.mxu0 %vm104_vm3, %v320_v33 }
 0x587   :  { %560 = vmatpush1.bf16.msra.mxu0 %v8197_v3  ;;  %583 = vmatprep.mubr.bf16.mxu0 %v8119_v4 }
 0x588   :  { %561 = vmatprep.subr.bf16.mxu0 %v8192_v2 }
 0x58b   :  { %562 = vmatpush1.bf16.msra.mxu0 %v8205_v5 }
 0x58c   :  { %563 = vmatprep.subr.bf16.mxu0 %v8212_v6 }
 0x58f   :  { %564 = vmatpush1.bf16.msra.mxu0 %v8219_v7 }
 0x590   :  { %565 = vmatprep.subr.bf16.mxu0 %v8226_v8 }
 0x593   :  { %566 = vmatpush1.bf16.msra.mxu0 %v8233_v9 }
 0x594   :  { %6761 = vmatprep.subr.msk.bf16.mxu0 %vm108_vm0, %v8182_v0 }
 0x646   :  { %v371_v36 = vpop.f32.mrf.mxu0 }
 0x647   :  { %v372_v37 = vadd.f32 %v6736_v34, %v371_v36 }
 0x648   :  { %v373_v38 = vpop.f32.mrf.mxu0 }
 0x649   :  { %v378_v39 = vadd.f32 %v372_v37, %v8261_v16  ;;  %v374_v40 = vadd.f32 %v373_v38, %v331_v35 }
 0x64a   :  { %v375_v41 = vpop.f32.mrf.mxu0 }
 0x64b   :  { %7610 = vtanh.f32 %v378_v39  ;;  %v379_v42 = vadd.f32 %v374_v40, %v8263_v20  ;;  %v6739_v49 = vmul.f32 -1.442695, %v378_v39 }
 0x64c   :  { %v376_v43 = vpop.f32.mrf.mxu0 }
 0x64d   :  { %7612 = vtanh.f32 %v379_v42  ;;  %v6740_v62 = vmul.f32 -1.442695, %v379_v42 }
 0x64e   :  { %7614 = vpow2.f32 %v6739_v49 }
 0x658   :  { %v7611_v44 = vpop.eup %7610 }
 0x659   :  { %401 = vrot.lane.b32.xlu1 %v7611_v44, %s8120_s2 }
 0x65a   :  { %v7613_v46 = vpop.eup %7612 }
 0x65b   :  { %403 = vrot.lane.b32.xlu0 %v7613_v46, %s8120_s2  ;;  %v7615_v50 = vpop.eup %7614 }
 0x65c   :  { %v386_v51 = vadd.f32 1.0, %v7615_v50  ;;  %v6748_v50 = vld.sshfl [vmem:[%s9942_s0 + $0x10] sm:$0x33 pattern:$0x76325410] }
 0x65d   :  { %395 = vrot.lane.b32.xlu1 %v319_v48, %s8121_s29 }
 0x65e   :  { %7616 = vrcp.f32 %v386_v51  ;;  %v545_v51 = vcombine.high %v6748_v50, %v6748_v50 }
 0x66b   :  { %v7617_v54 = vpop.eup %7616 }
 0x6cb   :  { %v402_v52 = vpop.permute.xlu1 %401 }
 0x6cd   :  { %v404_v53 = vpop.permute.xlu0 %403 }
 0x6ce   :  { %v405_v55 = vsel %vm179_vm1, %v402_v52, %v404_v53 }
 0x6cf   :  { %v407_v56 = vmul.f32 %v7617_v54, %v405_v55  ;;  %v396_v57 = vpop.permute.xlu1 %395 }
 0x6d0   :  { %v398_v58 = vmul.f32 %v7617_v54, %v396_v57 }
 0x6d1   :  { %409 = vrot.lane.b32.xlu0 %v407_v56, %s8121_s29 }
 0x743   :  { %v410_v59 = vpop.permute.xlu0 %409 }
 0x744   :  { %v412_v60 = vadd.f32 %v410_v59, %v398_v58 }
 0x746   :  { %7618 = vtanh.f32 %v412_v60 }
 0x747   :  { %7620 = vpow2.f32 %v6740_v62 }
 0x753   :  { %v7619_v61 = vpop.eup %7618 }
 0x754   :  { %415 = vrot.lane.b32.xlu1 %v7619_v61, %s8122_s30  ;;  %v7621_v63 = vpop.eup %7620 }
 0x755   :  { %v387_v1 = vadd.f32 1.0, %v7621_v63 }
 0x757   :  { %7622 = vrcp.f32 %v387_v1 }
 0x764   :  { %v7623_v10 = vpop.eup %7622 }
 0x7c6   :  { %v416_v11 = vpop.permute.xlu1 %415 }
 0x7c7   :  { %v8337_v12 = vmul.f32 %v7623_v10, %v416_v11 }
 0x7c9   :  { %v426_v13 = vpack.c.bf16 %v8337_v12, %v8337_v12 }
 0x7cb   :  { %430 = vrot.lane.b32.xlu0 %v426_v13, %s8124_s11 }
 0x83d   :  { %v431_v14 = vpop.permute.xlu0 %430 }
 0x83e   :  { %6744 = vmatmul.mubr.msk.bf16.vlgmr.msra.gmra.mxu1 %vm104_vm3, %v431_v14 }
 0x83f   :  { %665 = vmatpush1.bf16.msra.mxu1 %v8197_v3  ;;  %688 = vmatprep.mubr.bf16.mxu1 %v8119_v4 }
 0x840   :  { %666 = vmatprep.subr.bf16.mxu1 %v8192_v2 }
 0x843   :  { %667 = vmatpush1.bf16.msra.mxu1 %v8205_v5 }
 0x844   :  { %668 = vmatprep.subr.bf16.mxu1 %v8212_v6 }
 0x847   :  { %669 = vmatpush1.bf16.msra.mxu1 %v8219_v7 }
 0x848   :  { %670 = vmatprep.subr.bf16.mxu1 %v8226_v8 }
 0x84b   :  { %671 = vmatpush1.bf16.msra.mxu1 %v8233_v9 }
 0x84c   :  { %6767 = vmatprep.subr.msk.bf16.mxu1 %vm108_vm0, %v8182_v0 }
 0x8fe   :  { %v480_v18 = vpop.f32.mrf.mxu1 }
 0x8ff   :  { %v481_v19 = vadd.f32 %v6742_v15, %v480_v18 }
 0x900   :  { %v482_v21 = vpop.f32.mrf.mxu1 }
 0x901   :  { %v487_v22 = vadd.f32 %v481_v19, %v8261_v16  ;;  %v483_v23 = vadd.f32 %v482_v21, %v440_v17 }
 0x902   :  { %v484_v24 = vpop.f32.mrf.mxu1 }
 0x903   :  { %7624 = vtanh.f32 %v487_v22  ;;  %v488_v25 = vadd.f32 %v483_v23, %v8263_v20  ;;  %v6745_v29 = vmul.f32 -1.442695, %v487_v22 }
 0x904   :  { %v485_v26 = vpop.f32.mrf.mxu1 }
 0x905   :  { %7626 = vtanh.f32 %v488_v25  ;;  %v6746_v41 = vmul.f32 -1.442695, %v488_v25 }
 0x906   :  { %7628 = vpow2.f32 %v6745_v29 }
 0x910   :  { %v7625_v27 = vpop.eup %7624 }
 0x911   :  { %506 = vrot.lane.b32.xlu1 %v7625_v27, %s8120_s2 }
 0x912   :  { %v7627_v28 = vpop.eup %7626 }
 0x913   :  { %508 = vrot.lane.b32.xlu0 %v7627_v28, %s8120_s2  ;;  %v7629_v30 = vpop.eup %7628 }
 0x914   :  { %v495_v31 = vadd.f32 1.0, %v7629_v30  ;;  %v6754_v30 = vld.sshfl [vmem:[%s9942_s0 + $0x14] sm:$0x33 pattern:$0x76325410] }
 0x916   :  { %7630 = vrcp.f32 %v495_v31  ;;  %v650_v31 = vcombine.high %v6754_v30, %v6754_v30 }
 0x923   :  { %v7631_v34 = vpop.eup %7630 }
 0x924   :  { %v503_v37 = vmul.f32 %v7631_v34, %v412_v60 }
 0x983   :  { %v507_v32 = vpop.permute.xlu1 %506 }
 0x985   :  { %v509_v33 = vpop.permute.xlu0 %508 }
 0x986   :  { %v510_v35 = vsel %vm179_vm1, %v507_v32, %v509_v33 }
 0x987   :  { %v512_v36 = vmul.f32 %v7631_v34, %v510_v35 }
 0x989   :  { %514 = vrot.lane.b32.xlu1 %v512_v36, %s8121_s29 }
 0x9fb   :  { %v515_v38 = vpop.permute.xlu1 %514 }
 0x9fc   :  { %v517_v39 = vadd.f32 %v515_v38, %v503_v37 }
 0x9fe   :  { %7632 = vtanh.f32 %v517_v39 }
 0x9ff   :  { %7634 = vpow2.f32 %v6746_v41 }
 0xa0b   :  { %v7633_v40 = vpop.eup %7632 }
 0xa0c   :  { %520 = vrot.lane.b32.xlu0 %v7633_v40, %s8122_s30  ;;  %v7635_v42 = vpop.eup %7634 }
 0xa0d   :  { %v496_v43 = vadd.f32 1.0, %v7635_v42 }
 0xa0f   :  { %7636 = vrcp.f32 %v496_v43 }
 0xa1c   :  { %v7637_v44 = vpop.eup %7636 }
 0xa7e   :  { %v521_v45 = vpop.permute.xlu0 %520 }
 0xa7f   :  { %v8363_v46 = vmul.f32 %v7637_v44, %v521_v45 }
 0xa81   :  { %v531_v48 = vpack.c.bf16 %v8363_v46, %v8363_v46 }
 0xa83   :  { %535 = vrot.lane.b32.xlu1 %v531_v48, %s8124_s11 }
 0xaf5   :  { %v536_v49 = vpop.permute.xlu1 %535 }
 0xaf6   :  { %6750 = vmatmul.mubr.msk.bf16.vlgmr.msra.gmra.mxu0 %vm104_vm3, %v536_v49 }
 0xaf7   :  { %770 = vmatpush1.bf16.msra.mxu0 %v8197_v3  ;;  %793 = vmatprep.mubr.bf16.mxu0 %v8119_v4 }
 0xaf8   :  { %771 = vmatprep.subr.bf16.mxu0 %v8192_v2 }
 0xafb   :  { %772 = vmatpush1.bf16.msra.mxu0 %v8205_v5 }
 0xafc   :  { %773 = vmatprep.subr.bf16.mxu0 %v8212_v6 }
 0xaff   :  { %774 = vmatpush1.bf16.msra.mxu0 %v8219_v7 }
 0xb00   :  { %775 = vmatprep.subr.bf16.mxu0 %v8226_v8 }
 0xb03   :  { %776 = vmatpush1.bf16.msra.mxu0 %v8233_v9 }
 0xb04   :  { %6773 = vmatprep.subr.msk.bf16.mxu0 %vm108_vm0, %v8182_v0 }
 0xbb6   :  { %v585_v52 = vpop.f32.mrf.mxu0 }
 0xbb7   :  { %v586_v53 = vadd.f32 %v6748_v50, %v585_v52 }
 0xbb8   :  { %v587_v54 = vpop.f32.mrf.mxu0 }
 0xbb9   :  { %v592_v55 = vadd.f32 %v586_v53, %v8261_v16  ;;  %v588_v56 = vadd.f32 %v587_v54, %v545_v51 }
 0xbba   :  { %v589_v57 = vpop.f32.mrf.mxu0 }
 0xbbb   :  { %7638 = vtanh.f32 %v592_v55  ;;  %v593_v58 = vadd.f32 %v588_v56, %v8263_v20  ;;  %v6751_v62 = vmul.f32 -1.442695, %v592_v55 }
 0xbbc   :  { %v590_v59 = vpop.f32.mrf.mxu0 }
 0xbbd   :  { %7640 = vtanh.f32 %v593_v58  ;;  %v6752_v22 = vmul.f32 -1.442695, %v593_v58 }
 0xbbe   :  { %7642 = vpow2.f32 %v6751_v62 }
 0xbc8   :  { %v7639_v60 = vpop.eup %7638 }
 0xbc9   :  { %611 = vrot.lane.b32.xlu0 %v7639_v60, %s8120_s2 }
 0xbca   :  { %v7641_v61 = vpop.eup %7640 }
 0xbcb   :  { %613 = vrot.lane.b32.xlu1 %v7641_v61, %s8120_s2  ;;  %v7643_v63 = vpop.eup %7642 }
 0xbcc   :  { %v600_v1 = vadd.f32 1.0, %v7643_v63 }
 0xbce   :  { %7644 = vrcp.f32 %v600_v1  ;;  %v6760_v1 = vld.sshfl [vmem:[%s9942_s0 + $0x18] sm:$0x33 pattern:$0x76325410] }
 0xbdb   :  { %v7645_v13 = vpop.eup %7644 }
 0xbdc   :  { %v608_v17 = vmul.f32 %v7645_v13, %v517_v39 }
 0xc3b   :  { %v612_v10 = vpop.permute.xlu0 %611 }
 0xc3d   :  { %v614_v11 = vpop.permute.xlu1 %613 }
 0xc3e   :  { %v615_v14 = vsel %vm179_vm1, %v612_v10, %v614_v11  ;;  %v755_v10 = vcombine.high %v6760_v1, %v6760_v1 }
 0xc3f   :  { %v617_v15 = vmul.f32 %v7645_v13, %v615_v14 }
 0xc41   :  { %619 = vrot.lane.b32.xlu0 %v617_v15, %s8121_s29 }
 0xcb3   :  { %v620_v18 = vpop.permute.xlu0 %619 }
 0xcb4   :  { %v622_v19 = vadd.f32 %v620_v18, %v608_v17 }
 0xcb6   :  { %7646 = vtanh.f32 %v622_v19 }
 0xcb7   :  { %7648 = vpow2.f32 %v6752_v22 }
 0xcc3   :  { %v7647_v21 = vpop.eup %7646 }
 0xcc4   :  { %625 = vrot.lane.b32.xlu1 %v7647_v21, %s8122_s30  ;;  %v7649_v23 = vpop.eup %7648 }
 0xcc5   :  { %v601_v24 = vadd.f32 1.0, %v7649_v23 }
 0xcc7   :  { %7650 = vrcp.f32 %v601_v24 }
 0xcd4   :  { %v7651_v25 = vpop.eup %7650 }
 0xd36   :  { %v626_v26 = vpop.permute.xlu1 %625 }
 0xd37   :  { %v8389_v27 = vmul.f32 %v7651_v25, %v626_v26 }
 0xd39   :  { %v636_v28 = vpack.c.bf16 %v8389_v27, %v8389_v27 }
 0xd3b   :  { %640 = vrot.lane.b32.xlu0 %v636_v28, %s8124_s11 }
 0xdad   :  { %v641_v29 = vpop.permute.xlu0 %640 }
 0xdae   :  { %6756 = vmatmul.mubr.msk.bf16.vlgmr.msra.gmra.mxu1 %vm104_vm3, %v641_v29 }
 0xdaf   :  { %875 = vmatpush1.bf16.msra.mxu1 %v8197_v3  ;;  %898 = vmatprep.mubr.bf16.mxu1 %v8119_v4 }
 0xdb0   :  { %876 = vmatprep.subr.bf16.mxu1 %v8192_v2 }
 0xdb3   :  { %877 = vmatpush1.bf16.msra.mxu1 %v8205_v5 }
 0xdb4   :  { %878 = vmatprep.subr.bf16.mxu1 %v8212_v6 }
 0xdb7   :  { %879 = vmatpush1.bf16.msra.mxu1 %v8219_v7 }
 0xdb8   :  { %880 = vmatprep.subr.bf16.mxu1 %v8226_v8 }
 0xdbb   :  { %881 = vmatpush1.bf16.msra.mxu1 %v8233_v9 }
 0xdbc   :  { %6779 = vmatprep.subr.msk.bf16.mxu1 %vm108_vm0, %v8182_v0 }
 0xe6e   :  { %v690_v32 = vpop.f32.mrf.mxu1 }
 0xe6f   :  { %v691_v33 = vadd.f32 %v6754_v30, %v690_v32 }
 0xe70   :  { %v692_v34 = vpop.f32.mrf.mxu1 }
 0xe71   :  { %v697_v35 = vadd.f32 %v691_v33, %v8261_v16  ;;  %v693_v36 = vadd.f32 %v692_v34, %v650_v31 }
 0xe72   :  { %v694_v37 = vpop.f32.mrf.mxu1 }
 0xe73   :  { %7652 = vtanh.f32 %v697_v35  ;;  %v698_v38 = vadd.f32 %v693_v36, %v8263_v20  ;;  %v6757_v42 = vmul.f32 -1.442695, %v697_v35 }
 0xe74   :  { %v695_v39 = vpop.f32.mrf.mxu1 }
 0xe75   :  { %7654 = vtanh.f32 %v698_v38  ;;  %v6758_v56 = vmul.f32 -1.442695, %v698_v38 }
 0xe76   :  { %7656 = vpow2.f32 %v6757_v42 }
 0xe80   :  { %v7653_v40 = vpop.eup %7652 }
 0xe81   :  { %716 = vrot.lane.b32.xlu1 %v7653_v40, %s8120_s2 }
 0xe82   :  { %v7655_v41 = vpop.eup %7654 }
 0xe83   :  { %718 = vrot.lane.b32.xlu0 %v7655_v41, %s8120_s2  ;;  %v7657_v43 = vpop.eup %7656 }
 0xe84   :  { %v705_v44 = vadd.f32 1.0, %v7657_v43 }
 0xe86   :  { %7658 = vrcp.f32 %v705_v44 }
 0xe93   :  { %v7659_v49 = vpop.eup %7658 }
 0xe94   :  { %v713_v52 = vmul.f32 %v7659_v49, %v622_v19 }
 0xef3   :  { %v717_v45 = vpop.permute.xlu1 %716 }
 0xef5   :  { %v719_v48 = vpop.permute.xlu0 %718 }
 0xef6   :  { %v720_v50 = vsel %vm179_vm1, %v717_v45, %v719_v48  ;;  %v6766_v45 = vld.sshfl [vmem:[%s9942_s0 + $0x1c] sm:$0x33 pattern:$0x76325410] }
 0xef7   :  { %v722_v51 = vmul.f32 %v7659_v49, %v720_v50  ;;  %v860_v48 = vcombine.high %v6766_v45, %v6766_v45 }
 0xef9   :  { %724 = vrot.lane.b32.xlu1 %v722_v51, %s8121_s29 }
 0xf6b   :  { %v725_v53 = vpop.permute.xlu1 %724 }
 0xf6c   :  { %v727_v54 = vadd.f32 %v725_v53, %v713_v52 }
 0xf6e   :  { %7660 = vtanh.f32 %v727_v54 }
 0xf6f   :  { %7662 = vpow2.f32 %v6758_v56 }
 0xf7b   :  { %v7661_v55 = vpop.eup %7660 }
 0xf7c   :  { %730 = vrot.lane.b32.xlu0 %v7661_v55, %s8122_s30  ;;  %v7663_v57 = vpop.eup %7662 }
 0xf7d   :  { %v706_v58 = vadd.f32 1.0, %v7663_v57 }
 0xf7f   :  { %7664 = vrcp.f32 %v706_v58 }
 0xf8c   :  { %v7665_v59 = vpop.eup %7664 }
 0xfee   :  { %v731_v60 = vpop.permute.xlu0 %730 }
 0xfef   :  { %v8415_v61 = vmul.f32 %v7665_v59, %v731_v60 }
 0xff1   :  { %v741_v62 = vpack.c.bf16 %v8415_v61, %v8415_v61 }
 0xff3   :  { %745 = vrot.lane.b32.xlu1 %v741_v62, %s8124_s11 }
0x1065   :  { %v746_v63 = vpop.permute.xlu1 %745 }
0x1066   :  { %6762 = vmatmul.mubr.msk.bf16.vlgmr.msra.gmra.mxu0 %vm104_vm3, %v746_v63 }
0x1067   :  { %980 = vmatpush1.bf16.msra.mxu0 %v8197_v3  ;;  %1003 = vmatprep.mubr.bf16.mxu0 %v8119_v4 }
0x1068   :  { %981 = vmatprep.subr.bf16.mxu0 %v8192_v2 }
0x106b   :  { %982 = vmatpush1.bf16.msra.mxu0 %v8205_v5 }
0x106c   :  { %983 = vmatprep.subr.bf16.mxu0 %v8212_v6 }
0x106f   :  { %984 = vmatpush1.bf16.msra.mxu0 %v8219_v7 }
0x1070   :  { %985 = vmatprep.subr.bf16.mxu0 %v8226_v8 }
0x1073   :  { %986 = vmatpush1.bf16.msra.mxu0 %v8233_v9 }
0x1074   :  { %6785 = vmatprep.subr.msk.bf16.mxu0 %vm108_vm0, %v8182_v0 }
0x1126   :  { %v795_v11 = vpop.f32.mrf.mxu0 }
0x1127   :  { %v796_v13 = vadd.f32 %v6760_v1, %v795_v11 }
0x1128   :  { %v797_v14 = vpop.f32.mrf.mxu0 }
0x1129   :  { %v802_v15 = vadd.f32 %v796_v13, %v8261_v16  ;;  %v798_v17 = vadd.f32 %v797_v14, %v755_v10 }
0x112a   :  { %v799_v18 = vpop.f32.mrf.mxu0 }
0x112b   :  { %7666 = vtanh.f32 %v802_v15  ;;  %v803_v19 = vadd.f32 %v798_v17, %v8263_v20  ;;  %v6763_v24 = vmul.f32 -1.442695, %v802_v15 }
0x112c   :  { %v800_v21 = vpop.f32.mrf.mxu0 }
0x112d   :  { %7668 = vtanh.f32 %v803_v19  ;;  %v6764_v37 = vmul.f32 -1.442695, %v803_v19 }
0x112e   :  { %7670 = vpow2.f32 %v6763_v24 }
0x1138   :  { %v7667_v22 = vpop.eup %7666 }
0x1139   :  { %821 = vrot.lane.b32.xlu0 %v7667_v22, %s8120_s2 }
0x113a   :  { %v7669_v23 = vpop.eup %7668 }
0x113b   :  { %823 = vrot.lane.b32.xlu1 %v7669_v23, %s8120_s2  ;;  %v7671_v25 = vpop.eup %7670 }
0x113c   :  { %v810_v26 = vadd.f32 1.0, %v7671_v25 }
0x113e   :  { %7672 = vrcp.f32 %v810_v26 }
0x114b   :  { %v7673_v30 = vpop.eup %7672 }
0x114c   :  { %v818_v33 = vmul.f32 %v7673_v30, %v727_v54 }
0x11ab   :  { %v822_v28 = vpop.permute.xlu0 %821 }
0x11ad   :  { %v824_v29 = vpop.permute.xlu1 %823 }
0x11ae   :  { %v825_v31 = vsel %vm179_vm1, %v822_v28, %v824_v29  ;;  %v6772_v29 = vld.sshfl [vmem:[%s9942_s0 + $0x20] sm:$0x33 pattern:$0x76325410] }
0x11af   :  { %v827_v32 = vmul.f32 %v7673_v30, %v825_v31  ;;  %v965_v30 = vcombine.high %v6772_v29, %v6772_v29 }
0x11b1   :  { %829 = vrot.lane.b32.xlu0 %v827_v32, %s8121_s29 }
0x1223   :  { %v830_v34 = vpop.permute.xlu0 %829 }
0x1224   :  { %v832_v35 = vadd.f32 %v830_v34, %v818_v33 }
0x1226   :  { %7674 = vtanh.f32 %v832_v35 }
0x1227   :  { %7676 = vpow2.f32 %v6764_v37 }
0x1233   :  { %v7675_v36 = vpop.eup %7674 }
0x1234   :  { %835 = vrot.lane.b32.xlu1 %v7675_v36, %s8122_s30  ;;  %v7677_v38 = vpop.eup %7676 }
0x1235   :  { %v811_v39 = vadd.f32 1.0, %v7677_v38 }
0x1237   :  { %7678 = vrcp.f32 %v811_v39 }
0x1244   :  { %v7679_v40 = vpop.eup %7678 }
0x12a6   :  { %v836_v41 = vpop.permute.xlu1 %835 }
0x12a7   :  { %v8441_v42 = vmul.f32 %v7679_v40, %v836_v41 }
0x12a9   :  { %v846_v43 = vpack.c.bf16 %v8441_v42, %v8441_v42 }
0x12ab   :  { %850 = vrot.lane.b32.xlu0 %v846_v43, %s8124_s11 }
0x131d   :  { %v851_v44 = vpop.permute.xlu0 %850 }
0x131e   :  { %6768 = vmatmul.mubr.msk.bf16.vlgmr.msra.gmra.mxu1 %vm104_vm3, %v851_v44 }
0x131f   :  { %1085 = vmatpush1.bf16.msra.mxu1 %v8197_v3  ;;  %1108 = vmatprep.mubr.bf16.mxu1 %v8119_v4 }
0x1320   :  { %1086 = vmatprep.subr.bf16.mxu1 %v8192_v2 }
0x1323   :  { %1087 = vmatpush1.bf16.msra.mxu1 %v8205_v5 }
0x1324   :  { %1088 = vmatprep.subr.bf16.mxu1 %v8212_v6 }
0x1327   :  { %1089 = vmatpush1.bf16.msra.mxu1 %v8219_v7 }
0x1328   :  { %1090 = vmatprep.subr.bf16.mxu1 %v8226_v8 }
0x132b   :  { %1091 = vmatpush1.bf16.msra.mxu1 %v8233_v9 }
0x132c   :  { %6791 = vmatprep.subr.msk.bf16.mxu1 %vm108_vm0, %v8182_v0 }
0x13de   :  { %v900_v49 = vpop.f32.mrf.mxu1 }
0x13df   :  { %v901_v50 = vadd.f32 %v6766_v45, %v900_v49 }
0x13e0   :  { %v902_v51 = vpop.f32.mrf.mxu1 }
0x13e1   :  { %v907_v52 = vadd.f32 %v901_v50, %v8261_v16  ;;  %v903_v53 = vadd.f32 %v902_v51, %v860_v48 }
0x13e2   :  { %v904_v54 = vpop.f32.mrf.mxu1 }
0x13e3   :  { %7680 = vtanh.f32 %v907_v52  ;;  %v908_v55 = vadd.f32 %v903_v53, %v8263_v20  ;;  %v6769_v59 = vmul.f32 -1.442695, %v907_v52 }
0x13e4   :  { %v905_v56 = vpop.f32.mrf.mxu1 }
0x13e5   :  { %7682 = vtanh.f32 %v908_v55  ;;  %v6770_v19 = vmul.f32 -1.442695, %v908_v55 }
0x13e6   :  { %7684 = vpow2.f32 %v6769_v59  ;;  %v8516_v59 = vld [vmem:[%s9943_s1 + $0x14] ss:$8 sps:$4 sm:$0xff]  }
0x13f0   :  { %v7681_v57 = vpop.eup %7680 }
0x13f1   :  { %926 = vrot.lane.b32.xlu1 %v7681_v57, %s8120_s2  ;;  %v8504_v57 = vld [vmem:[%s9943_s1 + $0x24] ss:$8 sps:$4 sm:$0xff]  }
0x13f2   :  { %v7683_v58 = vpop.eup %7682 }
0x13f3   :  { %928 = vrot.lane.b32.xlu0 %v7683_v58, %s8120_s2  ;;  %v7685_v60 = vpop.eup %7684  ;;  %v8510_v58 = vld [vmem:[%s9943_s1 + $0x20] ss:$8 sps:$4 sm:$0xff]  }
0x13f4   :  { %v915_v62 = vadd.f32 1.0, %v7685_v60  ;;  %v8522_v60 = vld [vmem:[%s9943_s1 + $0x10] ss:$8 sps:$4 sm:$0xff]  }
0x13f6   :  { %7686 = vrcp.f32 %v915_v62  ;;  %v8528_v62 = vld [vmem:[%s9943_s1 + $0x4] ss:$8 sps:$4 sm:$0xff]  }
0x1403   :  { %v7687_v10 = vpop.eup %7686 }
0x1404   :  { %v923_v14 = vmul.f32 %v7687_v10, %v832_v35 }
0x1463   :  { %v927_v63 = vpop.permute.xlu1 %926 }
0x1465   :  { %v929_v1 = vpop.permute.xlu0 %928 }
0x1466   :  { %v930_v11 = vsel %vm179_vm1, %v927_v63, %v929_v1  ;;  %v8534_v63 = vld [vmem:[%s9943_s1] ss:$8 sps:$4 sm:$0xff]   ;;  %v8540_v1 = vld [vmem:[%s9943_s1 + $0x34] ss:$8 sps:$4 sm:$0x3f]  }
0x1467   :  { %v932_v13 = vmul.f32 %v7687_v10, %v930_v11  ;;  %v6778_v10 = vld.sshfl [vmem:[%s9942_s0 + $0x24] sm:$0x33 pattern:$0x76325410] }
0x1468   :  { %v1070_v11 = vcombine.high %v6778_v10, %v6778_v10 }
0x1469   :  { %934 = vrot.lane.b32.xlu1 %v932_v13, %s8121_s29 }
0x14db   :  { %v935_v15 = vpop.permute.xlu1 %934 }
0x14dc   :  { %v937_v17 = vadd.f32 %v935_v15, %v923_v14 }
0x14de   :  { %7688 = vtanh.f32 %v937_v17 }
0x14df   :  { %7690 = vpow2.f32 %v6770_v19 }
0x14eb   :  { %v7689_v18 = vpop.eup %7688 }
0x14ec   :  { %940 = vrot.lane.b32.xlu0 %v7689_v18, %s8122_s30  ;;  %v7691_v21 = vpop.eup %7690 }
0x14ed   :  { %v916_v22 = vadd.f32 1.0, %v7691_v21 }
0x14ef   :  { %7692 = vrcp.f32 %v916_v22 }
0x14fc   :  { %v7693_v23 = vpop.eup %7692 }
0x155e   :  { %v941_v24 = vpop.permute.xlu0 %940 }
0x155f   :  { %v8467_v25 = vmul.f32 %v7693_v23, %v941_v24 }
0x1561   :  { %v951_v26 = vpack.c.bf16 %v8467_v25, %v8467_v25 }
0x1563   :  { %955 = vrot.lane.b32.xlu1 %v951_v26, %s8124_s11 }
0x15d5   :  { %v956_v28 = vpop.permute.xlu1 %955 }
0x15d6   :  { %6774 = vmatmul.mubr.msk.bf16.vlgmr.msra.gmra.mxu0 %vm104_vm3, %v956_v28 }
0x15d7   :  { %1190 = vmatpush1.bf16.msra.mxu0 %v8197_v3  ;;  %1213 = vmatprep.mubr.bf16.mxu0 %v8119_v4 }
0x15d8   :  { %1191 = vmatprep.subr.bf16.mxu0 %v8192_v2 }
0x15db   :  { %1192 = vmatpush1.bf16.msra.mxu0 %v8205_v5 }
0x15dc   :  { %1193 = vmatprep.subr.bf16.mxu0 %v8212_v6 }
0x15df   :  { %1194 = vmatpush1.bf16.msra.mxu0 %v8219_v7 }
0x15e0   :  { %1195 = vmatprep.subr.bf16.mxu0 %v8226_v8 }
0x15e3   :  { %1196 = vmatpush1.bf16.msra.mxu0 %v8233_v9 }
0x15e4   :  { %6797 = vmatprep.subr.msk.bf16.mxu0 %vm108_vm0, %v8182_v0 }
0x1696   :  { %v1005_v31 = vpop.f32.mrf.mxu0 }
0x1697   :  { %v1006_v2 = vadd.f32 %v6772_v29, %v1005_v31 }
0x1698   :  { %v1007_v32 = vpop.f32.mrf.mxu0 }
0x1699   :  { %v1012_v5 = vadd.f32 %v1006_v2, %v8261_v16  ;;  %v1008_v6 = vadd.f32 %v1007_v32, %v965_v30 }
0x169a   :  { %v1009_v33 = vpop.f32.mrf.mxu0 }
0x169b   :  { %7694 = vtanh.f32 %v1012_v5  ;;  %v1013_v7 = vadd.f32 %v1008_v6, %v8263_v20  ;;  %v6775_v34 = vmul.f32 -1.442695, %v1012_v5 }
0x169c   :  { %v1010_v8 = vpop.f32.mrf.mxu0 }
0x169d   :  { %7696 = vtanh.f32 %v1013_v7  ;;  %v6776_v49 = vmul.f32 -1.442695, %v1013_v7 }
0x169e   :  { %7698 = vpow2.f32 %v6775_v34 }
0x16a8   :  { %v7695_v9 = vpop.eup %7694 }
0x16a9   :  { %1031 = vrot.lane.b32.xlu0 %v7695_v9, %s8120_s2 }
0x16aa   :  { %v7697_v0 = vpop.eup %7696 }
0x16ab   :  { %1033 = vrot.lane.b32.xlu1 %v7697_v0, %s8120_s2  ;;  %v7699_v35 = vpop.eup %7698 }
0x16ac   :  { %v1020_v36 = vadd.f32 1.0, %v7699_v35 }
0x16ae   :  { %7700 = vrcp.f32 %v1020_v36 }
0x16bb   :  { %v7701_v39 = vpop.eup %7700 }
0x16bc   :  { %v1028_v43 = vmul.f32 %v7701_v39, %v937_v17 }
0x171b   :  { %v1032_v37 = vpop.permute.xlu0 %1031 }
0x171d   :  { %v1034_v38 = vpop.permute.xlu1 %1033 }
0x171e   :  { %v1035_v40 = vsel %vm179_vm1, %v1032_v37, %v1034_v38 }
0x171f   :  { %v1037_v41 = vmul.f32 %v7701_v39, %v1035_v40  ;;  %v6784_v40 = vld.sshfl [vmem:[%s9942_s0 + $0x28] sm:$0x33 pattern:$0x76325410] }
0x1721   :  { %1039 = vrot.lane.b32.xlu0 %v1037_v41, %s8121_s29  ;;  %v1175_v41 = vcombine.high %v6784_v40, %v6784_v40 }
0x1793   :  { %v1040_v44 = vpop.permute.xlu0 %1039 }
0x1794   :  { %v1042_v45 = vadd.f32 %v1040_v44, %v1028_v43 }
0x1796   :  { %7702 = vtanh.f32 %v1042_v45 }
0x1797   :  { %7704 = vpow2.f32 %v6776_v49 }
0x17a3   :  { %v7703_v48 = vpop.eup %7702 }
0x17a4   :  { %1045 = vrot.lane.b32.xlu1 %v7703_v48, %s8122_s30  ;;  %v7705_v50 = vpop.eup %7704 }
0x17a5   :  { %v1021_v51 = vadd.f32 1.0, %v7705_v50 }
0x17a7   :  { %7706 = vrcp.f32 %v1021_v51 }
0x17b4   :  { %v7707_v52 = vpop.eup %7706 }
0x1816   :  { %v1046_v53 = vpop.permute.xlu1 %1045 }
0x1817   :  { %v8493_v54 = vmul.f32 %v7707_v52, %v1046_v53 }
0x1819   :  { %v1056_v55 = vpack.c.bf16 %v8493_v54, %v8493_v54 }
0x181b   :  { %1060 = vrot.lane.b32.xlu0 %v1056_v55, %s8124_s11 }
0x188d   :  { %v1061_v56 = vpop.permute.xlu0 %1060 }
0x188e   :  { %6780 = vmatmul.mubr.msk.bf16.vlgmr.msra.gmra.mxu1 %vm104_vm3, %v1061_v56 }
0x188f   :  { %1295 = vmatpush1.bf16.msra.mxu1 %v8197_v3  ;;  %1318 = vmatprep.mubr.bf16.mxu1 %v8119_v4 }
0x1890   :  { %1296 = vmatprep.subr.bf16.mxu1 %v8504_v57 }
0x1893   :  { %1297 = vmatpush1.bf16.msra.mxu1 %v8510_v58 }
0x1894   :  { %1298 = vmatprep.subr.bf16.mxu1 %v8516_v59 }
0x1897   :  { %1299 = vmatpush1.bf16.msra.mxu1 %v8522_v60 }
0x1898   :  { %1300 = vmatprep.subr.bf16.mxu1 %v8528_v62 }
0x189b   :  { %1301 = vmatpush1.bf16.msra.mxu1 %v8534_v63 }
0x189c   :  { %6803 = vmatprep.subr.msk.bf16.mxu1 %vm108_vm0, %v8540_v1 }
0x194e   :  { %v1110_v13 = vpop.f32.mrf.mxu1 }
0x194f   :  { %v1111_v14 = vadd.f32 %v6778_v10, %v1110_v13 }
0x1950   :  { %v1112_v15 = vpop.f32.mrf.mxu1 }
0x1951   :  { %v1117_v17 = vadd.f32 %v1111_v14, %v8261_v16  ;;  %v1113_v18 = vadd.f32 %v1112_v15, %v1070_v11 }
0x1952   :  { %v1114_v19 = vpop.f32.mrf.mxu1 }
0x1953   :  { %7708 = vtanh.f32 %v1117_v17  ;;  %v1118_v21 = vadd.f32 %v1113_v18, %v8263_v20  ;;  %v6781_v26 = vmul.f32 -1.442695, %v1117_v17 }
0x1954   :  { %v1115_v22 = vpop.f32.mrf.mxu1 }
0x1955   :  { %7710 = vtanh.f32 %v1118_v21  ;;  %v6782_v9 = vmul.f32 -1.442695, %v1118_v21 }
0x1956   :  { %7712 = vpow2.f32 %v6781_v26 }
0x1960   :  { %v7709_v23 = vpop.eup %7708 }
0x1961   :  { %1136 = vrot.lane.b32.xlu1 %v7709_v23, %s8120_s2 }
0x1962   :  { %v7711_v24 = vpop.eup %7710 }
0x1963   :  { %1138 = vrot.lane.b32.xlu0 %v7711_v24, %s8120_s2  ;;  %v7713_v28 = vpop.eup %7712 }
0x1964   :  { %v1125_v29 = vadd.f32 1.0, %v7713_v28 }
0x1966   :  { %7714 = vrcp.f32 %v1125_v29 }
0x1973   :  { %v7715_v2 = vpop.eup %7714 }
0x1974   :  { %v1133_v6 = vmul.f32 %v7715_v2, %v1042_v45 }
0x19d3   :  { %v1137_v30 = vpop.permute.xlu1 %1136 }
0x19d5   :  { %v1139_v31 = vpop.permute.xlu0 %1138 }
0x19d6   :  { %v1140_v32 = vsel %vm179_vm1, %v1137_v30, %v1139_v31 }
0x19d7   :  { %v1142_v5 = vmul.f32 %v7715_v2, %v1140_v32 }
0x19d9   :  { %1144 = vrot.lane.b32.xlu1 %v1142_v5, %s8121_s29  ;;  %v6790_v5 = vld.sshfl [vmem:[%s9942_s0 + $0x2c] sm:$0x33 pattern:$0x76325410] }
0x1a4b   :  { %v1145_v33 = vpop.permute.xlu1 %1144 }
0x1a4c   :  { %v1147_v7 = vadd.f32 %v1145_v33, %v1133_v6  ;;  %v1280_v6 = vcombine.high %v6790_v5, %v6790_v5 }
0x1a4e   :  { %7716 = vtanh.f32 %v1147_v7 }
0x1a4f   :  { %7718 = vpow2.f32 %v6782_v9 }
0x1a5b   :  { %v7717_v8 = vpop.eup %7716 }
0x1a5c   :  { %1150 = vrot.lane.b32.xlu0 %v7717_v8, %s8122_s30  ;;  %v7719_v0 = vpop.eup %7718 }
0x1a5d   :  { %v1126_v34 = vadd.f32 1.0, %v7719_v0 }
0x1a5f   :  { %7720 = vrcp.f32 %v1126_v34 }
0x1a6c   :  { %v7721_v35 = vpop.eup %7720 }
0x1ace   :  { %v1151_v36 = vpop.permute.xlu0 %1150 }
0x1acf   :  { %v8554_v37 = vmul.f32 %v7721_v35, %v1151_v36 }
0x1ad1   :  { %v1161_v38 = vpack.c.bf16 %v8554_v37, %v8554_v37 }
0x1ad3   :  { %1165 = vrot.lane.b32.xlu1 %v1161_v38, %s8124_s11 }
0x1b45   :  { %v1166_v39 = vpop.permute.xlu1 %1165 }
0x1b46   :  { %6786 = vmatmul.mubr.msk.bf16.vlgmr.msra.gmra.mxu0 %vm104_vm3, %v1166_v39 }
0x1b47   :  { %1400 = vmatpush1.bf16.msra.mxu0 %v8197_v3  ;;  %1423 = vmatprep.mubr.bf16.mxu0 %v8119_v4 }
0x1b48   :  { %1401 = vmatprep.subr.bf16.mxu0 %v8504_v57 }
0x1b4b   :  { %1402 = vmatpush1.bf16.msra.mxu0 %v8510_v58 }
0x1b4c   :  { %1403 = vmatprep.subr.bf16.mxu0 %v8516_v59 }
0x1b4f   :  { %1404 = vmatpush1.bf16.msra.mxu0 %v8522_v60 }
0x1b50   :  { %1405 = vmatprep.subr.bf16.mxu0 %v8528_v62 }
0x1b53   :  { %1406 = vmatpush1.bf16.msra.mxu0 %v8534_v63 }
0x1b54   :  { %6809 = vmatprep.subr.msk.bf16.mxu0 %vm108_vm0, %v8540_v1 }
0x1c06   :  { %v1215_v43 = vpop.f32.mrf.mxu0 }
0x1c07   :  { %v1216_v44 = vadd.f32 %v6784_v40, %v1215_v43 }
0x1c08   :  { %v1217_v45 = vpop.f32.mrf.mxu0 }
0x1c09   :  { %v1222_v48 = vadd.f32 %v1216_v44, %v8261_v16  ;;  %v1218_v49 = vadd.f32 %v1217_v45, %v1175_v41 }
0x1c0a   :  { %v1219_v50 = vpop.f32.mrf.mxu0 }
0x1c0b   :  { %7722 = vtanh.f32 %v1222_v48  ;;  %v1223_v51 = vadd.f32 %v1218_v49, %v8263_v20  ;;  %v6787_v56 = vmul.f32 -1.442695, %v1222_v48 }
0x1c0c   :  { %v1220_v52 = vpop.f32.mrf.mxu0 }
0x1c0d   :  { %7724 = vtanh.f32 %v1223_v51  ;;  %v6788_v24 = vmul.f32 -1.442695, %v1223_v51 }
0x1c0e   :  { %7726 = vpow2.f32 %v6787_v56 }
0x1c18   :  { %v7723_v53 = vpop.eup %7722 }
0x1c19   :  { %1241 = vrot.lane.b32.xlu0 %v7723_v53, %s8120_s2 }
0x1c1a   :  { %v7725_v55 = vpop.eup %7724 }
0x1c1b   :  { %1243 = vrot.lane.b32.xlu1 %v7725_v55, %s8120_s2  ;;  %v7727_v10 = vpop.eup %7726 }
0x1c1c   :  { %v1230_v11 = vadd.f32 1.0, %v7727_v10 }
0x1c1e   :  { %7728 = vrcp.f32 %v1230_v11 }
0x1c2b   :  { %v7729_v15 = vpop.eup %7728 }
0x1c2c   :  { %v1238_v19 = vmul.f32 %v7729_v15, %v1147_v7 }
0x1c8b   :  { %v1242_v13 = vpop.permute.xlu0 %1241 }
0x1c8d   :  { %v1244_v14 = vpop.permute.xlu1 %1243 }
0x1c8e   :  { %v1245_v17 = vsel %vm179_vm1, %v1242_v13, %v1244_v14 }
0x1c8f   :  { %v1247_v18 = vmul.f32 %v7729_v15, %v1245_v17 }
0x1c91   :  { %1249 = vrot.lane.b32.xlu0 %v1247_v18, %s8121_s29 }
0x1d03   :  { %v1250_v21 = vpop.permute.xlu0 %1249 }
0x1d04   :  { %v1252_v22 = vadd.f32 %v1250_v21, %v1238_v19  ;;  %v6796_v19 = vld.sshfl [vmem:[%s9942_s0 + $0x30] sm:$0x33 pattern:$0x76325410] }
0x1d05   :  { %v1385_v21 = vcombine.high %v6796_v19, %v6796_v19 }
0x1d06   :  { %7730 = vtanh.f32 %v1252_v22 }
0x1d07   :  { %7732 = vpow2.f32 %v6788_v24 }
0x1d13   :  { %v7731_v23 = vpop.eup %7730 }
0x1d14   :  { %1255 = vrot.lane.b32.xlu1 %v7731_v23, %s8122_s30  ;;  %v7733_v26 = vpop.eup %7732 }
0x1d15   :  { %v1231_v28 = vadd.f32 1.0, %v7733_v26 }
0x1d17   :  { %7734 = vrcp.f32 %v1231_v28 }
0x1d24   :  { %v7735_v29 = vpop.eup %7734 }
0x1d86   :  { %v1256_v30 = vpop.permute.xlu1 %1255 }
0x1d87   :  { %v8580_v31 = vmul.f32 %v7735_v29, %v1256_v30 }
0x1d89   :  { %v1266_v2 = vpack.c.bf16 %v8580_v31, %v8580_v31 }
0x1d8b   :  { %1270 = vrot.lane.b32.xlu0 %v1266_v2, %s8124_s11 }
0x1dfd   :  { %v1271_v32 = vpop.permute.xlu0 %1270 }
0x1dfe   :  { %6792 = vmatmul.mubr.msk.bf16.vlgmr.msra.gmra.mxu1 %vm104_vm3, %v1271_v32 }
0x1dff   :  { %1505 = vmatpush1.bf16.msra.mxu1 %v8197_v3  ;;  %1528 = vmatprep.mubr.bf16.mxu1 %v8119_v4 }
0x1e00   :  { %1506 = vmatprep.subr.bf16.mxu1 %v8504_v57 }
0x1e03   :  { %1507 = vmatpush1.bf16.msra.mxu1 %v8510_v58 }
0x1e04   :  { %1508 = vmatprep.subr.bf16.mxu1 %v8516_v59 }
0x1e07   :  { %1509 = vmatpush1.bf16.msra.mxu1 %v8522_v60 }
0x1e08   :  { %1510 = vmatprep.subr.bf16.mxu1 %v8528_v62 }
0x1e0b   :  { %1511 = vmatpush1.bf16.msra.mxu1 %v8534_v63 }
0x1e0c   :  { %6815 = vmatprep.subr.msk.bf16.mxu1 %vm108_vm0, %v8540_v1 }
0x1ebe   :  { %v1320_v33 = vpop.f32.mrf.mxu1 }
0x1ebf   :  { %v1321_v7 = vadd.f32 %v6790_v5, %v1320_v33 }
0x1ec0   :  { %v1322_v8 = vpop.f32.mrf.mxu1 }
0x1ec1   :  { %v1327_v9 = vadd.f32 %v1321_v7, %v8261_v16  ;;  %v1323_v0 = vadd.f32 %v1322_v8, %v1280_v6 }
0x1ec2   :  { %v1324_v34 = vpop.f32.mrf.mxu1 }
0x1ec3   :  { %7736 = vtanh.f32 %v1327_v9  ;;  %v1328_v35 = vadd.f32 %v1323_v0, %v8263_v20  ;;  %v6793_v40 = vmul.f32 -1.442695, %v1327_v9 }
0x1ec4   :  { %v1325_v36 = vpop.f32.mrf.mxu1 }
0x1ec5   :  { %7738 = vtanh.f32 %v1328_v35  ;;  %v6794_v56 = vmul.f32 -1.442695, %v1328_v35 }
0x1ec6   :  { %7740 = vpow2.f32 %v6793_v40 }
0x1ed0   :  { %v7737_v38 = vpop.eup %7736 }
0x1ed1   :  { %1346 = vrot.lane.b32.xlu1 %v7737_v38, %s8120_s2 }
0x1ed2   :  { %v7739_v39 = vpop.eup %7738 }
0x1ed3   :  { %1348 = vrot.lane.b32.xlu0 %v7739_v39, %s8120_s2  ;;  %v7741_v41 = vpop.eup %7740 }
0x1ed4   :  { %v1335_v43 = vadd.f32 1.0, %v7741_v41 }
0x1ed6   :  { %7742 = vrcp.f32 %v1335_v43 }
0x1ee3   :  { %v7743_v48 = vpop.eup %7742 }
0x1ee4   :  { %v1343_v51 = vmul.f32 %v7743_v48, %v1252_v22 }
0x1f43   :  { %v1347_v44 = vpop.permute.xlu1 %1346 }
0x1f45   :  { %v1349_v45 = vpop.permute.xlu0 %1348 }
0x1f46   :  { %v1350_v49 = vsel %vm179_vm1, %v1347_v44, %v1349_v45 }
0x1f47   :  { %v1352_v50 = vmul.f32 %v7743_v48, %v1350_v49 }
0x1f49   :  { %1354 = vrot.lane.b32.xlu1 %v1352_v50, %s8121_s29 }
0x1fbb   :  { %v1355_v52 = vpop.permute.xlu1 %1354 }
0x1fbc   :  { %v1357_v53 = vadd.f32 %v1355_v52, %v1343_v51  ;;  %v6802_v52 = vld.sshfl [vmem:[%s9942_s0 + $0x34] sm:$0x33 pattern:$0x76325410] }
0x1fbe   :  { %7744 = vtanh.f32 %v1357_v53 }
0x1fbf   :  { %7746 = vpow2.f32 %v6794_v56 }
0x1fcb   :  { %v7745_v55 = vpop.eup %7744 }
0x1fcc   :  { %1360 = vrot.lane.b32.xlu0 %v7745_v55, %s8122_s30  ;;  %v7747_v10 = vpop.eup %7746 }
0x1fcd   :  { %v1336_v11 = vadd.f32 1.0, %v7747_v10 }
0x1fcf   :  { %7748 = vrcp.f32 %v1336_v11 }
0x1fdc   :  { %v7749_v13 = vpop.eup %7748 }
0x203e   :  { %v1361_v14 = vpop.permute.xlu0 %1360 }
0x203f   :  { %v8606_v15 = vmul.f32 %v7749_v13, %v1361_v14 }
0x2041   :  { %v1371_v17 = vpack.c.bf16 %v8606_v15, %v8606_v15 }
0x2043   :  { %1375 = vrot.lane.b32.xlu1 %v1371_v17, %s8124_s11 }
0x20b5   :  { %v1376_v18 = vpop.permute.xlu1 %1375 }
0x20b6   :  { %6798 = vmatmul.mubr.msk.bf16.vlgmr.msra.gmra.mxu0 %vm104_vm3, %v1376_v18 }
0x20b7   :  { %1610 = vmatpush1.bf16.msra.mxu0 %v8197_v3  ;;  %1633 = vmatprep.mubr.bf16.mxu0 %v8119_v4 }
0x20b8   :  { %1611 = vmatprep.subr.bf16.mxu0 %v8504_v57 }
0x20bb   :  { %1612 = vmatpush1.bf16.msra.mxu0 %v8510_v58 }
0x20bc   :  { %1613 = vmatprep.subr.bf16.mxu0 %v8516_v59 }
0x20bf   :  { %1614 = vmatpush1.bf16.msra.mxu0 %v8522_v60 }
0x20c0   :  { %1615 = vmatprep.subr.bf16.mxu0 %v8528_v62 }
0x20c3   :  { %1616 = vmatpush1.bf16.msra.mxu0 %v8534_v63 }
0x20c4   :  { %6821 = vmatprep.subr.msk.bf16.mxu0 %vm108_vm0, %v8540_v1 }
0x2176   :  { %v1425_v22 = vpop.f32.mrf.mxu0 }
0x2177   :  { %v1426_v23 = vadd.f32 %v6796_v19, %v1425_v22 }
0x2178   :  { %v1427_v24 = vpop.f32.mrf.mxu0 }
0x2179   :  { %v1432_v26 = vadd.f32 %v1426_v23, %v8261_v16  ;;  %v1428_v28 = vadd.f32 %v1427_v24, %v1385_v21 }
0x217a   :  { %v1429_v29 = vpop.f32.mrf.mxu0 }
0x217b   :  { %7750 = vtanh.f32 %v1432_v26  ;;  %v1433_v30 = vadd.f32 %v1428_v28, %v8263_v20  ;;  %v6799_v6 = vmul.f32 -1.442695, %v1432_v26 }
0x217c   :  { %v1430_v2 = vpop.f32.mrf.mxu0 }
0x217d   :  { %7752 = vtanh.f32 %v1433_v30  ;;  %v6800_v41 = vmul.f32 -1.442695, %v1433_v30 }
0x217e   :  { %7754 = vpow2.f32 %v6799_v6 }
0x2188   :  { %v7751_v32 = vpop.eup %7750 }
0x2189   :  { %1451 = vrot.lane.b32.xlu0 %v7751_v32, %s8120_s2 }
0x218a   :  { %v7753_v5 = vpop.eup %7752 }
0x218b   :  { %1453 = vrot.lane.b32.xlu1 %v7753_v5, %s8120_s2  ;;  %v7755_v33 = vpop.eup %7754 }
0x218c   :  { %v1440_v7 = vadd.f32 1.0, %v7755_v33 }
0x218e   :  { %7756 = vrcp.f32 %v1440_v7 }
0x219b   :  { %v7757_v0 = vpop.eup %7756 }
0x219c   :  { %v1448_v36 = vmul.f32 %v7757_v0, %v1357_v53  ;;  %v1490_v53 = vcombine.high %v6802_v52, %v6802_v52 }
0x21fb   :  { %v1452_v8 = vpop.permute.xlu0 %1451 }
0x21fd   :  { %v1454_v9 = vpop.permute.xlu1 %1453 }
0x21fe   :  { %v1455_v34 = vsel %vm179_vm1, %v1452_v8, %v1454_v9 }
0x21ff   :  { %v1457_v35 = vmul.f32 %v7757_v0, %v1455_v34 }
0x2201   :  { %1459 = vrot.lane.b32.xlu0 %v1457_v35, %s8121_s29 }
0x2273   :  { %v1460_v38 = vpop.permute.xlu0 %1459 }
0x2274   :  { %v1462_v39 = vadd.f32 %v1460_v38, %v1448_v36 }
0x2276   :  { %7758 = vtanh.f32 %v1462_v39 }
0x2277   :  { %7760 = vpow2.f32 %v6800_v41 }
0x2283   :  { %v7759_v40 = vpop.eup %7758 }
0x2284   :  { %1465 = vrot.lane.b32.xlu1 %v7759_v40, %s8122_s30  ;;  %v7761_v43 = vpop.eup %7760 }
0x2285   :  { %v1441_v44 = vadd.f32 1.0, %v7761_v43 }
0x2287   :  { %7762 = vrcp.f32 %v1441_v44 }
0x2294   :  { %v7763_v45 = vpop.eup %7762 }
0x22f6   :  { %v1466_v48 = vpop.permute.xlu1 %1465 }
0x22f7   :  { %v8632_v49 = vmul.f32 %v7763_v45, %v1466_v48 }
0x22f9   :  { %v1476_v50 = vpack.c.bf16 %v8632_v49, %v8632_v49 }
0x22fb   :  { %1480 = vrot.lane.b32.xlu0 %v1476_v50, %s8124_s11 }
0x236d   :  { %v1481_v51 = vpop.permute.xlu0 %1480 }
0x236e   :  { %6804 = vmatmul.mubr.msk.bf16.vlgmr.msra.gmra.mxu1 %vm104_vm3, %v1481_v51 }
0x236f   :  { %1715 = vmatpush1.bf16.msra.mxu1 %v8197_v3  ;;  %1738 = vmatprep.mubr.bf16.mxu1 %v8119_v4 }
0x2370   :  { %1716 = vmatprep.subr.bf16.mxu1 %v8504_v57 }
0x2373   :  { %1717 = vmatpush1.bf16.msra.mxu1 %v8510_v58 }
0x2374   :  { %1718 = vmatprep.subr.bf16.mxu1 %v8516_v59 }
0x2377   :  { %1719 = vmatpush1.bf16.msra.mxu1 %v8522_v60 }
0x2378   :  { %1720 = vmatprep.subr.bf16.mxu1 %v8528_v62 }
0x237b   :  { %1721 = vmatpush1.bf16.msra.mxu1 %v8534_v63 }
0x237c   :  { %6827 = vmatprep.subr.msk.bf16.mxu1 %vm108_vm0, %v8540_v1 }
0x242e   :  { %v1530_v55 = vpop.f32.mrf.mxu1 }
0x242f   :  { %v1531_v56 = vadd.f32 %v6802_v52, %v1530_v55 }
0x2430   :  { %v1532_v10 = vpop.f32.mrf.mxu1 }
0x2431   :  { %v1537_v11 = vadd.f32 %v1531_v56, %v8261_v16  ;;  %v1533_v13 = vadd.f32 %v1532_v10, %v1490_v53 }
0x2432   :  { %v1534_v14 = vpop.f32.mrf.mxu1 }
0x2433   :  { %7764 = vtanh.f32 %v1537_v11  ;;  %v1538_v17 = vadd.f32 %v1533_v13, %v8263_v20  ;;  %v6805_v22 = vmul.f32 -1.442695, %v1537_v11 }
0x2434   :  { %v1535_v18 = vpop.f32.mrf.mxu1 }
0x2435   :  { %7766 = vtanh.f32 %v1538_v17  ;;  %v6806_v7 = vmul.f32 -1.442695, %v1538_v17 }
0x2436   :  { %7768 = vpow2.f32 %v6805_v22 }
0x2440   :  { %v7765_v19 = vpop.eup %7764 }
0x2441   :  { %1556 = vrot.lane.b32.xlu1 %v7765_v19, %s8120_s2 }
0x2442   :  { %v7767_v21 = vpop.eup %7766 }
0x2443   :  { %1558 = vrot.lane.b32.xlu0 %v7767_v21, %s8120_s2  ;;  %v7769_v23 = vpop.eup %7768 }
0x2444   :  { %v1545_v24 = vadd.f32 1.0, %v7769_v23 }
0x2446   :  { %7770 = vrcp.f32 %v1545_v24 }
0x2453   :  { %v7771_v29 = vpop.eup %7770 }
0x2454   :  { %v1553_v32 = vmul.f32 %v7771_v29, %v1462_v39  ;;  %v6808_v39 = vld.sshfl [vmem:[%s9942_s0 + $0x38] sm:$0x33 pattern:$0x76325410] }
0x2455   :  { %v1595_v40 = vcombine.high %v6808_v39, %v6808_v39 }
0x24b3   :  { %v1557_v26 = vpop.permute.xlu1 %1556 }
0x24b5   :  { %v1559_v28 = vpop.permute.xlu0 %1558 }
0x24b6   :  { %v1560_v30 = vsel %vm179_vm1, %v1557_v26, %v1559_v28 }
0x24b7   :  { %v1562_v2 = vmul.f32 %v7771_v29, %v1560_v30 }
0x24b9   :  { %1564 = vrot.lane.b32.xlu1 %v1562_v2, %s8121_s29 }
0x252b   :  { %v1565_v5 = vpop.permute.xlu1 %1564 }
0x252c   :  { %v1567_v6 = vadd.f32 %v1565_v5, %v1553_v32 }
0x252e   :  { %7772 = vtanh.f32 %v1567_v6 }
0x252f   :  { %7774 = vpow2.f32 %v6806_v7 }
0x253b   :  { %v7773_v33 = vpop.eup %7772 }
0x253c   :  { %1570 = vrot.lane.b32.xlu0 %v7773_v33, %s8122_s30  ;;  %v7775_v8 = vpop.eup %7774  ;;  %v6814_v33 = vld.sshfl [vmem:[%s9942_s0 + $0x3c] sm:$0x33 pattern:$0x76325410] }
0x253d   :  { %v1546_v9 = vadd.f32 1.0, %v7775_v8  ;;  %v1700_v7 = vcombine.high %v6814_v33, %v6814_v33 }
0x253f   :  { %7776 = vrcp.f32 %v1546_v9 }
0x254c   :  { %v7777_v0 = vpop.eup %7776 }
0x25ae   :  { %v1571_v34 = vpop.permute.xlu0 %1570 }
0x25af   :  { %v8658_v35 = vmul.f32 %v7777_v0, %v1571_v34 }
0x25b1   :  { %v1581_v36 = vpack.c.bf16 %v8658_v35, %v8658_v35 }
0x25b3   :  { %1585 = vrot.lane.b32.xlu1 %v1581_v36, %s8124_s11 }
0x2625   :  { %v1586_v38 = vpop.permute.xlu1 %1585 }
0x2626   :  { %6810 = vmatmul.mubr.msk.bf16.vlgmr.msra.gmra.mxu0 %vm104_vm3, %v1586_v38 }
0x2627   :  { %1820 = vmatpush1.bf16.msra.mxu0 %v8197_v3  ;;  %1843 = vmatprep.mubr.bf16.mxu0 %v8119_v4 }
0x2628   :  { %1821 = vmatprep.subr.bf16.mxu0 %v8504_v57 }
0x262b   :  { %1822 = vmatpush1.bf16.msra.mxu0 %v8510_v58 }
0x262c   :  { %1823 = vmatprep.subr.bf16.mxu0 %v8516_v59 }
0x262f   :  { %1824 = vmatpush1.bf16.msra.mxu0 %v8522_v60 }
0x2630   :  { %1825 = vmatprep.subr.bf16.mxu0 %v8528_v62 }
0x2633   :  { %1826 = vmatpush1.bf16.msra.mxu0 %v8534_v63 }
0x2634   :  { %6833 = vmatprep.subr.msk.bf16.mxu0 %vm108_vm0, %v8540_v1 }
0x26e6   :  { %v1635_v41 = vpop.f32.mrf.mxu0 }
0x26e7   :  { %v1636_v43 = vadd.f32 %v6808_v39, %v1635_v41 }
0x26e8   :  { %v1637_v44 = vpop.f32.mrf.mxu0 }
0x26e9   :  { %v1642_v45 = vadd.f32 %v1636_v43, %v8261_v16  ;;  %v1638_v48 = vadd.f32 %v1637_v44, %v1595_v40 }
0x26ea   :  { %v1639_v50 = vpop.f32.mrf.mxu0 }
0x26eb   :  { %7778 = vtanh.f32 %v1642_v45  ;;  %v1643_v51 = vadd.f32 %v1638_v48, %v8263_v20  ;;  %v6811_v56 = vmul.f32 -1.442695, %v1642_v45 }
0x26ec   :  { %v1640_v52 = vpop.f32.mrf.mxu0 }
0x26ed   :  { %7780 = vtanh.f32 %v1643_v51  ;;  %v6812_v26 = vmul.f32 -1.442695, %v1643_v51 }
0x26ee   :  { %7782 = vpow2.f32 %v6811_v56 }
0x26f8   :  { %v7779_v53 = vpop.eup %7778 }
0x26f9   :  { %1661 = vrot.lane.b32.xlu0 %v7779_v53, %s8120_s2 }
0x26fa   :  { %v7781_v55 = vpop.eup %7780 }
0x26fb   :  { %1663 = vrot.lane.b32.xlu1 %v7781_v55, %s8120_s2  ;;  %v7783_v10 = vpop.eup %7782 }
0x26fc   :  { %v1650_v11 = vadd.f32 1.0, %v7783_v10 }
0x26fe   :  { %7784 = vrcp.f32 %v1650_v11 }
0x270b   :  { %v7785_v17 = vpop.eup %7784 }
0x270c   :  { %v1658_v21 = vmul.f32 %v7785_v17, %v1567_v6 }
0x276b   :  { %v1662_v13 = vpop.permute.xlu0 %1661 }
0x276d   :  { %v1664_v14 = vpop.permute.xlu1 %1663 }
0x276e   :  { %v1665_v18 = vsel %vm179_vm1, %v1662_v13, %v1664_v14 }
0x276f   :  { %v1667_v19 = vmul.f32 %v7785_v17, %v1665_v18 }
0x2771   :  { %1669 = vrot.lane.b32.xlu0 %v1667_v19, %s8121_s29 }
0x27e3   :  { %v1670_v22 = vpop.permute.xlu0 %1669 }
0x27e4   :  { %v1672_v23 = vadd.f32 %v1670_v22, %v1658_v21 }
0x27e6   :  { %7786 = vtanh.f32 %v1672_v23 }
0x27e7   :  { %7788 = vpow2.f32 %v6812_v26  ;;  %v6820_v26 = vld.sshfl [vmem:[%s9942_s0 + $0x40] sm:$0x33 pattern:$0x76325410] }
0x27f3   :  { %v7787_v24 = vpop.eup %7786 }
0x27f4   :  { %1675 = vrot.lane.b32.xlu1 %v7787_v24, %s8122_s30  ;;  %v7789_v28 = vpop.eup %7788 }
0x27f5   :  { %v1651_v29 = vadd.f32 1.0, %v7789_v28  ;;  %v1805_v28 = vcombine.high %v6820_v26, %v6820_v26 }
0x27f7   :  { %7790 = vrcp.f32 %v1651_v29 }
0x2804   :  { %v7791_v30 = vpop.eup %7790 }
0x2866   :  { %v1676_v2 = vpop.permute.xlu1 %1675 }
0x2867   :  { %v8684_v32 = vmul.f32 %v7791_v30, %v1676_v2 }
0x2869   :  { %v1686_v5 = vpack.c.bf16 %v8684_v32, %v8684_v32 }
0x286b   :  { %1690 = vrot.lane.b32.xlu0 %v1686_v5, %s8124_s11 }
0x28dd   :  { %v1691_v6 = vpop.permute.xlu0 %1690 }
0x28de   :  { %6816 = vmatmul.mubr.msk.bf16.vlgmr.msra.gmra.mxu1 %vm104_vm3, %v1691_v6 }
0x28df   :  { %1925 = vmatpush1.bf16.msra.mxu1 %v8197_v3  ;;  %1948 = vmatprep.mubr.bf16.mxu1 %v8119_v4 }
0x28e0   :  { %1926 = vmatprep.subr.bf16.mxu1 %v8504_v57 }
0x28e3   :  { %1927 = vmatpush1.bf16.msra.mxu1 %v8510_v58 }
0x28e4   :  { %1928 = vmatprep.subr.bf16.mxu1 %v8516_v59 }
0x28e7   :  { %1929 = vmatpush1.bf16.msra.mxu1 %v8522_v60 }
0x28e8   :  { %1930 = vmatprep.subr.bf16.mxu1 %v8528_v62 }
0x28eb   :  { %1931 = vmatpush1.bf16.msra.mxu1 %v8534_v63 }
0x28ec   :  { %6839 = vmatprep.subr.msk.bf16.mxu1 %vm108_vm0, %v8540_v1 }
0x299e   :  { %v1740_v8 = vpop.f32.mrf.mxu1 }
0x299f   :  { %v1741_v9 = vadd.f32 %v6814_v33, %v1740_v8 }
0x29a0   :  { %v1742_v0 = vpop.f32.mrf.mxu1 }
0x29a1   :  { %v1747_v34 = vadd.f32 %v1741_v9, %v8261_v16  ;;  %v1743_v36 = vadd.f32 %v1742_v0, %v1700_v7 }
0x29a2   :  { %v1744_v38 = vpop.f32.mrf.mxu1 }
0x29a3   :  { %7792 = vtanh.f32 %v1747_v34  ;;  %v1748_v39 = vadd.f32 %v1743_v36, %v8263_v20  ;;  %v6817_v44 = vmul.f32 -1.442695, %v1747_v34 }
0x29a4   :  { %v1745_v40 = vpop.f32.mrf.mxu1 }
0x29a5   :  { %7794 = vtanh.f32 %v1748_v39  ;;  %v6818_v14 = vmul.f32 -1.442695, %v1748_v39 }
0x29a6   :  { %7796 = vpow2.f32 %v6817_v44 }
0x29b0   :  { %v7793_v41 = vpop.eup %7792 }
0x29b1   :  { %1766 = vrot.lane.b32.xlu1 %v7793_v41, %s8120_s2 }
0x29b2   :  { %v7795_v43 = vpop.eup %7794 }
0x29b3   :  { %1768 = vrot.lane.b32.xlu0 %v7795_v43, %s8120_s2  ;;  %v7797_v45 = vpop.eup %7796 }
0x29b4   :  { %v1755_v48 = vadd.f32 1.0, %v7797_v45 }
0x29b6   :  { %7798 = vrcp.f32 %v1755_v48 }
0x29c3   :  { %v7799_v52 = vpop.eup %7798 }
0x29c4   :  { %v1763_v56 = vmul.f32 %v7799_v52, %v1672_v23 }
0x2a23   :  { %v1767_v50 = vpop.permute.xlu1 %1766 }
0x2a25   :  { %v1769_v51 = vpop.permute.xlu0 %1768 }
0x2a26   :  { %v1770_v53 = vsel %vm179_vm1, %v1767_v50, %v1769_v51 }
0x2a27   :  { %v1772_v55 = vmul.f32 %v7799_v52, %v1770_v53 }
0x2a29   :  { %1774 = vrot.lane.b32.xlu1 %v1772_v55, %s8121_s29 }
0x2a9b   :  { %v1775_v10 = vpop.permute.xlu1 %1774 }
0x2a9c   :  { %v1777_v11 = vadd.f32 %v1775_v10, %v1763_v56 }
0x2a9e   :  { %7800 = vtanh.f32 %v1777_v11 }
0x2a9f   :  { %7802 = vpow2.f32 %v6818_v14 }
0x2aab   :  { %v7801_v13 = vpop.eup %7800 }
0x2aac   :  { %1780 = vrot.lane.b32.xlu0 %v7801_v13, %s8122_s30  ;;  %v7803_v17 = vpop.eup %7802 }
0x2aad   :  { %v1756_v18 = vadd.f32 1.0, %v7803_v17  ;;  %v6826_v17 = vld.sshfl [vmem:[%s9942_s0 + $0x44] sm:$0x33 pattern:$0x76325410] }
0x2aaf   :  { %7804 = vrcp.f32 %v1756_v18  ;;  %v1910_v18 = vcombine.high %v6826_v17, %v6826_v17 }
0x2abc   :  { %v7805_v19 = vpop.eup %7804 }
0x2b1e   :  { %v1781_v21 = vpop.permute.xlu0 %1780 }
0x2b1f   :  { %v8710_v22 = vmul.f32 %v7805_v19, %v1781_v21 }
0x2b21   :  { %v1791_v24 = vpack.c.bf16 %v8710_v22, %v8710_v22 }
0x2b23   :  { %1795 = vrot.lane.b32.xlu1 %v1791_v24, %s8124_s11 }
0x2b95   :  { %v1796_v23 = vpop.permute.xlu1 %1795 }
0x2b96   :  { %6822 = vmatmul.mubr.msk.bf16.vlgmr.msra.gmra.mxu0 %vm104_vm3, %v1796_v23 }
0x2b97   :  { %2030 = vmatpush1.bf16.msra.mxu0 %v8197_v3  ;;  %2053 = vmatprep.mubr.bf16.mxu0 %v8119_v4 }
0x2b98   :  { %2031 = vmatprep.subr.bf16.mxu0 %v8504_v57 }
0x2b9b   :  { %2032 = vmatpush1.bf16.msra.mxu0 %v8510_v58 }
0x2b9c   :  { %2033 = vmatprep.subr.bf16.mxu0 %v8516_v59 }
0x2b9f   :  { %2034 = vmatpush1.bf16.msra.mxu0 %v8522_v60 }
0x2ba0   :  { %2035 = vmatprep.subr.bf16.mxu0 %v8528_v62 }
0x2ba3   :  { %2036 = vmatpush1.bf16.msra.mxu0 %v8534_v63 }
0x2ba4   :  { %6845 = vmatprep.subr.msk.bf16.mxu0 %vm108_vm0, %v8540_v1 }
0x2c56   :  { %v1845_v29 = vpop.f32.mrf.mxu0 }
0x2c57   :  { %v1846_v30 = vadd.f32 %v6820_v26, %v1845_v29 }
0x2c58   :  { %v1847_v2 = vpop.f32.mrf.mxu0 }
0x2c59   :  { %v1852_v5 = vadd.f32 %v1846_v30, %v8261_v16  ;;  %v1848_v6 = vadd.f32 %v1847_v2, %v1805_v28 }
0x2c5a   :  { %v1849_v33 = vpop.f32.mrf.mxu0 }
0x2c5b   :  { %7806 = vtanh.f32 %v1852_v5  ;;  %v1853_v7 = vadd.f32 %v1848_v6, %v8263_v20  ;;  %v6823_v34 = vmul.f32 -1.442695, %v1852_v5 }
0x2c5c   :  { %v1850_v8 = vpop.f32.mrf.mxu0 }
0x2c5d   :  { %7808 = vtanh.f32 %v1853_v7  ;;  %v6824_v52 = vmul.f32 -1.442695, %v1853_v7 }
0x2c5e   :  { %7810 = vpow2.f32 %v6823_v34 }
0x2c68   :  { %v7807_v9 = vpop.eup %7806 }
0x2c69   :  { %1871 = vrot.lane.b32.xlu0 %v7807_v9, %s8120_s2 }
0x2c6a   :  { %v7809_v0 = vpop.eup %7808 }
0x2c6b   :  { %1873 = vrot.lane.b32.xlu1 %v7809_v0, %s8120_s2  ;;  %v7811_v36 = vpop.eup %7810 }
0x2c6c   :  { %v1860_v38 = vadd.f32 1.0, %v7811_v36 }
0x2c6e   :  { %7812 = vrcp.f32 %v1860_v38 }
0x2c7b   :  { %v7813_v41 = vpop.eup %7812 }
0x2c7c   :  { %v1868_v45 = vmul.f32 %v7813_v41, %v1777_v11 }
0x2cdb   :  { %v1872_v39 = vpop.permute.xlu0 %1871 }
0x2cdd   :  { %v1874_v40 = vpop.permute.xlu1 %1873 }
0x2cde   :  { %v1875_v43 = vsel %vm179_vm1, %v1872_v39, %v1874_v40 }
0x2cdf   :  { %v1877_v44 = vmul.f32 %v7813_v41, %v1875_v43 }
0x2ce1   :  { %1879 = vrot.lane.b32.xlu0 %v1877_v44, %s8121_s29 }
0x2d53   :  { %v1880_v48 = vpop.permute.xlu0 %1879 }
0x2d54   :  { %v1882_v50 = vadd.f32 %v1880_v48, %v1868_v45 }
0x2d56   :  { %7814 = vtanh.f32 %v1882_v50 }
0x2d57   :  { %7816 = vpow2.f32 %v6824_v52 }
0x2d63   :  { %v7815_v51 = vpop.eup %7814 }
0x2d64   :  { %1885 = vrot.lane.b32.xlu1 %v7815_v51, %s8122_s30  ;;  %v7817_v53 = vpop.eup %7816 }
0x2d65   :  { %v1861_v55 = vadd.f32 1.0, %v7817_v53 }
0x2d67   :  { %7818 = vrcp.f32 %v1861_v55  ;;  %v6832_v55 = vld.sshfl [vmem:[%s9942_s0 + $0x48] sm:$0x33 pattern:$0x76325410] }
0x2d74   :  { %v7819_v56 = vpop.eup %7818 }
0x2dd6   :  { %v1886_v10 = vpop.permute.xlu1 %1885 }
0x2dd7   :  { %v8736_v13 = vmul.f32 %v7819_v56, %v1886_v10  ;;  %v2015_v56 = vcombine.high %v6832_v55, %v6832_v55 }
0x2dd9   :  { %v1896_v14 = vpack.c.bf16 %v8736_v13, %v8736_v13 }
0x2ddb   :  { %1900 = vrot.lane.b32.xlu0 %v1896_v14, %s8124_s11 }
0x2e4d   :  { %v1901_v11 = vpop.permute.xlu0 %1900 }
0x2e4e   :  { %6828 = vmatmul.mubr.msk.bf16.vlgmr.msra.gmra.mxu1 %vm104_vm3, %v1901_v11 }
0x2e4f   :  { %2135 = vmatpush1.bf16.msra.mxu1 %v8197_v3  ;;  %2158 = vmatprep.mubr.bf16.mxu1 %v8119_v4 }
0x2e50   :  { %2136 = vmatprep.subr.bf16.mxu1 %v8504_v57 }
0x2e53   :  { %2137 = vmatpush1.bf16.msra.mxu1 %v8510_v58 }
0x2e54   :  { %2138 = vmatprep.subr.bf16.mxu1 %v8516_v59 }
0x2e57   :  { %2139 = vmatpush1.bf16.msra.mxu1 %v8522_v60 }
0x2e58   :  { %2140 = vmatprep.subr.bf16.mxu1 %v8528_v62 }
0x2e5b   :  { %2141 = vmatpush1.bf16.msra.mxu1 %v8534_v63 }
0x2e5c   :  { %6851 = vmatprep.subr.msk.bf16.mxu1 %vm108_vm0, %v8540_v1 }
0x2f0e   :  { %v1950_v19 = vpop.f32.mrf.mxu1 }
0x2f0f   :  { %v1951_v21 = vadd.f32 %v6826_v17, %v1950_v19 }
0x2f10   :  { %v1952_v24 = vpop.f32.mrf.mxu1 }
0x2f11   :  { %v1957_v23 = vadd.f32 %v1951_v21, %v8261_v16  ;;  %v1953_v26 = vadd.f32 %v1952_v24, %v1910_v18 }
0x2f12   :  { %v1954_v28 = vpop.f32.mrf.mxu1 }
0x2f13   :  { %7820 = vtanh.f32 %v1957_v23  ;;  %v1958_v29 = vadd.f32 %v1953_v26, %v8263_v20  ;;  %v6829_v6 = vmul.f32 -1.442695, %v1957_v23 }
0x2f14   :  { %v1955_v30 = vpop.f32.mrf.mxu1 }
0x2f15   :  { %7822 = vtanh.f32 %v1958_v29  ;;  %v6830_v43 = vmul.f32 -1.442695, %v1958_v29 }
0x2f16   :  { %7824 = vpow2.f32 %v6829_v6 }
0x2f20   :  { %v7821_v2 = vpop.eup %7820 }
0x2f21   :  { %1976 = vrot.lane.b32.xlu1 %v7821_v2, %s8120_s2 }
0x2f22   :  { %v7823_v5 = vpop.eup %7822 }
0x2f23   :  { %1978 = vrot.lane.b32.xlu0 %v7823_v5, %s8120_s2  ;;  %v7825_v33 = vpop.eup %7824 }
0x2f24   :  { %v1965_v7 = vadd.f32 1.0, %v7825_v33 }
0x2f26   :  { %7826 = vrcp.f32 %v1965_v7 }
0x2f33   :  { %v7827_v0 = vpop.eup %7826 }
0x2f34   :  { %v1973_v38 = vmul.f32 %v7827_v0, %v1882_v50 }
0x2f93   :  { %v1977_v8 = vpop.permute.xlu1 %1976 }
0x2f95   :  { %v1979_v9 = vpop.permute.xlu0 %1978 }
0x2f96   :  { %v1980_v34 = vsel %vm179_vm1, %v1977_v8, %v1979_v9 }
0x2f97   :  { %v1982_v36 = vmul.f32 %v7827_v0, %v1980_v34 }
0x2f99   :  { %1984 = vrot.lane.b32.xlu1 %v1982_v36, %s8121_s29 }
0x300b   :  { %v1985_v39 = vpop.permute.xlu1 %1984 }
0x300c   :  { %v1987_v40 = vadd.f32 %v1985_v39, %v1973_v38  ;;  %v8799_v38 = vld [vmem:[%s9943_s1 + $0x24] ss:$8 sps:$4 sm:$0xff]   ;;  %v8805_v39 = vld [vmem:[%s9943_s1 + $0x20] ss:$8 sps:$4 sm:$0xff]  }
0x300e   :  { %7828 = vtanh.f32 %v1987_v40 }
0x300f   :  { %7830 = vpow2.f32 %v6830_v43  ;;  %v8823_v43 = vld [vmem:[%s9943_s1 + $0x4] ss:$8 sps:$4 sm:$0xff]  }
0x301b   :  { %v7829_v41 = vpop.eup %7828 }
0x301c   :  { %1990 = vrot.lane.b32.xlu0 %v7829_v41, %s8122_s30  ;;  %v7831_v44 = vpop.eup %7830  ;;  %v8817_v41 = vld [vmem:[%s9943_s1 + $0x10] ss:$8 sps:$4 sm:$0xff]  }
0x301d   :  { %v1966_v45 = vadd.f32 1.0, %v7831_v44  ;;  %v8829_v44 = vld [vmem:[%s9943_s1] ss:$8 sps:$4 sm:$0xff]  }
0x301f   :  { %7832 = vrcp.f32 %v1966_v45  ;;  %v8835_v45 = vld [vmem:[%s9943_s1 + $0x34] ss:$8 sps:$4 sm:$0x3f]  }
0x302c   :  { %v7833_v48 = vpop.eup %7832 }
0x308e   :  { %v1991_v51 = vpop.permute.xlu0 %1990 }
0x308f   :  { %v8762_v52 = vmul.f32 %v7833_v48, %v1991_v51  ;;  %v6838_v48 = vld.sshfl [vmem:[%s9942_s0 + $0x4c] sm:$0x33 pattern:$0x76325410] }
0x3090   :  { %v2120_v51 = vcombine.high %v6838_v48, %v6838_v48 }
0x3091   :  { %v2001_v53 = vpack.c.bf16 %v8762_v52, %v8762_v52 }
0x3093   :  { %2005 = vrot.lane.b32.xlu1 %v2001_v53, %s8124_s11 }
0x3105   :  { %v2006_v50 = vpop.permute.xlu1 %2005 }
0x3106   :  { %6834 = vmatmul.mubr.msk.bf16.vlgmr.msra.gmra.mxu0 %vm104_vm3, %v2006_v50 }
0x3107   :  { %2240 = vmatpush1.bf16.msra.mxu0 %v8197_v3  ;;  %2263 = vmatprep.mubr.bf16.mxu0 %v8119_v4 }
0x3108   :  { %2241 = vmatprep.subr.bf16.mxu0 %v8504_v57 }
0x310b   :  { %2242 = vmatpush1.bf16.msra.mxu0 %v8510_v58 }
0x310c   :  { %2243 = vmatprep.subr.bf16.mxu0 %v8516_v59 }
0x310f   :  { %2244 = vmatpush1.bf16.msra.mxu0 %v8522_v60 }
0x3110   :  { %2245 = vmatprep.subr.bf16.mxu0 %v8528_v62 }
0x3113   :  { %2246 = vmatpush1.bf16.msra.mxu0 %v8534_v63 }
0x3114   :  { %6857 = vmatprep.subr.msk.bf16.mxu0 %vm108_vm0, %v8540_v1 }
0x31c6   :  { %v2055_v10 = vpop.f32.mrf.mxu0 }
0x31c7   :  { %v2056_v57 = vadd.f32 %v6832_v55, %v2055_v10 }
0x31c8   :  { %v2057_v14 = vpop.f32.mrf.mxu0 }
0x31c9   :  { %v2062_v58 = vadd.f32 %v2056_v57, %v8261_v16  ;;  %v2058_v59 = vadd.f32 %v2057_v14, %v2015_v56 }
0x31ca   :  { %v2059_v11 = vpop.f32.mrf.mxu0 }
0x31cb   :  { %7834 = vtanh.f32 %v2062_v58  ;;  %v2063_v60 = vadd.f32 %v2058_v59, %v8263_v20  ;;  %v6835_v17 = vmul.f32 -1.442695, %v2062_v58 }
0x31cc   :  { %v2060_v62 = vpop.f32.mrf.mxu0 }
0x31cd   :  { %7836 = vtanh.f32 %v2063_v60  ;;  %v6836_v6 = vmul.f32 -1.442695, %v2063_v60 }
0x31ce   :  { %7838 = vpow2.f32 %v6835_v17 }
0x31d8   :  { %v7835_v63 = vpop.eup %7834 }
0x31d9   :  { %2081 = vrot.lane.b32.xlu0 %v7835_v63, %s8120_s2 }
0x31da   :  { %v7837_v1 = vpop.eup %7836 }
0x31db   :  { %2083 = vrot.lane.b32.xlu1 %v7837_v1, %s8120_s2  ;;  %v7839_v18 = vpop.eup %7838 }
0x31dc   :  { %v2070_v19 = vadd.f32 1.0, %v7839_v18 }
0x31de   :  { %7840 = vrcp.f32 %v2070_v19 }
0x31eb   :  { %v7841_v23 = vpop.eup %7840 }
0x31ec   :  { %v2078_v29 = vmul.f32 %v7841_v23, %v1987_v40  ;;  %v8811_v40 = vld [vmem:[%s9943_s1 + $0x14] ss:$8 sps:$4 sm:$0xff]  }
0x324b   :  { %v2082_v21 = vpop.permute.xlu0 %2081 }
0x324d   :  { %v2084_v24 = vpop.permute.xlu1 %2083 }
0x324e   :  { %v2085_v26 = vsel %vm179_vm1, %v2082_v21, %v2084_v24 }
0x324f   :  { %v2087_v28 = vmul.f32 %v7841_v23, %v2085_v26 }
0x3251   :  { %2089 = vrot.lane.b32.xlu0 %v2087_v28, %s8121_s29 }
0x32c3   :  { %v2090_v30 = vpop.permute.xlu0 %2089 }
0x32c4   :  { %v2092_v2 = vadd.f32 %v2090_v30, %v2078_v29 }
0x32c6   :  { %7842 = vtanh.f32 %v2092_v2 }
0x32c7   :  { %7844 = vpow2.f32 %v6836_v6 }
0x32d3   :  { %v7843_v5 = vpop.eup %7842 }
0x32d4   :  { %2095 = vrot.lane.b32.xlu1 %v7843_v5, %s8122_s30  ;;  %v7845_v33 = vpop.eup %7844 }
0x32d5   :  { %v2071_v7 = vadd.f32 1.0, %v7845_v33 }
0x32d7   :  { %7846 = vrcp.f32 %v2071_v7 }
0x32e4   :  { %v7847_v8 = vpop.eup %7846 }
0x3346   :  { %v2096_v9 = vpop.permute.xlu1 %2095 }
0x3347   :  { %v8788_v0 = vmul.f32 %v7847_v8, %v2096_v9  ;;  %v6844_v9 = vld.sshfl [vmem:[%s9942_s0 + $0x50] sm:$0x33 pattern:$0x76325410] }
0x3349   :  { %v2106_v34 = vpack.c.bf16 %v8788_v0, %v8788_v0 }
0x334b   :  { %2110 = vrot.lane.b32.xlu0 %v2106_v34, %s8124_s11  ;;  %v2225_v34 = vcombine.high %v6844_v9, %v6844_v9 }
0x33bd   :  { %v2111_v36 = vpop.permute.xlu0 %2110 }
0x33be   :  { %6840 = vmatmul.mubr.msk.bf16.vlgmr.msra.gmra.mxu1 %vm104_vm3, %v2111_v36 }
0x33bf   :  { %2345 = vmatpush1.bf16.msra.mxu1 %v8197_v3  ;;  %2368 = vmatprep.mubr.bf16.mxu1 %v8119_v4 }
0x33c0   :  { %2346 = vmatprep.subr.bf16.mxu1 %v8799_v38 }
0x33c3   :  { %2347 = vmatpush1.bf16.msra.mxu1 %v8805_v39 }
0x33c4   :  { %2348 = vmatprep.subr.bf16.mxu1 %v8811_v40 }
0x33c7   :  { %2349 = vmatpush1.bf16.msra.mxu1 %v8817_v41 }
0x33c8   :  { %2350 = vmatprep.subr.bf16.mxu1 %v8823_v43 }
0x33cb   :  { %2351 = vmatpush1.bf16.msra.mxu1 %v8829_v44 }
0x33cc   :  { %6863 = vmatprep.subr.msk.bf16.mxu1 %vm108_vm0, %v8835_v45 }
0x347e   :  { %v2160_v53 = vpop.f32.mrf.mxu1 }
0x347f   :  { %v2161_v50 = vadd.f32 %v6838_v48, %v2160_v53 }
0x3480   :  { %v2162_v55 = vpop.f32.mrf.mxu1 }
0x3481   :  { %v2167_v56 = vadd.f32 %v2161_v50, %v8261_v16  ;;  %v2163_v10 = vadd.f32 %v2162_v55, %v2120_v51 }
0x3482   :  { %v2164_v57 = vpop.f32.mrf.mxu1 }
0x3483   :  { %7848 = vtanh.f32 %v2167_v56  ;;  %v2168_v14 = vadd.f32 %v2163_v10, %v8263_v20  ;;  %v6841_v60 = vmul.f32 -1.442695, %v2167_v56 }
0x3484   :  { %v2165_v58 = vpop.f32.mrf.mxu1 }
0x3485   :  { %7850 = vtanh.f32 %v2168_v14  ;;  %v6842_v29 = vmul.f32 -1.442695, %v2168_v14 }
0x3486   :  { %7852 = vpow2.f32 %v6841_v60 }
0x3490   :  { %v7849_v59 = vpop.eup %7848 }
0x3491   :  { %2186 = vrot.lane.b32.xlu1 %v7849_v59, %s8120_s2 }
0x3492   :  { %v7851_v11 = vpop.eup %7850 }
0x3493   :  { %2188 = vrot.lane.b32.xlu0 %v7851_v11, %s8120_s2  ;;  %v7853_v62 = vpop.eup %7852 }
0x3494   :  { %v2175_v63 = vadd.f32 1.0, %v7853_v62 }
0x3496   :  { %7854 = vrcp.f32 %v2175_v63 }
0x34a3   :  { %v7855_v18 = vpop.eup %7854 }
0x34a4   :  { %v2183_v24 = vmul.f32 %v7855_v18, %v2092_v2 }
0x3503   :  { %v2187_v1 = vpop.permute.xlu1 %2186 }
0x3505   :  { %v2189_v17 = vpop.permute.xlu0 %2188 }
0x3506   :  { %v2190_v19 = vsel %vm179_vm1, %v2187_v1, %v2189_v17 }
0x3507   :  { %v2192_v21 = vmul.f32 %v7855_v18, %v2190_v19 }
0x3509   :  { %2194 = vrot.lane.b32.xlu1 %v2192_v21, %s8121_s29 }
0x357b   :  { %v2195_v23 = vpop.permute.xlu1 %2194 }
0x357c   :  { %v2197_v26 = vadd.f32 %v2195_v23, %v2183_v24 }
0x357e   :  { %7856 = vtanh.f32 %v2197_v26 }
0x357f   :  { %7858 = vpow2.f32 %v6842_v29 }
0x358b   :  { %v7857_v28 = vpop.eup %7856 }
0x358c   :  { %2200 = vrot.lane.b32.xlu0 %v7857_v28, %s8122_s30  ;;  %v7859_v30 = vpop.eup %7858 }
0x358d   :  { %v2176_v5 = vadd.f32 1.0, %v7859_v30 }
0x358f   :  { %7860 = vrcp.f32 %v2176_v5 }
0x359c   :  { %v7861_v6 = vpop.eup %7860 }
0x35fe   :  { %v2201_v33 = vpop.permute.xlu0 %2200 }
0x35ff   :  { %v8849_v7 = vmul.f32 %v7861_v6, %v2201_v33 }
0x3601   :  { %v2211_v8 = vpack.c.bf16 %v8849_v7, %v8849_v7 }
0x3603   :  { %2215 = vrot.lane.b32.xlu1 %v2211_v8, %s8124_s11  ;;  %v6850_v8 = vld.sshfl [vmem:[%s9942_s0 + $0x54] sm:$0x33 pattern:$0x76325410] }
0x3675   :  { %v2216_v2 = vpop.permute.xlu1 %2215 }
0x3676   :  { %6846 = vmatmul.mubr.msk.bf16.vlgmr.msra.gmra.mxu0 %vm104_vm3, %v2216_v2  ;;  %v2330_v2 = vcombine.high %v6850_v8, %v6850_v8 }
0x3677   :  { %2450 = vmatpush1.bf16.msra.mxu0 %v8197_v3  ;;  %2473 = vmatprep.mubr.bf16.mxu0 %v8119_v4 }
0x3678   :  { %2451 = vmatprep.subr.bf16.mxu0 %v8799_v38 }
0x367b   :  { %2452 = vmatpush1.bf16.msra.mxu0 %v8805_v39 }
0x367c   :  { %2453 = vmatprep.subr.bf16.mxu0 %v8811_v40 }
0x367f   :  { %2454 = vmatpush1.bf16.msra.mxu0 %v8817_v41 }
0x3680   :  { %2455 = vmatprep.subr.bf16.mxu0 %v8823_v43 }
0x3683   :  { %2456 = vmatpush1.bf16.msra.mxu0 %v8829_v44 }
0x3684   :  { %6869 = vmatprep.subr.msk.bf16.mxu0 %vm108_vm0, %v8835_v45 }
0x3736   :  { %v2265_v36 = vpop.f32.mrf.mxu0 }
0x3737   :  { %v2266_v48 = vadd.f32 %v6844_v9, %v2265_v36 }
0x3738   :  { %v2267_v51 = vpop.f32.mrf.mxu0 }
0x3739   :  { %v2272_v53 = vadd.f32 %v2266_v48, %v8261_v16  ;;  %v2268_v50 = vadd.f32 %v2267_v51, %v2225_v34 }
0x373a   :  { %v2269_v55 = vpop.f32.mrf.mxu0 }
0x373b   :  { %7862 = vtanh.f32 %v2272_v53  ;;  %v2273_v56 = vadd.f32 %v2268_v50, %v8263_v20  ;;  %v6847_v58 = vmul.f32 -1.442695, %v2272_v53 }
0x373c   :  { %v2270_v10 = vpop.f32.mrf.mxu0 }
0x373d   :  { %7864 = vtanh.f32 %v2273_v56  ;;  %v6848_v23 = vmul.f32 -1.442695, %v2273_v56 }
0x373e   :  { %7866 = vpow2.f32 %v6847_v58 }
0x3748   :  { %v7863_v57 = vpop.eup %7862 }
0x3749   :  { %2291 = vrot.lane.b32.xlu0 %v7863_v57, %s8120_s2 }
0x374a   :  { %v7865_v14 = vpop.eup %7864 }
0x374b   :  { %2293 = vrot.lane.b32.xlu1 %v7865_v14, %s8120_s2  ;;  %v7867_v59 = vpop.eup %7866 }
0x374c   :  { %v2280_v11 = vadd.f32 1.0, %v7867_v59 }
0x374e   :  { %7868 = vrcp.f32 %v2280_v11 }
0x375b   :  { %v7869_v63 = vpop.eup %7868 }
0x375c   :  { %v2288_v18 = vmul.f32 %v7869_v63, %v2197_v26 }
0x37bb   :  { %v2292_v60 = vpop.permute.xlu0 %2291 }
0x37bd   :  { %v2294_v62 = vpop.permute.xlu1 %2293 }
0x37be   :  { %v2295_v1 = vsel %vm179_vm1, %v2292_v60, %v2294_v62 }
0x37bf   :  { %v2297_v17 = vmul.f32 %v7869_v63, %v2295_v1 }
0x37c1   :  { %2299 = vrot.lane.b32.xlu0 %v2297_v17, %s8121_s29 }
0x3833   :  { %v2300_v19 = vpop.permute.xlu0 %2299 }
0x3834   :  { %v2302_v21 = vadd.f32 %v2300_v19, %v2288_v18 }
0x3836   :  { %7870 = vtanh.f32 %v2302_v21 }
0x3837   :  { %7872 = vpow2.f32 %v6848_v23 }
0x3843   :  { %v7871_v24 = vpop.eup %7870 }
0x3844   :  { %2305 = vrot.lane.b32.xlu1 %v7871_v24, %s8122_s30  ;;  %v7873_v28 = vpop.eup %7872 }
0x3845   :  { %v2281_v29 = vadd.f32 1.0, %v7873_v28 }
0x3847   :  { %7874 = vrcp.f32 %v2281_v29 }
0x3854   :  { %v7875_v30 = vpop.eup %7874 }
0x38b6   :  { %v2306_v5 = vpop.permute.xlu1 %2305 }
0x38b7   :  { %v8875_v6 = vmul.f32 %v7875_v30, %v2306_v5 }
0x38b9   :  { %v2316_v33 = vpack.c.bf16 %v8875_v6, %v8875_v6 }
0x38bb   :  { %2320 = vrot.lane.b32.xlu0 %v2316_v33, %s8124_s11 }
0x392d   :  { %v2321_v26 = vpop.permute.xlu0 %2320 }
0x392e   :  { %6852 = vmatmul.mubr.msk.bf16.vlgmr.msra.gmra.mxu1 %vm104_vm3, %v2321_v26  ;;  %v6856_v26 = vld.sshfl [vmem:[%s9942_s0 + $0x58] sm:$0x33 pattern:$0x76325410] }
0x392f   :  { %2555 = vmatpush1.bf16.msra.mxu1 %v8197_v3  ;;  %2578 = vmatprep.mubr.bf16.mxu1 %v8119_v4 }
0x3930   :  { %2556 = vmatprep.subr.bf16.mxu1 %v8799_v38 }
0x3933   :  { %2557 = vmatpush1.bf16.msra.mxu1 %v8805_v39 }
0x3934   :  { %2558 = vmatprep.subr.bf16.mxu1 %v8811_v40 }
0x3937   :  { %2559 = vmatpush1.bf16.msra.mxu1 %v8817_v41 }
0x3938   :  { %2560 = vmatprep.subr.bf16.mxu1 %v8823_v43 }
0x393b   :  { %2561 = vmatpush1.bf16.msra.mxu1 %v8829_v44 }
0x393c   :  { %6875 = vmatprep.subr.msk.bf16.mxu1 %vm108_vm0, %v8835_v45 }
0x39ee   :  { %v2370_v9 = vpop.f32.mrf.mxu1 }
0x39ef   :  { %v2371_v34 = vadd.f32 %v6850_v8, %v2370_v9  ;;  %v2435_v8 = vcombine.high %v6856_v26, %v6856_v26 }
0x39f0   :  { %v2372_v36 = vpop.f32.mrf.mxu1 }
0x39f1   :  { %v2377_v48 = vadd.f32 %v2371_v34, %v8261_v16  ;;  %v2373_v51 = vadd.f32 %v2372_v36, %v2330_v2 }
0x39f2   :  { %v2374_v53 = vpop.f32.mrf.mxu1 }
0x39f3   :  { %7876 = vtanh.f32 %v2377_v48  ;;  %v2378_v50 = vadd.f32 %v2373_v51, %v8263_v20  ;;  %v6853_v57 = vmul.f32 -1.442695, %v2377_v48 }
0x39f4   :  { %v2375_v55 = vpop.f32.mrf.mxu1 }
0x39f5   :  { %7878 = vtanh.f32 %v2378_v50  ;;  %v6854_v24 = vmul.f32 -1.442695, %v2378_v50 }
0x39f6   :  { %7880 = vpow2.f32 %v6853_v57 }
0x3a00   :  { %v7877_v56 = vpop.eup %7876 }
0x3a01   :  { %2396 = vrot.lane.b32.xlu1 %v7877_v56, %s8120_s2 }
0x3a02   :  { %v7879_v10 = vpop.eup %7878 }
0x3a03   :  { %2398 = vrot.lane.b32.xlu0 %v7879_v10, %s8120_s2  ;;  %v7881_v14 = vpop.eup %7880 }
0x3a04   :  { %v2385_v58 = vadd.f32 1.0, %v7881_v14 }
0x3a06   :  { %7882 = vrcp.f32 %v2385_v58 }
0x3a13   :  { %v7883_v60 = vpop.eup %7882 }
0x3a14   :  { %v2393_v1 = vmul.f32 %v7883_v60, %v2302_v21 }
0x3a73   :  { %v2397_v59 = vpop.permute.xlu1 %2396 }
0x3a75   :  { %v2399_v11 = vpop.permute.xlu0 %2398 }
0x3a76   :  { %v2400_v62 = vsel %vm179_vm1, %v2397_v59, %v2399_v11 }
0x3a77   :  { %v2402_v63 = vmul.f32 %v7883_v60, %v2400_v62 }
0x3a79   :  { %2404 = vrot.lane.b32.xlu1 %v2402_v63, %s8121_s29 }
0x3aeb   :  { %v2405_v17 = vpop.permute.xlu1 %2404 }
0x3aec   :  { %v2407_v18 = vadd.f32 %v2405_v17, %v2393_v1 }
0x3aee   :  { %7884 = vtanh.f32 %v2407_v18 }
0x3aef   :  { %7886 = vpow2.f32 %v6854_v24 }
0x3afb   :  { %v7885_v19 = vpop.eup %7884 }
0x3afc   :  { %2410 = vrot.lane.b32.xlu0 %v7885_v19, %s8122_s30  ;;  %v7887_v23 = vpop.eup %7886 }
0x3afd   :  { %v2386_v28 = vadd.f32 1.0, %v7887_v23 }
0x3aff   :  { %7888 = vrcp.f32 %v2386_v28 }
0x3b0c   :  { %v7889_v29 = vpop.eup %7888 }
0x3b6e   :  { %v2411_v30 = vpop.permute.xlu0 %2410 }
0x3b6f   :  { %v8901_v5 = vmul.f32 %v7889_v29, %v2411_v30 }
0x3b71   :  { %v2421_v33 = vpack.c.bf16 %v8901_v5, %v8901_v5 }
0x3b73   :  { %2425 = vrot.lane.b32.xlu1 %v2421_v33, %s8124_s11 }
0x3be5   :  { %v2426_v21 = vpop.permute.xlu1 %2425 }
0x3be6   :  { %6858 = vmatmul.mubr.msk.bf16.vlgmr.msra.gmra.mxu0 %vm104_vm3, %v2426_v21 }
0x3be7   :  { %2660 = vmatpush1.bf16.msra.mxu0 %v8197_v3  ;;  %2683 = vmatprep.mubr.bf16.mxu0 %v8119_v4 }
0x3be8   :  { %2661 = vmatprep.subr.bf16.mxu0 %v8799_v38 }
0x3beb   :  { %2662 = vmatpush1.bf16.msra.mxu0 %v8805_v39 }
0x3bec   :  { %2663 = vmatprep.subr.bf16.mxu0 %v8811_v40 }
0x3bef   :  { %2664 = vmatpush1.bf16.msra.mxu0 %v8817_v41 }
0x3bf0   :  { %2665 = vmatprep.subr.bf16.mxu0 %v8823_v43 }
0x3bf3   :  { %2666 = vmatpush1.bf16.msra.mxu0 %v8829_v44 }
0x3bf4   :  { %6881 = vmatprep.subr.msk.bf16.mxu0 %vm108_vm0, %v8835_v45 }
0x3ca6   :  { %v2475_v2 = vpop.f32.mrf.mxu0 }
0x3ca7   :  { %v2476_v9 = vadd.f32 %v6856_v26, %v2475_v2  ;;  %v6862_v26 = vld.sshfl [vmem:[%s9942_s0 + $0x5c] sm:$0x33 pattern:$0x76325410] }
0x3ca8   :  { %v2477_v34 = vpop.f32.mrf.mxu0 }
0x3ca9   :  { %v2482_v36 = vadd.f32 %v2476_v9, %v8261_v16  ;;  %v2478_v48 = vadd.f32 %v2477_v34, %v2435_v8  ;;  %v2540_v8 = vcombine.high %v6862_v26, %v6862_v26 }
0x3caa   :  { %v2479_v51 = vpop.f32.mrf.mxu0 }
0x3cab   :  { %7890 = vtanh.f32 %v2482_v36  ;;  %v2483_v53 = vadd.f32 %v2478_v48, %v8263_v20  ;;  %v6859_v10 = vmul.f32 -1.442695, %v2482_v36 }
0x3cac   :  { %v2480_v50 = vpop.f32.mrf.mxu0 }
0x3cad   :  { %7892 = vtanh.f32 %v2483_v53  ;;  %v6860_v24 = vmul.f32 -1.442695, %v2483_v53 }
0x3cae   :  { %7894 = vpow2.f32 %v6859_v10 }
0x3cb8   :  { %v7891_v55 = vpop.eup %7890 }
0x3cb9   :  { %2501 = vrot.lane.b32.xlu0 %v7891_v55, %s8120_s2 }
0x3cba   :  { %v7893_v56 = vpop.eup %7892 }
0x3cbb   :  { %2503 = vrot.lane.b32.xlu1 %v7893_v56, %s8120_s2  ;;  %v7895_v57 = vpop.eup %7894 }
0x3cbc   :  { %v2490_v14 = vadd.f32 1.0, %v7895_v57 }
0x3cbe   :  { %7896 = vrcp.f32 %v2490_v14 }
0x3ccb   :  { %v7897_v11 = vpop.eup %7896 }
0x3ccc   :  { %v2498_v63 = vmul.f32 %v7897_v11, %v2407_v18 }
0x3d2b   :  { %v2502_v58 = vpop.permute.xlu0 %2501 }
0x3d2d   :  { %v2504_v59 = vpop.permute.xlu1 %2503 }
0x3d2e   :  { %v2505_v60 = vsel %vm179_vm1, %v2502_v58, %v2504_v59 }
0x3d2f   :  { %v2507_v62 = vmul.f32 %v7897_v11, %v2505_v60 }
0x3d31   :  { %2509 = vrot.lane.b32.xlu0 %v2507_v62, %s8121_s29 }
0x3da3   :  { %v2510_v1 = vpop.permute.xlu0 %2509 }
0x3da4   :  { %v2512_v17 = vadd.f32 %v2510_v1, %v2498_v63 }
0x3da6   :  { %7898 = vtanh.f32 %v2512_v17 }
0x3da7   :  { %7900 = vpow2.f32 %v6860_v24 }
0x3db3   :  { %v7899_v19 = vpop.eup %7898 }
0x3db4   :  { %2515 = vrot.lane.b32.xlu1 %v7899_v19, %s8122_s30  ;;  %v7901_v23 = vpop.eup %7900 }
0x3db5   :  { %v2491_v28 = vadd.f32 1.0, %v7901_v23 }
0x3db7   :  { %7902 = vrcp.f32 %v2491_v28 }
0x3dc4   :  { %v7903_v29 = vpop.eup %7902 }
0x3e26   :  { %v2516_v30 = vpop.permute.xlu1 %2515 }
0x3e27   :  { %v8927_v33 = vmul.f32 %v7903_v29, %v2516_v30 }
0x3e29   :  { %v2526_v21 = vpack.c.bf16 %v8927_v33, %v8927_v33 }
0x3e2b   :  { %2530 = vrot.lane.b32.xlu0 %v2526_v21, %s8124_s11 }
0x3e9d   :  { %v2531_v18 = vpop.permute.xlu0 %2530 }
0x3e9e   :  { %6864 = vmatmul.mubr.msk.bf16.vlgmr.msra.gmra.mxu1 %vm104_vm3, %v2531_v18 }
0x3e9f   :  { %2765 = vmatpush1.bf16.msra.mxu1 %v8197_v3  ;;  %2788 = vmatprep.mubr.bf16.mxu1 %v8119_v4 }
0x3ea0   :  { %2766 = vmatprep.subr.bf16.mxu1 %v8799_v38 }
0x3ea3   :  { %2767 = vmatpush1.bf16.msra.mxu1 %v8805_v39 }
0x3ea4   :  { %2768 = vmatprep.subr.bf16.mxu1 %v8811_v40 }
0x3ea7   :  { %2769 = vmatpush1.bf16.msra.mxu1 %v8817_v41 }
0x3ea8   :  { %2770 = vmatprep.subr.bf16.mxu1 %v8823_v43 }
0x3eab   :  { %2771 = vmatpush1.bf16.msra.mxu1 %v8829_v44 }
0x3eac   :  { %6887 = vmatprep.subr.msk.bf16.mxu1 %vm108_vm0, %v8835_v45 }
0x3f5e   :  { %v2580_v2 = vpop.f32.mrf.mxu1 }
0x3f5f   :  { %v2581_v9 = vadd.f32 %v6862_v26, %v2580_v2 }
0x3f60   :  { %v2582_v34 = vpop.f32.mrf.mxu1 }
0x3f61   :  { %v2587_v36 = vadd.f32 %v2581_v9, %v8261_v16  ;;  %v2583_v48 = vadd.f32 %v2582_v34, %v2540_v8  ;;  %v6868_v8 = vld.sshfl [vmem:[%s9942_s0 + $0x60] sm:$0x33 pattern:$0x76325410] }
0x3f62   :  { %v2584_v51 = vpop.f32.mrf.mxu1  ;;  %v2645_v2 = vcombine.high %v6868_v8, %v6868_v8 }
0x3f63   :  { %7904 = vtanh.f32 %v2587_v36  ;;  %v2588_v53 = vadd.f32 %v2583_v48, %v8263_v20  ;;  %v6865_v10 = vmul.f32 -1.442695, %v2587_v36 }
0x3f64   :  { %v2585_v50 = vpop.f32.mrf.mxu1 }
0x3f65   :  { %7906 = vtanh.f32 %v2588_v53  ;;  %v6866_v23 = vmul.f32 -1.442695, %v2588_v53 }
0x3f66   :  { %7908 = vpow2.f32 %v6865_v10 }
0x3f70   :  { %v7905_v55 = vpop.eup %7904 }
0x3f71   :  { %2606 = vrot.lane.b32.xlu1 %v7905_v55, %s8120_s2 }
0x3f72   :  { %v7907_v56 = vpop.eup %7906 }
0x3f73   :  { %2608 = vrot.lane.b32.xlu0 %v7907_v56, %s8120_s2  ;;  %v7909_v57 = vpop.eup %7908 }
0x3f74   :  { %v2595_v14 = vadd.f32 1.0, %v7909_v57 }
0x3f76   :  { %7910 = vrcp.f32 %v2595_v14 }
0x3f83   :  { %v7911_v11 = vpop.eup %7910 }
0x3f84   :  { %v2603_v63 = vmul.f32 %v7911_v11, %v2512_v17 }
0x3fe3   :  { %v2607_v58 = vpop.permute.xlu1 %2606 }
0x3fe5   :  { %v2609_v59 = vpop.permute.xlu0 %2608 }
0x3fe6   :  { %v2610_v60 = vsel %vm179_vm1, %v2607_v58, %v2609_v59 }
0x3fe7   :  { %v2612_v62 = vmul.f32 %v7911_v11, %v2610_v60 }
0x3fe9   :  { %2614 = vrot.lane.b32.xlu1 %v2612_v62, %s8121_s29 }
0x405b   :  { %v2615_v1 = vpop.permute.xlu1 %2614 }
0x405c   :  { %v2617_v19 = vadd.f32 %v2615_v1, %v2603_v63 }
0x405e   :  { %7912 = vtanh.f32 %v2617_v19 }
0x405f   :  { %7914 = vpow2.f32 %v6866_v23 }
0x406b   :  { %v7913_v24 = vpop.eup %7912 }
0x406c   :  { %2620 = vrot.lane.b32.xlu0 %v7913_v24, %s8122_s30  ;;  %v7915_v28 = vpop.eup %7914 }
0x406d   :  { %v2596_v29 = vadd.f32 1.0, %v7915_v28 }
0x406f   :  { %7916 = vrcp.f32 %v2596_v29 }
0x407c   :  { %v7917_v30 = vpop.eup %7916 }
0x40de   :  { %v2621_v21 = vpop.permute.xlu0 %2620 }
0x40df   :  { %v8953_v18 = vmul.f32 %v7917_v30, %v2621_v21 }
0x40e1   :  { %v2631_v26 = vpack.c.bf16 %v8953_v18, %v8953_v18 }
0x40e3   :  { %2635 = vrot.lane.b32.xlu1 %v2631_v26, %s8124_s11 }
0x4155   :  { %v2636_v17 = vpop.permute.xlu1 %2635 }
0x4156   :  { %6870 = vmatmul.mubr.msk.bf16.vlgmr.msra.gmra.mxu0 %vm104_vm3, %v2636_v17 }
0x4157   :  { %2870 = vmatpush1.bf16.msra.mxu0 %v8197_v3  ;;  %2893 = vmatprep.mubr.bf16.mxu0 %v8119_v4 }
0x4158   :  { %2871 = vmatprep.subr.bf16.mxu0 %v8799_v38 }
0x415b   :  { %2872 = vmatpush1.bf16.msra.mxu0 %v8805_v39 }
0x415c   :  { %2873 = vmatprep.subr.bf16.mxu0 %v8811_v40 }
0x415f   :  { %2874 = vmatpush1.bf16.msra.mxu0 %v8817_v41 }
0x4160   :  { %2875 = vmatprep.subr.bf16.mxu0 %v8823_v43 }
0x4163   :  { %2876 = vmatpush1.bf16.msra.mxu0 %v8829_v44 }
0x4164   :  { %6893 = vmatprep.subr.msk.bf16.mxu0 %vm108_vm0, %v8835_v45 }
0x4216   :  { %v2685_v9 = vpop.f32.mrf.mxu0 }
0x4217   :  { %v2686_v34 = vadd.f32 %v6868_v8, %v2685_v9  ;;  %v6874_v9 = vld.sshfl [vmem:[%s9942_s0 + $0x64] sm:$0x33 pattern:$0x76325410] }
0x4218   :  { %v2687_v36 = vpop.f32.mrf.mxu0 }
0x4219   :  { %v2692_v48 = vadd.f32 %v2686_v34, %v8261_v16  ;;  %v2688_v51 = vadd.f32 %v2687_v36, %v2645_v2  ;;  %v2750_v34 = vcombine.high %v6874_v9, %v6874_v9 }
0x421a   :  { %v2689_v53 = vpop.f32.mrf.mxu0 }
0x421b   :  { %7918 = vtanh.f32 %v2692_v48  ;;  %v2693_v50 = vadd.f32 %v2688_v51, %v8263_v20  ;;  %v6871_v57 = vmul.f32 -1.442695, %v2692_v48 }
0x421c   :  { %v2690_v55 = vpop.f32.mrf.mxu0 }
0x421d   :  { %7920 = vtanh.f32 %v2693_v50  ;;  %v6872_v29 = vmul.f32 -1.442695, %v2693_v50 }
0x421e   :  { %7922 = vpow2.f32 %v6871_v57 }
0x4228   :  { %v7919_v56 = vpop.eup %7918 }
0x4229   :  { %2711 = vrot.lane.b32.xlu0 %v7919_v56, %s8120_s2 }
0x422a   :  { %v7921_v10 = vpop.eup %7920 }
0x422b   :  { %2713 = vrot.lane.b32.xlu1 %v7921_v10, %s8120_s2  ;;  %v7923_v14 = vpop.eup %7922 }
0x422c   :  { %v2700_v58 = vadd.f32 1.0, %v7923_v14 }
0x422e   :  { %7924 = vrcp.f32 %v2700_v58 }
0x423b   :  { %v7925_v60 = vpop.eup %7924 }
0x423c   :  { %v2708_v1 = vmul.f32 %v7925_v60, %v2617_v19 }
0x429b   :  { %v2712_v59 = vpop.permute.xlu0 %2711 }
0x429d   :  { %v2714_v11 = vpop.permute.xlu1 %2713 }
0x429e   :  { %v2715_v62 = vsel %vm179_vm1, %v2712_v59, %v2714_v11 }
0x429f   :  { %v2717_v63 = vmul.f32 %v7925_v60, %v2715_v62 }
0x42a1   :  { %2719 = vrot.lane.b32.xlu0 %v2717_v63, %s8121_s29 }
0x4313   :  { %v2720_v24 = vpop.permute.xlu0 %2719 }
0x4314   :  { %v2722_v23 = vadd.f32 %v2720_v24, %v2708_v1 }
0x4316   :  { %7926 = vtanh.f32 %v2722_v23 }
0x4317   :  { %7928 = vpow2.f32 %v6872_v29 }
0x4323   :  { %v7927_v28 = vpop.eup %7926 }
0x4324   :  { %2725 = vrot.lane.b32.xlu1 %v7927_v28, %s8122_s30  ;;  %v7929_v30 = vpop.eup %7928 }
0x4325   :  { %v2701_v21 = vadd.f32 1.0, %v7929_v30 }
0x4327   :  { %7930 = vrcp.f32 %v2701_v21 }
0x4334   :  { %v7931_v26 = vpop.eup %7930 }
0x4396   :  { %v2726_v17 = vpop.permute.xlu1 %2725 }
0x4397   :  { %v8979_v8 = vmul.f32 %v7931_v26, %v2726_v17 }
0x4399   :  { %v2736_v2 = vpack.c.bf16 %v8979_v8, %v8979_v8 }
0x439b   :  { %2740 = vrot.lane.b32.xlu0 %v2736_v2, %s8124_s11 }
0x440d   :  { %v2741_v19 = vpop.permute.xlu0 %2740 }
0x440e   :  { %6876 = vmatmul.mubr.msk.bf16.vlgmr.msra.gmra.mxu1 %vm104_vm3, %v2741_v19 }
0x440f   :  { %2975 = vmatpush1.bf16.msra.mxu1 %v8197_v3  ;;  %2998 = vmatprep.mubr.bf16.mxu1 %v8119_v4 }
0x4410   :  { %2976 = vmatprep.subr.bf16.mxu1 %v8799_v38 }
0x4413   :  { %2977 = vmatpush1.bf16.msra.mxu1 %v8805_v39 }
0x4414   :  { %2978 = vmatprep.subr.bf16.mxu1 %v8811_v40 }
0x4417   :  { %2979 = vmatpush1.bf16.msra.mxu1 %v8817_v41 }
0x4418   :  { %2980 = vmatprep.subr.bf16.mxu1 %v8823_v43 }
0x441b   :  { %2981 = vmatpush1.bf16.msra.mxu1 %v8829_v44 }
0x441c   :  { %6899 = vmatprep.subr.msk.bf16.mxu1 %vm108_vm0, %v8835_v45 }
0x44ce   :  { %v2790_v36 = vpop.f32.mrf.mxu1 }
0x44cf   :  { %v2791_v48 = vadd.f32 %v6874_v9, %v2790_v36 }
0x44d0   :  { %v2792_v51 = vpop.f32.mrf.mxu1 }
0x44d1   :  { %v2797_v53 = vadd.f32 %v2791_v48, %v8261_v16  ;;  %v2793_v50 = vadd.f32 %v2792_v51, %v2750_v34  ;;  %v6880_v48 = vld.sshfl [vmem:[%s9942_s0 + $0x68] sm:$0x33 pattern:$0x76325410] }
0x44d2   :  { %v2794_v55 = vpop.f32.mrf.mxu1  ;;  %v2855_v51 = vcombine.high %v6880_v48, %v6880_v48 }
0x44d3   :  { %7932 = vtanh.f32 %v2797_v53  ;;  %v2798_v56 = vadd.f32 %v2793_v50, %v8263_v20  ;;  %v6877_v58 = vmul.f32 -1.442695, %v2797_v53 }
0x44d4   :  { %v2795_v10 = vpop.f32.mrf.mxu1 }
0x44d5   :  { %7934 = vtanh.f32 %v2798_v56  ;;  %v6878_v26 = vmul.f32 -1.442695, %v2798_v56 }
0x44d6   :  { %7936 = vpow2.f32 %v6877_v58 }
0x44e0   :  { %v7933_v57 = vpop.eup %7932 }
0x44e1   :  { %2816 = vrot.lane.b32.xlu1 %v7933_v57, %s8120_s2 }
0x44e2   :  { %v7935_v14 = vpop.eup %7934 }
0x44e3   :  { %2818 = vrot.lane.b32.xlu0 %v7935_v14, %s8120_s2  ;;  %v7937_v59 = vpop.eup %7936 }
0x44e4   :  { %v2805_v11 = vadd.f32 1.0, %v7937_v59 }
0x44e6   :  { %7938 = vrcp.f32 %v2805_v11 }
0x44f3   :  { %v7939_v63 = vpop.eup %7938 }
0x44f4   :  { %v2813_v28 = vmul.f32 %v7939_v63, %v2722_v23 }
0x4553   :  { %v2817_v60 = vpop.permute.xlu1 %2816 }
0x4555   :  { %v2819_v62 = vpop.permute.xlu0 %2818 }
0x4556   :  { %v2820_v1 = vsel %vm179_vm1, %v2817_v60, %v2819_v62 }
0x4557   :  { %v2822_v24 = vmul.f32 %v7939_v63, %v2820_v1 }
0x4559   :  { %2824 = vrot.lane.b32.xlu1 %v2822_v24, %s8121_s29 }
0x45cb   :  { %v2825_v29 = vpop.permute.xlu1 %2824 }
0x45cc   :  { %v2827_v30 = vadd.f32 %v2825_v29, %v2813_v28 }
0x45ce   :  { %7940 = vtanh.f32 %v2827_v30 }
0x45cf   :  { %7942 = vpow2.f32 %v6878_v26 }
0x45db   :  { %v7941_v21 = vpop.eup %7940 }
0x45dc   :  { %2830 = vrot.lane.b32.xlu0 %v7941_v21, %s8122_s30  ;;  %v7943_v17 = vpop.eup %7942 }
0x45dd   :  { %v2806_v2 = vadd.f32 1.0, %v7943_v17 }
0x45df   :  { %7944 = vrcp.f32 %v2806_v2 }
0x45ec   :  { %v7945_v19 = vpop.eup %7944 }
0x464e   :  { %v2831_v9 = vpop.permute.xlu0 %2830 }
0x464f   :  { %v9005_v34 = vmul.f32 %v7945_v19, %v2831_v9 }
0x4651   :  { %v2841_v36 = vpack.c.bf16 %v9005_v34, %v9005_v34 }
0x4653   :  { %2845 = vrot.lane.b32.xlu1 %v2841_v36, %s8124_s11 }
0x46c5   :  { %v2846_v23 = vpop.permute.xlu1 %2845 }
0x46c6   :  { %6882 = vmatmul.mubr.msk.bf16.vlgmr.msra.gmra.mxu0 %vm104_vm3, %v2846_v23 }
0x46c7   :  { %3080 = vmatpush1.bf16.msra.mxu0 %v8197_v3  ;;  %3103 = vmatprep.mubr.bf16.mxu0 %v8119_v4 }
0x46c8   :  { %3081 = vmatprep.subr.bf16.mxu0 %v8799_v38 }
0x46cb   :  { %3082 = vmatpush1.bf16.msra.mxu0 %v8805_v39 }
0x46cc   :  { %3083 = vmatprep.subr.bf16.mxu0 %v8811_v40 }
0x46cf   :  { %3084 = vmatpush1.bf16.msra.mxu0 %v8817_v41 }
0x46d0   :  { %3085 = vmatprep.subr.bf16.mxu0 %v8823_v43 }
0x46d3   :  { %3086 = vmatpush1.bf16.msra.mxu0 %v8829_v44 }
0x46d4   :  { %6905 = vmatprep.subr.msk.bf16.mxu0 %vm108_vm0, %v8835_v45 }
0x4786   :  { %v2895_v53 = vpop.f32.mrf.mxu0 }
0x4787   :  { %v2896_v50 = vadd.f32 %v6880_v48, %v2895_v53 }
0x4788   :  { %v2897_v55 = vpop.f32.mrf.mxu0 }
0x4789   :  { %v2902_v56 = vadd.f32 %v2896_v50, %v8261_v16  ;;  %v2898_v10 = vadd.f32 %v2897_v55, %v2855_v51  ;;  %v6886_v55 = vld.sshfl [vmem:[%s9942_s0 + $0x6c] sm:$0x33 pattern:$0x76325410] }
0x478a   :  { %v2899_v57 = vpop.f32.mrf.mxu0 }
0x478b   :  { %7946 = vtanh.f32 %v2902_v56  ;;  %v2903_v14 = vadd.f32 %v2898_v10, %v8263_v20  ;;  %v6883_v60 = vmul.f32 -1.442695, %v2902_v56  ;;  %v2960_v56 = vcombine.high %v6886_v55, %v6886_v55 }
0x478c   :  { %v2900_v58 = vpop.f32.mrf.mxu0 }
0x478d   :  { %7948 = vtanh.f32 %v2903_v14  ;;  %v6884_v9 = vmul.f32 -1.442695, %v2903_v14 }
0x478e   :  { %7950 = vpow2.f32 %v6883_v60 }
0x4798   :  { %v7947_v59 = vpop.eup %7946 }
0x4799   :  { %2921 = vrot.lane.b32.xlu0 %v7947_v59, %s8120_s2 }
0x479a   :  { %v7949_v11 = vpop.eup %7948 }
0x479b   :  { %2923 = vrot.lane.b32.xlu1 %v7949_v11, %s8120_s2  ;;  %v7951_v62 = vpop.eup %7950 }
0x479c   :  { %v2910_v63 = vadd.f32 1.0, %v7951_v62 }
0x479e   :  { %7952 = vrcp.f32 %v2910_v63 }
0x47ab   :  { %v7953_v28 = vpop.eup %7952 }
0x47ac   :  { %v2918_v26 = vmul.f32 %v7953_v28, %v2827_v30 }
0x480b   :  { %v2922_v1 = vpop.permute.xlu0 %2921 }
0x480d   :  { %v2924_v24 = vpop.permute.xlu1 %2923 }
0x480e   :  { %v2925_v29 = vsel %vm179_vm1, %v2922_v1, %v2924_v24 }
0x480f   :  { %v2927_v21 = vmul.f32 %v7953_v28, %v2925_v29 }
0x4811   :  { %2929 = vrot.lane.b32.xlu0 %v2927_v21, %s8121_s29 }
0x4883   :  { %v2930_v17 = vpop.permute.xlu0 %2929 }
0x4884   :  { %v2932_v2 = vadd.f32 %v2930_v17, %v2918_v26 }
0x4886   :  { %7954 = vtanh.f32 %v2932_v2 }
0x4887   :  { %7956 = vpow2.f32 %v6884_v9 }
0x4893   :  { %v7955_v19 = vpop.eup %7954 }
0x4894   :  { %2935 = vrot.lane.b32.xlu1 %v7955_v19, %s8122_s30  ;;  %v7957_v36 = vpop.eup %7956 }
0x4895   :  { %v2911_v23 = vadd.f32 1.0, %v7957_v36 }
0x4897   :  { %7958 = vrcp.f32 %v2911_v23 }
0x48a4   :  { %v7959_v48 = vpop.eup %7958 }
0x4906   :  { %v2936_v51 = vpop.permute.xlu1 %2935 }
0x4907   :  { %v9031_v53 = vmul.f32 %v7959_v48, %v2936_v51 }
0x4909   :  { %v2946_v50 = vpack.c.bf16 %v9031_v53, %v9031_v53 }
0x490b   :  { %2950 = vrot.lane.b32.xlu0 %v2946_v50, %s8124_s11 }
0x497d   :  { %v2951_v30 = vpop.permute.xlu0 %2950 }
0x497e   :  { %6888 = vmatmul.mubr.msk.bf16.vlgmr.msra.gmra.mxu1 %vm104_vm3, %v2951_v30 }
0x497f   :  { %3185 = vmatpush1.bf16.msra.mxu1 %v8197_v3  ;;  %3208 = vmatprep.mubr.bf16.mxu1 %v8119_v4 }
0x4980   :  { %3186 = vmatprep.subr.bf16.mxu1 %v8799_v38 }
0x4983   :  { %3187 = vmatpush1.bf16.msra.mxu1 %v8805_v39 }
0x4984   :  { %3188 = vmatprep.subr.bf16.mxu1 %v8811_v40 }
0x4987   :  { %3189 = vmatpush1.bf16.msra.mxu1 %v8817_v41 }
0x4988   :  { %3190 = vmatprep.subr.bf16.mxu1 %v8823_v43 }
0x498b   :  { %3191 = vmatpush1.bf16.msra.mxu1 %v8829_v44 }
0x498c   :  { %6911 = vmatprep.subr.msk.bf16.mxu1 %vm108_vm0, %v8835_v45 }
0x4a3e   :  { %v3000_v10 = vpop.f32.mrf.mxu1 }
0x4a3f   :  { %v3001_v57 = vadd.f32 %v6886_v55, %v3000_v10 }
0x4a40   :  { %v3002_v14 = vpop.f32.mrf.mxu1 }
0x4a41   :  { %v3007_v58 = vadd.f32 %v3001_v57, %v8261_v16  ;;  %v3003_v59 = vadd.f32 %v3002_v14, %v2960_v56 }
0x4a42   :  { %v3004_v11 = vpop.f32.mrf.mxu1 }
0x4a43   :  { %7960 = vtanh.f32 %v3007_v58  ;;  %v3008_v60 = vadd.f32 %v3003_v59, %v8263_v20  ;;  %v6889_v24 = vmul.f32 -1.442695, %v3007_v58  ;;  %v6892_v58 = vld.sshfl [vmem:[%s9942_s0 + $0x70] sm:$0x33 pattern:$0x76325410] }
0x4a44   :  { %v3005_v62 = vpop.f32.mrf.mxu1  ;;  %v3065_v59 = vcombine.high %v6892_v58, %v6892_v58 }
0x4a45   :  { %7962 = vtanh.f32 %v3008_v60  ;;  %v6890_v50 = vmul.f32 -1.442695, %v3008_v60 }
0x4a46   :  { %7964 = vpow2.f32 %v6889_v24 }
0x4a50   :  { %v7961_v63 = vpop.eup %7960 }
0x4a51   :  { %3026 = vrot.lane.b32.xlu1 %v7961_v63, %s8120_s2 }
0x4a52   :  { %v7963_v1 = vpop.eup %7962 }
0x4a53   :  { %3028 = vrot.lane.b32.xlu0 %v7963_v1, %s8120_s2  ;;  %v7965_v28 = vpop.eup %7964 }
0x4a54   :  { %v3015_v29 = vadd.f32 1.0, %v7965_v28 }
0x4a56   :  { %7966 = vrcp.f32 %v3015_v29 }
0x4a63   :  { %v7967_v17 = vpop.eup %7966 }
0x4a64   :  { %v3023_v36 = vmul.f32 %v7967_v17, %v2932_v2 }
0x4ac3   :  { %v3027_v21 = vpop.permute.xlu1 %3026 }
0x4ac5   :  { %v3029_v26 = vpop.permute.xlu0 %3028 }
0x4ac6   :  { %v3030_v19 = vsel %vm179_vm1, %v3027_v21, %v3029_v26 }
0x4ac7   :  { %v3032_v9 = vmul.f32 %v7967_v17, %v3030_v19 }
0x4ac9   :  { %3034 = vrot.lane.b32.xlu1 %v3032_v9, %s8121_s29 }
0x4b3b   :  { %v3035_v23 = vpop.permute.xlu1 %3034 }
0x4b3c   :  { %v3037_v48 = vadd.f32 %v3035_v23, %v3023_v36 }
0x4b3e   :  { %7968 = vtanh.f32 %v3037_v48 }
0x4b3f   :  { %7970 = vpow2.f32 %v6890_v50 }
0x4b4b   :  { %v7969_v51 = vpop.eup %7968 }
0x4b4c   :  { %3040 = vrot.lane.b32.xlu0 %v7969_v51, %s8122_s30  ;;  %v7971_v30 = vpop.eup %7970 }
0x4b4d   :  { %v3016_v55 = vadd.f32 1.0, %v7971_v30 }
0x4b4f   :  { %7972 = vrcp.f32 %v3016_v55 }
0x4b5c   :  { %v7973_v56 = vpop.eup %7972 }
0x4bbe   :  { %v3041_v10 = vpop.permute.xlu0 %3040 }
0x4bbf   :  { %v9057_v57 = vmul.f32 %v7973_v56, %v3041_v10 }
0x4bc1   :  { %v3051_v14 = vpack.c.bf16 %v9057_v57, %v9057_v57 }
0x4bc3   :  { %3055 = vrot.lane.b32.xlu1 %v3051_v14, %s8124_s11 }
0x4c35   :  { %v3056_v2 = vpop.permute.xlu1 %3055 }
0x4c36   :  { %6894 = vmatmul.mubr.msk.bf16.vlgmr.msra.gmra.mxu0 %vm104_vm3, %v3056_v2  ;;  %v9094_v2 = vld [vmem:[%s9943_s1 + $0x24] ss:$8 sps:$4 sm:$0xff]  }
0x4c37   :  { %3290 = vmatpush1.bf16.msra.mxu0 %v8197_v3  ;;  %3313 = vmatprep.mubr.bf16.mxu0 %v8119_v4 }
0x4c38   :  { %3291 = vmatprep.subr.bf16.mxu0 %v8799_v38 }
0x4c3b   :  { %3292 = vmatpush1.bf16.msra.mxu0 %v8805_v39 }
0x4c3c   :  { %3293 = vmatprep.subr.bf16.mxu0 %v8811_v40 }
0x4c3f   :  { %3294 = vmatpush1.bf16.msra.mxu0 %v8817_v41 }
0x4c40   :  { %3295 = vmatprep.subr.bf16.mxu0 %v8823_v43 }
0x4c43   :  { %3296 = vmatpush1.bf16.msra.mxu0 %v8829_v44 }
0x4c44   :  { %6917 = vmatprep.subr.msk.bf16.mxu0 %vm108_vm0, %v8835_v45 }
0x4cf6   :  { %v3105_v11 = vpop.f32.mrf.mxu0 }
0x4cf7   :  { %v3106_v38 = vadd.f32 %v6892_v58, %v3105_v11  ;;  %v9100_v58 = vld [vmem:[%s9943_s1 + $0x20] ss:$8 sps:$4 sm:$0xff]   ;;  %v9112_v11 = vld [vmem:[%s9943_s1 + $0x10] ss:$8 sps:$4 sm:$0xff]  }
0x4cf8   :  { %v3107_v60 = vpop.f32.mrf.mxu0 }
0x4cf9   :  { %v3112_v39 = vadd.f32 %v3106_v38, %v8261_v16  ;;  %v3108_v40 = vadd.f32 %v3107_v60, %v3065_v59  ;;  %v9106_v59 = vld [vmem:[%s9943_s1 + $0x14] ss:$8 sps:$4 sm:$0xff]   ;;  %v9118_v38 = vld [vmem:[%s9943_s1 + $0x4] ss:$8 sps:$4 sm:$0xff]   ;;  %v9124_v60 = vld [vmem:[%s9943_s1] ss:$8 sps:$4 sm:$0xff]  }
0x4cfa   :  { %v3109_v62 = vpop.f32.mrf.mxu0 }
0x4cfb   :  { %7974 = vtanh.f32 %v3112_v39  ;;  %v3113_v41 = vadd.f32 %v3108_v40, %v8263_v20  ;;  %v6895_v63 = vmul.f32 -1.442695, %v3112_v39  ;;  %v8096_v39 = vld [vmem:[%s9943_s1 + $0x34] ss:$8 sps:$4 sm:$0x3f]  }
0x4cfc   :  { %v3110_v43 = vpop.f32.mrf.mxu0  ;;  %v6898_v40 = vld.sshfl [vmem:[%s9942_s0 + $0x74] sm:$0x33 pattern:$0x76325410] }
0x4cfd   :  { %7976 = vtanh.f32 %v3113_v41  ;;  %v6896_v51 = vmul.f32 -1.442695, %v3113_v41  ;;  %v3170_v62 = vcombine.high %v6898_v40, %v6898_v40 }
0x4cfe   :  { %7978 = vpow2.f32 %v6895_v63 }
0x4d08   :  { %v7975_v44 = vpop.eup %7974 }
0x4d09   :  { %3131 = vrot.lane.b32.xlu0 %v7975_v44, %s8120_s2 }
0x4d0a   :  { %v7977_v45 = vpop.eup %7976 }
0x4d0b   :  { %3133 = vrot.lane.b32.xlu1 %v7977_v45, %s8120_s2  ;;  %v7979_v1 = vpop.eup %7978 }
0x4d0c   :  { %v3120_v24 = vadd.f32 1.0, %v7979_v1 }
0x4d0e   :  { %7980 = vrcp.f32 %v3120_v24 }
0x4d1b   :  { %v7981_v21 = vpop.eup %7980 }
0x4d1c   :  { %v3128_v19 = vmul.f32 %v7981_v21, %v3037_v48 }
0x4d7b   :  { %v3132_v28 = vpop.permute.xlu0 %3131 }
0x4d7d   :  { %v3134_v29 = vpop.permute.xlu1 %3133 }
0x4d7e   :  { %v3135_v26 = vsel %vm179_vm1, %v3132_v28, %v3134_v29 }
0x4d7f   :  { %v3137_v17 = vmul.f32 %v7981_v21, %v3135_v26 }
0x4d81   :  { %3139 = vrot.lane.b32.xlu0 %v3137_v17, %s8121_s29 }
0x4df3   :  { %v3140_v9 = vpop.permute.xlu0 %3139 }
0x4df4   :  { %v3142_v36 = vadd.f32 %v3140_v9, %v3128_v19 }
0x4df6   :  { %7982 = vtanh.f32 %v3142_v36 }
0x4df7   :  { %7984 = vpow2.f32 %v6896_v51 }
0x4e03   :  { %v7983_v23 = vpop.eup %7982 }
0x4e04   :  { %3145 = vrot.lane.b32.xlu1 %v7983_v23, %s8122_s30  ;;  %v7985_v50 = vpop.eup %7984 }
0x4e05   :  { %v3121_v30 = vadd.f32 1.0, %v7985_v50 }
0x4e07   :  { %7986 = vrcp.f32 %v3121_v30 }
0x4e14   :  { %v7987_v55 = vpop.eup %7986 }
0x4e76   :  { %v3146_v56 = vpop.permute.xlu1 %3145 }
0x4e77   :  { %v9083_v10 = vmul.f32 %v7987_v55, %v3146_v56 }
0x4e79   :  { %v3156_v14 = vpack.c.bf16 %v9083_v10, %v9083_v10 }
0x4e7b   :  { %3160 = vrot.lane.b32.xlu0 %v3156_v14, %s8124_s11 }
0x4eed   :  { %v3161_v48 = vpop.permute.xlu0 %3160 }
0x4eee   :  { %6900 = vmatmul.mubr.msk.bf16.vlgmr.msra.gmra.mxu1 %vm104_vm3, %v3161_v48 }
0x4eef   :  { %3395 = vmatpush1.bf16.msra.mxu1 %v8197_v3  ;;  %3418 = vmatprep.mubr.bf16.mxu1 %v8119_v4 }
0x4ef0   :  { %3396 = vmatprep.subr.bf16.mxu1 %v9094_v2 }
0x4ef3   :  { %3397 = vmatpush1.bf16.msra.mxu1 %v9100_v58 }
0x4ef4   :  { %3398 = vmatprep.subr.bf16.mxu1 %v9106_v59 }
0x4ef7   :  { %3399 = vmatpush1.bf16.msra.mxu1 %v9112_v11 }
0x4ef8   :  { %3400 = vmatprep.subr.bf16.mxu1 %v9118_v38 }
0x4efb   :  { %3401 = vmatpush1.bf16.msra.mxu1 %v9124_v60 }
0x4efc   :  { %6923 = vmatprep.subr.msk.bf16.mxu1 %vm108_vm0, %v8096_v39 }
0x4fae   :  { %v3210_v41 = vpop.f32.mrf.mxu1 }
0x4faf   :  { %v3211_v43 = vadd.f32 %v6898_v40, %v3210_v41 }
0x4fb0   :  { %v3212_v44 = vpop.f32.mrf.mxu1 }
0x4fb1   :  { %v3217_v45 = vadd.f32 %v3211_v43, %v8261_v16  ;;  %v3213_v63 = vadd.f32 %v3212_v44, %v3170_v62 }
0x4fb2   :  { %v3214_v1 = vpop.f32.mrf.mxu1 }
0x4fb3   :  { %7988 = vtanh.f32 %v3217_v45  ;;  %v3218_v24 = vadd.f32 %v3213_v63, %v8263_v20  ;;  %v6901_v26 = vmul.f32 -1.442695, %v3217_v45  ;;  %v6904_v1 = vld.sshfl [vmem:[%s9942_s0 + $0x78] sm:$0x33 pattern:$0x76325410] }
0x4fb4   :  { %v3215_v28 = vpop.f32.mrf.mxu1 }
0x4fb5   :  { %7990 = vtanh.f32 %v3218_v24  ;;  %v6902_v40 = vmul.f32 -1.442695, %v3218_v24  ;;  %v3275_v24 = vcombine.high %v6904_v1, %v6904_v1 }
0x4fb6   :  { %7992 = vpow2.f32 %v6901_v26 }
0x4fc0   :  { %v7989_v29 = vpop.eup %7988 }
0x4fc1   :  { %3236 = vrot.lane.b32.xlu1 %v7989_v29, %s8120_s2 }
0x4fc2   :  { %v7991_v21 = vpop.eup %7990 }
0x4fc3   :  { %3238 = vrot.lane.b32.xlu0 %v7991_v21, %s8120_s2  ;;  %v7993_v17 = vpop.eup %7992 }
0x4fc4   :  { %v3225_v19 = vadd.f32 1.0, %v7993_v17 }
0x4fc6   :  { %7994 = vrcp.f32 %v3225_v19 }
0x4fd3   :  { %v7995_v51 = vpop.eup %7994 }
0x4fd4   :  { %v3233_v55 = vmul.f32 %v7995_v51, %v3142_v36 }
0x5033   :  { %v3237_v9 = vpop.permute.xlu1 %3236 }
0x5035   :  { %v3239_v23 = vpop.permute.xlu0 %3238 }
0x5036   :  { %v3240_v50 = vsel %vm179_vm1, %v3237_v9, %v3239_v23 }
0x5037   :  { %v3242_v30 = vmul.f32 %v7995_v51, %v3240_v50 }
0x5039   :  { %3244 = vrot.lane.b32.xlu1 %v3242_v30, %s8121_s29 }
0x50ab   :  { %v3245_v56 = vpop.permute.xlu1 %3244 }
0x50ac   :  { %v3247_v14 = vadd.f32 %v3245_v56, %v3233_v55 }
0x50ae   :  { %7996 = vtanh.f32 %v3247_v14 }
0x50af   :  { %7998 = vpow2.f32 %v6902_v40 }
0x50bb   :  { %v7997_v48 = vpop.eup %7996 }
0x50bc   :  { %3250 = vrot.lane.b32.xlu0 %v7997_v48, %s8122_s30  ;;  %v7999_v62 = vpop.eup %7998 }
0x50bd   :  { %v3226_v41 = vadd.f32 1.0, %v7999_v62 }
0x50bf   :  { %8000 = vrcp.f32 %v3226_v41 }
0x50cc   :  { %v8001_v43 = vpop.eup %8000 }
0x512e   :  { %v3251_v44 = vpop.permute.xlu0 %3250 }
0x512f   :  { %v9141_v45 = vmul.f32 %v8001_v43, %v3251_v44 }
0x5131   :  { %v3261_v63 = vpack.c.bf16 %v9141_v45, %v9141_v45 }
0x5133   :  { %3265 = vrot.lane.b32.xlu1 %v3261_v63, %s8124_s11 }
0x51a5   :  { %v3266_v36 = vpop.permute.xlu1 %3265 }
0x51a6   :  { %6906 = vmatmul.mubr.msk.bf16.vlgmr.msra.gmra.mxu0 %vm104_vm3, %v3266_v36 }
0x51a7   :  { %3500 = vmatpush1.bf16.msra.mxu0 %v8197_v3  ;;  %3523 = vmatprep.mubr.bf16.mxu0 %v8119_v4 }
0x51a8   :  { %3501 = vmatprep.subr.bf16.mxu0 %v9094_v2 }
0x51ab   :  { %3502 = vmatpush1.bf16.msra.mxu0 %v9100_v58 }
0x51ac   :  { %3503 = vmatprep.subr.bf16.mxu0 %v9106_v59 }
0x51af   :  { %3504 = vmatpush1.bf16.msra.mxu0 %v9112_v11 }
0x51b0   :  { %3505 = vmatprep.subr.bf16.mxu0 %v9118_v38 }
0x51b3   :  { %3506 = vmatpush1.bf16.msra.mxu0 %v9124_v60 }
0x51b4   :  { %6929 = vmatprep.subr.msk.bf16.mxu0 %vm108_vm0, %v8096_v39 }
0x5266   :  { %v3315_v28 = vpop.f32.mrf.mxu0 }
0x5267   :  { %v3316_v29 = vadd.f32 %v6904_v1, %v3315_v28 }
0x5268   :  { %v3317_v21 = vpop.f32.mrf.mxu0 }
0x5269   :  { %v3322_v26 = vadd.f32 %v3316_v29, %v8261_v16  ;;  %v3318_v17 = vadd.f32 %v3317_v21, %v3275_v24 }
0x526a   :  { %v3319_v19 = vpop.f32.mrf.mxu0 }
0x526b   :  { %8002 = vtanh.f32 %v3322_v26  ;;  %v3323_v9 = vadd.f32 %v3318_v17, %v8263_v20  ;;  %v6907_v50 = vmul.f32 -1.442695, %v3322_v26  ;;  %v6910_v19 = vld.sshfl [vmem:[%s9942_s0 + $0x7c] sm:$0x33 pattern:$0x76325410] }
0x526c   :  { %v3320_v23 = vpop.f32.mrf.mxu0 }
0x526d   :  { %8004 = vtanh.f32 %v3323_v9  ;;  %v6908_v1 = vmul.f32 -1.442695, %v3323_v9  ;;  %v3380_v9 = vcombine.high %v6910_v19, %v6910_v19 }
0x526e   :  { %8006 = vpow2.f32 %v6907_v50 }
0x5278   :  { %v8003_v51 = vpop.eup %8002 }
0x5279   :  { %3341 = vrot.lane.b32.xlu0 %v8003_v51, %s8120_s2 }
0x527a   :  { %v8005_v39 = vpop.eup %8004 }
0x527b   :  { %3343 = vrot.lane.b32.xlu1 %v8005_v39, %s8120_s2  ;;  %v8007_v30 = vpop.eup %8006 }
0x527c   :  { %v3330_v55 = vadd.f32 1.0, %v8007_v30 }
0x527e   :  { %8008 = vrcp.f32 %v3330_v55 }
0x528b   :  { %v8009_v40 = vpop.eup %8008 }
0x528c   :  { %v3338_v43 = vmul.f32 %v8009_v40, %v3247_v14 }
0x52eb   :  { %v3342_v56 = vpop.permute.xlu0 %3341 }
0x52ed   :  { %v3344_v48 = vpop.permute.xlu1 %3343 }
0x52ee   :  { %v3345_v62 = vsel %vm179_vm1, %v3342_v56, %v3344_v48 }
0x52ef   :  { %v3347_v41 = vmul.f32 %v8009_v40, %v3345_v62 }
0x52f1   :  { %3349 = vrot.lane.b32.xlu0 %v3347_v41, %s8121_s29 }
0x5363   :  { %v3350_v44 = vpop.permute.xlu0 %3349 }
0x5364   :  { %v3352_v63 = vadd.f32 %v3350_v44, %v3338_v43 }
0x5366   :  { %8010 = vtanh.f32 %v3352_v63 }
0x5367   :  { %8012 = vpow2.f32 %v6908_v1 }
0x5373   :  { %v8011_v36 = vpop.eup %8010 }
0x5374   :  { %3355 = vrot.lane.b32.xlu1 %v8011_v36, %s8122_s30  ;;  %v8013_v24 = vpop.eup %8012 }
0x5375   :  { %v3331_v28 = vadd.f32 1.0, %v8013_v24 }
0x5377   :  { %8014 = vrcp.f32 %v3331_v28 }
0x5384   :  { %v8015_v29 = vpop.eup %8014 }
0x53e6   :  { %v3356_v21 = vpop.permute.xlu1 %3355 }
0x53e7   :  { %v9166_v26 = vmul.f32 %v8015_v29, %v3356_v21 }
0x53e9   :  { %v3366_v17 = vpack.c.bf16 %v9166_v26, %v9166_v26 }
0x53eb   :  { %3370 = vrot.lane.b32.xlu0 %v3366_v17, %s8124_s11 }
0x545d   :  { %v3371_v14 = vpop.permute.xlu0 %3370 }
0x545e   :  { %6912 = vmatmul.mubr.msk.bf16.vlgmr.msra.gmra.mxu1 %vm104_vm3, %v3371_v14 }
0x545f   :  { %3605 = vmatpush1.bf16.msra.mxu1 %v8197_v3  ;;  %3628 = vmatprep.mubr.bf16.mxu1 %v8119_v4 }
0x5460   :  { %3606 = vmatprep.subr.bf16.mxu1 %v9094_v2 }
0x5463   :  { %3607 = vmatpush1.bf16.msra.mxu1 %v9100_v58 }
0x5464   :  { %3608 = vmatprep.subr.bf16.mxu1 %v9106_v59 }
0x5467   :  { %3609 = vmatpush1.bf16.msra.mxu1 %v9112_v11 }
0x5468   :  { %3610 = vmatprep.subr.bf16.mxu1 %v9118_v38 }
0x546b   :  { %3611 = vmatpush1.bf16.msra.mxu1 %v9124_v60 }
0x551e   :  { %v3420_v23 = vpop.f32.mrf.mxu1 }
0x551f   :  { %v3421_v51 = vadd.f32 %v6910_v19, %v3420_v23 }
0x5520   :  { %v3422_v39 = vpop.f32.mrf.mxu1 }
0x5521   :  { %v3427_v50 = vadd.f32 %v3421_v51, %v8261_v16  ;;  %v3423_v30 = vadd.f32 %v3422_v39, %v3380_v9 }
0x5522   :  { %v3424_v55 = vpop.f32.mrf.mxu1 }
0x5523   :  { %8016 = vtanh.f32 %v3427_v50  ;;  %v3428_v56 = vadd.f32 %v3423_v30, %v8263_v20  ;;  %v6913_v41 = vmul.f32 -1.442695, %v3427_v50 }
0x5524   :  { %v3425_v48 = vpop.f32.mrf.mxu1 }
0x5525   :  { %8018 = vtanh.f32 %v3428_v56  ;;  %v6914_v9 = vmul.f32 -1.442695, %v3428_v56  ;;  %v6916_v56 = vld.sshfl [vmem:[%s9942_s0 + $0x80] sm:$0x33 pattern:$0x76325410] }
0x5526   :  { %8020 = vpow2.f32 %v6913_v41  ;;  %v3485_v48 = vcombine.high %v6916_v56, %v6916_v56 }
0x5530   :  { %v8017_v40 = vpop.eup %8016 }
0x5531   :  { %3446 = vrot.lane.b32.xlu1 %v8017_v40, %s8120_s2 }
0x5532   :  { %v8019_v62 = vpop.eup %8018 }
0x5533   :  { %3448 = vrot.lane.b32.xlu0 %v8019_v62, %s8120_s2  ;;  %v8021_v43 = vpop.eup %8020 }
0x5534   :  { %v3435_v44 = vadd.f32 1.0, %v8021_v43 }
0x5536   :  { %8022 = vrcp.f32 %v3435_v44 }
0x5543   :  { %v8023_v24 = vpop.eup %8022 }
0x5544   :  { %v3443_v21 = vmul.f32 %v8023_v24, %v3352_v63 }
0x55a3   :  { %v3447_v36 = vpop.permute.xlu1 %3446 }
0x55a5   :  { %v3449_v1 = vpop.permute.xlu0 %3448 }
0x55a6   :  { %v3450_v28 = vsel %vm179_vm1, %v3447_v36, %v3449_v1 }
0x55a7   :  { %v3452_v29 = vmul.f32 %v8023_v24, %v3450_v28 }
0x55a9   :  { %3454 = vrot.lane.b32.xlu1 %v3452_v29, %s8121_s29 }
0x561b   :  { %v3455_v17 = vpop.permute.xlu1 %3454 }
0x561c   :  { %v3457_v14 = vadd.f32 %v3455_v17, %v3443_v21 }
0x561e   :  { %8024 = vtanh.f32 %v3457_v14 }
0x561f   :  { %8026 = vpow2.f32 %v6914_v9 }
0x562b   :  { %v8025_v19 = vpop.eup %8024 }
0x562c   :  { %3460 = vrot.lane.b32.xlu0 %v8025_v19, %s8122_s30  ;;  %v8027_v23 = vpop.eup %8026 }
0x562d   :  { %v3436_v51 = vadd.f32 1.0, %v8027_v23 }
0x562f   :  { %8028 = vrcp.f32 %v3436_v51 }
0x563c   :  { %v8029_v39 = vpop.eup %8028 }
0x569e   :  { %v3461_v50 = vpop.permute.xlu0 %3460 }
0x569f   :  { %v9190_v30 = vmul.f32 %v8029_v39, %v3461_v50 }
0x56a1   :  { %v3471_v55 = vpack.c.bf16 %v9190_v30, %v9190_v30 }
0x56a3   :  { %3475 = vrot.lane.b32.xlu1 %v3471_v55, %s8124_s11 }
0x5715   :  { %v3476_v63 = vpop.permute.xlu1 %3475 }
0x5716   :  { %6918 = vmatmul.mubr.msk.bf16.vlgmr.msra.gmra.mxu0 %vm104_vm3, %v3476_v63 }
0x5717   :  { %3728 = vmatpush1.bf16.msra.mxu0 %v8197_v3  ;;  %3751 = vmatprep.mubr.bf16.mxu0 %v8119_v4 }
0x5718   :  { %3729 = vmatprep.subr.bf16.mxu0 %v9094_v2 }
0x571b   :  { %3730 = vmatpush1.bf16.msra.mxu0 %v9100_v58 }
0x571c   :  { %3731 = vmatprep.subr.bf16.mxu0 %v9106_v59 }
0x571f   :  { %3732 = vmatpush1.bf16.msra.mxu0 %v9112_v11 }
0x5720   :  { %3733 = vmatprep.subr.bf16.mxu0 %v9118_v38 }
0x5723   :  { %3734 = vmatpush1.bf16.msra.mxu0 %v9124_v60 }
0x57d6   :  { %v3525_v3 = vpop.f32.mrf.mxu0 }
0x57d7   :  { %v3526_v40 = vadd.f32 %v6916_v56, %v3525_v3 }
0x57d8   :  { %v3527_v4 = vpop.f32.mrf.mxu0 }
0x57d9   :  { %v3532_v2 = vadd.f32 %v3526_v40, %v8261_v16  ;;  %v3528_v62 = vadd.f32 %v3527_v4, %v3485_v48  ;;  %v6922_v48 = vld.sshfl [vmem:[%s9942_s0 + $0x84] sm:$0x33 pattern:$0x76325410] }
0x57da   :  { %v3529_v58 = vpop.f32.mrf.mxu0  ;;  %v3590_v3 = vcombine.high %v6922_v48, %v6922_v48 }
0x57db   :  { %8030 = vtanh.f32 %v3532_v2  ;;  %v3533_v59 = vadd.f32 %v3528_v62, %v8263_v20  ;;  %v6919_v41 = vmul.f32 -1.442695, %v3532_v2 }
0x57dc   :  { %v3530_v11 = vpop.f32.mrf.mxu0 }
0x57dd   :  { %8032 = vtanh.f32 %v3533_v59  ;;  %v6920_v23 = vmul.f32 -1.442695, %v3533_v59 }
0x57de   :  { %8034 = vpow2.f32 %v6919_v41 }
0x57e8   :  { %v8031_v38 = vpop.eup %8030 }
0x57e9   :  { %3551 = vrot.lane.b32.xlu0 %v8031_v38, %s8120_s2 }
0x57ea   :  { %v8033_v60 = vpop.eup %8032 }
0x57eb   :  { %3553 = vrot.lane.b32.xlu1 %v8033_v60, %s8120_s2  ;;  %v8035_v43 = vpop.eup %8034 }
0x57ec   :  { %v3540_v44 = vadd.f32 1.0, %v8035_v43 }
0x57ee   :  { %8036 = vrcp.f32 %v3540_v44 }
0x57fb   :  { %v8037_v24 = vpop.eup %8036 }
0x57fc   :  { %v3548_v21 = vmul.f32 %v8037_v24, %v3457_v14 }
0x585b   :  { %v3552_v36 = vpop.permute.xlu0 %3551 }
0x585d   :  { %v3554_v1 = vpop.permute.xlu1 %3553 }
0x585e   :  { %v3555_v28 = vsel %vm179_vm1, %v3552_v36, %v3554_v1 }
0x585f   :  { %v3557_v29 = vmul.f32 %v8037_v24, %v3555_v28 }
0x5861   :  { %3559 = vrot.lane.b32.xlu0 %v3557_v29, %s8121_s29 }
0x58d3   :  { %v3560_v17 = vpop.permute.xlu0 %3559 }
0x58d4   :  { %v3562_v19 = vadd.f32 %v3560_v17, %v3548_v21 }
0x58d6   :  { %8038 = vtanh.f32 %v3562_v19 }
0x58d7   :  { %8040 = vpow2.f32 %v6920_v23 }
0x58e3   :  { %v8039_v9 = vpop.eup %8038 }
0x58e4   :  { %3565 = vrot.lane.b32.xlu1 %v8039_v9, %s8122_s30  ;;  %v8041_v51 = vpop.eup %8040 }
0x58e5   :  { %v3541_v39 = vadd.f32 1.0, %v8041_v51 }
0x58e7   :  { %8042 = vrcp.f32 %v3541_v39 }
0x58f4   :  { %v8043_v50 = vpop.eup %8042 }
0x5956   :  { %v3566_v55 = vpop.permute.xlu1 %3565 }
0x5957   :  { %v9214_v63 = vmul.f32 %v8043_v50, %v3566_v55 }
0x5959   :  { %v3576_v56 = vpack.c.bf16 %v9214_v63, %v9214_v63 }
0x595b   :  { %3580 = vrot.lane.b32.xlu0 %v3576_v56, %s8124_s11 }
0x59cd   :  { %v3581_v14 = vpop.permute.xlu0 %3580 }
0x59ce   :  { %6924 = vmatmul.mubr.msk.bf16.vlgmr.msra.gmra.mxu1 %vm104_vm3, %v3581_v14 }
0x5a8e   :  { %v3630_v40 = vpop.f32.mrf.mxu1 }
0x5a8f   :  { %v3631_v4 = vadd.f32 %v6922_v48, %v3630_v40 }
0x5a90   :  { %v3632_v2 = vpop.f32.mrf.mxu1 }
0x5a91   :  { %v3637_v62 = vadd.f32 %v3631_v4, %v8261_v16  ;;  %v3633_v58 = vadd.f32 %v3632_v2, %v3590_v3 }
0x5a92   :  { %v3634_v59 = vpop.f32.mrf.mxu1 }
0x5a93   :  { %8044 = vtanh.f32 %v3637_v62  ;;  %v3638_v11 = vadd.f32 %v3633_v58, %v8263_v20  ;;  %v6925_v43 = vmul.f32 -1.442695, %v3637_v62 }
0x5a94   :  { %v3635_v38 = vpop.f32.mrf.mxu1 }
0x5a95   :  { %8046 = vtanh.f32 %v3638_v11  ;;  %v6926_v39 = vmul.f32 -1.442695, %v3638_v11 }
0x5a96   :  { %8048 = vpow2.f32 %v6925_v43 }
0x5aa0   :  { %v8045_v60 = vpop.eup %8044 }
0x5aa1   :  { %3656 = vrot.lane.b32.xlu1 %v8045_v60, %s8120_s2 }
0x5aa2   :  { %v8047_v41 = vpop.eup %8046 }
0x5aa3   :  { %3658 = vrot.lane.b32.xlu0 %v8047_v41, %s8120_s2  ;;  %v8049_v44 = vpop.eup %8048 }
0x5aa4   :  { %v3645_v36 = vadd.f32 1.0, %v8049_v44 }
0x5aa6   :  { %8050 = vrcp.f32 %v3645_v36 }
0x5ab3   :  { %v8051_v28 = vpop.eup %8050 }
0x5ab4   :  { %v3653_v17 = vmul.f32 %v8051_v28, %v3562_v19 }
0x5b13   :  { %v3657_v1 = vpop.permute.xlu1 %3656 }
0x5b15   :  { %v3659_v24 = vpop.permute.xlu0 %3658 }
0x5b16   :  { %v3660_v29 = vsel %vm179_vm1, %v3657_v1, %v3659_v24  ;;  %v6935_v24 = vld [vmem:[%s9945_s3 + $0x28] sm:$0xf] }
0x5b17   :  { %v3662_v21 = vmul.f32 %v8051_v28, %v3660_v29  ;;  %v8125_v28 = vmov 0.0  }
0x5b18   :  { %7240 = vmatprep.subr.mxu1 %v8125_v28  ;;  %7267 = vmatprep.subr.mxu0 %v8125_v28 }
0x5b19   :  { %3664 = vrot.lane.b32.xlu1 %v3662_v21, %s8121_s29  ;;  %7241 = vmatpush3.msk.msra.mxu1 %vm3821_vm8, %v6935_v24  ;;  %v6933_v21 = vld [vmem:[%s9945_s3 + $0x18] sm:$0xff] }
0x5b1a   :  { %7242 = vmatprep.subr.mxu1 %v8125_v28  ;;  %7246 = vmatprep.mubr.msk.f32.mxu1 %vm8126_vm9, %v8125_v28 }
0x5b8b   :  { %v3665_v9 = vpop.permute.xlu1 %3664 }
0x5b8c   :  { %v3667_v23 = vadd.f32 %v3665_v9, %v3653_v17 }
0x5b8e   :  { %8052 = vtanh.f32 %v3667_v23 }
0x5b8f   :  { %8054 = vpow2.f32 %v6926_v39  ;;  %v629_v39 = vmax.f32 %v8389_v27, 0.0  ;;  %v1574_v27 = vmax.f32 %v8658_v35, 0.0  ;;  %v2624_v35 = vmax.f32 %v8953_v18, 0.0 }
0x5b9b   :  { %v8053_v51 = vpop.eup %8052 }
0x5b9c   :  { %3670 = vrot.lane.b32.xlu0 %v8053_v51, %s8122_s30  ;;  %v8055_v50 = vpop.eup %8054  ;;  %v524_v51 = vmax.f32 %v8363_v46, 0.0  ;;  %v1469_v46 = vmax.f32 %v8632_v49, 0.0  ;;  %v2414_v49 = vmax.f32 %v8901_v5, 0.0  ;;  %v3464_v5 = vmax.f32 %v9190_v30, 0.0 }
0x5b9d   :  { %v3646_v55 = vadd.f32 1.0, %v8055_v50  ;;  %v839_v50 = vmax.f32 %v8441_v42, 0.0  ;;  %v1784_v42 = vmax.f32 %v8710_v22, 0.0  ;;  %v2834_v22 = vmax.f32 %v9005_v34, 0.0 }
0x5b9f   :  { %8056 = vrcp.f32 %v3646_v55  ;;  %v1049_v55 = vmax.f32 %v8493_v54, 0.0  ;;  %v1994_v54 = vmax.f32 %v8762_v52, 0.0  ;;  %v3044_v52 = vmax.f32 %v9057_v57, 0.0 }
0x5ba0   :  { %3694 = vrot.lane.b32.xlu0 %v3667_v23, %s8123_s10 }
0x5bac   :  { %v8057_v56 = vpop.eup %8056 }
0x5c0e   :  { %v3671_v14 = vpop.permute.xlu0 %3670 }
0x5c0f   :  { %v9231_v48 = vmul.f32 %v8057_v56, %v3671_v14  ;;  %v1259_v56 = vmax.f32 %v8580_v31, 0.0  ;;  %v2204_v31 = vmax.f32 %v8849_v7, 0.0  ;;  %v3254_v7 = vmax.f32 %v9141_v45, 0.0  ;;  %v6947_v45 = vld [vmem:[%s9945_s3 + $0x58] sm:$0xf] }
0x5c11   :  { %v7565_v3 = vpack.i.bf16 %v9214_v63, %v9231_v48  ;;  %v3674_v18 = vmax.f32 %v9231_v48, 0.0 }
0x5c12   :  { %v3695_v9 = vpop.permute.xlu0 %3694 }
0x5c13   :  { %7566 = vrot.lane.b32.xlu1 %v7565_v3, %s8124_s11 }
0x5c17   :  { %3698 = vrot.lane.b32.xlu1 %v3562_v19, %s8123_s10  ;;  %v6928_v19 = vld.sshfl [vmem:[%s9942_s0 + $0x88] sm:$0x33 pattern:$0x76325410] }
0x5c18   :  { %v3713_v11 = vcombine.high %v6928_v19, %v6928_v19 }
0x5c85   :  { %v7567_v40 = vpop.permute.xlu1 %7566 }
0x5c86   :  { %v7569_v2 = vunpack.i.h.bf16 %v7567_v40  ;;  %v7568_v62 = vunpack.i.l.bf16 %v7567_v40 }
0x5c88   :  { %v3692_v58 = vsel %vm9239_vm7, %v7568_v62, %v7569_v2 }
0x5c89   :  { %v3702_v59 = vpack.c.bf16 %v3692_v58, %v3692_v58  ;;  %v3699_v29 = vpop.permute.xlu1 %3698  ;;  %v6946_v58 = vld [vmem:[%s9945_s3 + $0x50] sm:$0xff] }
0x5c8a   :  { %v3701_v23 = vsel %vm9239_vm7, %v3695_v9, %v3699_v29 }
0x5c8b   :  { %6930 = vmatmul.mubr.msk.bf16.vlgmr.msra.gmra.mxu0 %vm104_vm3, %v3702_v59 }
0x5c8c   :  { %7273 = vmatprep.mubr.msk.f32.mxu0 %vm8126_vm9, %v8125_v28  ;;  %7268 = vmatpush3.msk.msra.mxu0 %vm3821_vm8, %v6947_v45  ;;  %v6951_v45 = vld [vmem:[%s9945_s3 + $0x68] sm:$0xff] }
0x5c8d   :  { %7269 = vmatprep.subr.mxu0 %v8125_v28 }
0x5c8e   :  { %7270 = vmatpush3.msra.mxu0 %v6946_v58  ;;  %v6962_v58 = vld [vmem:[%s9945_s3 + $0xa0] sm:$0xf] }
0x5c8f   :  { %7271 = vmatprep.subr.mxu0 %v8125_v28 }
0x5d4b   :  { %v3753_v38 = vpop.f32.mrf.mxu0 }
0x5d4c   :  { %v3754_v47 = vadd.f32 %v6928_v19, %v3753_v38  ;;  %v6945_v19 = vld [vmem:[%s9945_s3 + $0x48] sm:$0xff] }
0x5d4d   :  { %v3755_v60 = vpop.f32.mrf.mxu0  ;;  %7272 = vmatpush3.msra.mxu0 %v6945_v19  ;;  %v6965_v19 = vld [vmem:[%s9945_s3 + $0xa8] sm:$0xff] }
0x5d4e   :  { %v9250_v41 = vadd.f32 %v3754_v47, %v8261_v16  ;;  %v3756_v43 = vadd.f32 %v3755_v60, %v3713_v11  ;;  %v419_v11 = vmax.f32 %v8337_v12, 0.0  ;;  %7285 = vmatprep.subr.mxu0 %v8125_v28  ;;  %v734_v47 = vmax.f32 %v8415_v61, 0.0  ;;  %v3811_v60 = vld [vmem:[%s9945_s3 + $0x10] sm:$0xf]  ;;  %v3810_v61 = vld [vmem:[%s9945_s3 + $0x8] sm:$0xff] }
0x5d4f   :  { %v3757_v44 = vpop.f32.mrf.mxu0 }
0x5d50   :  { %8058 = vtanh.f32 %v9250_v41  ;;  %v9254_v36 = vadd.f32 %v3756_v43, %v8263_v20  ;;  %v6934_v20 = vld [vmem:[%s9945_s3 + $0x20] sm:$0xff]  ;;  %v6931_v34 = vmul.f32 -1.442695, %v9250_v41  ;;  %v944_v43 = vmax.f32 %v8467_v25, 0.0 }
0x5d51   :  { %v3758_v1 = vpop.f32.mrf.mxu0  ;;  %7243 = vmatpush3.msra.mxu1 %v6934_v20  ;;  %v3809_v25 = vld [vmem:[%s9945_s3] sm:$0xff] }
0x5d52   :  { %8060 = vtanh.f32 %v9254_v36  ;;  %7244 = vmatprep.subr.mxu1 %v8125_v28  ;;  %v1154_v1 = vmax.f32 %v8554_v37, 0.0 }
0x5d53   :  { %7245 = vmatpush3.msra.mxu1 %v6933_v21  ;;  %8062 = vpow2.f32 %v6931_v34 }
0x5d54   :  { %7249 = vmatprep.subr.mxu1 %v8125_v28 }
0x5d5d   :  { %v8059_v16 = vpop.eup %8058 }
0x5d5e   :  { %3783 = vrot.lane.b32.xlu0 %v8059_v16, %s8120_s2  ;;  %v1364_v16 = vmax.f32 %v8606_v15, 0.0 }
0x5d5f   :  { %v8061_v17 = vpop.eup %8060 }
0x5d60   :  { %3785 = vrot.lane.b32.xlu1 %v8061_v17, %s8120_s2  ;;  %v8063_v14 = vpop.eup %8062 }
0x5d61   :  { %v3768_v3 = vadd.f32 1.0, %v8063_v14  ;;  %v6952_v14 = vld [vmem:[%s9945_s3 + $0x70] sm:$0xf] }
0x5d62   :  { %3777 = vrot.lane.b32.xlu0 %v3701_v23, %s8121_s29 }
0x5d63   :  { %8064 = vrcp.f32 %v3768_v3  ;;  %v6956_v3 = vld [vmem:[%s9945_s3 + $0x80] sm:$0xff] }
0x5d66   :  { %526 = vrot.lane.b32.xlu0 %v524_v51, %s8127_s22 }
0x5d6a   :  { %631 = vrot.lane.b32.xlu0 %v629_v39, %s8127_s22 }
0x5d6e   :  { %841 = vrot.lane.b32.xlu0 %v839_v50, %s8127_s22 }
0x5d70   :  { %v8065_v30 = vpop.eup %8064 }
0x5d72   :  { %1051 = vrot.lane.b32.xlu0 %v1049_v55, %s8127_s22 }
0x5d76   :  { %1261 = vrot.lane.b32.xlu0 %v1259_v56, %s8127_s22 }
0x5d7a   :  { %1471 = vrot.lane.b32.xlu0 %v1469_v46, %s8127_s22 }
0x5d7e   :  { %1576 = vrot.lane.b32.xlu0 %v1574_v27, %s8127_s22 }
0x5d82   :  { %1786 = vrot.lane.b32.xlu0 %v1784_v42, %s8127_s22 }
0x5d86   :  { %1996 = vrot.lane.b32.xlu0 %v1994_v54, %s8127_s22  ;;  %v6942_v54 = vld [vmem:[%s9945_s3 + $0x40] sm:$0xf] }
0x5d8a   :  { %2206 = vrot.lane.b32.xlu0 %v2204_v31, %s8127_s22 }
0x5d8e   :  { %2416 = vrot.lane.b32.xlu0 %v2414_v49, %s8127_s22 }
0x5d92   :  { %2626 = vrot.lane.b32.xlu0 %v2624_v35, %s8127_s22  ;;  %v6941_v35 = vld [vmem:[%s9945_s3 + $0x38] sm:$0xff] }
0x5d96   :  { %2836 = vrot.lane.b32.xlu0 %v2834_v22, %s8127_s22  ;;  %v6940_v22 = vld [vmem:[%s9945_s3 + $0x30] sm:$0xff] }
0x5d9a   :  { %3046 = vrot.lane.b32.xlu0 %v3044_v52, %s8127_s22 }
0x5d9e   :  { %3256 = vrot.lane.b32.xlu0 %v3254_v7, %s8127_s22 }
0x5da2   :  { %3466 = vrot.lane.b32.xlu0 %v3464_v5, %s8127_s22 }
0x5da6   :  { %3676 = vrot.lane.b32.xlu0 %v3674_v18, %s8127_s22  ;;  %v6957_v18 = vld [vmem:[%s9945_s3 + $0x88] sm:$0xf] }
0x5dd0   :  { %v3784_v57 = vpop.permute.xlu0 %3783 }
0x5dd2   :  { %v3786_v40 = vpop.permute.xlu1 %3785 }
0x5dd3   :  { %v3787_v4 = vsel %vm179_vm1, %v3784_v57, %v3786_v40  ;;  %v1679_v40 = vmax.f32 %v8684_v32, 0.0  ;;  %v6950_v32 = vld [vmem:[%s9945_s3 + $0x60] sm:$0xff] }
0x5dd4   :  { %v3778_v48 = vpop.permute.xlu0 %3777  ;;  %v3789_v2 = vmul.f32 %v8065_v30, %v3787_v4 }
0x5dd5   :  { %v9322_v62 = vmul.f32 %v8065_v30, %v3778_v48  ;;  %v6955_v30 = vld [vmem:[%s9945_s3 + $0x78] sm:$0xff] }
0x5dd6   :  { %3791 = vrot.lane.b32.xlu1 %v3789_v2, %s8121_s29  ;;  %v6967_v48 = vld [vmem:[%s9945_s3 + $0xb8] sm:$0xf]  ;;  %v1889_v2 = vmax.f32 %v8736_v13, 0.0 }
0x5dd7   :  { %v6961_v13 = vld [vmem:[%s9945_s3 + $0x98] sm:$0xff] }
0x5dd8   :  { %v527_v59 = vpop.permute.xlu0 %526 }
0x5dd9   :  { %530 = vst.msk [vmem:[#allocation2 + $0x2] sm:$0x3] %vm424_vm10, %v527_v59  ;;  %v6966_v59 = vld [vmem:[%s9945_s3 + $0xb0] sm:$0xff] }
0x5dda   :  { %421 = vrot.lane.b32.xlu1 %v419_v11, %s8127_s22  ;;  %v6960_v11 = vld [vmem:[%s9945_s3 + $0x90] sm:$0xff] }
0x5ddc   :  { %v632_v38 = vpop.permute.xlu0 %631 }
0x5ddd   :  { %635 = vst.msk [vmem:[#allocation2 + $0x4] sm:$0x3] %vm424_vm10, %v632_v38  ;;  %v2099_v38 = vmax.f32 %v8788_v0, 0.0  ;;  %v6972_v0 = vld [vmem:[%s9945_s3 + $0xd0] sm:$0xf] }
0x5dde   :  { %736 = vrot.lane.b32.xlu1 %v734_v47, %s8127_s22 }
0x5de0   :  { %v842_v12 = vpop.permute.xlu0 %841  ;;  %v3812_v41 = vld [vmem:[#allocation2 + $0x2] sm:$0x3] }
0x5de1   :  { %845 = vst.msk [vmem:[#allocation2 + $0x8] sm:$0x3] %vm424_vm10, %v842_v12  ;;  %7247 = vmatmul.mubr.msk.f32.vlgmr.msra.gmra.mxu1 %vm3817_vm11, %v3812_v41  ;;  %v6976_v41 = vld [vmem:[%s9945_s3 + $0xe0] sm:$0xff] }
0x5de2   :  { %7250 = vmatpush3.msk.msra.mxu1 %vm3821_vm8, %v3811_v60  ;;  %7255 = vmatprep.mubr.msk.f32.mxu1 %vm8126_vm9, %v8125_v28  ;;  %v6977_v60 = vld [vmem:[%s9945_s3 + $0xe8] sm:$0xf] }
0x5de3   :  { %946 = vrot.lane.b32.xlu1 %v944_v43, %s8127_s22  ;;  %7251 = vmatprep.subr.mxu1 %v8125_v28  ;;  %v2309_v43 = vmax.f32 %v8875_v6, 0.0  ;;  %v6970_v6 = vld [vmem:[%s9945_s3 + $0xc0] sm:$0xff] }
0x5de4   :  { %v1052_v44 = vpop.permute.xlu0 %1051  ;;  %7252 = vmatpush3.msra.mxu1 %v3810_v61  ;;  %v3971_v34 = vld [vmem:[#allocation2 + $0x4] sm:$0x3]  ;;  %v6971_v61 = vld [vmem:[%s9945_s3 + $0xc8] sm:$0xff] }
0x5de5   :  { %1055 = vst.msk [vmem:[#allocation2 + $0xc] sm:$0x3] %vm424_vm10, %v1052_v44  ;;  %7253 = vmatprep.subr.mxu1 %v8125_v28 }
0x5de6   :  { %7254 = vmatpush3.msra.mxu1 %v3809_v25  ;;  %v6975_v25 = vld [vmem:[%s9945_s3 + $0xd8] sm:$0xff] }
0x5de7   :  { %1156 = vrot.lane.b32.xlu1 %v1154_v1, %s8127_s22  ;;  %7258 = vmatprep.subr.mxu1 %v8125_v28  ;;  %v6987_v1 = vld [vmem:[%s9945_s3 + $0x118] sm:$0xf] }
0x5de8   :  { %v1262_v24 = vpop.permute.xlu0 %1261 }
0x5de9   :  { %1265 = vst.msk [vmem:[#allocation2 + $0x10] sm:$0x3] %vm424_vm10, %v1262_v24 }
0x5deb   :  { %1366 = vrot.lane.b32.xlu1 %v1364_v16, %s8127_s22  ;;  %v6982_v16 = vld [vmem:[%s9945_s3 + $0x100] sm:$0xf] }
0x5dec   :  { %v1472_v20 = vpop.permute.xlu0 %1471  ;;  %v4299_v12 = vld [vmem:[#allocation2 + $0xc] sm:$0x3] }
0x5ded   :  { %1475 = vst.msk [vmem:[#allocation2 + $0x14] sm:$0x3] %vm424_vm10, %v1472_v20  ;;  %v2519_v20 = vmax.f32 %v8927_v33, 0.0  ;;  %v6985_v33 = vld [vmem:[%s9945_s3 + $0x108] sm:$0xff] }
0x5df0   :  { %v1577_v37 = vpop.permute.xlu0 %1576  ;;  %v4463_v24 = vld [vmem:[#allocation2 + $0x10] sm:$0x3] }
0x5df1   :  { %1580 = vst.msk [vmem:[#allocation2 + $0x16] sm:$0x3] %vm424_vm10, %v1577_v37  ;;  %v6986_v37 = vld [vmem:[%s9945_s3 + $0x110] sm:$0xff] }
0x5df4   :  { %v1787_v29 = vpop.permute.xlu0 %1786 }
0x5df5   :  { %1790 = vst.msk [vmem:[#allocation2 + $0x1a] sm:$0x3] %vm424_vm10, %v1787_v29  ;;  %v6981_v29 = vld [vmem:[%s9945_s3 + $0xf8] sm:$0xff] }
0x5df8   :  { %v1997_v21 = vpop.permute.xlu0 %1996 }
0x5df9   :  { %2000 = vst.msk [vmem:[#allocation2 + $0x1e] sm:$0x3] %vm424_vm10, %v1997_v21  ;;  %v2729_v21 = vmax.f32 %v8979_v8, 0.0  ;;  %v4627_v8 = vld [vmem:[#allocation2 + $0x14] sm:$0x3] }
0x5dfc   :  { %v2207_v17 = vpop.permute.xlu0 %2206 }
0x5dfd   :  { %2210 = vst.msk [vmem:[#allocation2 + $0x22] sm:$0x3] %vm424_vm10, %v2207_v17  ;;  %v4709_v17 = vld [vmem:[#allocation2 + $0x16] sm:$0x3] }
0x5e00   :  { %v2417_v15 = vpop.permute.xlu0 %2416 }
0x5e01   :  { %2420 = vst.msk [vmem:[#allocation2 + $0x26] sm:$0x3] %vm424_vm10, %v2417_v15  ;;  %v6980_v15 = vld [vmem:[%s9945_s3 + $0xf0] sm:$0xff] }
0x5e04   :  { %v2627_v9 = vpop.permute.xlu0 %2626 }
0x5e05   :  { %2630 = vst.msk [vmem:[#allocation2 + $0x2a] sm:$0x3] %vm424_vm10, %v2627_v9  ;;  %v6997_v9 = vld [vmem:[%s9945_s3 + $0x148] sm:$0xf] }
0x5e08   :  { %v2837_v23 = vpop.permute.xlu0 %2836 }
0x5e09   :  { %2840 = vst.msk [vmem:[#allocation2 + $0x2e] sm:$0x3] %vm424_vm10, %v2837_v23  ;;  %v6996_v23 = vld [vmem:[%s9945_s3 + $0x140] sm:$0xff] }
0x5e0c   :  { %v3047_v51 = vpop.permute.xlu0 %3046 }
0x5e0d   :  { %3050 = vst.msk [vmem:[#allocation2 + $0x32] sm:$0x3] %vm424_vm10, %v3047_v51  ;;  %v2939_v51 = vmax.f32 %v9031_v53, 0.0  ;;  %v7007_v53 = vld [vmem:[%s9945_s3 + $0x178] sm:$0xf] }
0x5e10   :  { %v3257_v39 = vpop.permute.xlu0 %3256 }
0x5e11   :  { %3260 = vst.msk [vmem:[#allocation2 + $0x36] sm:$0x3] %vm424_vm10, %v3257_v39  ;;  %v6995_v39 = vld [vmem:[%s9945_s3 + $0x138] sm:$0xff] }
0x5e14   :  { %v3467_v50 = vpop.permute.xlu0 %3466 }
0x5e15   :  { %3470 = vst.msk [vmem:[#allocation2 + $0x3a] sm:$0x3] %vm424_vm10, %v3467_v50  ;;  %v6992_v50 = vld [vmem:[%s9945_s3 + $0x130] sm:$0xf] }
0x5e18   :  { %v3677_v55 = vpop.permute.xlu0 %3676 }
0x5e19   :  { %3680 = vst.msk [vmem:[#allocation2 + $0x3e] sm:$0x3] %vm424_vm10, %v3677_v55  ;;  %v3149_v55 = vmax.f32 %v9083_v10, 0.0  ;;  %v6991_v10 = vld [vmem:[%s9945_s3 + $0x128] sm:$0xff] }
0x5e48   :  { %v3792_v56 = vpop.permute.xlu1 %3791 }
0x5e49   :  { %v3794_v46 = vadd.f32 %v3792_v56, %v9322_v62  ;;  %v4135_v62 = vld [vmem:[#allocation2 + $0x8] sm:$0x3]  ;;  %v4873_v56 = vld [vmem:[#allocation2 + $0x1a] sm:$0x3] }
0x5e4b   :  { %8066 = vtanh.f32 %v3794_v46  ;;  %v7006_v46 = vld [vmem:[%s9945_s3 + $0x170] sm:$0xff] }
0x5e4c   :  { %v422_v27 = vpop.permute.xlu1 %421 }
0x5e4d   :  { %425 = vst.msk [vmem:[#allocation2] sm:$0x3] %vm424_vm10, %v422_v27  ;;  %v7005_v27 = vld [vmem:[%s9945_s3 + $0x168] sm:$0xff] }
0x5e50   :  { %v737_v42 = vpop.permute.xlu1 %736 }
0x5e51   :  { %740 = vst.msk [vmem:[#allocation2 + $0x6] sm:$0x3] %vm424_vm10, %v737_v42  ;;  %v3359_v42 = vmax.f32 %v9166_v26, 0.0  ;;  %v7016_v26 = vld [vmem:[%s9945_s3 + $0x1a0] sm:$0xff] }
0x5e54   :  { %v3808_v49 = vld [vmem:[#allocation2] sm:$0x3] }
0x5e55   :  { %v947_v31 = vpop.permute.xlu1 %946  ;;  %7256 = vmatmul.mubr.msk.f32.vlgmr.msra.gmra.mxu1 %vm3817_vm11, %v3808_v49  ;;  %v3569_v49 = vmax.f32 %v9214_v63, 0.0  ;;  %v7027_v63 = vld [vmem:[%s9945_s3 + $0x1d8] sm:$0xf] }
0x5e56   :  { %950 = vst.msk [vmem:[#allocation2 + $0xa] sm:$0x3] %vm424_vm10, %v947_v31  ;;  %7259 = vmatpush3.msk.msra.mxu1 %vm3821_vm8, %v6942_v54  ;;  %7264 = vmatprep.mubr.msk.f32.mxu1 %vm8126_vm9, %v8125_v28  ;;  %v7017_v54 = vld [vmem:[%s9945_s3 + $0x1a8] sm:$0xf]  ;;  %v5037_v31 = vld [vmem:[#allocation2 + $0x1e] sm:$0x3] }
0x5e57   :  { %7260 = vmatprep.subr.mxu1 %v8125_v28 }
0x5e58   :  { %v8067_v52 = vpop.eup %8066  ;;  %7261 = vmatpush3.msra.mxu1 %v6941_v35  ;;  %v4053_v5 = vld [vmem:[#allocation2 + $0x6] sm:$0x3] }
0x5e59   :  { %v1157_v7 = vpop.permute.xlu1 %1156  ;;  %7262 = vmatprep.subr.mxu1 %v8125_v28  ;;  %3797 = vrot.lane.b32.xlu1 %v8067_v52, %s8122_s30  ;;  %v6990_v35 = vld [vmem:[%s9945_s3 + $0x120] sm:$0xff] }
0x5e5a   :  { %1160 = vst.msk [vmem:[#allocation2 + $0xe] sm:$0x3] %vm424_vm10, %v1157_v7  ;;  %7263 = vmatpush3.msra.mxu1 %v6940_v22  ;;  %7274 = vmatmul.mubr.msk.f32.vlgmr.msra.gmra.mxu0 %vm3817_vm11, %v4053_v5  ;;  %v7015_v22 = vld [vmem:[%s9945_s3 + $0x198] sm:$0xff]  ;;  %v5201_v52 = vld [vmem:[#allocation2 + $0x22] sm:$0x3]  ;;  %v7026_v7 = vld [vmem:[%s9945_s3 + $0x1d0] sm:$0xff] }
0x5e5b   :  { %7286 = vmatpush3.msk.msra.mxu0 %vm3821_vm8, %v6957_v18  ;;  %7265 = vmatmul.mubr.msk.f32.vlgmr.msra.gmra.mxu1 %vm3817_vm11, %v3971_v34  ;;  %v7025_v5 = vld [vmem:[%s9945_s3 + $0x1c8] sm:$0xff]  ;;  %v5365_v34 = vld [vmem:[#allocation2 + $0x26] sm:$0x3] }
0x5e5c   :  { %7276 = vmatprep.subr.mxu1 %v8125_v28  ;;  %7287 = vmatprep.subr.mxu0 %v8125_v28  ;;  %v7037_v18 = vld [vmem:[%s9945_s3 + $0x208] sm:$0xf] }
0x5e5d   :  { %v1367_v57 = vpop.permute.xlu1 %1366  ;;  %7277 = vmatpush3.msk.msra.mxu1 %vm3821_vm8, %v6952_v14  ;;  %7288 = vmatpush3.msra.mxu0 %v6956_v3  ;;  %v4217_v4 = vld [vmem:[#allocation2 + $0xa] sm:$0x3]  ;;  %v7036_v14 = vld [vmem:[%s9945_s3 + $0x200] sm:$0xff]  ;;  %v7035_v3 = vld [vmem:[%s9945_s3 + $0x1f8] sm:$0xff] }
0x5e5e   :  { %1370 = vst.msk [vmem:[#allocation2 + $0x12] sm:$0x3] %vm424_vm10, %v1367_v57  ;;  %7278 = vmatprep.subr.mxu1 %v8125_v28  ;;  %7289 = vmatprep.subr.mxu0 %v8125_v28  ;;  %v7047_v57 = vld [vmem:[%s9945_s3 + $0x238] sm:$0xf] }
0x5e5f   :  { %1681 = vrot.lane.b32.xlu1 %v1679_v40, %s8127_s22  ;;  %7279 = vmatpush3.msra.mxu1 %v6951_v45  ;;  %v5529_v45 = vld [vmem:[#allocation2 + $0x2a] sm:$0x3]  ;;  %v7046_v40 = vld [vmem:[%s9945_s3 + $0x230] sm:$0xff] }
0x5e60   :  { %7290 = vmatpush3.msra.mxu0 %v6955_v30  ;;  %7291 = vmatprep.mubr.msk.f32.mxu0 %vm8126_vm9, %v8125_v28  ;;  %v7045_v30 = vld [vmem:[%s9945_s3 + $0x228] sm:$0xff] }
0x5e61   :  { %7280 = vmatprep.subr.mxu1 %v8125_v28  ;;  %7292 = vmatmul.mubr.msk.f32.vlgmr.msra.gmra.mxu0 %vm3817_vm11, %v4217_v4  ;;  %v4381_v47 = vld [vmem:[#allocation2 + $0xe] sm:$0x3]  ;;  %v7057_v4 = vld [vmem:[%s9945_s3 + $0x268] sm:$0xf] }
0x5e62   :  { %7303 = vmatprep.subr.mxu0 %v8125_v28  ;;  %7281 = vmatpush3.msra.mxu1 %v6950_v32  ;;  %v5693_v32 = vld [vmem:[#allocation2 + $0x2e] sm:$0x3] }
0x5e63   :  { %7282 = vmatprep.mubr.msk.f32.mxu1 %vm8126_vm9, %v8125_v28  ;;  %7304 = vmatpush3.msk.msra.mxu0 %vm3821_vm8, %v6967_v48 }
0x5e64   :  { %7283 = vmatmul.mubr.msk.f32.vlgmr.msra.gmra.mxu1 %vm3817_vm11, %v4135_v62  ;;  %7294 = vmatprep.subr.mxu1 %v8125_v28 }
0x5e65   :  { %7305 = vmatprep.subr.mxu0 %v8125_v28  ;;  %1891 = vrot.lane.b32.xlu1 %v1889_v2, %s8127_s22  ;;  %v4545_v44 = vld [vmem:[#allocation2 + $0x12] sm:$0x3]  ;;  %v7056_v2 = vld [vmem:[%s9945_s3 + $0x260] sm:$0xff] }
0x5e66   :  { %7295 = vmatpush3.msk.msra.mxu1 %vm3821_vm8, %v6962_v58  ;;  %7306 = vmatpush3.msra.mxu0 %v6966_v59  ;;  %v7055_v58 = vld [vmem:[%s9945_s3 + $0x258] sm:$0xff] }
0x5e67   :  { %7296 = vmatprep.subr.mxu1 %v8125_v28  ;;  %7307 = vmatprep.subr.mxu0 %v8125_v28  ;;  %v7067_v59 = vld [vmem:[%s9945_s3 + $0x298] sm:$0xf] }
0x5e68   :  { %7297 = vmatpush3.msra.mxu1 %v6961_v13  ;;  %7308 = vmatpush3.msra.mxu0 %v6965_v19  ;;  %v6932_v13 = vmul.f32 -1.442695, %v9254_v36  ;;  %v5857_v19 = vld [vmem:[#allocation2 + $0x32] sm:$0x3]  ;;  %v7065_v36 = vld [vmem:[%s9945_s3 + $0x288] sm:$0xff] }
0x5e69   :  { %7309 = vmatprep.mubr.msk.f32.mxu0 %vm8126_vm9, %v8125_v28  ;;  %7298 = vmatprep.subr.mxu1 %v8125_v28 }
0x5e6a   :  { %7310 = vmatmul.mubr.msk.f32.vlgmr.msra.gmra.mxu0 %vm3817_vm11, %v4381_v47  ;;  %7321 = vmatprep.subr.mxu0 %v8125_v28  ;;  %8068 = vpow2.f32 %v6932_v13  ;;  %v6021_v47 = vld [vmem:[#allocation2 + $0x36] sm:$0x3] }
0x5e6b   :  { %2101 = vrot.lane.b32.xlu1 %v2099_v38, %s8127_s22  ;;  %7299 = vmatpush3.msra.mxu1 %v6960_v11  ;;  %v7066_v11 = vld [vmem:[%s9945_s3 + $0x290] sm:$0xff]  ;;  %v7077_v38 = vld [vmem:[%s9945_s3 + $0x2c8] sm:$0xf] }
0x5e6c   :  { %7300 = vmatprep.mubr.msk.f32.mxu1 %vm8126_vm9, %v8125_v28  ;;  %7322 = vmatpush3.msk.msra.mxu0 %vm3821_vm8, %v6977_v60  ;;  %v7076_v60 = vld [vmem:[%s9945_s3 + $0x2c0] sm:$0xff] }
0x5e6d   :  { %7301 = vmatmul.mubr.msk.f32.vlgmr.msra.gmra.mxu1 %vm3817_vm11, %v4299_v12  ;;  %7312 = vmatprep.subr.mxu1 %v8125_v28  ;;  %v7087_v12 = vld [vmem:[%s9945_s3 + $0x2f8] sm:$0xf] }
0x5e6e   :  { %7323 = vmatprep.subr.mxu0 %v8125_v28  ;;  %7313 = vmatpush3.msk.msra.mxu1 %vm3821_vm8, %v6972_v0  ;;  %v7075_v0 = vld [vmem:[%s9945_s3 + $0x2b8] sm:$0xff] }
0x5e6f   :  { %7324 = vmatpush3.msra.mxu0 %v6976_v41  ;;  %7314 = vmatprep.subr.mxu1 %v8125_v28  ;;  %v6185_v41 = vld [vmem:[#allocation2 + $0x3a] sm:$0x3] }
0x5e70   :  { %7325 = vmatprep.subr.mxu0 %v8125_v28  ;;  %2311 = vrot.lane.b32.xlu1 %v2309_v43, %s8127_s22  ;;  %v7086_v43 = vld [vmem:[%s9945_s3 + $0x2f0] sm:$0xff] }
0x5e71   :  { %7315 = vmatpush3.msra.mxu1 %v6971_v61  ;;  %7326 = vmatpush3.msra.mxu0 %v6975_v25  ;;  %v7085_v61 = vld [vmem:[%s9945_s3 + $0x2e8] sm:$0xff] }
0x5e72   :  { %7327 = vmatprep.mubr.msk.f32.mxu0 %vm8126_vm9, %v8125_v28  ;;  %7316 = vmatprep.subr.mxu1 %v8125_v28 }
0x5e73   :  { %7328 = vmatmul.mubr.msk.f32.vlgmr.msra.gmra.mxu0 %vm3817_vm11, %v4545_v44  ;;  %7339 = vmatprep.subr.mxu0 %v8125_v28 }
0x5e74   :  { %7317 = vmatpush3.msra.mxu1 %v6970_v6  ;;  %7318 = vmatprep.mubr.msk.f32.mxu1 %vm8126_vm9, %v8125_v28  ;;  %v6349_v6 = vld [vmem:[#allocation2 + $0x3e] sm:$0x3] }
0x5e75   :  { %7340 = vmatpush3.msk.msra.mxu0 %vm3821_vm8, %v6987_v1  ;;  %7319 = vmatmul.mubr.msk.f32.vlgmr.msra.gmra.mxu1 %vm3817_vm11, %v4463_v24 }
0x5e76   :  { %7330 = vmatprep.subr.mxu1 %v8125_v28  ;;  %7341 = vmatprep.subr.mxu0 %v8125_v28 }
0x5e77   :  { %2521 = vrot.lane.b32.xlu1 %v2519_v20, %s8127_s22  ;;  %7331 = vmatpush3.msk.msra.mxu1 %vm3821_vm8, %v6982_v16  ;;  %v8069_v25 = vpop.eup %8068 }
0x5e78   :  { %7342 = vmatpush3.msra.mxu0 %v6986_v37  ;;  %7332 = vmatprep.subr.mxu1 %v8125_v28  ;;  %v3769_v44 = vadd.f32 1.0, %v8069_v25 }
0x5e79   :  { %7343 = vmatprep.subr.mxu0 %v8125_v28  ;;  %7333 = vmatpush3.msra.mxu1 %v6981_v29 }
0x5e7a   :  { %7344 = vmatpush3.msra.mxu0 %v6985_v33  ;;  %7345 = vmatprep.mubr.msk.f32.mxu0 %vm8126_vm9, %v8125_v28  ;;  %8070 = vrcp.f32 %v3769_v44  ;;  %v7002_v33 = vld [vmem:[%s9945_s3 + $0x160] sm:$0xf] }
0x5e7b   :  { %7334 = vmatprep.subr.mxu1 %v8125_v28  ;;  %7346 = vmatmul.mubr.msk.f32.vlgmr.msra.gmra.mxu0 %vm3817_vm11, %v4709_v17  ;;  %v7001_v17 = vld [vmem:[%s9945_s3 + $0x158] sm:$0xff] }
0x5e7c   :  { %7357 = vmatprep.subr.mxu0 %v8125_v28  ;;  %2731 = vrot.lane.b32.xlu1 %v2729_v21, %s8127_s22 }
0x5e7d   :  { %7335 = vmatpush3.msra.mxu1 %v6980_v15  ;;  %7336 = vmatprep.mubr.msk.f32.mxu1 %vm8126_vm9, %v8125_v28  ;;  %v7000_v15 = vld [vmem:[%s9945_s3 + $0x150] sm:$0xff] }
0x5e7e   :  { %7358 = vmatpush3.msk.msra.mxu0 %vm3821_vm8, %v6997_v9  ;;  %7337 = vmatmul.mubr.msk.f32.vlgmr.msra.gmra.mxu1 %vm3817_vm11, %v4627_v8  ;;  %v7012_v8 = vld [vmem:[%s9945_s3 + $0x190] sm:$0xf] }
0x5e7f   :  { %7359 = vmatprep.subr.mxu0 %v8125_v28  ;;  %7363 = vmatprep.mubr.msk.f32.mxu0 %vm8126_vm9, %v8125_v28 }
0x5e80   :  { %7360 = vmatpush3.msra.mxu0 %v6996_v23  ;;  %2941 = vrot.lane.b32.xlu1 %v2939_v51, %s8127_s22  ;;  %v7011_v51 = vld [vmem:[%s9945_s3 + $0x188] sm:$0xff] }
0x5e81   :  { %7361 = vmatprep.subr.mxu0 %v8125_v28  ;;  %7348 = vmatprep.subr.mxu1 %v8125_v28 }
0x5e82   :  { %7362 = vmatpush3.msra.mxu0 %v6995_v39  ;;  %7349 = vmatpush3.msk.msra.mxu1 %vm3821_vm8, %v6992_v50  ;;  %v7010_v50 = vld [vmem:[%s9945_s3 + $0x180] sm:$0xff] }
0x5e83   :  { %7364 = vmatmul.mubr.msk.f32.vlgmr.msra.gmra.mxu0 %vm3817_vm11, %v4873_v56  ;;  %7375 = vmatprep.subr.mxu0 %v8125_v28  ;;  %v7021_v56 = vld [vmem:[%s9945_s3 + $0x1b8] sm:$0xff] }
0x5e84   :  { %7376 = vmatpush3.msk.msra.mxu0 %vm3821_vm8, %v7007_v53  ;;  %3151 = vrot.lane.b32.xlu1 %v3149_v55, %s8127_s22  ;;  %v7022_v53 = vld [vmem:[%s9945_s3 + $0x1c0] sm:$0xf] }
0x5e85   :  { %7377 = vmatprep.subr.mxu0 %v8125_v28  ;;  %7381 = vmatprep.mubr.msk.f32.mxu0 %vm8126_vm9, %v8125_v28 }
0x5e86   :  { %7378 = vmatpush3.msra.mxu0 %v7006_v46  ;;  %7350 = vmatprep.subr.mxu1 %v8125_v28  ;;  %v7020_v46 = vld [vmem:[%s9945_s3 + $0x1b0] sm:$0xff] }
0x5e87   :  { %7379 = vmatprep.subr.mxu0 %v8125_v28  ;;  %7351 = vmatpush3.msra.mxu1 %v6991_v10  ;;  %v8071_v1 = vpop.eup %8070 }
0x5e88   :  { %7380 = vmatpush3.msra.mxu0 %v7005_v27  ;;  %3361 = vrot.lane.b32.xlu1 %v3359_v42, %s8127_s22  ;;  %v7032_v27 = vld [vmem:[%s9945_s3 + $0x1f0] sm:$0xf] }
0x5e89   :  { %7382 = vmatmul.mubr.msk.f32.vlgmr.msra.gmra.mxu0 %vm3817_vm11, %v5037_v31  ;;  %7393 = vmatprep.subr.mxu0 %v8125_v28 }
0x5e8a   :  { %7394 = vmatpush3.msk.msra.mxu0 %vm3821_vm8, %v7017_v54  ;;  %7399 = vmatprep.mubr.msk.f32.mxu0 %vm8126_vm9, %v8125_v28  ;;  %v7031_v54 = vld [vmem:[%s9945_s3 + $0x1e8] sm:$0xff] }
0x5e8b   :  { %7395 = vmatprep.subr.mxu0 %v8125_v28  ;;  %7352 = vmatprep.subr.mxu1 %v8125_v28 }
0x5e8c   :  { %7396 = vmatpush3.msra.mxu0 %v7016_v26  ;;  %3571 = vrot.lane.b32.xlu1 %v3569_v49, %s8127_s22  ;;  %v7030_v26 = vld [vmem:[%s9945_s3 + $0x1e0] sm:$0xff] }
0x5e8d   :  { %7397 = vmatprep.subr.mxu0 %v8125_v28  ;;  %7353 = vmatpush3.msra.mxu1 %v6990_v35  ;;  %v7042_v49 = vld [vmem:[%s9945_s3 + $0x220] sm:$0xf] }
0x5e8e   :  { %7398 = vmatpush3.msra.mxu0 %v7015_v22  ;;  %7354 = vmatprep.mubr.msk.f32.mxu1 %vm8126_vm9, %v8125_v28 }
0x5e8f   :  { %7400 = vmatmul.mubr.msk.f32.vlgmr.msra.gmra.mxu0 %vm3817_vm11, %v5201_v52  ;;  %7411 = vmatprep.subr.mxu0 %v8125_v28  ;;  %v7040_v52 = vld [vmem:[%s9945_s3 + $0x210] sm:$0xff] }
0x5e90   :  { %7412 = vmatpush3.msk.msra.mxu0 %vm3821_vm8, %v7027_v63  ;;  %7417 = vmatprep.mubr.msk.f32.mxu0 %vm8126_vm9, %v8125_v28  ;;  %v7041_v63 = vld [vmem:[%s9945_s3 + $0x218] sm:$0xff] }
0x5e91   :  { %7413 = vmatprep.subr.mxu0 %v8125_v28  ;;  %7366 = vmatprep.subr.mxu1 %v8125_v28 }
0x5e92   :  { %7414 = vmatpush3.msra.mxu0 %v7026_v7 }
0x5e93   :  { %7415 = vmatprep.subr.mxu0 %v8125_v28 }
0x5e94   :  { %7416 = vmatpush3.msra.mxu0 %v7025_v5  ;;  %v7052_v5 = vld [vmem:[%s9945_s3 + $0x250] sm:$0xf] }
0x5e95   :  { %7418 = vmatmul.mubr.msk.f32.vlgmr.msra.gmra.mxu0 %vm3817_vm11, %v5365_v34  ;;  %7429 = vmatprep.subr.mxu0 %v8125_v28  ;;  %v7051_v34 = vld [vmem:[%s9945_s3 + $0x248] sm:$0xff] }
0x5e96   :  { %7430 = vmatpush3.msk.msra.mxu0 %vm3821_vm8, %v7037_v18  ;;  %7435 = vmatprep.mubr.msk.f32.mxu0 %vm8126_vm9, %v8125_v28 }
0x5e97   :  { %7431 = vmatprep.subr.mxu0 %v8125_v28 }
0x5e98   :  { %7432 = vmatpush3.msra.mxu0 %v7036_v14 }
0x5e99   :  { %7433 = vmatprep.subr.mxu0 %v8125_v28 }
0x5e9a   :  { %7434 = vmatpush3.msra.mxu0 %v7035_v3  ;;  %v7050_v3 = vld [vmem:[%s9945_s3 + $0x240] sm:$0xff] }
0x5e9b   :  { %7436 = vmatmul.mubr.msk.f32.vlgmr.msra.gmra.mxu0 %vm3817_vm11, %v5529_v45  ;;  %7447 = vmatprep.subr.mxu0 %v8125_v28 }
0x5e9c   :  { %7448 = vmatpush3.msk.msra.mxu0 %vm3821_vm8, %v7047_v57  ;;  %7453 = vmatprep.mubr.msk.f32.mxu0 %vm8126_vm9, %v8125_v28  ;;  %v7062_v57 = vld [vmem:[%s9945_s3 + $0x280] sm:$0xf] }
0x5e9d   :  { %7449 = vmatprep.subr.mxu0 %v8125_v28 }
0x5e9e   :  { %7450 = vmatpush3.msra.mxu0 %v7046_v40 }
0x5e9f   :  { %7451 = vmatprep.subr.mxu0 %v8125_v28 }
0x5ea0   :  { %7452 = vmatpush3.msra.mxu0 %v7045_v30  ;;  %v7061_v30 = vld [vmem:[%s9945_s3 + $0x278] sm:$0xff] }
0x5ea1   :  { %v9661_v48 = vpop.f32.mrf.mxu1  ;;  %7454 = vmatmul.mubr.msk.f32.vlgmr.msra.gmra.mxu0 %vm3817_vm11, %v5693_v32  ;;  %7465 = vmatprep.subr.mxu0 %v8125_v28  ;;  %v7072_v32 = vld [vmem:[%s9945_s3 + $0x2b0] sm:$0xf] }
0x5ea2   :  { %7466 = vmatpush3.msk.msra.mxu0 %vm3821_vm8, %v7057_v4  ;;  %7471 = vmatprep.mubr.msk.f32.mxu0 %vm8126_vm9, %v8125_v28  ;;  %v7060_v4 = vld [vmem:[%s9945_s3 + $0x270] sm:$0xff] }
0x5ea3   :  { %v7248_v62 = vpop.f32.mrf.mxu1  ;;  %7467 = vmatprep.subr.mxu0 %v8125_v28 }
0x5ea4   :  { %7468 = vmatpush3.msra.mxu0 %v7056_v2  ;;  %v7071_v62 = vld [vmem:[%s9945_s3 + $0x2a8] sm:$0xff] }
0x5ea5   :  { %7469 = vmatprep.subr.mxu0 %v8125_v28 }
0x5ea6   :  { %7470 = vmatpush3.msra.mxu0 %v7055_v58  ;;  %v7070_v58 = vld [vmem:[%s9945_s3 + $0x2a0] sm:$0xff] }
0x5ea7   :  { %7472 = vmatmul.mubr.msk.f32.vlgmr.msra.gmra.mxu0 %vm3817_vm11, %v5857_v19  ;;  %7483 = vmatprep.subr.mxu0 %v8125_v28  ;;  %v7081_v19 = vld [vmem:[%s9945_s3 + $0x2d8] sm:$0xff] }
0x5ea8   :  { %7484 = vmatpush3.msk.msra.mxu0 %vm3821_vm8, %v7067_v59  ;;  %7489 = vmatprep.mubr.msk.f32.mxu0 %vm8126_vm9, %v8125_v28  ;;  %v7082_v59 = vld [vmem:[%s9945_s3 + $0x2e0] sm:$0xf] }
0x5ea9   :  { %7485 = vmatprep.subr.mxu0 %v8125_v28 }
0x5eaa   :  { %7486 = vmatpush3.msra.mxu0 %v7066_v11  ;;  %v7080_v11 = vld [vmem:[%s9945_s3 + $0x2d0] sm:$0xff] }
0x5eab   :  { %7487 = vmatprep.subr.mxu0 %v8125_v28 }
0x5eac   :  { %7488 = vmatpush3.msra.mxu0 %v7065_v36  ;;  %v7092_v36 = vld [vmem:[%s9945_s3 + $0x310] sm:$0xf] }
0x5ead   :  { %7490 = vmatmul.mubr.msk.f32.vlgmr.msra.gmra.mxu0 %vm3817_vm11, %v6021_v47  ;;  %7501 = vmatprep.subr.mxu0 %v8125_v28  ;;  %v7091_v47 = vld [vmem:[%s9945_s3 + $0x308] sm:$0xff] }
0x5eae   :  { %7502 = vmatpush3.msk.msra.mxu0 %vm3821_vm8, %v7077_v38  ;;  %7507 = vmatprep.mubr.msk.f32.mxu0 %vm8126_vm9, %v8125_v28 }
0x5eaf   :  { %7503 = vmatprep.subr.mxu0 %v8125_v28 }
0x5eb0   :  { %7504 = vmatpush3.msra.mxu0 %v7076_v60  ;;  %v7090_v60 = vld [vmem:[%s9945_s3 + $0x300] sm:$0xff] }
0x5eb1   :  { %7505 = vmatprep.subr.mxu0 %v8125_v28 }
0x5eb2   :  { %7506 = vmatpush3.msra.mxu0 %v7075_v0 }
0x5eb3   :  { %7508 = vmatmul.mubr.msk.f32.vlgmr.msra.gmra.mxu0 %vm3817_vm11, %v6185_v41  ;;  %7519 = vmatprep.subr.mxu0 %v8125_v28 }
0x5eb4   :  { %7520 = vmatpush3.msk.msra.mxu0 %vm3821_vm8, %v7087_v12  ;;  %7525 = vmatprep.mubr.msk.f32.mxu0 %vm8126_vm9, %v8125_v28 }
0x5eb5   :  { %7521 = vmatprep.subr.mxu0 %v8125_v28 }
0x5eb6   :  { %7522 = vmatpush3.msra.mxu0 %v7086_v43 }
0x5eb7   :  { %7523 = vmatprep.subr.mxu0 %v8125_v28 }
0x5eb8   :  { %7524 = vmatpush3.msra.mxu0 %v7085_v61 }
0x5eb9   :  { %7526 = vmatmul.mubr.msk.f32.vlgmr.msra.gmra.mxu0 %vm3817_vm11, %v6349_v6  ;;  %7537 = vmatprep.subr.mxu0 %v8125_v28 }
0x5eba   :  { %7545 = vmatprep.mubr.msk.f32.mxu0 %vm8126_vm9, %v8125_v28 }
0x5ecb   :  { %v3798_v24 = vpop.permute.xlu1 %3797 }
0x5ecc   :  { %v3800_v16 = vmul.f32 %v8071_v1, %v3798_v24 }
0x5ece   :  { %v3801_v20 = vmax.f32 %v3800_v16, 0.0 }
0x5ed0   :  { %3803 = vrot.lane.b32.xlu1 %v3801_v20, %s8127_s22 }
0x5ed1   :  { %v1682_v37 = vpop.permute.xlu1 %1681 }
0x5ed2   :  { %1685 = vst.msk [vmem:[#allocation2 + $0x18] sm:$0x3] %vm424_vm10, %v1682_v37 }
0x5ed7   :  { %v1892_v29 = vpop.permute.xlu1 %1891 }
0x5ed8   :  { %1895 = vst.msk [vmem:[#allocation2 + $0x1c] sm:$0x3] %vm424_vm10, %v1892_v29 }
0x5ed9   :  { %v4791_v21 = vld [vmem:[#allocation2 + $0x18] sm:$0x3] }
0x5eda   :  { %7355 = vmatmul.mubr.msk.f32.vlgmr.msra.gmra.mxu1 %vm3817_vm11, %v4791_v21 }
0x5edb   :  { %7367 = vmatpush3.msk.msra.mxu1 %vm3821_vm8, %v7002_v33  ;;  %7372 = vmatprep.mubr.msk.f32.mxu1 %vm8126_vm9, %v8125_v28 }
0x5edc   :  { %7368 = vmatprep.subr.mxu1 %v8125_v28 }
0x5edd   :  { %v2102_v9 = vpop.permute.xlu1 %2101  ;;  %7369 = vmatpush3.msra.mxu1 %v7001_v17 }
0x5ede   :  { %2105 = vst.msk [vmem:[#allocation2 + $0x20] sm:$0x3] %vm424_vm10, %v2102_v9  ;;  %7370 = vmatprep.subr.mxu1 %v8125_v28 }
0x5edf   :  { %7371 = vmatpush3.msra.mxu1 %v7000_v15  ;;  %v4955_v23 = vld [vmem:[#allocation2 + $0x1c] sm:$0x3] }
0x5ee0   :  { %7373 = vmatmul.mubr.msk.f32.vlgmr.msra.gmra.mxu1 %vm3817_vm11, %v4955_v23  ;;  %7384 = vmatprep.subr.mxu1 %v8125_v28 }
0x5ee1   :  { %7385 = vmatpush3.msk.msra.mxu1 %vm3821_vm8, %v7012_v8  ;;  %7390 = vmatprep.mubr.msk.f32.mxu1 %vm8126_vm9, %v8125_v28 }
0x5ee2   :  { %v2312_v39 = vpop.permute.xlu1 %2311  ;;  %7386 = vmatprep.subr.mxu1 %v8125_v28 }
0x5ee3   :  { %2315 = vst.msk [vmem:[#allocation2 + $0x24] sm:$0x3] %vm424_vm10, %v2312_v39  ;;  %7387 = vmatpush3.msra.mxu1 %v7011_v51 }
0x5ee4   :  { %7388 = vmatprep.subr.mxu1 %v8125_v28 }
0x5ee5   :  { %7389 = vmatpush3.msra.mxu1 %v7010_v50  ;;  %v5119_v55 = vld [vmem:[#allocation2 + $0x20] sm:$0x3] }
0x5ee6   :  { %7391 = vmatmul.mubr.msk.f32.vlgmr.msra.gmra.mxu1 %vm3817_vm11, %v5119_v55  ;;  %7402 = vmatprep.subr.mxu1 %v8125_v28 }
0x5ee7   :  { %7403 = vmatpush3.msk.msra.mxu1 %vm3821_vm8, %v7022_v53  ;;  %7408 = vmatprep.mubr.msk.f32.mxu1 %vm8126_vm9, %v8125_v28 }
0x5ee8   :  { %7404 = vmatprep.subr.mxu1 %v8125_v28 }
0x5ee9   :  { %v2522_v10 = vpop.permute.xlu1 %2521  ;;  %7405 = vmatpush3.msra.mxu1 %v7021_v56 }
0x5eea   :  { %2525 = vst.msk [vmem:[#allocation2 + $0x28] sm:$0x3] %vm424_vm10, %v2522_v10  ;;  %7406 = vmatprep.subr.mxu1 %v8125_v28  ;;  %v5283_v42 = vld [vmem:[#allocation2 + $0x24] sm:$0x3] }
0x5eeb   :  { %7407 = vmatpush3.msra.mxu1 %v7020_v46 }
0x5eec   :  { %7409 = vmatmul.mubr.msk.f32.vlgmr.msra.gmra.mxu1 %vm3817_vm11, %v5283_v42  ;;  %7420 = vmatprep.subr.mxu1 %v8125_v28 }
0x5eed   :  { %7421 = vmatpush3.msk.msra.mxu1 %vm3821_vm8, %v7032_v27  ;;  %7426 = vmatprep.mubr.msk.f32.mxu1 %vm8126_vm9, %v8125_v28 }
0x5eee   :  { %v2732_v31 = vpop.permute.xlu1 %2731  ;;  %7422 = vmatprep.subr.mxu1 %v8125_v28 }
0x5eef   :  { %2735 = vst.msk [vmem:[#allocation2 + $0x2c] sm:$0x3] %vm424_vm10, %v2732_v31  ;;  %7423 = vmatpush3.msra.mxu1 %v7031_v54 }
0x5ef0   :  { %7424 = vmatprep.subr.mxu1 %v8125_v28 }
0x5ef1   :  { %7425 = vmatpush3.msra.mxu1 %v7030_v26  ;;  %v5447_v35 = vld [vmem:[#allocation2 + $0x28] sm:$0x3] }
0x5ef2   :  { %v2942_v22 = vpop.permute.xlu1 %2941  ;;  %7427 = vmatmul.mubr.msk.f32.vlgmr.msra.gmra.mxu1 %vm3817_vm11, %v5447_v35  ;;  %7438 = vmatprep.subr.mxu1 %v8125_v28 }
0x5ef3   :  { %2945 = vst.msk [vmem:[#allocation2 + $0x30] sm:$0x3] %vm424_vm10, %v2942_v22  ;;  %7439 = vmatpush3.msk.msra.mxu1 %vm3821_vm8, %v7042_v49  ;;  %7444 = vmatprep.mubr.msk.f32.mxu1 %vm8126_vm9, %v8125_v28 }
0x5ef4   :  { %7440 = vmatprep.subr.mxu1 %v8125_v28 }
0x5ef5   :  { %7441 = vmatpush3.msra.mxu1 %v7041_v63 }
0x5ef6   :  { %v3152_v7 = vpop.permute.xlu1 %3151  ;;  %7442 = vmatprep.subr.mxu1 %v8125_v28  ;;  %v5611_v18 = vld [vmem:[#allocation2 + $0x2c] sm:$0x3] }
0x5ef7   :  { %3155 = vst.msk [vmem:[#allocation2 + $0x34] sm:$0x3] %vm424_vm10, %v3152_v7  ;;  %7443 = vmatpush3.msra.mxu1 %v7040_v52 }
0x5ef8   :  { %7445 = vmatmul.mubr.msk.f32.vlgmr.msra.gmra.mxu1 %vm3817_vm11, %v5611_v18  ;;  %7456 = vmatprep.subr.mxu1 %v8125_v28 }
0x5ef9   :  { %7457 = vmatpush3.msk.msra.mxu1 %vm3821_vm8, %v7052_v5  ;;  %7462 = vmatprep.mubr.msk.f32.mxu1 %vm8126_vm9, %v8125_v28 }
0x5efa   :  { %v3362_v14 = vpop.permute.xlu1 %3361  ;;  %7458 = vmatprep.subr.mxu1 %v8125_v28  ;;  %v5775_v45 = vld [vmem:[#allocation2 + $0x30] sm:$0x3] }
0x5efb   :  { %3365 = vst.msk [vmem:[#allocation2 + $0x38] sm:$0x3] %vm424_vm10, %v3362_v14  ;;  %7459 = vmatpush3.msra.mxu1 %v7051_v34 }
0x5efc   :  { %7460 = vmatprep.subr.mxu1 %v8125_v28 }
0x5efd   :  { %7461 = vmatpush3.msra.mxu1 %v7050_v3 }
0x5efe   :  { %v3572_v40 = vpop.permute.xlu1 %3571  ;;  %7463 = vmatmul.mubr.msk.f32.vlgmr.msra.gmra.mxu1 %vm3817_vm11, %v5775_v45  ;;  %7474 = vmatprep.subr.mxu1 %v8125_v28  ;;  %v5939_v2 = vld [vmem:[#allocation2 + $0x34] sm:$0x3] }
0x5eff   :  { %3575 = vst.msk [vmem:[#allocation2 + $0x3c] sm:$0x3] %vm424_vm10, %v3572_v40  ;;  %7475 = vmatpush3.msk.msra.mxu1 %vm3821_vm8, %v7062_v57  ;;  %7480 = vmatprep.mubr.msk.f32.mxu1 %vm8126_vm9, %v8125_v28 }
0x5f00   :  { %7476 = vmatprep.subr.mxu1 %v8125_v28 }
0x5f01   :  { %7477 = vmatpush3.msra.mxu1 %v7061_v30 }
0x5f02   :  { %7478 = vmatprep.subr.mxu1 %v8125_v28  ;;  %v6103_v13 = vld [vmem:[#allocation2 + $0x38] sm:$0x3] }
0x5f03   :  { %7479 = vmatpush3.msra.mxu1 %v7060_v4 }
0x5f04   :  { %7481 = vmatmul.mubr.msk.f32.vlgmr.msra.gmra.mxu1 %vm3817_vm11, %v5939_v2  ;;  %7492 = vmatprep.subr.mxu1 %v8125_v28 }
0x5f05   :  { %7493 = vmatpush3.msk.msra.mxu1 %vm3821_vm8, %v7072_v32  ;;  %7498 = vmatprep.mubr.msk.f32.mxu1 %vm8126_vm9, %v8125_v28 }
0x5f06   :  { %7494 = vmatprep.subr.mxu1 %v8125_v28  ;;  %v6267_v38 = vld [vmem:[#allocation2 + $0x3c] sm:$0x3] }
0x5f07   :  { %7495 = vmatpush3.msra.mxu1 %v7071_v62 }
0x5f08   :  { %7496 = vmatprep.subr.mxu1 %v8125_v28 }
0x5f09   :  { %7497 = vmatpush3.msra.mxu1 %v7070_v58 }
0x5f0a   :  { %7499 = vmatmul.mubr.msk.f32.vlgmr.msra.gmra.mxu1 %vm3817_vm11, %v6103_v13  ;;  %7510 = vmatprep.subr.mxu1 %v8125_v28  ;;  %v6524_v13 = vld [vmem:[%s9947_s5 + $0x10] sm:$0xff] }
0x5f0b   :  { %7511 = vmatpush3.msk.msra.mxu1 %vm3821_vm8, %v7082_v59  ;;  %7516 = vmatprep.mubr.msk.f32.mxu1 %vm8126_vm9, %v8125_v28  ;;  %v6525_v59 = vld [vmem:[%s9947_s5 + $0x18] sm:$0xff] }
0x5f0c   :  { %7512 = vmatprep.subr.mxu1 %v8125_v28  ;;  %7538 = vmatpush3.msra.mxu0 %v6525_v59 }
0x5f0d   :  { %7513 = vmatpush3.msra.mxu1 %v7081_v19  ;;  %7539 = vmatprep.subr.mxu0 %v8125_v28  ;;  %v6523_v19 = vld [vmem:[%s9947_s5 + $0x8] sm:$0xff] }
0x5f0e   :  { %7514 = vmatprep.subr.mxu1 %v8125_v28  ;;  %7540 = vmatpush3.msra.mxu0 %v6524_v13 }
0x5f0f   :  { %7515 = vmatpush3.msra.mxu1 %v7080_v11  ;;  %v6608_v11 = vld [vmem:[%s9949_s7 + $0x8] sm:$0xff]  ;;  %7541 = vmatprep.subr.mxu0 %v8125_v28 }
0x5f10   :  { %7517 = vmatmul.mubr.msk.f32.vlgmr.msra.gmra.mxu1 %vm3817_vm11, %v6267_v38  ;;  %7528 = vmatprep.subr.mxu1 %v8125_v28 }
0x5f11   :  { %7529 = vmatpush3.msk.msra.mxu1 %vm3821_vm8, %v7092_v36  ;;  %7534 = vmatprep.mubr.msk.f32.mxu1 %vm8126_vm9, %v8125_v28  ;;  %v6522_v36 = vld [vmem:[%s9947_s5] sm:$0xff] }
0x5f12   :  { %7530 = vmatprep.subr.mxu1 %v8125_v28  ;;  %7542 = vmatpush3.msra.mxu0 %v6523_v19 }
0x5f13   :  { %7531 = vmatpush3.msra.mxu1 %v7091_v47  ;;  %7543 = vmatprep.subr.mxu0 %v8125_v28 }
0x5f14   :  { %7532 = vmatprep.subr.mxu1 %v8125_v28  ;;  %7544 = vmatpush3.msra.mxu0 %v6522_v36 }
0x5f15   :  { %v3967_v0 = vpop.f32.mrf.mxu1  ;;  %7533 = vmatpush3.msra.mxu1 %v7090_v60 }
0x5f16   :  { %7548 = vmatprep.subr.mxu1 %v8125_v28  ;;  %v3968_v41 = vadd.f32 %v3967_v0, %v9661_v48 }
0x5f17   :  { %v7257_v12 = vpop.f32.mrf.mxu1 }
0x5f1a   :  { %v4130_v43 = vpop.f32.mrf.mxu0 }
0x5f1b   :  { %v4048_v61 = vpop.f32.mrf.mxu1 }
0x5f1c   :  { %v4052_v25 = vadd.f32 %v4048_v61, %v3968_v41  ;;  %v7275_v6 = vpop.f32.mrf.mxu0 }
0x5f1d   :  { %v7266_v44 = vpop.f32.mrf.mxu1 }
0x5f1e   :  { %v4134_v1 = vadd.f32 %v4130_v43, %v4052_v25 }
0x5f21   :  { %v4294_v24 = vpop.f32.mrf.mxu0 }
0x5f23   :  { %v7293_v16 = vpop.f32.mrf.mxu0 }
0x5f24   :  { %v4212_v20 = vpop.f32.mrf.mxu1 }
0x5f25   :  { %v4216_v37 = vadd.f32 %v4212_v20, %v4134_v1 }
0x5f26   :  { %v7284_v29 = vpop.f32.mrf.mxu1 }
0x5f27   :  { %v4298_v33 = vadd.f32 %v4294_v24, %v4216_v37 }
0x5f2a   :  { %v4458_v21 = vpop.f32.mrf.mxu0 }
0x5f2c   :  { %v7311_v17 = vpop.f32.mrf.mxu0 }
0x5f2d   :  { %v4376_v15 = vpop.f32.mrf.mxu1 }
0x5f2e   :  { %v4380_v9 = vadd.f32 %v4376_v15, %v4298_v33 }
0x5f2f   :  { %v7302_v8 = vpop.f32.mrf.mxu1 }
0x5f30   :  { %v4462_v23 = vadd.f32 %v4458_v21, %v4380_v9 }
0x5f33   :  { %v4622_v51 = vpop.f32.mrf.mxu0 }
0x5f35   :  { %v4540_v48 = vpop.f32.mrf.mxu1  ;;  %v7329_v39 = vpop.f32.mrf.mxu0 }
0x5f36   :  { %v4544_v50 = vadd.f32 %v4540_v48, %v4462_v23 }
0x5f37   :  { %v7320_v53 = vpop.f32.mrf.mxu1 }
0x5f38   :  { %v4626_v55 = vadd.f32 %v4622_v51, %v4544_v50 }
0x5f3b   :  { %v4786_v56 = vpop.f32.mrf.mxu0 }
0x5f3d   :  { %v7347_v46 = vpop.f32.mrf.mxu0 }
0x5f3e   :  { %v4704_v10 = vpop.f32.mrf.mxu1 }
0x5f3f   :  { %v4708_v27 = vadd.f32 %v4704_v10, %v4626_v55 }
0x5f40   :  { %v7338_v42 = vpop.f32.mrf.mxu1 }
0x5f41   :  { %v4790_v54 = vadd.f32 %v4786_v56, %v4708_v27 }
0x5f42   :  { %v3804_v31 = vpop.permute.xlu1 %3803 }
0x5f43   :  { %v4950_v26 = vpop.f32.mrf.mxu0  ;;  %3807 = vst.msk [vmem:[#allocation2 + $0x40] sm:$0x3] %vm424_vm10, %v3804_v31 }
0x5f45   :  { %v7365_v49 = vpop.f32.mrf.mxu0 }
0x5f49   :  { %v5114_v35 = vpop.f32.mrf.mxu0 }
0x5f4a   :  { %v6431_v22 = vld [vmem:[#allocation2 + $0x40] sm:$0x3] }
0x5f4b   :  { %v7383_v63 = vpop.f32.mrf.mxu0  ;;  %7535 = vmatmul.mubr.msk.f32.vlgmr.msra.gmra.mxu1 %vm3817_vm11, %v6431_v22  ;;  %v7095_v22 = vld [vmem:[%s9946_s4] ss:$0 sm:$0xff] }
0x5f4c   :  { %7552 = vmatprep.mubr.msk.f32.mxu1 %vm8126_vm9, %v8125_v28  ;;  %7549 = vmatpush3.msra.mxu1 %v6608_v11 }
0x5f4d   :  { %7550 = vmatprep.subr.mxu1 %v8125_v28 }
0x5f4f   :  { %v5278_v52 = vpop.f32.mrf.mxu0 }
0x5f51   :  { %v7401_v7 = vpop.f32.mrf.mxu0 }
0x5f55   :  { %v5442_v5 = vpop.f32.mrf.mxu0 }
0x5f57   :  { %v7419_v18 = vpop.f32.mrf.mxu0 }
0x5f58   :  { %v6607_v18 = vld [vmem:[%s9949_s7] sm:$0xff] }
0x5f59   :  { %7551 = vmatpush3.msra.mxu1 %v6607_v18 }
0x5f5b   :  { %v5606_v34 = vpop.f32.mrf.mxu0 }
0x5f5d   :  { %v7437_v14 = vpop.f32.mrf.mxu0 }
0x5f61   :  { %v5770_v3 = vpop.f32.mrf.mxu0 }
0x5f63   :  { %v7455_v57 = vpop.f32.mrf.mxu0 }
0x5f67   :  { %v5934_v45 = vpop.f32.mrf.mxu0 }
0x5f69   :  { %v7473_v40 = vpop.f32.mrf.mxu0 }
0x5f6d   :  { %v6098_v30 = vpop.f32.mrf.mxu0 }
0x5f6f   :  { %v7491_v4 = vpop.f32.mrf.mxu0 }
0x5f73   :  { %v6262_v32 = vpop.f32.mrf.mxu0 }
0x5f75   :  { %v7509_v2 = vpop.f32.mrf.mxu0 }
0x5f79   :  { %v6426_v62 = vpop.f32.mrf.mxu0 }
0x5f7b   :  { %v7527_v58 = vpop.f32.mrf.mxu0 }
0x5f9a   :  { %v4868_v38 = vpop.f32.mrf.mxu1 }
0x5f9b   :  { %v4872_v47 = vadd.f32 %v4868_v38, %v4790_v54 }
0x5f9c   :  { %v7356_v60 = vpop.f32.mrf.mxu1 }
0x5f9d   :  { %v4954_v0 = vadd.f32 %v4950_v26, %v4872_v47 }
0x5fa0   :  { %v5032_v12 = vpop.f32.mrf.mxu1 }
0x5fa1   :  { %v5036_v41 = vadd.f32 %v5032_v12, %v4954_v0 }
0x5fa2   :  { %v7374_v43 = vpop.f32.mrf.mxu1 }
0x5fa3   :  { %v5118_v61 = vadd.f32 %v5114_v35, %v5036_v41 }
0x5fa6   :  { %v5196_v25 = vpop.f32.mrf.mxu1 }
0x5fa7   :  { %v5200_v6 = vadd.f32 %v5196_v25, %v5118_v61 }
0x5fa8   :  { %v7392_v44 = vpop.f32.mrf.mxu1 }
0x5fa9   :  { %v5282_v1 = vadd.f32 %v5278_v52, %v5200_v6 }
0x5fac   :  { %v5360_v24 = vpop.f32.mrf.mxu1 }
0x5fad   :  { %v5364_v16 = vadd.f32 %v5360_v24, %v5282_v1 }
0x5fae   :  { %v7410_v20 = vpop.f32.mrf.mxu1 }
0x5faf   :  { %v5446_v37 = vadd.f32 %v5442_v5, %v5364_v16 }
0x5fb2   :  { %v5524_v29 = vpop.f32.mrf.mxu1 }
0x5fb3   :  { %v5528_v33 = vadd.f32 %v5524_v29, %v5446_v37 }
0x5fb4   :  { %v7428_v28 = vpop.f32.mrf.mxu1 }
0x5fb5   :  { %v5610_v53 = vadd.f32 %v5606_v34, %v5528_v33  ;;  %v7096_v34 = vld [vmem:[%s9948_s6] ss:$0 sm:$0xff]  ;;  %s8128_s6 = smov [#allocation3]  }
0x5fb6   :  { %s6709_s7 = sshll.u32 %s8128_s6, 4  ;;  %s6710_s7 = int_to_ptr.vmem [resolvable:$true] %s6709_s7 }
0x5fb7   :  { %p8102_p1 = scmp.lt.s32.totalorder %s6710_s7, %s6710_s7 }
0x5fb8   :  { %v5688_v21 = vpop.f32.mrf.mxu1 }
0x5fb9   :  { %v5692_v55 = vadd.f32 %v5688_v21, %v5610_v53 }
0x5fba   :  { %v7446_v17 = vpop.f32.mrf.mxu1 }
0x5fbb   :  { %v5774_v56 = vadd.f32 %v5770_v3, %v5692_v55 }
0x5fbe   :  { %v5852_v15 = vpop.f32.mrf.mxu1 }
0x5fbf   :  { %v5856_v46 = vadd.f32 %v5852_v15, %v5774_v56 }
0x5fc0   :  { %v7464_v9 = vpop.f32.mrf.mxu1 }
0x5fc1   :  { %v5938_v10 = vadd.f32 %v5934_v45, %v5856_v46  ;;  %v7098_v45 = vld [vmem:[%s9950_s8] ss:$0 sm:$0xff]  ;;  %s8097_s8 = scalar_lea.vmem %s6710_s7, 32 }
0x5fc2   :  { %p8098_p0 = scmp.ne.s32.totalorder %s6710_s7, %s8097_s8  ;;  %p8103_p2 = scmp.lt.s32.totalorder %s8097_s8, %s8097_s8 }
0x5fc4   :  { %v6016_v8 = vpop.f32.mrf.mxu1  ;;  %p8104_p3 = por %p8103_p2, %p8102_p1 }
0x5fc5   :  { %v6020_v27 = vadd.f32 %v6016_v8, %v5938_v10 }
0x5fc6   :  { %v7482_v23 = vpop.f32.mrf.mxu1  ;;  %p8105_p4 = pnand %p8104_p3, %p8098_p0 }
0x5fc7   :  { %v6102_v42 = vadd.f32 %v6098_v30, %v6020_v27 }
0x5fca   :  { %v6180_v51 = vpop.f32.mrf.mxu1 }
0x5fcb   :  { %v6184_v54 = vadd.f32 %v6180_v51, %v6102_v42 }
0x5fcc   :  { %v7500_v48 = vpop.f32.mrf.mxu1 }
0x5fcd   :  { %v6266_v31 = vadd.f32 %v6262_v32, %v6184_v54 }
0x5fd0   :  { %v6344_v39 = vpop.f32.mrf.mxu1 }
0x5fd1   :  { %v6348_v26 = vadd.f32 %v6344_v39, %v6266_v31 }
0x5fd2   :  { %v7518_v50 = vpop.f32.mrf.mxu1 }
0x5fd3   :  { %v6430_v49 = vadd.f32 %v6426_v62, %v6348_v26 }
0x600b   :  { %v6508_v35 = vpop.f32.mrf.mxu1 }
0x600c   :  { %v6512_v63 = vadd.f32 %v6508_v35, %v6430_v49 }
0x600d   :  { %v7536_v52 = vpop.f32.mrf.mxu1 }
0x600e   :  { %v6520_v7 = vadd.f32 %v7095_v22, %v6512_v63 }
0x6010   :  { %v6521_v5 = vmax.f32 %v6520_v7, 0.0 }
0x6012   :  { %7546 = vmatmul.mubr.msk.f32.vlgmr.msra.gmra.mxu0 %vm6533_vm12, %v6521_v5 }
0x60d2   :  { %v6603_v14 = vpop.f32.mrf.mxu0 }
0x60d3   :  { %v6604_v3 = vadd.f32 %v7096_v34, %v6603_v14 }
0x60d4   :  { %v7547_v57 = vpop.f32.mrf.mxu0 }
0x60d5   :  { %7553 = vmatmul.mubr.msk.f32.vlgmr.msra.gmra.mxu1 %vm6616_vm13, %v6604_v3 }
0x6195   :  { %v6686_v40 = vpop.f32.mrf.mxu1 }
0x6196   :  { %v6687_v30 = vadd.f32 %v7098_v45, %v6686_v40 }
0x6197   :  { %v7554_v4 = vpop.f32.mrf.mxu1 }
0x6198   :  { %v6691_v32 = vsel %vm6690_vm14, %v6687_v30, -inf }
0x6199   :  { %6692 = vmax.xlane.f32.xlu0 %v6691_v32 }
0x6222   :  { %v6693_v2 = vpop.xlane.xlu0 %6692 }
0x6223   :  { %v6694_v62 = vsub.f32 %v6687_v30, %v6693_v2 }
0x6225   :  { %v6695_v58 = vmul.f32 1.442695, %v6694_v62 }
0x6227   :  { %8072 = vpow2.f32 %v6695_v58 }
0x6234   :  { %v8073_v59 = vpop.eup %8072 }
0x6235   :  { %v6697_v13 = vsel %vm6690_vm14, %v8073_v59, 0.0 }
0x6236   :  { %6698 = vadd.xlane.f32.xlu1 %v6697_v13 }
0x62bf   :  { %v6699_v19 = vpop.xlane.xlu1 %6698 }
0x62c0   :  { %8074 = vrcp.f32 %v6699_v19 }
0x62cd   :  { %v8075_v11 = vpop.eup %8074 }
0x62ce   :  { %v6701_v36 = vmul.f32 %v8075_v11, %v8073_v59 }
0x62d0   :  { %6702 = vst.msk [vmem:[#allocation3] sm:$0x3] %vm6690_vm14, %v6701_v36 }
0x62d1   :  { %8108 = shalt.err (!%p8105_p4)
}
0x62d2   :  { %6712 = dma.vmem_to_hbm [thread:$0]  %s6710_s7, 32, %s9951_s9, [#allocation4]  }
0x62d3   :  { %8117 = dma.done.wait [#allocation4], 32  }
0x62d4   :  { %8118 = vsyncadd [#allocation4], 4294967264 }
0x62d5   :  { %6716 = vsyncpa [#allocation4], 1 }

</bundles_post_ra>
